<compile_context>
chip_gen: v6e
topology: v6e:2x2x1
jax: 0.10.0
libtpu: 0.0.40
codegen_flags: <defaults>
</compile_context>

<pallas_src>
import jax
import jax.numpy as jnp
from jax import lax
from jax.experimental import pallas as pl
from jax.experimental.pallas import tpu as pltpu

# ----------------------------- model config (small) -------------------------
BATCH       = 2
BLOCK_SIZE  = 128             # T (sequence length)
EMBD        = 128             # E
NUM_HEADS   = 4               # head_dim = 32
N_LAYERS    = 2
VOCAB       = 65
VOCAB_PAD   = 128             # lane-dense LM-head output width
HIDDEN      = 4 * EMBD        # 512
FF_CHUNK    = 128             # FFN hidden-dim tile
N_FF_CHUNKS = HIDDEN // FF_CHUNK
HEAD_DIM    = EMBD // NUM_HEADS
LN_EPS      = 1e-5


def _layernorm(x, gamma, beta):
    mu = jnp.mean(x, axis=-1, keepdims=True)
    var = jnp.mean((x - mu) ** 2, axis=-1, keepdims=True)
    return (x - mu) * lax.rsqrt(var + LN_EPS) * gamma + beta


def _bf16(x):
    return x.astype(jnp.bfloat16)


# ----------------------------- fused full-model kernel ----------------------
def transformer_kernel(x_ref, mask_ref,
                       wqkv_ref, wp_ref, w1_ref, w2_ref, b1_ref,
                       vec_ref, lnf_ref, wlm_ref, blm_ref,
                       o_ref):
    """Whole transformer stack for one batch element.

    x_ref    (1, T, E) f32       activations
    mask_ref (T, T)    f32       additive causal mask (0 / -1e30)
    wqkv_ref (3L, E, E) bf16     [wq(scaled), wk, wv] per layer
    wp_ref   (L, E, E)  bf16
    w1_ref   (L*NC, E, FC) bf16  FFN up-proj, hidden dim pre-chunked
    w2_ref   (L*NC, FC, E) bf16  FFN down-proj, hidden dim pre-chunked
    b1_ref   (L*NC, 1, FC) f32
    vec_ref  (L, 6, E) f32       rows = [ln1_w, ln1_b, bp, ln2_w, ln2_b, b2]
    lnf_ref  (2, E) f32, wlm_ref (E, Vp) bf16, blm_ref (1, Vp) f32
    o_ref    (1, T, Vp) f32      padded logits
    """
    x = x_ref[0]                                   # (T, E) f32 residual stream
    T, E = x.shape
    hd = HEAD_DIM

    for l in range(N_LAYERS):                      # static unroll (N_LAYERS=2)
        vecs = vec_ref[l]                          # (6, E) f32
        ln1_w, ln1_b = vecs[0:1], vecs[1:2]
        bp           = vecs[2:3]
        ln2_w, ln2_b = vecs[3:4], vecs[4:5]
        b2           = vecs[5:6]

        # --- causal multi-head attention ---
        xn = _bf16(_layernorm(x, ln1_w, ln1_b))
        # 1/sqrt(head_dim) is folded into the Q weights at init time.
        q = _bf16(jnp.dot(xn, wqkv_ref[3 * l + 0],
                          preferred_element_type=jnp.float32))
        k = _bf16(jnp.dot(xn, wqkv_ref[3 * l + 1],
                          preferred_element_type=jnp.float32))
        v = _bf16(jnp.dot(xn, wqkv_ref[3 * l + 2],
                          preferred_element_type=jnp.float32))

        heads = []
        for h in range(NUM_HEADS):                 # static unroll (4 heads)
            sl = slice(h * hd, (h + 1) * hd)
            s = lax.dot_general(q[:, sl], k[:, sl],
                                (((1,), (1,)), ((), ())),
                                preferred_element_type=jnp.float32)
            s = s + mask_ref[...]                  # causal mask from VMEM
            s = s - jnp.max(s, axis=-1, keepdims=True)
            p = jnp.exp(s)
            p = p * (1.0 / jnp.sum(p, axis=-1, keepdims=True))
            heads.append(_bf16(jnp.dot(_bf16(p), v[:, sl],
                                       preferred_element_type=jnp.float32)))
        # one dense output projection (full K=128) instead of 4 skinny matmuls
        attn = jnp.dot(jnp.concatenate(heads, axis=-1), wp_ref[l],
                       preferred_element_type=jnp.float32)
        x = x + attn + bp                          # residual 1 (+ proj bias)

        # --- feed-forward, hidden dim tiled in FF_CHUNK-wide slices ---
        xn2 = _bf16(_layernorm(x, ln2_w, ln2_b))
        ff = None
        for c in range(N_FF_CHUNKS):               # static unroll (4 chunks)
            idx_c = l * N_FF_CHUNKS + c
            h1 = jnp.dot(xn2, w1_ref[idx_c],
                         preferred_element_type=jnp.float32)
            h1 = jnp.maximum(h1 + b1_ref[idx_c], 0.0)   # bias + ReLU
            part = jnp.dot(_bf16(h1), w2_ref[idx_c],
                           preferred_element_type=jnp.float32)
            ff = part if ff is None else ff + part
        x = x + ff + b2                            # residual 2 (+ down bias)

    # --- final LayerNorm + LM head (lane-dense, padded to VOCAB_PAD) ---
    lnf = lnf_ref[...]                             # (2, E)
    xf = _bf16(_layernorm(x, lnf[0:1], lnf[1:2]))
    o_ref[0] = jnp.dot(xf, wlm_ref[...],
                       preferred_element_type=jnp.float32) + blm_ref[...]


# ----------------------------- wrapper ---------------------------------------
def _const_spec(shape):
    if len(shape) == 2:
        return pl.BlockSpec(shape, lambda b: (0, 0))
    return pl.BlockSpec(shape, lambda b: (0, 0, 0))


@jax.jit
def transformer_forward(idx, params):
    """Equivalent of TransformerModel.forward(idx, targets=None) -> logits."""
    B, T = idx.shape
    E, L, Vp = EMBD, N_LAYERS, VOCAB_PAD
    # embedding gathers are glue (plain JAX)
    x = params["tok_table"][idx] + params["pos_table"][:T][None]   # (B,T,E) f32
    neg_mask = jnp.where(jnp.tril(jnp.ones((T, T), jnp.bool_)),
                         0.0, -1e30).astype(jnp.float32)

    out = pl.pallas_call(
        transformer_kernel,
        out_shape=jax.ShapeDtypeStruct((B, T, Vp), jnp.float32),
        grid=(B,),
        in_specs=[
            pl.BlockSpec((1, T, E), lambda b: (b, 0, 0)),       # activations
            _const_spec((T, T)),                                # causal mask
            _const_spec((3 * L, E, E)),                         # wq/wk/wv
            _const_spec((L, E, E)),                             # wp
            _const_spec((L * N_FF_CHUNKS, E, FF_CHUNK)),        # w1 (chunked)
            _const_spec((L * N_FF_CHUNKS, FF_CHUNK, E)),        # w2 (chunked)
            _const_spec((L * N_FF_CHUNKS, 1, FF_CHUNK)),        # b1 (chunked)
            _const_spec((L, 6, E)),                             # packed LN/bias
            _const_spec((2, E)),                                # ln_f
            _const_spec((E, Vp)),                               # w_lm (padded)
            _const_spec((1, Vp)),                               # b_lm (padded)
        ],
        out_specs=pl.BlockSpec((1, T, Vp), lambda b: (b, 0, 0)),
        compiler_params=pltpu.CompilerParams(
            dimension_semantics=("parallel",)),
    )(x, neg_mask, params["wqkv"], params["wp"], params["w1"], params["w2"],
      params["b1"], params["vec"], params["lnf"], params["w_lm"], params["b_lm"])
    return out[..., :VOCAB]                                     # drop lane padding


# ----------------------------- pure-JAX reference ----------------------------
def _ref_forward(idx, params):
    """Reference with matching matmul precision (bf16 operands, f32 accumulate).

    Uses the same pre-folded Q scale as the kernel (math-equivalent to the
    PyTorch q@k^T * head_dim**-0.5).
    """
    bf = lambda a: a.astype(jnp.bfloat16)
    B, T = idx.shape
    E, hd = EMBD, HEAD_DIM
    x = params["tok_table"][idx] + params["pos_table"][:T][None]
    neg_mask = jnp.where(jnp.tril(jnp.ones((T, T), bool)), 0.0, -1e30)
    for l in range(N_LAYERS):
        vecs = params["vec"][l]
        ln1_w, ln1_b, bp, ln2_w, ln2_b, b2 = (vecs[i] for i in range(6))
        xn = bf(_layernorm(x, ln1_w, ln1_b))
        q = bf(jnp.einsum("bte,ef->btf", xn, params["wqkv"][3 * l + 0],
                          preferred_element_type=jnp.float32))
        k = bf(jnp.einsum("bte,ef->btf", xn, params["wqkv"][3 * l + 1],
                          preferred_element_type=jnp.float32))
        v = bf(jnp.einsum("bte,ef->btf", xn, params["wqkv"][3 * l + 2],
                          preferred_element_type=jnp.float32))
        qh = q.reshape(B, T, NUM_HEADS, hd).transpose(0, 2, 1, 3)
        kh = k.reshape(B, T, NUM_HEADS, hd).transpose(0, 2, 1, 3)
        vh = v.reshape(B, T, NUM_HEADS, hd).transpose(0, 2, 1, 3)
        s = jnp.einsum("bhqd,bhkd->bhqk", qh, kh,
                       preferred_element_type=jnp.float32) + neg_mask
        p = jax.nn.softmax(s, axis=-1)
        o = jnp.einsum("bhqk,bhkd->bhqd", bf(p), vh,
                       preferred_element_type=jnp.float32)
        o = bf(o.transpose(0, 2, 1, 3).reshape(B, T, E))
        x = x + jnp.einsum("bte,ef->btf", o, params["wp"][l],
                           preferred_element_type=jnp.float32) + bp
        xn2 = bf(_layernorm(x, ln2_w, ln2_b))
        w1_l = jnp.concatenate([params["w1"][l * N_FF_CHUNKS + c]
                                for c in range(N_FF_CHUNKS)], axis=-1)
        w2_l = jnp.concatenate([params["w2"][l * N_FF_CHUNKS + c]
                                for c in range(N_FF_CHUNKS)], axis=0)
        b1_l = jnp.concatenate([params["b1"][l * N_FF_CHUNKS + c]
                                for c in range(N_FF_CHUNKS)], axis=-1)
        h1 = jnp.maximum(jnp.einsum("bte,ef->btf", xn2, w1_l,
                                    preferred_element_type=jnp.float32) + b1_l, 0.0)
        x = x + jnp.einsum("btf,fe->bte", bf(h1), w2_l,
                           preferred_element_type=jnp.float32) + b2
    xf = bf(_layernorm(x, params["lnf"][0], params["lnf"][1]))
    logits = jnp.einsum("bte,ev->btv", xf, params["w_lm"],
                        preferred_element_type=jnp.float32) + params["b_lm"][0]
    return logits[..., :VOCAB]


# ----------------------------- parameter init --------------------------------
def init_params(key):
    def nrm(k, shape, dtype, scale=0.02):
        return (scale * jax.random.normal(k, shape, jnp.float32)).astype(dtype)

    keys = jax.random.split(key, 6 + N_LAYERS)
    qscale = float(HEAD_DIM) ** -0.5
    wqkv, wp, w1, w2, b1, vec = [], [], [], [], [], []
    for l in range(N_LAYERS):
        ks = jax.random.split(keys[6 + l], 13)
        # fold 1/sqrt(head_dim) into the Q weight (runtime-free scaling)
        wq = nrm(ks[0], (EMBD, EMBD), jnp.float32) * qscale
        wqkv += [wq.astype(jnp.bfloat16),
                 nrm(ks[1], (EMBD, EMBD), jnp.bfloat16),
                 nrm(ks[2], (EMBD, EMBD), jnp.bfloat16)]
        wp.append(nrm(ks[3], (EMBD, EMBD), jnp.bfloat16))
        w1_full = nrm(ks[4], (EMBD, HIDDEN), jnp.bfloat16)
        w2_full = nrm(ks[5], (HIDDEN, EMBD), jnp.bfloat16)
        b1_full = nrm(ks[12], (1, HIDDEN), jnp.float32)
        for c in range(N_FF_CHUNKS):
            sl = slice(c * FF_CHUNK, (c + 1) * FF_CHUNK)
            w1.append(w1_full[:, sl])
            w2.append(w2_full[sl, :])
            b1.append(b1_full[:, sl])
        ln1_w = 1.0 + nrm(ks[6], (EMBD,), jnp.float32)
        ln1_b = nrm(ks[7], (EMBD,), jnp.float32)
        bp_   = nrm(ks[8], (EMBD,), jnp.float32)
        ln2_w = 1.0 + nrm(ks[9], (EMBD,), jnp.float32)
        ln2_b = nrm(ks[10], (EMBD,), jnp.float32)
        b2_   = nrm(ks[11], (EMBD,), jnp.float32)
        vec.append(jnp.stack([ln1_w, ln1_b, bp_, ln2_w, ln2_b, b2_]))  # (6, E)

    w_lm = jnp.zeros((EMBD, VOCAB_PAD), jnp.bfloat16)
    w_lm = w_lm.at[:, :VOCAB].set(nrm(keys[2], (EMBD, VOCAB), jnp.bfloat16))
    b_lm = jnp.zeros((1, VOCAB_PAD), jnp.float32)
    b_lm = b_lm.at[:, :VOCAB].set(nrm(keys[5], (1, VOCAB), jnp.float32))
    lnf = jnp.stack([1.0 + nrm(keys[3], (EMBD,), jnp.float32),
                     nrm(keys[4], (EMBD,), jnp.float32)])              # (2, E)

    return {
        "tok_table": nrm(keys[0], (VOCAB, EMBD), jnp.float32),
        "pos_table": nrm(keys[1], (BLOCK_SIZE, EMBD), jnp.float32),
        "wqkv": jnp.stack(wqkv), "wp": jnp.stack(wp),
        "w1": jnp.stack(w1), "w2": jnp.stack(w2), "b1": jnp.stack(b1),
        "vec": jnp.stack(vec), "lnf": lnf, "w_lm": w_lm, "b_lm": b_lm,
    }


# ----------------------------- main ------------------------------------------
if __name__ == "__main__":
    key = jax.random.PRNGKey(0)
    k_param, k_idx = jax.random.split(key)
    params = init_params(k_param)
    idx = jax.random.randint(k_idx, (BATCH, BLOCK_SIZE), 0, VOCAB, dtype=jnp.int32)

    logits = transformer_forward(idx, params)
    jax.block_until_ready(logits)
    assert logits.shape == (BATCH, BLOCK_SIZE, VOCAB), logits.shape

    ref = _ref_forward(idx, params)
    max_err = float(jnp.max(jnp.abs(logits - ref)))
    if not jnp.allclose(logits, ref, atol=2e-2, rtol=2e-2):
        raise AssertionError(f"Pallas output mismatch vs reference (max abs err {max_err})")

    print("KERNEL_OK")
</pallas_src>

<mosaic_0001>
module attributes {stable_mosaic.version = 11 : i64} {
  func.func @transformer_kernel(%arg0: i32, %arg1: memref<1x128x128xf32, #tpu.memory_space<vmem>>, %arg2: memref<128x128xf32, #tpu.memory_space<vmem>>, %arg3: memref<6x128x128xbf16, #tpu.memory_space<vmem>>, %arg4: memref<2x128x128xbf16, #tpu.memory_space<vmem>>, %arg5: memref<8x128x128xbf16, #tpu.memory_space<vmem>>, %arg6: memref<8x128x128xbf16, #tpu.memory_space<vmem>>, %arg7: memref<8x1x128xf32, #tpu.memory_space<vmem>>, %arg8: memref<2x6x128xf32, #tpu.memory_space<vmem>>, %arg9: memref<2x128xf32, #tpu.memory_space<vmem>>, %arg10: memref<128x128xbf16, #tpu.memory_space<vmem>>, %arg11: memref<1x128xf32, #tpu.memory_space<vmem>>, %arg12: memref<1x128x128xf32, #tpu.memory_space<vmem>>) attributes {dimension_semantics = [#tpu.dimension_semantics<parallel>], iteration_bounds = array<i64: 2>, scalar_prefetch = 0 : i64, scratch_operands = 0 : i64, tpu.core_type = #tpu.core_type<tc>, window_params = [{transform_indices = @transform_0, window_bounds = array<i64: 1, 128, 128>}, {pipeline_mode = #tpu.pipeline_mode<synchronous>, transform_indices = @transform_1, window_bounds = array<i64: 128, 128>}, {pipeline_mode = #tpu.pipeline_mode<synchronous>, transform_indices = @transform_2, window_bounds = array<i64: 6, 128, 128>}, {pipeline_mode = #tpu.pipeline_mode<synchronous>, transform_indices = @transform_3, window_bounds = array<i64: 2, 128, 128>}, {pipeline_mode = #tpu.pipeline_mode<synchronous>, transform_indices = @transform_4, window_bounds = array<i64: 8, 128, 128>}, {pipeline_mode = #tpu.pipeline_mode<synchronous>, transform_indices = @transform_5, window_bounds = array<i64: 8, 128, 128>}, {pipeline_mode = #tpu.pipeline_mode<synchronous>, transform_indices = @transform_6, window_bounds = array<i64: 8, 1, 128>}, {pipeline_mode = #tpu.pipeline_mode<synchronous>, transform_indices = @transform_7, window_bounds = array<i64: 2, 6, 128>}, {pipeline_mode = #tpu.pipeline_mode<synchronous>, transform_indices = @transform_8, window_bounds = array<i64: 2, 128>}, {pipeline_mode = #tpu.pipeline_mode<synchronous>, transform_indices = @transform_9, window_bounds = array<i64: 128, 128>}, {pipeline_mode = #tpu.pipeline_mode<synchronous>, transform_indices = @transform_10, window_bounds = array<i64: 1, 128>}, {transform_indices = @transform_11, window_bounds = array<i64: 1, 128, 128>}]} {
    %c0 = arith.constant 0 : index
    %c0_0 = arith.constant 0 : index
    %c0_1 = arith.constant 0 : index
    %0 = vector.load %arg1[%c0, %c0_0, %c0_1] : memref<1x128x128xf32, #tpu.memory_space<vmem>>, vector<1x128x128xf32>
    %1 = vector.shape_cast %0 : vector<1x128x128xf32> to vector<128x128xf32>
    %c0_2 = arith.constant 0 : index
    %c0_3 = arith.constant 0 : index
    %c0_4 = arith.constant 0 : index
    %2 = vector.load %arg8[%c0_2, %c0_3, %c0_4] : memref<2x6x128xf32, #tpu.memory_space<vmem>>, vector<1x6x128xf32>
    %3 = vector.shape_cast %2 : vector<1x6x128xf32> to vector<6x128xf32>
    %4 = vector.extract_strided_slice %3 {offsets = [0, 0], sizes = [1, 128], strides = [1, 1]} : vector<6x128xf32> to vector<1x128xf32>
    %5 = vector.extract_strided_slice %3 {offsets = [1, 0], sizes = [1, 128], strides = [1, 1]} : vector<6x128xf32> to vector<1x128xf32>
    %6 = vector.extract_strided_slice %3 {offsets = [2, 0], sizes = [1, 128], strides = [1, 1]} : vector<6x128xf32> to vector<1x128xf32>
    %7 = vector.extract_strided_slice %3 {offsets = [3, 0], sizes = [1, 128], strides = [1, 1]} : vector<6x128xf32> to vector<1x128xf32>
    %8 = vector.extract_strided_slice %3 {offsets = [4, 0], sizes = [1, 128], strides = [1, 1]} : vector<6x128xf32> to vector<1x128xf32>
    %9 = vector.extract_strided_slice %3 {offsets = [5, 0], sizes = [1, 128], strides = [1, 1]} : vector<6x128xf32> to vector<1x128xf32>
    %cst = arith.constant dense<0.000000e+00> : vector<128xf32>
    %10 = vector.multi_reduction <add>, %1, %cst [1] : vector<128x128xf32> to vector<128xf32>
    %11 = vector.shape_cast %10 : vector<128xf32> to vector<128x1xf32>
    %cst_5 = arith.constant 1.280000e+02 : f32
    %12 = vector.broadcast %cst_5 : f32 to vector<128x1xf32>
    %13 = arith.divf %11, %12 : vector<128x1xf32>
    %14 = vector.broadcast %13 : vector<128x1xf32> to vector<128x128xf32>
    %15 = arith.subf %1, %14 : vector<128x128xf32>
    %16 = arith.mulf %15, %15 : vector<128x128xf32>
    %cst_6 = arith.constant dense<0.000000e+00> : vector<128xf32>
    %17 = vector.multi_reduction <add>, %16, %cst_6 [1] : vector<128x128xf32> to vector<128xf32>
    %18 = vector.shape_cast %17 : vector<128xf32> to vector<128x1xf32>
    %cst_7 = arith.constant 1.280000e+02 : f32
    %19 = vector.broadcast %cst_7 : f32 to vector<128x1xf32>
    %20 = arith.divf %18, %19 : vector<128x1xf32>
    %21 = vector.broadcast %13 : vector<128x1xf32> to vector<128x128xf32>
    %22 = arith.subf %1, %21 : vector<128x128xf32>
    %cst_8 = arith.constant 9.99999974E-6 : f32
    %23 = vector.broadcast %cst_8 : f32 to vector<128x1xf32>
    %24 = arith.addf %20, %23 : vector<128x1xf32>
    %25 = math.rsqrt %24 : vector<128x1xf32>
    %26 = vector.broadcast %25 : vector<128x1xf32> to vector<128x128xf32>
    %27 = arith.mulf %22, %26 : vector<128x128xf32>
    %28 = vector.broadcast %4 : vector<1x128xf32> to vector<128x128xf32>
    %29 = arith.mulf %27, %28 : vector<128x128xf32>
    %30 = vector.broadcast %5 : vector<1x128xf32> to vector<128x128xf32>
    %31 = arith.addf %29, %30 : vector<128x128xf32>
    %32 = arith.truncf %31 : vector<128x128xf32> to vector<128x128xbf16>
    %c0_9 = arith.constant 0 : index
    %c0_10 = arith.constant 0 : index
    %c0_11 = arith.constant 0 : index
    %33 = vector.load %arg3[%c0_9, %c0_10, %c0_11] : memref<6x128x128xbf16, #tpu.memory_space<vmem>>, vector<1x128x128xbf16>
    %34 = vector.shape_cast %33 : vector<1x128x128xbf16> to vector<128x128xbf16>
    %cst_12 = arith.constant dense<0.000000e+00> : vector<128x128xf32>
    %35 = tpu.matmul %32, %34, %cst_12 {dimension_numbers = #tpu.dot_dimension_numbers<[1], [0], [0], [1], [0, 0, 1, 1], [], []>} : vector<128x128xbf16>, vector<128x128xbf16>, vector<128x128xf32> -> vector<128x128xf32>
    %36 = arith.truncf %35 : vector<128x128xf32> to vector<128x128xbf16>
    %c1 = arith.constant 1 : index
    %c0_13 = arith.constant 0 : index
    %c0_14 = arith.constant 0 : index
    %37 = vector.load %arg3[%c1, %c0_13, %c0_14] : memref<6x128x128xbf16, #tpu.memory_space<vmem>>, vector<1x128x128xbf16>
    %38 = vector.shape_cast %37 : vector<1x128x128xbf16> to vector<128x128xbf16>
    %cst_15 = arith.constant dense<0.000000e+00> : vector<128x128xf32>
    %39 = tpu.matmul %32, %38, %cst_15 {dimension_numbers = #tpu.dot_dimension_numbers<[1], [0], [0], [1], [0, 0, 1, 1], [], []>} : vector<128x128xbf16>, vector<128x128xbf16>, vector<128x128xf32> -> vector<128x128xf32>
    %40 = arith.truncf %39 : vector<128x128xf32> to vector<128x128xbf16>
    %c2 = arith.constant 2 : index
    %c0_16 = arith.constant 0 : index
    %c0_17 = arith.constant 0 : index
    %41 = vector.load %arg3[%c2, %c0_16, %c0_17] : memref<6x128x128xbf16, #tpu.memory_space<vmem>>, vector<1x128x128xbf16>
    %42 = vector.shape_cast %41 : vector<1x128x128xbf16> to vector<128x128xbf16>
    %cst_18 = arith.constant dense<0.000000e+00> : vector<128x128xf32>
    %43 = tpu.matmul %32, %42, %cst_18 {dimension_numbers = #tpu.dot_dimension_numbers<[1], [0], [0], [1], [0, 0, 1, 1], [], []>} : vector<128x128xbf16>, vector<128x128xbf16>, vector<128x128xf32> -> vector<128x128xf32>
    %44 = arith.truncf %43 : vector<128x128xf32> to vector<128x128xbf16>
    %45 = vector.extract_strided_slice %36 {offsets = [0, 0], sizes = [128, 32], strides = [1, 1]} : vector<128x128xbf16> to vector<128x32xbf16>
    %46 = vector.extract_strided_slice %40 {offsets = [0, 0], sizes = [128, 32], strides = [1, 1]} : vector<128x128xbf16> to vector<128x32xbf16>
    %cst_19 = arith.constant dense<0.000000e+00> : vector<128x128xf32>
    %47 = tpu.matmul %45, %46, %cst_19 {dimension_numbers = #tpu.dot_dimension_numbers<[1], [1], [0], [0], [0, 0, 1, 0], [], []>} : vector<128x32xbf16>, vector<128x32xbf16>, vector<128x128xf32> -> vector<128x128xf32>
    %c0_20 = arith.constant 0 : index
    %c0_21 = arith.constant 0 : index
    %48 = vector.load %arg2[%c0_20, %c0_21] : memref<128x128xf32, #tpu.memory_space<vmem>>, vector<128x128xf32>
    %49 = arith.addf %47, %48 : vector<128x128xf32>
    %cst_22 = arith.constant dense<0xFF800000> : vector<128xf32>
    %50 = vector.multi_reduction <maximumf>, %49, %cst_22 [1] : vector<128x128xf32> to vector<128xf32>
    %51 = vector.shape_cast %50 : vector<128xf32> to vector<128x1xf32>
    %52 = vector.broadcast %51 : vector<128x1xf32> to vector<128x128xf32>
    %53 = arith.subf %49, %52 : vector<128x128xf32>
    %54 = math.exp %53 : vector<128x128xf32>
    %cst_23 = arith.constant dense<0.000000e+00> : vector<128xf32>
    %55 = vector.multi_reduction <add>, %54, %cst_23 [1] : vector<128x128xf32> to vector<128xf32>
    %56 = vector.shape_cast %55 : vector<128xf32> to vector<128x1xf32>
    %cst_24 = arith.constant 1.000000e+00 : f32
    %57 = vector.broadcast %cst_24 : f32 to vector<128x1xf32>
    %58 = arith.divf %57, %56 : vector<128x1xf32>
    %59 = vector.broadcast %58 : vector<128x1xf32> to vector<128x128xf32>
    %60 = arith.mulf %54, %59 : vector<128x128xf32>
    %61 = arith.truncf %60 : vector<128x128xf32> to vector<128x128xbf16>
    %62 = vector.extract_strided_slice %44 {offsets = [0, 0], sizes = [128, 32], strides = [1, 1]} : vector<128x128xbf16> to vector<128x32xbf16>
    %cst_25 = arith.constant dense<0.000000e+00> : vector<128x32xf32>
    %63 = tpu.matmul %61, %62, %cst_25 {dimension_numbers = #tpu.dot_dimension_numbers<[1], [0], [0], [1], [0, 0, 1, 1], [], []>} : vector<128x128xbf16>, vector<128x32xbf16>, vector<128x32xf32> -> vector<128x32xf32>
    %64 = arith.truncf %63 : vector<128x32xf32> to vector<128x32xbf16>
    %65 = vector.extract_strided_slice %36 {offsets = [0, 32], sizes = [128, 32], strides = [1, 1]} : vector<128x128xbf16> to vector<128x32xbf16>
    %66 = vector.extract_strided_slice %40 {offsets = [0, 32], sizes = [128, 32], strides = [1, 1]} : vector<128x128xbf16> to vector<128x32xbf16>
    %cst_26 = arith.constant dense<0.000000e+00> : vector<128x128xf32>
    %67 = tpu.matmul %65, %66, %cst_26 {dimension_numbers = #tpu.dot_dimension_numbers<[1], [1], [0], [0], [0, 0, 1, 0], [], []>} : vector<128x32xbf16>, vector<128x32xbf16>, vector<128x128xf32> -> vector<128x128xf32>
    %c0_27 = arith.constant 0 : index
    %c0_28 = arith.constant 0 : index
    %68 = vector.load %arg2[%c0_27, %c0_28] : memref<128x128xf32, #tpu.memory_space<vmem>>, vector<128x128xf32>
    %69 = arith.addf %67, %68 : vector<128x128xf32>
    %cst_29 = arith.constant dense<0xFF800000> : vector<128xf32>
    %70 = vector.multi_reduction <maximumf>, %69, %cst_29 [1] : vector<128x128xf32> to vector<128xf32>
    %71 = vector.shape_cast %70 : vector<128xf32> to vector<128x1xf32>
    %72 = vector.broadcast %71 : vector<128x1xf32> to vector<128x128xf32>
    %73 = arith.subf %69, %72 : vector<128x128xf32>
    %74 = math.exp %73 : vector<128x128xf32>
    %cst_30 = arith.constant dense<0.000000e+00> : vector<128xf32>
    %75 = vector.multi_reduction <add>, %74, %cst_30 [1] : vector<128x128xf32> to vector<128xf32>
    %76 = vector.shape_cast %75 : vector<128xf32> to vector<128x1xf32>
    %cst_31 = arith.constant 1.000000e+00 : f32
    %77 = vector.broadcast %cst_31 : f32 to vector<128x1xf32>
    %78 = arith.divf %77, %76 : vector<128x1xf32>
    %79 = vector.broadcast %78 : vector<128x1xf32> to vector<128x128xf32>
    %80 = arith.mulf %74, %79 : vector<128x128xf32>
    %81 = arith.truncf %80 : vector<128x128xf32> to vector<128x128xbf16>
    %82 = vector.extract_strided_slice %44 {offsets = [0, 32], sizes = [128, 32], strides = [1, 1]} : vector<128x128xbf16> to vector<128x32xbf16>
    %cst_32 = arith.constant dense<0.000000e+00> : vector<128x32xf32>
    %83 = tpu.matmul %81, %82, %cst_32 {dimension_numbers = #tpu.dot_dimension_numbers<[1], [0], [0], [1], [0, 0, 1, 1], [], []>} : vector<128x128xbf16>, vector<128x32xbf16>, vector<128x32xf32> -> vector<128x32xf32>
    %84 = arith.truncf %83 : vector<128x32xf32> to vector<128x32xbf16>
    %85 = vector.extract_strided_slice %36 {offsets = [0, 64], sizes = [128, 32], strides = [1, 1]} : vector<128x128xbf16> to vector<128x32xbf16>
    %86 = vector.extract_strided_slice %40 {offsets = [0, 64], sizes = [128, 32], strides = [1, 1]} : vector<128x128xbf16> to vector<128x32xbf16>
    %cst_33 = arith.constant dense<0.000000e+00> : vector<128x128xf32>
    %87 = tpu.matmul %85, %86, %cst_33 {dimension_numbers = #tpu.dot_dimension_numbers<[1], [1], [0], [0], [0, 0, 1, 0], [], []>} : vector<128x32xbf16>, vector<128x32xbf16>, vector<128x128xf32> -> vector<128x128xf32>
    %c0_34 = arith.constant 0 : index
    %c0_35 = arith.constant 0 : index
    %88 = vector.load %arg2[%c0_34, %c0_35] : memref<128x128xf32, #tpu.memory_space<vmem>>, vector<128x128xf32>
    %89 = arith.addf %87, %88 : vector<128x128xf32>
    %cst_36 = arith.constant dense<0xFF800000> : vector<128xf32>
    %90 = vector.multi_reduction <maximumf>, %89, %cst_36 [1] : vector<128x128xf32> to vector<128xf32>
    %91 = vector.shape_cast %90 : vector<128xf32> to vector<128x1xf32>
    %92 = vector.broadcast %91 : vector<128x1xf32> to vector<128x128xf32>
    %93 = arith.subf %89, %92 : vector<128x128xf32>
    %94 = math.exp %93 : vector<128x128xf32>
    %cst_37 = arith.constant dense<0.000000e+00> : vector<128xf32>
    %95 = vector.multi_reduction <add>, %94, %cst_37 [1] : vector<128x128xf32> to vector<128xf32>
    %96 = vector.shape_cast %95 : vector<128xf32> to vector<128x1xf32>
    %cst_38 = arith.constant 1.000000e+00 : f32
    %97 = vector.broadcast %cst_38 : f32 to vector<128x1xf32>
    %98 = arith.divf %97, %96 : vector<128x1xf32>
    %99 = vector.broadcast %98 : vector<128x1xf32> to vector<128x128xf32>
    %100 = arith.mulf %94, %99 : vector<128x128xf32>
    %101 = arith.truncf %100 : vector<128x128xf32> to vector<128x128xbf16>
    %102 = vector.extract_strided_slice %44 {offsets = [0, 64], sizes = [128, 32], strides = [1, 1]} : vector<128x128xbf16> to vector<128x32xbf16>
    %cst_39 = arith.constant dense<0.000000e+00> : vector<128x32xf32>
    %103 = tpu.matmul %101, %102, %cst_39 {dimension_numbers = #tpu.dot_dimension_numbers<[1], [0], [0], [1], [0, 0, 1, 1], [], []>} : vector<128x128xbf16>, vector<128x32xbf16>, vector<128x32xf32> -> vector<128x32xf32>
    %104 = arith.truncf %103 : vector<128x32xf32> to vector<128x32xbf16>
    %105 = vector.extract_strided_slice %36 {offsets = [0, 96], sizes = [128, 32], strides = [1, 1]} : vector<128x128xbf16> to vector<128x32xbf16>
    %106 = vector.extract_strided_slice %40 {offsets = [0, 96], sizes = [128, 32], strides = [1, 1]} : vector<128x128xbf16> to vector<128x32xbf16>
    %cst_40 = arith.constant dense<0.000000e+00> : vector<128x128xf32>
    %107 = tpu.matmul %105, %106, %cst_40 {dimension_numbers = #tpu.dot_dimension_numbers<[1], [1], [0], [0], [0, 0, 1, 0], [], []>} : vector<128x32xbf16>, vector<128x32xbf16>, vector<128x128xf32> -> vector<128x128xf32>
    %c0_41 = arith.constant 0 : index
    %c0_42 = arith.constant 0 : index
    %108 = vector.load %arg2[%c0_41, %c0_42] : memref<128x128xf32, #tpu.memory_space<vmem>>, vector<128x128xf32>
    %109 = arith.addf %107, %108 : vector<128x128xf32>
    %cst_43 = arith.constant dense<0xFF800000> : vector<128xf32>
    %110 = vector.multi_reduction <maximumf>, %109, %cst_43 [1] : vector<128x128xf32> to vector<128xf32>
    %111 = vector.shape_cast %110 : vector<128xf32> to vector<128x1xf32>
    %112 = vector.broadcast %111 : vector<128x1xf32> to vector<128x128xf32>
    %113 = arith.subf %109, %112 : vector<128x128xf32>
    %114 = math.exp %113 : vector<128x128xf32>
    %cst_44 = arith.constant dense<0.000000e+00> : vector<128xf32>
    %115 = vector.multi_reduction <add>, %114, %cst_44 [1] : vector<128x128xf32> to vector<128xf32>
    %116 = vector.shape_cast %115 : vector<128xf32> to vector<128x1xf32>
    %cst_45 = arith.constant 1.000000e+00 : f32
    %117 = vector.broadcast %cst_45 : f32 to vector<128x1xf32>
    %118 = arith.divf %117, %116 : vector<128x1xf32>
    %119 = vector.broadcast %118 : vector<128x1xf32> to vector<128x128xf32>
    %120 = arith.mulf %114, %119 : vector<128x128xf32>
    %121 = arith.truncf %120 : vector<128x128xf32> to vector<128x128xbf16>
    %122 = vector.extract_strided_slice %44 {offsets = [0, 96], sizes = [128, 32], strides = [1, 1]} : vector<128x128xbf16> to vector<128x32xbf16>
    %cst_46 = arith.constant dense<0.000000e+00> : vector<128x32xf32>
    %123 = tpu.matmul %121, %122, %cst_46 {dimension_numbers = #tpu.dot_dimension_numbers<[1], [0], [0], [1], [0, 0, 1, 1], [], []>} : vector<128x128xbf16>, vector<128x32xbf16>, vector<128x32xf32> -> vector<128x32xf32>
    %124 = arith.truncf %123 : vector<128x32xf32> to vector<128x32xbf16>
    %125 = tpu.concatenate %64, %84, %104, %124 in 1 : vector<128x32xbf16>, vector<128x32xbf16>, vector<128x32xbf16>, vector<128x32xbf16> -> vector<128x128xbf16>
    %c0_47 = arith.constant 0 : index
    %c0_48 = arith.constant 0 : index
    %c0_49 = arith.constant 0 : index
    %126 = vector.load %arg4[%c0_47, %c0_48, %c0_49] : memref<2x128x128xbf16, #tpu.memory_space<vmem>>, vector<1x128x128xbf16>
    %127 = vector.shape_cast %126 : vector<1x128x128xbf16> to vector<128x128xbf16>
    %cst_50 = arith.constant dense<0.000000e+00> : vector<128x128xf32>
    %128 = tpu.matmul %125, %127, %cst_50 {dimension_numbers = #tpu.dot_dimension_numbers<[1], [0], [0], [1], [0, 0, 1, 1], [], []>} : vector<128x128xbf16>, vector<128x128xbf16>, vector<128x128xf32> -> vector<128x128xf32>
    %129 = arith.addf %1, %128 : vector<128x128xf32>
    %130 = vector.broadcast %6 : vector<1x128xf32> to vector<128x128xf32>
    %131 = arith.addf %129, %130 : vector<128x128xf32>
    %cst_51 = arith.constant dense<0.000000e+00> : vector<128xf32>
    %132 = vector.multi_reduction <add>, %131, %cst_51 [1] : vector<128x128xf32> to vector<128xf32>
    %133 = vector.shape_cast %132 : vector<128xf32> to vector<128x1xf32>
    %cst_52 = arith.constant 1.280000e+02 : f32
    %134 = vector.broadcast %cst_52 : f32 to vector<128x1xf32>
    %135 = arith.divf %133, %134 : vector<128x1xf32>
    %136 = vector.broadcast %135 : vector<128x1xf32> to vector<128x128xf32>
    %137 = arith.subf %131, %136 : vector<128x128xf32>
    %138 = arith.mulf %137, %137 : vector<128x128xf32>
    %cst_53 = arith.constant dense<0.000000e+00> : vector<128xf32>
    %139 = vector.multi_reduction <add>, %138, %cst_53 [1] : vector<128x128xf32> to vector<128xf32>
    %140 = vector.shape_cast %139 : vector<128xf32> to vector<128x1xf32>
    %cst_54 = arith.constant 1.280000e+02 : f32
    %141 = vector.broadcast %cst_54 : f32 to vector<128x1xf32>
    %142 = arith.divf %140, %141 : vector<128x1xf32>
    %143 = vector.broadcast %135 : vector<128x1xf32> to vector<128x128xf32>
    %144 = arith.subf %131, %143 : vector<128x128xf32>
    %cst_55 = arith.constant 9.99999974E-6 : f32
    %145 = vector.broadcast %cst_55 : f32 to vector<128x1xf32>
    %146 = arith.addf %142, %145 : vector<128x1xf32>
    %147 = math.rsqrt %146 : vector<128x1xf32>
    %148 = vector.broadcast %147 : vector<128x1xf32> to vector<128x128xf32>
    %149 = arith.mulf %144, %148 : vector<128x128xf32>
    %150 = vector.broadcast %7 : vector<1x128xf32> to vector<128x128xf32>
    %151 = arith.mulf %149, %150 : vector<128x128xf32>
    %152 = vector.broadcast %8 : vector<1x128xf32> to vector<128x128xf32>
    %153 = arith.addf %151, %152 : vector<128x128xf32>
    %154 = arith.truncf %153 : vector<128x128xf32> to vector<128x128xbf16>
    %c0_56 = arith.constant 0 : index
    %c0_57 = arith.constant 0 : index
    %c0_58 = arith.constant 0 : index
    %155 = vector.load %arg5[%c0_56, %c0_57, %c0_58] : memref<8x128x128xbf16, #tpu.memory_space<vmem>>, vector<1x128x128xbf16>
    %156 = vector.shape_cast %155 : vector<1x128x128xbf16> to vector<128x128xbf16>
    %cst_59 = arith.constant dense<0.000000e+00> : vector<128x128xf32>
    %157 = tpu.matmul %154, %156, %cst_59 {dimension_numbers = #tpu.dot_dimension_numbers<[1], [0], [0], [1], [0, 0, 1, 1], [], []>} : vector<128x128xbf16>, vector<128x128xbf16>, vector<128x128xf32> -> vector<128x128xf32>
    %c0_60 = arith.constant 0 : index
    %c0_61 = arith.constant 0 : index
    %c0_62 = arith.constant 0 : index
    %158 = vector.load %arg7[%c0_60, %c0_61, %c0_62] : memref<8x1x128xf32, #tpu.memory_space<vmem>>, vector<1x1x128xf32>
    %159 = vector.shape_cast %158 : vector<1x1x128xf32> to vector<1x128xf32>
    %160 = vector.broadcast %159 : vector<1x128xf32> to vector<128x128xf32>
    %161 = arith.addf %157, %160 : vector<128x128xf32>
    %cst_63 = arith.constant 0.000000e+00 : f32
    %162 = vector.broadcast %cst_63 : f32 to vector<128x128xf32>
    %163 = arith.maximumf %161, %162 : vector<128x128xf32>
    %164 = arith.truncf %163 : vector<128x128xf32> to vector<128x128xbf16>
    %c0_64 = arith.constant 0 : index
    %c0_65 = arith.constant 0 : index
    %c0_66 = arith.constant 0 : index
    %165 = vector.load %arg6[%c0_64, %c0_65, %c0_66] : memref<8x128x128xbf16, #tpu.memory_space<vmem>>, vector<1x128x128xbf16>
    %166 = vector.shape_cast %165 : vector<1x128x128xbf16> to vector<128x128xbf16>
    %cst_67 = arith.constant dense<0.000000e+00> : vector<128x128xf32>
    %167 = tpu.matmul %164, %166, %cst_67 {dimension_numbers = #tpu.dot_dimension_numbers<[1], [0], [0], [1], [0, 0, 1, 1], [], []>} : vector<128x128xbf16>, vector<128x128xbf16>, vector<128x128xf32> -> vector<128x128xf32>
    %c1_68 = arith.constant 1 : index
    %c0_69 = arith.constant 0 : index
    %c0_70 = arith.constant 0 : index
    %168 = vector.load %arg5[%c1_68, %c0_69, %c0_70] : memref<8x128x128xbf16, #tpu.memory_space<vmem>>, vector<1x128x128xbf16>
    %169 = vector.shape_cast %168 : vector<1x128x128xbf16> to vector<128x128xbf16>
    %cst_71 = arith.constant dense<0.000000e+00> : vector<128x128xf32>
    %170 = tpu.matmul %154, %169, %cst_71 {dimension_numbers = #tpu.dot_dimension_numbers<[1], [0], [0], [1], [0, 0, 1, 1], [], []>} : vector<128x128xbf16>, vector<128x128xbf16>, vector<128x128xf32> -> vector<128x128xf32>
    %c1_72 = arith.constant 1 : index
    %c0_73 = arith.constant 0 : index
    %c0_74 = arith.constant 0 : index
    %171 = vector.load %arg7[%c1_72, %c0_73, %c0_74] : memref<8x1x128xf32, #tpu.memory_space<vmem>>, vector<1x1x128xf32>
    %172 = vector.shape_cast %171 : vector<1x1x128xf32> to vector<1x128xf32>
    %173 = vector.broadcast %172 : vector<1x128xf32> to vector<128x128xf32>
    %174 = arith.addf %170, %173 : vector<128x128xf32>
    %cst_75 = arith.constant 0.000000e+00 : f32
    %175 = vector.broadcast %cst_75 : f32 to vector<128x128xf32>
    %176 = arith.maximumf %174, %175 : vector<128x128xf32>
    %177 = arith.truncf %176 : vector<128x128xf32> to vector<128x128xbf16>
    %c1_76 = arith.constant 1 : index
    %c0_77 = arith.constant 0 : index
    %c0_78 = arith.constant 0 : index
    %178 = vector.load %arg6[%c1_76, %c0_77, %c0_78] : memref<8x128x128xbf16, #tpu.memory_space<vmem>>, vector<1x128x128xbf16>
    %179 = vector.shape_cast %178 : vector<1x128x128xbf16> to vector<128x128xbf16>
    %cst_79 = arith.constant dense<0.000000e+00> : vector<128x128xf32>
    %180 = tpu.matmul %177, %179, %cst_79 {dimension_numbers = #tpu.dot_dimension_numbers<[1], [0], [0], [1], [0, 0, 1, 1], [], []>} : vector<128x128xbf16>, vector<128x128xbf16>, vector<128x128xf32> -> vector<128x128xf32>
    %181 = arith.addf %167, %180 : vector<128x128xf32>
    %c2_80 = arith.constant 2 : index
    %c0_81 = arith.constant 0 : index
    %c0_82 = arith.constant 0 : index
    %182 = vector.load %arg5[%c2_80, %c0_81, %c0_82] : memref<8x128x128xbf16, #tpu.memory_space<vmem>>, vector<1x128x128xbf16>
    %183 = vector.shape_cast %182 : vector<1x128x128xbf16> to vector<128x128xbf16>
    %cst_83 = arith.constant dense<0.000000e+00> : vector<128x128xf32>
    %184 = tpu.matmul %154, %183, %cst_83 {dimension_numbers = #tpu.dot_dimension_numbers<[1], [0], [0], [1], [0, 0, 1, 1], [], []>} : vector<128x128xbf16>, vector<128x128xbf16>, vector<128x128xf32> -> vector<128x128xf32>
    %c2_84 = arith.constant 2 : index
    %c0_85 = arith.constant 0 : index
    %c0_86 = arith.constant 0 : index
    %185 = vector.load %arg7[%c2_84, %c0_85, %c0_86] : memref<8x1x128xf32, #tpu.memory_space<vmem>>, vector<1x1x128xf32>
    %186 = vector.shape_cast %185 : vector<1x1x128xf32> to vector<1x128xf32>
    %187 = vector.broadcast %186 : vector<1x128xf32> to vector<128x128xf32>
    %188 = arith.addf %184, %187 : vector<128x128xf32>
    %cst_87 = arith.constant 0.000000e+00 : f32
    %189 = vector.broadcast %cst_87 : f32 to vector<128x128xf32>
    %190 = arith.maximumf %188, %189 : vector<128x128xf32>
    %191 = arith.truncf %190 : vector<128x128xf32> to vector<128x128xbf16>
    %c2_88 = arith.constant 2 : index
    %c0_89 = arith.constant 0 : index
    %c0_90 = arith.constant 0 : index
    %192 = vector.load %arg6[%c2_88, %c0_89, %c0_90] : memref<8x128x128xbf16, #tpu.memory_space<vmem>>, vector<1x128x128xbf16>
    %193 = vector.shape_cast %192 : vector<1x128x128xbf16> to vector<128x128xbf16>
    %cst_91 = arith.constant dense<0.000000e+00> : vector<128x128xf32>
    %194 = tpu.matmul %191, %193, %cst_91 {dimension_numbers = #tpu.dot_dimension_numbers<[1], [0], [0], [1], [0, 0, 1, 1], [], []>} : vector<128x128xbf16>, vector<128x128xbf16>, vector<128x128xf32> -> vector<128x128xf32>
    %195 = arith.addf %181, %194 : vector<128x128xf32>
    %c3 = arith.constant 3 : index
    %c0_92 = arith.constant 0 : index
    %c0_93 = arith.constant 0 : index
    %196 = vector.load %arg5[%c3, %c0_92, %c0_93] : memref<8x128x128xbf16, #tpu.memory_space<vmem>>, vector<1x128x128xbf16>
    %197 = vector.shape_cast %196 : vector<1x128x128xbf16> to vector<128x128xbf16>
    %cst_94 = arith.constant dense<0.000000e+00> : vector<128x128xf32>
    %198 = tpu.matmul %154, %197, %cst_94 {dimension_numbers = #tpu.dot_dimension_numbers<[1], [0], [0], [1], [0, 0, 1, 1], [], []>} : vector<128x128xbf16>, vector<128x128xbf16>, vector<128x128xf32> -> vector<128x128xf32>
    %c3_95 = arith.constant 3 : index
    %c0_96 = arith.constant 0 : index
    %c0_97 = arith.constant 0 : index
    %199 = vector.load %arg7[%c3_95, %c0_96, %c0_97] : memref<8x1x128xf32, #tpu.memory_space<vmem>>, vector<1x1x128xf32>
    %200 = vector.shape_cast %199 : vector<1x1x128xf32> to vector<1x128xf32>
    %201 = vector.broadcast %200 : vector<1x128xf32> to vector<128x128xf32>
    %202 = arith.addf %198, %201 : vector<128x128xf32>
    %cst_98 = arith.constant 0.000000e+00 : f32
    %203 = vector.broadcast %cst_98 : f32 to vector<128x128xf32>
    %204 = arith.maximumf %202, %203 : vector<128x128xf32>
    %205 = arith.truncf %204 : vector<128x128xf32> to vector<128x128xbf16>
    %c3_99 = arith.constant 3 : index
    %c0_100 = arith.constant 0 : index
    %c0_101 = arith.constant 0 : index
    %206 = vector.load %arg6[%c3_99, %c0_100, %c0_101] : memref<8x128x128xbf16, #tpu.memory_space<vmem>>, vector<1x128x128xbf16>
    %207 = vector.shape_cast %206 : vector<1x128x128xbf16> to vector<128x128xbf16>
    %cst_102 = arith.constant dense<0.000000e+00> : vector<128x128xf32>
    %208 = tpu.matmul %205, %207, %cst_102 {dimension_numbers = #tpu.dot_dimension_numbers<[1], [0], [0], [1], [0, 0, 1, 1], [], []>} : vector<128x128xbf16>, vector<128x128xbf16>, vector<128x128xf32> -> vector<128x128xf32>
    %209 = arith.addf %195, %208 : vector<128x128xf32>
    %210 = arith.addf %131, %209 : vector<128x128xf32>
    %211 = vector.broadcast %9 : vector<1x128xf32> to vector<128x128xf32>
    %212 = arith.addf %210, %211 : vector<128x128xf32>
    %c1_103 = arith.constant 1 : index
    %c0_104 = arith.constant 0 : index
    %c0_105 = arith.constant 0 : index
    %213 = vector.load %arg8[%c1_103, %c0_104, %c0_105] : memref<2x6x128xf32, #tpu.memory_space<vmem>>, vector<1x6x128xf32>
    %214 = vector.shape_cast %213 : vector<1x6x128xf32> to vector<6x128xf32>
    %215 = vector.extract_strided_slice %214 {offsets = [0, 0], sizes = [1, 128], strides = [1, 1]} : vector<6x128xf32> to vector<1x128xf32>
    %216 = vector.extract_strided_slice %214 {offsets = [1, 0], sizes = [1, 128], strides = [1, 1]} : vector<6x128xf32> to vector<1x128xf32>
    %217 = vector.extract_strided_slice %214 {offsets = [2, 0], sizes = [1, 128], strides = [1, 1]} : vector<6x128xf32> to vector<1x128xf32>
    %218 = vector.extract_strided_slice %214 {offsets = [3, 0], sizes = [1, 128], strides = [1, 1]} : vector<6x128xf32> to vector<1x128xf32>
    %219 = vector.extract_strided_slice %214 {offsets = [4, 0], sizes = [1, 128], strides = [1, 1]} : vector<6x128xf32> to vector<1x128xf32>
    %220 = vector.extract_strided_slice %214 {offsets = [5, 0], sizes = [1, 128], strides = [1, 1]} : vector<6x128xf32> to vector<1x128xf32>
    %cst_106 = arith.constant dense<0.000000e+00> : vector<128xf32>
    %221 = vector.multi_reduction <add>, %212, %cst_106 [1] : vector<128x128xf32> to vector<128xf32>
    %222 = vector.shape_cast %221 : vector<128xf32> to vector<128x1xf32>
    %cst_107 = arith.constant 1.280000e+02 : f32
    %223 = vector.broadcast %cst_107 : f32 to vector<128x1xf32>
    %224 = arith.divf %222, %223 : vector<128x1xf32>
    %225 = vector.broadcast %224 : vector<128x1xf32> to vector<128x128xf32>
    %226 = arith.subf %212, %225 : vector<128x128xf32>
    %227 = arith.mulf %226, %226 : vector<128x128xf32>
    %cst_108 = arith.constant dense<0.000000e+00> : vector<128xf32>
    %228 = vector.multi_reduction <add>, %227, %cst_108 [1] : vector<128x128xf32> to vector<128xf32>
    %229 = vector.shape_cast %228 : vector<128xf32> to vector<128x1xf32>
    %cst_109 = arith.constant 1.280000e+02 : f32
    %230 = vector.broadcast %cst_109 : f32 to vector<128x1xf32>
    %231 = arith.divf %229, %230 : vector<128x1xf32>
    %232 = vector.broadcast %224 : vector<128x1xf32> to vector<128x128xf32>
    %233 = arith.subf %212, %232 : vector<128x128xf32>
    %cst_110 = arith.constant 9.99999974E-6 : f32
    %234 = vector.broadcast %cst_110 : f32 to vector<128x1xf32>
    %235 = arith.addf %231, %234 : vector<128x1xf32>
    %236 = math.rsqrt %235 : vector<128x1xf32>
    %237 = vector.broadcast %236 : vector<128x1xf32> to vector<128x128xf32>
    %238 = arith.mulf %233, %237 : vector<128x128xf32>
    %239 = vector.broadcast %215 : vector<1x128xf32> to vector<128x128xf32>
    %240 = arith.mulf %238, %239 : vector<128x128xf32>
    %241 = vector.broadcast %216 : vector<1x128xf32> to vector<128x128xf32>
    %242 = arith.addf %240, %241 : vector<128x128xf32>
    %243 = arith.truncf %242 : vector<128x128xf32> to vector<128x128xbf16>
    %c3_111 = arith.constant 3 : index
    %c0_112 = arith.constant 0 : index
    %c0_113 = arith.constant 0 : index
    %244 = vector.load %arg3[%c3_111, %c0_112, %c0_113] : memref<6x128x128xbf16, #tpu.memory_space<vmem>>, vector<1x128x128xbf16>
    %245 = vector.shape_cast %244 : vector<1x128x128xbf16> to vector<128x128xbf16>
    %cst_114 = arith.constant dense<0.000000e+00> : vector<128x128xf32>
    %246 = tpu.matmul %243, %245, %cst_114 {dimension_numbers = #tpu.dot_dimension_numbers<[1], [0], [0], [1], [0, 0, 1, 1], [], []>} : vector<128x128xbf16>, vector<128x128xbf16>, vector<128x128xf32> -> vector<128x128xf32>
    %247 = arith.truncf %246 : vector<128x128xf32> to vector<128x128xbf16>
    %c4 = arith.constant 4 : index
    %c0_115 = arith.constant 0 : index
    %c0_116 = arith.constant 0 : index
    %248 = vector.load %arg3[%c4, %c0_115, %c0_116] : memref<6x128x128xbf16, #tpu.memory_space<vmem>>, vector<1x128x128xbf16>
    %249 = vector.shape_cast %248 : vector<1x128x128xbf16> to vector<128x128xbf16>
    %cst_117 = arith.constant dense<0.000000e+00> : vector<128x128xf32>
    %250 = tpu.matmul %243, %249, %cst_117 {dimension_numbers = #tpu.dot_dimension_numbers<[1], [0], [0], [1], [0, 0, 1, 1], [], []>} : vector<128x128xbf16>, vector<128x128xbf16>, vector<128x128xf32> -> vector<128x128xf32>
    %251 = arith.truncf %250 : vector<128x128xf32> to vector<128x128xbf16>
    %c5 = arith.constant 5 : index
    %c0_118 = arith.constant 0 : index
    %c0_119 = arith.constant 0 : index
    %252 = vector.load %arg3[%c5, %c0_118, %c0_119] : memref<6x128x128xbf16, #tpu.memory_space<vmem>>, vector<1x128x128xbf16>
    %253 = vector.shape_cast %252 : vector<1x128x128xbf16> to vector<128x128xbf16>
    %cst_120 = arith.constant dense<0.000000e+00> : vector<128x128xf32>
    %254 = tpu.matmul %243, %253, %cst_120 {dimension_numbers = #tpu.dot_dimension_numbers<[1], [0], [0], [1], [0, 0, 1, 1], [], []>} : vector<128x128xbf16>, vector<128x128xbf16>, vector<128x128xf32> -> vector<128x128xf32>
    %255 = arith.truncf %254 : vector<128x128xf32> to vector<128x128xbf16>
    %256 = vector.extract_strided_slice %247 {offsets = [0, 0], sizes = [128, 32], strides = [1, 1]} : vector<128x128xbf16> to vector<128x32xbf16>
    %257 = vector.extract_strided_slice %251 {offsets = [0, 0], sizes = [128, 32], strides = [1, 1]} : vector<128x128xbf16> to vector<128x32xbf16>
    %cst_121 = arith.constant dense<0.000000e+00> : vector<128x128xf32>
    %258 = tpu.matmul %256, %257, %cst_121 {dimension_numbers = #tpu.dot_dimension_numbers<[1], [1], [0], [0], [0, 0, 1, 0], [], []>} : vector<128x32xbf16>, vector<128x32xbf16>, vector<128x128xf32> -> vector<128x128xf32>
    %c0_122 = arith.constant 0 : index
    %c0_123 = arith.constant 0 : index
    %259 = vector.load %arg2[%c0_122, %c0_123] : memref<128x128xf32, #tpu.memory_space<vmem>>, vector<128x128xf32>
    %260 = arith.addf %258, %259 : vector<128x128xf32>
    %cst_124 = arith.constant dense<0xFF800000> : vector<128xf32>
    %261 = vector.multi_reduction <maximumf>, %260, %cst_124 [1] : vector<128x128xf32> to vector<128xf32>
    %262 = vector.shape_cast %261 : vector<128xf32> to vector<128x1xf32>
    %263 = vector.broadcast %262 : vector<128x1xf32> to vector<128x128xf32>
    %264 = arith.subf %260, %263 : vector<128x128xf32>
    %265 = math.exp %264 : vector<128x128xf32>
    %cst_125 = arith.constant dense<0.000000e+00> : vector<128xf32>
    %266 = vector.multi_reduction <add>, %265, %cst_125 [1] : vector<128x128xf32> to vector<128xf32>
    %267 = vector.shape_cast %266 : vector<128xf32> to vector<128x1xf32>
    %cst_126 = arith.constant 1.000000e+00 : f32
    %268 = vector.broadcast %cst_126 : f32 to vector<128x1xf32>
    %269 = arith.divf %268, %267 : vector<128x1xf32>
    %270 = vector.broadcast %269 : vector<128x1xf32> to vector<128x128xf32>
    %271 = arith.mulf %265, %270 : vector<128x128xf32>
    %272 = arith.truncf %271 : vector<128x128xf32> to vector<128x128xbf16>
    %273 = vector.extract_strided_slice %255 {offsets = [0, 0], sizes = [128, 32], strides = [1, 1]} : vector<128x128xbf16> to vector<128x32xbf16>
    %cst_127 = arith.constant dense<0.000000e+00> : vector<128x32xf32>
    %274 = tpu.matmul %272, %273, %cst_127 {dimension_numbers = #tpu.dot_dimension_numbers<[1], [0], [0], [1], [0, 0, 1, 1], [], []>} : vector<128x128xbf16>, vector<128x32xbf16>, vector<128x32xf32> -> vector<128x32xf32>
    %275 = arith.truncf %274 : vector<128x32xf32> to vector<128x32xbf16>
    %276 = vector.extract_strided_slice %247 {offsets = [0, 32], sizes = [128, 32], strides = [1, 1]} : vector<128x128xbf16> to vector<128x32xbf16>
    %277 = vector.extract_strided_slice %251 {offsets = [0, 32], sizes = [128, 32], strides = [1, 1]} : vector<128x128xbf16> to vector<128x32xbf16>
    %cst_128 = arith.constant dense<0.000000e+00> : vector<128x128xf32>
    %278 = tpu.matmul %276, %277, %cst_128 {dimension_numbers = #tpu.dot_dimension_numbers<[1], [1], [0], [0], [0, 0, 1, 0], [], []>} : vector<128x32xbf16>, vector<128x32xbf16>, vector<128x128xf32> -> vector<128x128xf32>
    %c0_129 = arith.constant 0 : index
    %c0_130 = arith.constant 0 : index
    %279 = vector.load %arg2[%c0_129, %c0_130] : memref<128x128xf32, #tpu.memory_space<vmem>>, vector<128x128xf32>
    %280 = arith.addf %278, %279 : vector<128x128xf32>
    %cst_131 = arith.constant dense<0xFF800000> : vector<128xf32>
    %281 = vector.multi_reduction <maximumf>, %280, %cst_131 [1] : vector<128x128xf32> to vector<128xf32>
    %282 = vector.shape_cast %281 : vector<128xf32> to vector<128x1xf32>
    %283 = vector.broadcast %282 : vector<128x1xf32> to vector<128x128xf32>
    %284 = arith.subf %280, %283 : vector<128x128xf32>
    %285 = math.exp %284 : vector<128x128xf32>
    %cst_132 = arith.constant dense<0.000000e+00> : vector<128xf32>
    %286 = vector.multi_reduction <add>, %285, %cst_132 [1] : vector<128x128xf32> to vector<128xf32>
    %287 = vector.shape_cast %286 : vector<128xf32> to vector<128x1xf32>
    %cst_133 = arith.constant 1.000000e+00 : f32
    %288 = vector.broadcast %cst_133 : f32 to vector<128x1xf32>
    %289 = arith.divf %288, %287 : vector<128x1xf32>
    %290 = vector.broadcast %289 : vector<128x1xf32> to vector<128x128xf32>
    %291 = arith.mulf %285, %290 : vector<128x128xf32>
    %292 = arith.truncf %291 : vector<128x128xf32> to vector<128x128xbf16>
    %293 = vector.extract_strided_slice %255 {offsets = [0, 32], sizes = [128, 32], strides = [1, 1]} : vector<128x128xbf16> to vector<128x32xbf16>
    %cst_134 = arith.constant dense<0.000000e+00> : vector<128x32xf32>
    %294 = tpu.matmul %292, %293, %cst_134 {dimension_numbers = #tpu.dot_dimension_numbers<[1], [0], [0], [1], [0, 0, 1, 1], [], []>} : vector<128x128xbf16>, vector<128x32xbf16>, vector<128x32xf32> -> vector<128x32xf32>
    %295 = arith.truncf %294 : vector<128x32xf32> to vector<128x32xbf16>
    %296 = vector.extract_strided_slice %247 {offsets = [0, 64], sizes = [128, 32], strides = [1, 1]} : vector<128x128xbf16> to vector<128x32xbf16>
    %297 = vector.extract_strided_slice %251 {offsets = [0, 64], sizes = [128, 32], strides = [1, 1]} : vector<128x128xbf16> to vector<128x32xbf16>
    %cst_135 = arith.constant dense<0.000000e+00> : vector<128x128xf32>
    %298 = tpu.matmul %296, %297, %cst_135 {dimension_numbers = #tpu.dot_dimension_numbers<[1], [1], [0], [0], [0, 0, 1, 0], [], []>} : vector<128x32xbf16>, vector<128x32xbf16>, vector<128x128xf32> -> vector<128x128xf32>
    %c0_136 = arith.constant 0 : index
    %c0_137 = arith.constant 0 : index
    %299 = vector.load %arg2[%c0_136, %c0_137] : memref<128x128xf32, #tpu.memory_space<vmem>>, vector<128x128xf32>
    %300 = arith.addf %298, %299 : vector<128x128xf32>
    %cst_138 = arith.constant dense<0xFF800000> : vector<128xf32>
    %301 = vector.multi_reduction <maximumf>, %300, %cst_138 [1] : vector<128x128xf32> to vector<128xf32>
    %302 = vector.shape_cast %301 : vector<128xf32> to vector<128x1xf32>
    %303 = vector.broadcast %302 : vector<128x1xf32> to vector<128x128xf32>
    %304 = arith.subf %300, %303 : vector<128x128xf32>
    %305 = math.exp %304 : vector<128x128xf32>
    %cst_139 = arith.constant dense<0.000000e+00> : vector<128xf32>
    %306 = vector.multi_reduction <add>, %305, %cst_139 [1] : vector<128x128xf32> to vector<128xf32>
    %307 = vector.shape_cast %306 : vector<128xf32> to vector<128x1xf32>
    %cst_140 = arith.constant 1.000000e+00 : f32
    %308 = vector.broadcast %cst_140 : f32 to vector<128x1xf32>
    %309 = arith.divf %308, %307 : vector<128x1xf32>
    %310 = vector.broadcast %309 : vector<128x1xf32> to vector<128x128xf32>
    %311 = arith.mulf %305, %310 : vector<128x128xf32>
    %312 = arith.truncf %311 : vector<128x128xf32> to vector<128x128xbf16>
    %313 = vector.extract_strided_slice %255 {offsets = [0, 64], sizes = [128, 32], strides = [1, 1]} : vector<128x128xbf16> to vector<128x32xbf16>
    %cst_141 = arith.constant dense<0.000000e+00> : vector<128x32xf32>
    %314 = tpu.matmul %312, %313, %cst_141 {dimension_numbers = #tpu.dot_dimension_numbers<[1], [0], [0], [1], [0, 0, 1, 1], [], []>} : vector<128x128xbf16>, vector<128x32xbf16>, vector<128x32xf32> -> vector<128x32xf32>
    %315 = arith.truncf %314 : vector<128x32xf32> to vector<128x32xbf16>
    %316 = vector.extract_strided_slice %247 {offsets = [0, 96], sizes = [128, 32], strides = [1, 1]} : vector<128x128xbf16> to vector<128x32xbf16>
    %317 = vector.extract_strided_slice %251 {offsets = [0, 96], sizes = [128, 32], strides = [1, 1]} : vector<128x128xbf16> to vector<128x32xbf16>
    %cst_142 = arith.constant dense<0.000000e+00> : vector<128x128xf32>
    %318 = tpu.matmul %316, %317, %cst_142 {dimension_numbers = #tpu.dot_dimension_numbers<[1], [1], [0], [0], [0, 0, 1, 0], [], []>} : vector<128x32xbf16>, vector<128x32xbf16>, vector<128x128xf32> -> vector<128x128xf32>
    %c0_143 = arith.constant 0 : index
    %c0_144 = arith.constant 0 : index
    %319 = vector.load %arg2[%c0_143, %c0_144] : memref<128x128xf32, #tpu.memory_space<vmem>>, vector<128x128xf32>
    %320 = arith.addf %318, %319 : vector<128x128xf32>
    %cst_145 = arith.constant dense<0xFF800000> : vector<128xf32>
    %321 = vector.multi_reduction <maximumf>, %320, %cst_145 [1] : vector<128x128xf32> to vector<128xf32>
    %322 = vector.shape_cast %321 : vector<128xf32> to vector<128x1xf32>
    %323 = vector.broadcast %322 : vector<128x1xf32> to vector<128x128xf32>
    %324 = arith.subf %320, %323 : vector<128x128xf32>
    %325 = math.exp %324 : vector<128x128xf32>
    %cst_146 = arith.constant dense<0.000000e+00> : vector<128xf32>
    %326 = vector.multi_reduction <add>, %325, %cst_146 [1] : vector<128x128xf32> to vector<128xf32>
    %327 = vector.shape_cast %326 : vector<128xf32> to vector<128x1xf32>
    %cst_147 = arith.constant 1.000000e+00 : f32
    %328 = vector.broadcast %cst_147 : f32 to vector<128x1xf32>
    %329 = arith.divf %328, %327 : vector<128x1xf32>
    %330 = vector.broadcast %329 : vector<128x1xf32> to vector<128x128xf32>
    %331 = arith.mulf %325, %330 : vector<128x128xf32>
    %332 = arith.truncf %331 : vector<128x128xf32> to vector<128x128xbf16>
    %333 = vector.extract_strided_slice %255 {offsets = [0, 96], sizes = [128, 32], strides = [1, 1]} : vector<128x128xbf16> to vector<128x32xbf16>
    %cst_148 = arith.constant dense<0.000000e+00> : vector<128x32xf32>
    %334 = tpu.matmul %332, %333, %cst_148 {dimension_numbers = #tpu.dot_dimension_numbers<[1], [0], [0], [1], [0, 0, 1, 1], [], []>} : vector<128x128xbf16>, vector<128x32xbf16>, vector<128x32xf32> -> vector<128x32xf32>
    %335 = arith.truncf %334 : vector<128x32xf32> to vector<128x32xbf16>
    %336 = tpu.concatenate %275, %295, %315, %335 in 1 : vector<128x32xbf16>, vector<128x32xbf16>, vector<128x32xbf16>, vector<128x32xbf16> -> vector<128x128xbf16>
    %c1_149 = arith.constant 1 : index
    %c0_150 = arith.constant 0 : index
    %c0_151 = arith.constant 0 : index
    %337 = vector.load %arg4[%c1_149, %c0_150, %c0_151] : memref<2x128x128xbf16, #tpu.memory_space<vmem>>, vector<1x128x128xbf16>
    %338 = vector.shape_cast %337 : vector<1x128x128xbf16> to vector<128x128xbf16>
    %cst_152 = arith.constant dense<0.000000e+00> : vector<128x128xf32>
    %339 = tpu.matmul %336, %338, %cst_152 {dimension_numbers = #tpu.dot_dimension_numbers<[1], [0], [0], [1], [0, 0, 1, 1], [], []>} : vector<128x128xbf16>, vector<128x128xbf16>, vector<128x128xf32> -> vector<128x128xf32>
    %340 = arith.addf %212, %339 : vector<128x128xf32>
    %341 = vector.broadcast %217 : vector<1x128xf32> to vector<128x128xf32>
    %342 = arith.addf %340, %341 : vector<128x128xf32>
    %cst_153 = arith.constant dense<0.000000e+00> : vector<128xf32>
    %343 = vector.multi_reduction <add>, %342, %cst_153 [1] : vector<128x128xf32> to vector<128xf32>
    %344 = vector.shape_cast %343 : vector<128xf32> to vector<128x1xf32>
    %cst_154 = arith.constant 1.280000e+02 : f32
    %345 = vector.broadcast %cst_154 : f32 to vector<128x1xf32>
    %346 = arith.divf %344, %345 : vector<128x1xf32>
    %347 = vector.broadcast %346 : vector<128x1xf32> to vector<128x128xf32>
    %348 = arith.subf %342, %347 : vector<128x128xf32>
    %349 = arith.mulf %348, %348 : vector<128x128xf32>
    %cst_155 = arith.constant dense<0.000000e+00> : vector<128xf32>
    %350 = vector.multi_reduction <add>, %349, %cst_155 [1] : vector<128x128xf32> to vector<128xf32>
    %351 = vector.shape_cast %350 : vector<128xf32> to vector<128x1xf32>
    %cst_156 = arith.constant 1.280000e+02 : f32
    %352 = vector.broadcast %cst_156 : f32 to vector<128x1xf32>
    %353 = arith.divf %351, %352 : vector<128x1xf32>
    %354 = vector.broadcast %346 : vector<128x1xf32> to vector<128x128xf32>
    %355 = arith.subf %342, %354 : vector<128x128xf32>
    %cst_157 = arith.constant 9.99999974E-6 : f32
    %356 = vector.broadcast %cst_157 : f32 to vector<128x1xf32>
    %357 = arith.addf %353, %356 : vector<128x1xf32>
    %358 = math.rsqrt %357 : vector<128x1xf32>
    %359 = vector.broadcast %358 : vector<128x1xf32> to vector<128x128xf32>
    %360 = arith.mulf %355, %359 : vector<128x128xf32>
    %361 = vector.broadcast %218 : vector<1x128xf32> to vector<128x128xf32>
    %362 = arith.mulf %360, %361 : vector<128x128xf32>
    %363 = vector.broadcast %219 : vector<1x128xf32> to vector<128x128xf32>
    %364 = arith.addf %362, %363 : vector<128x128xf32>
    %365 = arith.truncf %364 : vector<128x128xf32> to vector<128x128xbf16>
    %c4_158 = arith.constant 4 : index
    %c0_159 = arith.constant 0 : index
    %c0_160 = arith.constant 0 : index
    %366 = vector.load %arg5[%c4_158, %c0_159, %c0_160] : memref<8x128x128xbf16, #tpu.memory_space<vmem>>, vector<1x128x128xbf16>
    %367 = vector.shape_cast %366 : vector<1x128x128xbf16> to vector<128x128xbf16>
    %cst_161 = arith.constant dense<0.000000e+00> : vector<128x128xf32>
    %368 = tpu.matmul %365, %367, %cst_161 {dimension_numbers = #tpu.dot_dimension_numbers<[1], [0], [0], [1], [0, 0, 1, 1], [], []>} : vector<128x128xbf16>, vector<128x128xbf16>, vector<128x128xf32> -> vector<128x128xf32>
    %c4_162 = arith.constant 4 : index
    %c0_163 = arith.constant 0 : index
    %c0_164 = arith.constant 0 : index
    %369 = vector.load %arg7[%c4_162, %c0_163, %c0_164] : memref<8x1x128xf32, #tpu.memory_space<vmem>>, vector<1x1x128xf32>
    %370 = vector.shape_cast %369 : vector<1x1x128xf32> to vector<1x128xf32>
    %371 = vector.broadcast %370 : vector<1x128xf32> to vector<128x128xf32>
    %372 = arith.addf %368, %371 : vector<128x128xf32>
    %cst_165 = arith.constant 0.000000e+00 : f32
    %373 = vector.broadcast %cst_165 : f32 to vector<128x128xf32>
    %374 = arith.maximumf %372, %373 : vector<128x128xf32>
    %375 = arith.truncf %374 : vector<128x128xf32> to vector<128x128xbf16>
    %c4_166 = arith.constant 4 : index
    %c0_167 = arith.constant 0 : index
    %c0_168 = arith.constant 0 : index
    %376 = vector.load %arg6[%c4_166, %c0_167, %c0_168] : memref<8x128x128xbf16, #tpu.memory_space<vmem>>, vector<1x128x128xbf16>
    %377 = vector.shape_cast %376 : vector<1x128x128xbf16> to vector<128x128xbf16>
    %cst_169 = arith.constant dense<0.000000e+00> : vector<128x128xf32>
    %378 = tpu.matmul %375, %377, %cst_169 {dimension_numbers = #tpu.dot_dimension_numbers<[1], [0], [0], [1], [0, 0, 1, 1], [], []>} : vector<128x128xbf16>, vector<128x128xbf16>, vector<128x128xf32> -> vector<128x128xf32>
    %c5_170 = arith.constant 5 : index
    %c0_171 = arith.constant 0 : index
    %c0_172 = arith.constant 0 : index
    %379 = vector.load %arg5[%c5_170, %c0_171, %c0_172] : memref<8x128x128xbf16, #tpu.memory_space<vmem>>, vector<1x128x128xbf16>
    %380 = vector.shape_cast %379 : vector<1x128x128xbf16> to vector<128x128xbf16>
    %cst_173 = arith.constant dense<0.000000e+00> : vector<128x128xf32>
    %381 = tpu.matmul %365, %380, %cst_173 {dimension_numbers = #tpu.dot_dimension_numbers<[1], [0], [0], [1], [0, 0, 1, 1], [], []>} : vector<128x128xbf16>, vector<128x128xbf16>, vector<128x128xf32> -> vector<128x128xf32>
    %c5_174 = arith.constant 5 : index
    %c0_175 = arith.constant 0 : index
    %c0_176 = arith.constant 0 : index
    %382 = vector.load %arg7[%c5_174, %c0_175, %c0_176] : memref<8x1x128xf32, #tpu.memory_space<vmem>>, vector<1x1x128xf32>
    %383 = vector.shape_cast %382 : vector<1x1x128xf32> to vector<1x128xf32>
    %384 = vector.broadcast %383 : vector<1x128xf32> to vector<128x128xf32>
    %385 = arith.addf %381, %384 : vector<128x128xf32>
    %cst_177 = arith.constant 0.000000e+00 : f32
    %386 = vector.broadcast %cst_177 : f32 to vector<128x128xf32>
    %387 = arith.maximumf %385, %386 : vector<128x128xf32>
    %388 = arith.truncf %387 : vector<128x128xf32> to vector<128x128xbf16>
    %c5_178 = arith.constant 5 : index
    %c0_179 = arith.constant 0 : index
    %c0_180 = arith.constant 0 : index
    %389 = vector.load %arg6[%c5_178, %c0_179, %c0_180] : memref<8x128x128xbf16, #tpu.memory_space<vmem>>, vector<1x128x128xbf16>
    %390 = vector.shape_cast %389 : vector<1x128x128xbf16> to vector<128x128xbf16>
    %cst_181 = arith.constant dense<0.000000e+00> : vector<128x128xf32>
    %391 = tpu.matmul %388, %390, %cst_181 {dimension_numbers = #tpu.dot_dimension_numbers<[1], [0], [0], [1], [0, 0, 1, 1], [], []>} : vector<128x128xbf16>, vector<128x128xbf16>, vector<128x128xf32> -> vector<128x128xf32>
    %392 = arith.addf %378, %391 : vector<128x128xf32>
    %c6 = arith.constant 6 : index
    %c0_182 = arith.constant 0 : index
    %c0_183 = arith.constant 0 : index
    %393 = vector.load %arg5[%c6, %c0_182, %c0_183] : memref<8x128x128xbf16, #tpu.memory_space<vmem>>, vector<1x128x128xbf16>
    %394 = vector.shape_cast %393 : vector<1x128x128xbf16> to vector<128x128xbf16>
    %cst_184 = arith.constant dense<0.000000e+00> : vector<128x128xf32>
    %395 = tpu.matmul %365, %394, %cst_184 {dimension_numbers = #tpu.dot_dimension_numbers<[1], [0], [0], [1], [0, 0, 1, 1], [], []>} : vector<128x128xbf16>, vector<128x128xbf16>, vector<128x128xf32> -> vector<128x128xf32>
    %c6_185 = arith.constant 6 : index
    %c0_186 = arith.constant 0 : index
    %c0_187 = arith.constant 0 : index
    %396 = vector.load %arg7[%c6_185, %c0_186, %c0_187] : memref<8x1x128xf32, #tpu.memory_space<vmem>>, vector<1x1x128xf32>
    %397 = vector.shape_cast %396 : vector<1x1x128xf32> to vector<1x128xf32>
    %398 = vector.broadcast %397 : vector<1x128xf32> to vector<128x128xf32>
    %399 = arith.addf %395, %398 : vector<128x128xf32>
    %cst_188 = arith.constant 0.000000e+00 : f32
    %400 = vector.broadcast %cst_188 : f32 to vector<128x128xf32>
    %401 = arith.maximumf %399, %400 : vector<128x128xf32>
    %402 = arith.truncf %401 : vector<128x128xf32> to vector<128x128xbf16>
    %c6_189 = arith.constant 6 : index
    %c0_190 = arith.constant 0 : index
    %c0_191 = arith.constant 0 : index
    %403 = vector.load %arg6[%c6_189, %c0_190, %c0_191] : memref<8x128x128xbf16, #tpu.memory_space<vmem>>, vector<1x128x128xbf16>
    %404 = vector.shape_cast %403 : vector<1x128x128xbf16> to vector<128x128xbf16>
    %cst_192 = arith.constant dense<0.000000e+00> : vector<128x128xf32>
    %405 = tpu.matmul %402, %404, %cst_192 {dimension_numbers = #tpu.dot_dimension_numbers<[1], [0], [0], [1], [0, 0, 1, 1], [], []>} : vector<128x128xbf16>, vector<128x128xbf16>, vector<128x128xf32> -> vector<128x128xf32>
    %406 = arith.addf %392, %405 : vector<128x128xf32>
    %c7 = arith.constant 7 : index
    %c0_193 = arith.constant 0 : index
    %c0_194 = arith.constant 0 : index
    %407 = vector.load %arg5[%c7, %c0_193, %c0_194] : memref<8x128x128xbf16, #tpu.memory_space<vmem>>, vector<1x128x128xbf16>
    %408 = vector.shape_cast %407 : vector<1x128x128xbf16> to vector<128x128xbf16>
    %cst_195 = arith.constant dense<0.000000e+00> : vector<128x128xf32>
    %409 = tpu.matmul %365, %408, %cst_195 {dimension_numbers = #tpu.dot_dimension_numbers<[1], [0], [0], [1], [0, 0, 1, 1], [], []>} : vector<128x128xbf16>, vector<128x128xbf16>, vector<128x128xf32> -> vector<128x128xf32>
    %c7_196 = arith.constant 7 : index
    %c0_197 = arith.constant 0 : index
    %c0_198 = arith.constant 0 : index
    %410 = vector.load %arg7[%c7_196, %c0_197, %c0_198] : memref<8x1x128xf32, #tpu.memory_space<vmem>>, vector<1x1x128xf32>
    %411 = vector.shape_cast %410 : vector<1x1x128xf32> to vector<1x128xf32>
    %412 = vector.broadcast %411 : vector<1x128xf32> to vector<128x128xf32>
    %413 = arith.addf %409, %412 : vector<128x128xf32>
    %cst_199 = arith.constant 0.000000e+00 : f32
    %414 = vector.broadcast %cst_199 : f32 to vector<128x128xf32>
    %415 = arith.maximumf %413, %414 : vector<128x128xf32>
    %416 = arith.truncf %415 : vector<128x128xf32> to vector<128x128xbf16>
    %c7_200 = arith.constant 7 : index
    %c0_201 = arith.constant 0 : index
    %c0_202 = arith.constant 0 : index
    %417 = vector.load %arg6[%c7_200, %c0_201, %c0_202] : memref<8x128x128xbf16, #tpu.memory_space<vmem>>, vector<1x128x128xbf16>
    %418 = vector.shape_cast %417 : vector<1x128x128xbf16> to vector<128x128xbf16>
    %cst_203 = arith.constant dense<0.000000e+00> : vector<128x128xf32>
    %419 = tpu.matmul %416, %418, %cst_203 {dimension_numbers = #tpu.dot_dimension_numbers<[1], [0], [0], [1], [0, 0, 1, 1], [], []>} : vector<128x128xbf16>, vector<128x128xbf16>, vector<128x128xf32> -> vector<128x128xf32>
    %420 = arith.addf %406, %419 : vector<128x128xf32>
    %421 = arith.addf %342, %420 : vector<128x128xf32>
    %422 = vector.broadcast %220 : vector<1x128xf32> to vector<128x128xf32>
    %423 = arith.addf %421, %422 : vector<128x128xf32>
    %c0_204 = arith.constant 0 : index
    %c0_205 = arith.constant 0 : index
    %424 = vector.load %arg9[%c0_204, %c0_205] : memref<2x128xf32, #tpu.memory_space<vmem>>, vector<2x128xf32>
    %425 = vector.extract_strided_slice %424 {offsets = [0, 0], sizes = [1, 128], strides = [1, 1]} : vector<2x128xf32> to vector<1x128xf32>
    %426 = vector.extract_strided_slice %424 {offsets = [1, 0], sizes = [1, 128], strides = [1, 1]} : vector<2x128xf32> to vector<1x128xf32>
    %cst_206 = arith.constant dense<0.000000e+00> : vector<128xf32>
    %427 = vector.multi_reduction <add>, %423, %cst_206 [1] : vector<128x128xf32> to vector<128xf32>
    %428 = vector.shape_cast %427 : vector<128xf32> to vector<128x1xf32>
    %cst_207 = arith.constant 1.280000e+02 : f32
    %429 = vector.broadcast %cst_207 : f32 to vector<128x1xf32>
    %430 = arith.divf %428, %429 : vector<128x1xf32>
    %431 = vector.broadcast %430 : vector<128x1xf32> to vector<128x128xf32>
    %432 = arith.subf %423, %431 : vector<128x128xf32>
    %433 = arith.mulf %432, %432 : vector<128x128xf32>
    %cst_208 = arith.constant dense<0.000000e+00> : vector<128xf32>
    %434 = vector.multi_reduction <add>, %433, %cst_208 [1] : vector<128x128xf32> to vector<128xf32>
    %435 = vector.shape_cast %434 : vector<128xf32> to vector<128x1xf32>
    %cst_209 = arith.constant 1.280000e+02 : f32
    %436 = vector.broadcast %cst_209 : f32 to vector<128x1xf32>
    %437 = arith.divf %435, %436 : vector<128x1xf32>
    %438 = vector.broadcast %430 : vector<128x1xf32> to vector<128x128xf32>
    %439 = arith.subf %423, %438 : vector<128x128xf32>
    %cst_210 = arith.constant 9.99999974E-6 : f32
    %440 = vector.broadcast %cst_210 : f32 to vector<128x1xf32>
    %441 = arith.addf %437, %440 : vector<128x1xf32>
    %442 = math.rsqrt %441 : vector<128x1xf32>
    %443 = vector.broadcast %442 : vector<128x1xf32> to vector<128x128xf32>
    %444 = arith.mulf %439, %443 : vector<128x128xf32>
    %445 = vector.broadcast %425 : vector<1x128xf32> to vector<128x128xf32>
    %446 = arith.mulf %444, %445 : vector<128x128xf32>
    %447 = vector.broadcast %426 : vector<1x128xf32> to vector<128x128xf32>
    %448 = arith.addf %446, %447 : vector<128x128xf32>
    %449 = arith.truncf %448 : vector<128x128xf32> to vector<128x128xbf16>
    %c0_211 = arith.constant 0 : index
    %c0_212 = arith.constant 0 : index
    %450 = vector.load %arg10[%c0_211, %c0_212] : memref<128x128xbf16, #tpu.memory_space<vmem>>, vector<128x128xbf16>
    %cst_213 = arith.constant dense<0.000000e+00> : vector<128x128xf32>
    %451 = tpu.matmul %449, %450, %cst_213 {dimension_numbers = #tpu.dot_dimension_numbers<[1], [0], [0], [1], [0, 0, 1, 1], [], []>} : vector<128x128xbf16>, vector<128x128xbf16>, vector<128x128xf32> -> vector<128x128xf32>
    %c0_214 = arith.constant 0 : index
    %c0_215 = arith.constant 0 : index
    %452 = vector.load %arg11[%c0_214, %c0_215] : memref<1x128xf32, #tpu.memory_space<vmem>>, vector<1x128xf32>
    %453 = vector.broadcast %452 : vector<1x128xf32> to vector<128x128xf32>
    %454 = arith.addf %451, %453 : vector<128x128xf32>
    %c0_216 = arith.constant 0 : index
    %c0_217 = arith.constant 0 : index
    %c0_218 = arith.constant 0 : index
    %455 = vector.load %arg12[%c0_216, %c0_217, %c0_218] : memref<1x128x128xf32, #tpu.memory_space<vmem>>, vector<1x128x128xf32>
    %456 = vector.shape_cast %455 : vector<1x128x128xf32> to vector<128x128xf32>
    %457 = vector.shape_cast %454 : vector<128x128xf32> to vector<1x128x128xf32>
    tpu.vector_store %arg12[%c0_216, %c0_217, %c0_218], %457 {strides = array<i32>} : memref<1x128x128xf32, #tpu.memory_space<vmem>>, vector<1x128x128xf32>,
    return
  }
  func.func @transform_0(%arg0: i32) -> (i32, i32, i32) {
    %c0_i32 = arith.constant 0 : i32
    %c0_i32_0 = arith.constant 0 : i32
    %c0_i32_1 = arith.constant 0 : i32
    return %arg0, %c0_i32, %c0_i32_0 : i32, i32, i32
  }
  func.func @transform_1(%arg0: i32) -> (i32, i32) {
    %c0_i32 = arith.constant 0 : i32
    %c0_i32_0 = arith.constant 0 : i32
    %c0_i32_1 = arith.constant 0 : i32
    return %c0_i32, %c0_i32_0 : i32, i32
  }
  func.func @transform_2(%arg0: i32) -> (i32, i32, i32) {
    %c0_i32 = arith.constant 0 : i32
    %c0_i32_0 = arith.constant 0 : i32
    %c0_i32_1 = arith.constant 0 : i32
    %c0_i32_2 = arith.constant 0 : i32
    return %c0_i32, %c0_i32_0, %c0_i32_1 : i32, i32, i32
  }
  func.func @transform_3(%arg0: i32) -> (i32, i32, i32) {
    %c0_i32 = arith.constant 0 : i32
    %c0_i32_0 = arith.constant 0 : i32
    %c0_i32_1 = arith.constant 0 : i32
    %c0_i32_2 = arith.constant 0 : i32
    return %c0_i32, %c0_i32_0, %c0_i32_1 : i32, i32, i32
  }
  func.func @transform_4(%arg0: i32) -> (i32, i32, i32) {
    %c0_i32 = arith.constant 0 : i32
    %c0_i32_0 = arith.constant 0 : i32
    %c0_i32_1 = arith.constant 0 : i32
    %c0_i32_2 = arith.constant 0 : i32
    return %c0_i32, %c0_i32_0, %c0_i32_1 : i32, i32, i32
  }
  func.func @transform_5(%arg0: i32) -> (i32, i32, i32) {
    %c0_i32 = arith.constant 0 : i32
    %c0_i32_0 = arith.constant 0 : i32
    %c0_i32_1 = arith.constant 0 : i32
    %c0_i32_2 = arith.constant 0 : i32
    return %c0_i32, %c0_i32_0, %c0_i32_1 : i32, i32, i32
  }
  func.func @transform_6(%arg0: i32) -> (i32, i32, i32) {
    %c0_i32 = arith.constant 0 : i32
    %c0_i32_0 = arith.constant 0 : i32
    %c0_i32_1 = arith.constant 0 : i32
    %c0_i32_2 = arith.constant 0 : i32
    return %c0_i32, %c0_i32_0, %c0_i32_1 : i32, i32, i32
  }
  func.func @transform_7(%arg0: i32) -> (i32, i32, i32) {
    %c0_i32 = arith.constant 0 : i32
    %c0_i32_0 = arith.constant 0 : i32
    %c0_i32_1 = arith.constant 0 : i32
    %c0_i32_2 = arith.constant 0 : i32
    return %c0_i32, %c0_i32_0, %c0_i32_1 : i32, i32, i32
  }
  func.func @transform_8(%arg0: i32) -> (i32, i32) {
    %c0_i32 = arith.constant 0 : i32
    %c0_i32_0 = arith.constant 0 : i32
    %c0_i32_1 = arith.constant 0 : i32
    return %c0_i32, %c0_i32_0 : i32, i32
  }
  func.func @transform_9(%arg0: i32) -> (i32, i32) {
    %c0_i32 = arith.constant 0 : i32
    %c0_i32_0 = arith.constant 0 : i32
    %c0_i32_1 = arith.constant 0 : i32
    return %c0_i32, %c0_i32_0 : i32, i32
  }
  func.func @transform_10(%arg0: i32) -> (i32, i32) {
    %c0_i32 = arith.constant 0 : i32
    %c0_i32_0 = arith.constant 0 : i32
    %c0_i32_1 = arith.constant 0 : i32
    return %c0_i32, %c0_i32_0 : i32, i32
  }
  func.func @transform_11(%arg0: i32) -> (i32, i32, i32) {
    %c0_i32 = arith.constant 0 : i32
    %c0_i32_0 = arith.constant 0 : i32
    %c0_i32_1 = arith.constant 0 : i32
    return %arg0, %c0_i32, %c0_i32_0 : i32, i32, i32
  }
}

</mosaic_0001>

<bundles_post_ra>
// kernel: transformer_forward.1
= control target key start
LH: loop header
LB: loop body
LE: loop exit
PB: predicated region body
PF: predicated region fallthrough
CT: control target
= control target key end

     0   :  { %s13866_s17 = smov 0   ;;  %s18713_s0 = inlined_call_operand.vmem [shape: f32[2,128,128], index: 0, kind: input, shape index: {}]   ;;  %s18714_s1 = inlined_call_operand.vmem [shape: f32[128,128], index: 1, kind: input, shape index: {}]   ;;  %s18715_s2 = inlined_call_operand.vmem [shape: bf16[6,128,128], index: 2, kind: input, shape index: {}]   ;;  %s18716_s3 = inlined_call_operand.vmem [shape: bf16[2,128,128], index: 3, kind: input, shape index: {}]   ;;  %s18717_s4 = inlined_call_operand.vmem [shape: bf16[8,128,128], index: 4, kind: input, shape index: {}]   ;;  %s18718_s5 = inlined_call_operand.vmem [shape: bf16[8,128,128], index: 5, kind: input, shape index: {}]   ;;  %s18719_s6 = inlined_call_operand.vmem [shape: f32[8,1,128], index: 6, kind: input, shape index: {}]   ;;  %s18720_s7 = inlined_call_operand.vmem [shape: f32[2,6,128], index: 7, kind: input, shape index: {}]   ;;  %s18721_s8 = inlined_call_operand.vmem [shape: f32[2,128], index: 8, kind: input, shape index: {}]   ;;  %s18722_s9 = inlined_call_operand.vmem [shape: bf16[128,128], index: 9, kind: input, shape index: {}]   ;;  %s18723_s10 = inlined_call_operand.vmem [shape: f32[1,128], index: 10, kind: input, shape index: {}]   ;;  %s18724_s11 = inlined_call_operand.vmem [shape: f32[2,128,128], index: 11, kind: output, shape index: {}]  }
   0x1 LB: > { %s10182_s18 = sadd.s32 4294967295, %s13801_s17   ;;  %p10186_p0 = scmp.ge.s32.totalorder %s13801_s17, 1  ;;  %s13801_s17 = sphi %s13866_s17, %s21_s17  }
   0x2   : > { %p337_p1 = scmp.lt.s32.totalorder %s13801_s17, 3 }
   0x4   : > { %p338_p2 = pnand %p10186_p0, %p337_p1 }
   0x6   : > { %341 = sbr.rel (%p338_p2) target bundleno = 9564 (0x255c), region = 64 }
   0xb   : > { %p377_p3 = scmp.lt.s32.totalorder %s10182_s18, 1  ;;  %v12855_v51 = vld [vmem:[%s18715_s2 + $0x38] sm:$0xff]   ;;  %v12857_v61 = vld [vmem:[%s18715_s2 + $0x30] sm:$0xff]   ;;  %vm1155_vm0 = vcmask 261120   ;;  %s13803_s28 = smov 96   ;;  %vm3116_vm1 = vcmask 523264  }
   0xc   : > { %v12856_v52 = vld [vmem:[%s18715_s2 + $0x78] sm:$0xff]   ;;  %11452 = vmatprep.subr.bf16.mxu0 %v12855_v51  ;;  %v12858_v62 = vld [vmem:[%s18715_s2 + $0x70] sm:$0xff]   ;;  %s13804_s14 = smov 64   ;;  %s13805_s21 = smov 32   ;;  %vm3133_vm2 = vcmask 785408  }
   0xd   : > { %s19101_s18 = smov (!%p377_p3, %s10182_s18), 1  ;;  %11484 = vmatprep.subr.bf16.mxu1 %v12856_v52  ;;  %11453 = vmatpush3.bf16.msra.mxu0 %v12855_v51 }
   0xe   : > { %s10794_s19 = sshll.u32 %s19101_s18, 7  ;;  %11485 = vmatpush3.bf16.msra.mxu1 %v12856_v52  ;;  %11454 = vmatprep.subr.bf16.mxu0 %v12857_v61 }
   0xf   : > { %s13882_s22 = scalar_lea.vmem %s18713_s0, %s10794_s19  ;;  %11486 = vmatprep.subr.bf16.mxu1 %v12858_v62 }
  0x10   : > { %v388_v0 = vld [vmem:[%s13882_s22] sm:$0xff]  ;;  %v390_v1 = vld [vmem:[%s13882_s22 + $0x10] sm:$0xff]  ;;  %v389_v2 = vld [vmem:[%s13882_s22 + $0x8] sm:$0xff] }
  0x11   : > { %405 = vadd.xlane.f32.xlu0 %v388_v0  ;;  %409 = vadd.xlane.f32.xlu1 %v390_v1  ;;  %v391_v3 = vld [vmem:[%s13882_s22 + $0x18] sm:$0xff]  ;;  %v392_v4 = vld [vmem:[%s13882_s22 + $0x20] sm:$0xff]  ;;  %v393_v5 = vld [vmem:[%s13882_s22 + $0x28] sm:$0xff] }
  0x12   : > { %v394_v6 = vld [vmem:[%s13882_s22 + $0x30] sm:$0xff]  ;;  %v395_v7 = vld [vmem:[%s13882_s22 + $0x38] sm:$0xff]  ;;  %v13893_v8 = vld [vmem:[%s13882_s22 + $0x40] sm:$0xff]  ;;  %11455 = vmatpush3.bf16.msra.mxu0 %v12857_v61  ;;  %11487 = vmatpush3.bf16.msra.mxu1 %v12858_v62 }
  0x13   : > { %v13896_v9 = vld [vmem:[%s13882_s22 + $0x48] sm:$0xff]  ;;  %v13899_v10 = vld [vmem:[%s13882_s22 + $0x50] sm:$0xff]  ;;  %v13902_v11 = vld [vmem:[%s13882_s22 + $0x58] sm:$0xff] }
  0x14   : > { %v13907_v12 = vld [vmem:[%s13882_s22 + $0x60] sm:$0xff]  ;;  %v13910_v13 = vld [vmem:[%s13882_s22 + $0x68] sm:$0xff]  ;;  %v13915_v14 = vld [vmem:[%s13882_s22 + $0x70] sm:$0xff] }
  0x15   : > { %407 = vadd.xlane.f32.xlu0 %v389_v2  ;;  %411 = vadd.xlane.f32.xlu1 %v391_v3  ;;  %v13918_v15 = vld [vmem:[%s13882_s22 + $0x78] sm:$0xff] }
  0x19   : > { %413 = vadd.xlane.f32.xlu0 %v392_v4  ;;  %415 = vadd.xlane.f32.xlu1 %v393_v5 }
  0x1d   : > { %417 = vadd.xlane.f32.xlu0 %v394_v6  ;;  %419 = vadd.xlane.f32.xlu1 %v395_v7 }
  0x21   : > { %421 = vadd.xlane.f32.xlu0 %v13893_v8  ;;  %423 = vadd.xlane.f32.xlu1 %v13896_v9 }
  0x25   : > { %425 = vadd.xlane.f32.xlu0 %v13899_v10  ;;  %427 = vadd.xlane.f32.xlu1 %v13902_v11 }
  0x29   : > { %429 = vadd.xlane.f32.xlu0 %v13907_v12  ;;  %431 = vadd.xlane.f32.xlu1 %v13910_v13 }
  0x2d   : > { %433 = vadd.xlane.f32.xlu0 %v13915_v14  ;;  %435 = vadd.xlane.f32.xlu1 %v13918_v15 }
  0x9a   : > { %v406_v16 = vpop.xlane.xlu0 %405  ;;  %v410_v17 = vpop.xlane.xlu1 %409 }
  0x9b   : > { %v438_v18 = vmul.f32 0.0078125, %v406_v16  ;;  %v440_v19 = vmul.f32 0.0078125, %v410_v17 }
  0x9d   : > { %v13924_v20 = vsub.f32 %v388_v0, %v438_v18  ;;  %v13926_v21 = vsub.f32 %v390_v1, %v440_v19 }
  0x9e   : > { %v408_v22 = vpop.xlane.xlu0 %407  ;;  %v412_v23 = vpop.xlane.xlu1 %411 }
  0x9f   : > { %v439_v24 = vmul.f32 0.0078125, %v408_v22  ;;  %v470_v25 = vmul.f32 %v13924_v20, %v13924_v20  ;;  %v441_v26 = vmul.f32 0.0078125, %v412_v23  ;;  %v472_v27 = vmul.f32 %v13926_v21, %v13926_v21  ;;  %v12861_v23 = vld [vmem:[%s18715_s2 + $0x20] sm:$0xff]  }
  0xa1   : > { %486 = vadd.xlane.f32.xlu0 %v470_v25  ;;  %v13932_v28 = vsub.f32 %v389_v2, %v439_v24  ;;  %v13934_v29 = vsub.f32 %v391_v3, %v441_v26 }
  0xa2   : > { %v414_v30 = vpop.xlane.xlu0 %413  ;;  %v416_v31 = vpop.xlane.xlu1 %415 }
  0xa3   : > { %v442_v32 = vmul.f32 0.0078125, %v414_v30  ;;  %v471_v33 = vmul.f32 %v13932_v28, %v13932_v28  ;;  %v443_v34 = vmul.f32 0.0078125, %v416_v31  ;;  %v473_v35 = vmul.f32 %v13934_v29, %v13934_v29  ;;  %v12864_v30 = vld [vmem:[%s18715_s2 + $0x58] sm:$0xff]   ;;  %v12866_v31 = vld [vmem:[%s18715_s2 + $0x50] sm:$0xff]  }
  0xa5   : > { %490 = vadd.xlane.f32.xlu0 %v472_v27  ;;  %488 = vadd.xlane.f32.xlu1 %v471_v33  ;;  %v13940_v36 = vsub.f32 %v392_v4, %v442_v32  ;;  %v13942_v37 = vsub.f32 %v393_v5, %v443_v34  ;;  %v12863_v27 = vld [vmem:[%s18715_s2 + $0x18] sm:$0xff]   ;;  %v12867_v32 = vld [vmem:[%s18715_s2 + $0x8] sm:$0xff]   ;;  %v12869_v34 = vld [vmem:[%s18715_s2] sm:$0xff]  }
  0xa6   : > { %v418_v38 = vpop.xlane.xlu0 %417  ;;  %v420_v39 = vpop.xlane.xlu1 %419  ;;  %v12868_v33 = vld [vmem:[%s18715_s2 + $0x48] sm:$0xff]  }
  0xa7   : > { %v444_v40 = vmul.f32 0.0078125, %v418_v38  ;;  %v474_v41 = vmul.f32 %v13940_v36, %v13940_v36  ;;  %v445_v42 = vmul.f32 0.0078125, %v420_v39  ;;  %v475_v43 = vmul.f32 %v13942_v37, %v13942_v37  ;;  %v14047_v38 = vld [vmem:[%s18715_s2 + $0xb8] sm:$0xff]  }
  0xa9   : > { %492 = vadd.xlane.f32.xlu1 %v473_v35  ;;  %494 = vadd.xlane.f32.xlu0 %v474_v41  ;;  %v13948_v44 = vsub.f32 %v394_v6, %v444_v40  ;;  %v13950_v45 = vsub.f32 %v395_v7, %v445_v42  ;;  %v12859_v7 = vld [vmem:[%s18715_s2 + $0x28] sm:$0xff]   ;;  %v12870_v35 = vld [vmem:[%s18715_s2 + $0x40] sm:$0xff]  }
  0xaa   : > { %v422_v46 = vpop.xlane.xlu0 %421  ;;  %v424_v47 = vpop.xlane.xlu1 %423  ;;  %11456 = vmatprep.subr.bf16.mxu0 %v12859_v7 }
  0xab   : > { %v446_v48 = vmul.f32 0.0078125, %v422_v46  ;;  %v476_v49 = vmul.f32 %v13948_v44, %v13948_v44  ;;  %v447_v50 = vmul.f32 0.0078125, %v424_v47  ;;  %v477_v53 = vmul.f32 %v13950_v45, %v13950_v45  ;;  %11457 = vmatpush3.bf16.msra.mxu0 %v12859_v7 }
  0xac   : > { %11458 = vmatprep.subr.bf16.mxu0 %v12861_v23 }
  0xad   : > { %496 = vadd.xlane.f32.xlu1 %v475_v43  ;;  %498 = vadd.xlane.f32.xlu0 %v476_v49  ;;  %v13963_v54 = vsub.f32 %v13893_v8, %v446_v48  ;;  %v13966_v55 = vsub.f32 %v13896_v9, %v447_v50  ;;  %v12860_v8 = vld [vmem:[%s18715_s2 + $0x68] sm:$0xff]   ;;  %v582_v48 = vlaneseq }
  0xae   : > { %v426_v56 = vpop.xlane.xlu0 %425  ;;  %v428_v57 = vpop.xlane.xlu1 %427  ;;  %11488 = vmatprep.subr.bf16.mxu1 %v12860_v8 }
  0xaf   : > { %v448_v58 = vmul.f32 0.0078125, %v426_v56  ;;  %v478_v59 = vmul.f32 %v13963_v54, %v13963_v54  ;;  %v449_v60 = vmul.f32 0.0078125, %v428_v57  ;;  %v479_v63 = vmul.f32 %v13966_v55, %v13966_v55  ;;  %11489 = vmatpush3.bf16.msra.mxu1 %v12860_v8  ;;  %11459 = vmatpush3.bf16.msra.mxu0 %v12861_v23 }
  0xb0   : > { %11460 = vmatprep.subr.bf16.mxu0 %v12863_v27  ;;  %v14050_v57 = vshrl.u32 %v582_v48, 7 }
  0xb1   : > { %500 = vadd.xlane.f32.xlu1 %v477_v53  ;;  %502 = vadd.xlane.f32.xlu0 %v478_v59  ;;  %v13979_v0 = vsub.f32 %v13899_v10, %v448_v58  ;;  %v13982_v1 = vsub.f32 %v13902_v11, %v449_v60 }
  0xb2   : > { %v430_v2 = vpop.xlane.xlu0 %429  ;;  %v432_v3 = vpop.xlane.xlu1 %431  ;;  %18829 = vst [vmem:[#allocation2_spill] sm:$0xff] %v14050_v57 }
  0xb3   : > { %v450_v4 = vmul.f32 0.0078125, %v430_v2  ;;  %v480_v5 = vmul.f32 %v13979_v0, %v13979_v0  ;;  %v451_v6 = vmul.f32 0.0078125, %v432_v3  ;;  %v481_v9 = vmul.f32 %v13982_v1, %v13982_v1  ;;  %11461 = vmatpush3.bf16.msra.mxu0 %v12863_v27 }
  0xb4   : > { %v14053_v2 = vsub.s32 0, %v14050_v57 }
  0xb5   : > { %504 = vadd.xlane.f32.xlu1 %v479_v63  ;;  %506 = vadd.xlane.f32.xlu0 %v480_v5  ;;  %v13995_v10 = vsub.f32 %v13907_v12, %v450_v4  ;;  %v13998_v11 = vsub.f32 %v13910_v13, %v451_v6  ;;  %v12862_v12 = vld [vmem:[%s18715_s2 + $0x60] sm:$0xff]  }
  0xb6   : > { %v434_v16 = vpop.xlane.xlu0 %433  ;;  %v436_v17 = vpop.xlane.xlu1 %435  ;;  %11490 = vmatprep.subr.bf16.mxu1 %v12862_v12  ;;  %18830 = vst [vmem:[#allocation3_spill] sm:$0xff] %v14053_v2  ;;  %v404_v5 = vld [vmem:[%s18720_s7] sm:$0x3f] }
  0xb7   : > { %v452_v18 = vmul.f32 0.0078125, %v434_v16  ;;  %v482_v19 = vmul.f32 %v13995_v10, %v13995_v10  ;;  %v453_v22 = vmul.f32 0.0078125, %v436_v17  ;;  %v483_v13 = vmul.f32 %v13998_v11, %v13998_v11  ;;  %11491 = vmatpush3.bf16.msra.mxu1 %v12862_v12 }
  0xb8   : > { %11492 = vmatprep.subr.bf16.mxu1 %v12864_v30  ;;  %v14059_v17 = vrot.slane %v404_v5, %v14053_v2 }
  0xb9   : > { %508 = vadd.xlane.f32.xlu1 %v481_v9  ;;  %510 = vadd.xlane.f32.xlu0 %v482_v19  ;;  %v14011_v24 = vsub.f32 %v13915_v14, %v452_v18  ;;  %v14014_v25 = vsub.f32 %v13918_v15, %v453_v22  ;;  %v12865_v15 = vld [vmem:[%s18715_s2 + $0x10] sm:$0xff]   ;;  %v14062_v18 = vsub.s32 1, %v14050_v57 }
  0xba   : > { %11462 = vmatprep.subr.bf16.mxu0 %v12865_v15 }
  0xbb   : > { %v484_v26 = vmul.f32 %v14011_v24, %v14011_v24  ;;  %v485_v14 = vmul.f32 %v14014_v25, %v14014_v25  ;;  %11493 = vmatpush3.bf16.msra.mxu1 %v12864_v30  ;;  %11463 = vmatpush3.bf16.msra.mxu0 %v12865_v15  ;;  %18831 = vst [vmem:[#allocation4_spill] sm:$0xff] %v14062_v18 }
  0xbc   : > { %11494 = vmatprep.subr.bf16.mxu1 %v12866_v31  ;;  %11464 = vmatprep.subr.bf16.mxu0 %v12867_v32  ;;  %v14067_v15 = vrot.slane %v404_v5, %v14062_v18 }
  0xbd   : > { %512 = vadd.xlane.f32.xlu1 %v483_v13  ;;  %514 = vadd.xlane.f32.xlu0 %v484_v26 }
  0xbf   : > { %11495 = vmatpush3.bf16.msra.mxu1 %v12866_v31  ;;  %11465 = vmatpush3.bf16.msra.mxu0 %v12867_v32 }
  0xc0   : > { %11496 = vmatprep.subr.bf16.mxu1 %v12868_v33  ;;  %11466 = vmatprep.subr.bf16.mxu0 %v12869_v34 }
  0xc1   : > { %516 = vadd.xlane.f32.xlu1 %v485_v14 }
  0xc3   : > { %11497 = vmatpush3.bf16.msra.mxu1 %v12868_v33  ;;  %11467 = vmatpush3.bf16.msra.mxu0 %v12869_v34 }
  0xc4   : > { %11498 = vmatprep.subr.bf16.mxu1 %v12870_v35  ;;  %11516 = vmatprep.subr.bf16.mxu0 %v14047_v38 }
  0xc7   : > { %11499 = vmatpush3.bf16.msra.mxu1 %v12870_v35 }
 0x12a   : > { %v487_v39 = vpop.xlane.xlu0 %486 }
 0x12b   : > { %v518_v40 = vmul.f32 0.0078125, %v487_v39 }
 0x12d   : > { %v534_v41 = vadd.f32 1e-05, %v518_v40 }
 0x12e   : > { %v489_v42 = vpop.xlane.xlu1 %488  ;;  %v491_v43 = vpop.xlane.xlu0 %490 }
 0x12f   : > { %13055 = vrsqrt.f32 %v534_v41  ;;  %v519_v46 = vmul.f32 0.0078125, %v489_v42  ;;  %v520_v47 = vmul.f32 0.0078125, %v491_v43 }
 0x131   : > { %v535_v49 = vadd.f32 1e-05, %v519_v46  ;;  %v536_v50 = vadd.f32 1e-05, %v520_v47 }
 0x132   : > { %v493_v51 = vpop.xlane.xlu1 %492  ;;  %v495_v52 = vpop.xlane.xlu0 %494 }
 0x133   : > { %13057 = vrsqrt.f32 %v535_v49  ;;  %v521_v53 = vmul.f32 0.0078125, %v493_v51  ;;  %v522_v56 = vmul.f32 0.0078125, %v495_v52 }
 0x134   : > { %13059 = vrsqrt.f32 %v536_v50 }
 0x135   : > { %v537_v58 = vadd.f32 1e-05, %v521_v53  ;;  %v538_v59 = vadd.f32 1e-05, %v522_v56 }
 0x136   : > { %v497_v60 = vpop.xlane.xlu1 %496  ;;  %v499_v61 = vpop.xlane.xlu0 %498 }
 0x137   : > { %13061 = vrsqrt.f32 %v537_v58  ;;  %v523_v62 = vmul.f32 0.0078125, %v497_v60  ;;  %v524_v63 = vmul.f32 0.0078125, %v499_v61 }
 0x138   : > { %13063 = vrsqrt.f32 %v538_v59 }
 0x139   : > { %v539_v3 = vadd.f32 1e-05, %v523_v62  ;;  %v540_v4 = vadd.f32 1e-05, %v524_v63 }
 0x13a   : > { %v501_v6 = vpop.xlane.xlu1 %500  ;;  %v503_v7 = vpop.xlane.xlu0 %502 }
 0x13b   : > { %13065 = vrsqrt.f32 %v539_v3  ;;  %v525_v8 = vmul.f32 0.0078125, %v501_v6  ;;  %v526_v9 = vmul.f32 0.0078125, %v503_v7 }
 0x13c   : > { %v13056_v16 = vpop.eup %13055  ;;  %13067 = vrsqrt.f32 %v540_v4 }
 0x13d   : > { %v541_v19 = vadd.f32 1e-05, %v525_v8  ;;  %v542_v22 = vadd.f32 1e-05, %v526_v9  ;;  %v566_v23 = vmul.f32 %v13056_v16, %v13924_v20 }
 0x13e   : > { %v505_v12 = vpop.xlane.xlu1 %504  ;;  %v507_v13 = vpop.xlane.xlu0 %506 }
 0x13f   : > { %13069 = vrsqrt.f32 %v541_v19  ;;  %v527_v26 = vmul.f32 0.0078125, %v505_v12  ;;  %v528_v27 = vmul.f32 0.0078125, %v507_v13  ;;  %v586_v14 = vmul.f32 %v14059_v17, %v566_v23 }
 0x140   : > { %v13058_v30 = vpop.eup %13057  ;;  %13071 = vrsqrt.f32 %v542_v22 }
 0x141   : > { %v13060_v31 = vpop.eup %13059  ;;  %v543_v32 = vadd.f32 1e-05, %v527_v26  ;;  %v544_v33 = vadd.f32 1e-05, %v528_v27  ;;  %v567_v34 = vmul.f32 %v13058_v30, %v13932_v28  ;;  %v606_v46 = vadd.f32 %v14067_v15, %v586_v14 }
 0x142   : > { %v509_v35 = vpop.xlane.xlu1 %508  ;;  %v511_v39 = vpop.xlane.xlu0 %510  ;;  %v568_v20 = vmul.f32 %v13060_v31, %v13926_v21 }
 0x143   : > { %13073 = vrsqrt.f32 %v543_v32  ;;  %v529_v40 = vmul.f32 0.0078125, %v509_v35  ;;  %v530_v41 = vmul.f32 0.0078125, %v511_v39  ;;  %v587_v42 = vmul.f32 %v14059_v17, %v567_v34 }
 0x144   : > { %v13062_v43 = vpop.eup %13061  ;;  %13075 = vrsqrt.f32 %v544_v33  ;;  %v588_v21 = vmul.f32 %v14059_v17, %v568_v20 }
 0x145   : > { %v13064_v47 = vpop.eup %13063  ;;  %v545_v48 = vadd.f32 1e-05, %v529_v40  ;;  %v546_v49 = vadd.f32 1e-05, %v530_v41  ;;  %v607_v50 = vadd.f32 %v14067_v15, %v587_v42  ;;  %v569_v28 = vmul.f32 %v13062_v43, %v13934_v29  ;;  %v12874_v41 = vld [vmem:[%s18715_s2 + $0xa0] sm:$0xff]  }
 0x146   : > { %v513_v51 = vpop.xlane.xlu1 %512  ;;  %v515_v52 = vpop.xlane.xlu0 %514  ;;  %v570_v53 = vmul.f32 %v13064_v47, %v13940_v36  ;;  %v608_v5 = vadd.f32 %v14067_v15, %v588_v21 }
 0x147   : > { %13077 = vrsqrt.f32 %v545_v48  ;;  %v531_v56 = vmul.f32 0.0078125, %v513_v51  ;;  %v532_v58 = vmul.f32 0.0078125, %v515_v52  ;;  %v14077_v59 = vpack.c.bf16 %v607_v50, %v606_v46  ;;  %v12875_v51 = vld [vmem:[%s18715_s2 + $0x98] sm:$0xff]  }
 0x148   : > { %v13066_v60 = vpop.eup %13065  ;;  %13079 = vrsqrt.f32 %v546_v49  ;;  %v589_v61 = vmul.f32 %v14059_v17, %v569_v28  ;;  %v590_v36 = vmul.f32 %v14059_v17, %v570_v53 }
 0x149   : > { %v13068_v62 = vpop.eup %13067  ;;  %v547_v63 = vadd.f32 1e-05, %v531_v56  ;;  %v548_v3 = vadd.f32 1e-05, %v532_v58  ;;  %11468 = vmatprep.mubr.bf16.mxu0 %v14077_v59  ;;  %11500 = vmatprep.mubr.bf16.mxu1 %v14077_v59  ;;  %v571_v29 = vmul.f32 %v13066_v60, %v13942_v37  ;;  %v12872_v37 = vld [vmem:[%s18715_s2 + $0xb0] sm:$0xff]  }
 0x14a   : > { %v517_v4 = vpop.xlane.xlu1 %516  ;;  %v609_v6 = vadd.f32 %v14067_v15, %v589_v61  ;;  %v572_v7 = vmul.f32 %v13068_v62, %v13948_v44  ;;  %v610_v13 = vadd.f32 %v14067_v15, %v590_v36  ;;  %v12876_v61 = vld [vmem:[%s18715_s2 + $0x90] sm:$0xff]   ;;  %v12877_v36 = vld [vmem:[%s18715_s2 + $0x88] sm:$0xff]  }
 0x14b   : > { %13081 = vrsqrt.f32 %v547_v63  ;;  %v533_v8 = vmul.f32 0.0078125, %v517_v4  ;;  %v591_v9 = vmul.f32 %v14059_v17, %v571_v29 }
 0x14c   : > { %v13070_v16 = vpop.eup %13069  ;;  %13083 = vrsqrt.f32 %v548_v3  ;;  %v14088_v19 = vpack.c.bf16 %v609_v6, %v608_v5  ;;  %v592_v22 = vmul.f32 %v14059_v17, %v572_v7  ;;  %v12878_v6 = vld [vmem:[%s18715_s2 + $0x80] sm:$0xff]  }
 0x14d   : > { %v13072_v23 = vpop.eup %13071  ;;  %v549_v12 = vadd.f32 1e-05, %v533_v8  ;;  %v611_v44 = vadd.f32 %v14067_v15, %v591_v9  ;;  %v573_v26 = vmul.f32 %v13070_v16, %v13950_v45  ;;  %v12873_v45 = vld [vmem:[%s18715_s2 + $0xa8] sm:$0xff]  }
 0x14e   : > { %11469 = vmatmul.mubr.bf16.vlgmr.msra.gmra.mxu0 %v14088_v19  ;;  %11501 = vmatmul.mubr.bf16.vlgmr.msra.gmra.mxu1 %v14088_v19  ;;  %v574_v27 = vmul.f32 %v13072_v23, %v13963_v54  ;;  %v612_v32 = vadd.f32 %v14067_v15, %v592_v22 }
 0x14f   : > { %13085 = vrsqrt.f32 %v549_v12  ;;  %11517 = vmatpush3.bf16.msra.mxu0 %v14047_v38  ;;  %v14101_v30 = vpack.c.bf16 %v611_v44, %v610_v13  ;;  %v593_v14 = vmul.f32 %v14059_v17, %v573_v26 }
 0x150   : > { %v13074_v31 = vpop.eup %13073  ;;  %11518 = vmatprep.subr.bf16.mxu0 %v12872_v37  ;;  %v594_v34 = vmul.f32 %v14059_v17, %v574_v27 }
 0x151   : > { %v13076_v33 = vpop.eup %13075  ;;  %11472 = vmatprep.mubr.bf16.mxu0 %v14101_v30  ;;  %11504 = vmatprep.mubr.bf16.mxu1 %v14101_v30  ;;  %v613_v54 = vadd.f32 %v14067_v15, %v593_v14  ;;  %v575_v38 = vmul.f32 %v13074_v31, %v13966_v55 }
 0x152   : > { %v576_v35 = vmul.f32 %v13076_v33, %v13979_v0  ;;  %v614_v46 = vadd.f32 %v14067_v15, %v594_v34 }
 0x153   : > { %11519 = vmatpush3.bf16.msra.mxu0 %v12872_v37  ;;  %v625_v39 = vpack.c.bf16 %v613_v54, %v612_v32  ;;  %v595_v20 = vmul.f32 %v14059_v17, %v575_v38 }
 0x154   : > { %v13078_v40 = vpop.eup %13077  ;;  %11520 = vmatprep.subr.bf16.mxu0 %v12873_v45  ;;  %v596_v42 = vmul.f32 %v14059_v17, %v576_v35 }
 0x155   : > { %v13080_v43 = vpop.eup %13079  ;;  %v615_v55 = vadd.f32 %v14067_v15, %v595_v20  ;;  %v577_v47 = vmul.f32 %v13078_v40, %v13982_v1 }
 0x156   : > { %11473 = vmatmul.mubr.bf16.gmra.mxu0 %v625_v39  ;;  %11505 = vmatmul.mubr.bf16.gmra.mxu1 %v625_v39  ;;  %v578_v0 = vmul.f32 %v13080_v43, %v13995_v10  ;;  %v616_v28 = vadd.f32 %v14067_v15, %v596_v42 }
 0x157   : > { %11521 = vmatpush3.bf16.msra.mxu0 %v12873_v45  ;;  %v626_v48 = vpack.c.bf16 %v615_v55, %v614_v46  ;;  %v597_v49 = vmul.f32 %v14059_v17, %v577_v47 }
 0x158   : > { %v13082_v50 = vpop.eup %13081  ;;  %11522 = vmatprep.subr.bf16.mxu0 %v12874_v41  ;;  %v598_v10 = vmul.f32 %v14059_v17, %v578_v0 }
 0x159   : > { %v13084_v52 = vpop.eup %13083  ;;  %11476 = vmatprep.mubr.bf16.mxu0 %v626_v48  ;;  %11508 = vmatprep.mubr.bf16.mxu1 %v626_v48  ;;  %v617_v1 = vadd.f32 %v14067_v15, %v597_v49  ;;  %v579_v21 = vmul.f32 %v13082_v50, %v13998_v11 }
 0x15a   : > { %v580_v53 = vmul.f32 %v13084_v52, %v14011_v24  ;;  %v618_v62 = vadd.f32 %v14067_v15, %v598_v10 }
 0x15b   : > { %11523 = vmatpush3.bf16.msra.mxu0 %v12874_v41  ;;  %v627_v56 = vpack.c.bf16 %v617_v1, %v616_v28  ;;  %v599_v58 = vmul.f32 %v14059_v17, %v579_v21 }
 0x15c   : > { %v13086_v60 = vpop.eup %13085  ;;  %11524 = vmatprep.subr.bf16.mxu0 %v12875_v51  ;;  %v600_v3 = vmul.f32 %v14059_v17, %v580_v53 }
 0x15d   : > { %v619_v63 = vadd.f32 %v14067_v15, %v599_v58  ;;  %v581_v11 = vmul.f32 %v13086_v60, %v14014_v25 }
 0x15e   : > { %11477 = vmatmul.mubr.bf16.gmra.mxu0 %v627_v56  ;;  %11509 = vmatmul.mubr.bf16.gmra.mxu1 %v627_v56  ;;  %v620_v4 = vadd.f32 %v14067_v15, %v600_v3 }
 0x15f   : > { %11525 = vmatpush3.bf16.msra.mxu0 %v12875_v51  ;;  %v628_v24 = vpack.c.bf16 %v619_v63, %v618_v62  ;;  %v601_v29 = vmul.f32 %v14059_v17, %v581_v11 }
 0x160   : > { %11526 = vmatprep.subr.bf16.mxu0 %v12876_v61 }
 0x161   : > { %11480 = vmatprep.mubr.bf16.mxu0 %v628_v24  ;;  %11512 = vmatprep.mubr.bf16.mxu1 %v628_v24  ;;  %v621_v5 = vadd.f32 %v14067_v15, %v601_v29 }
 0x163   : > { %11527 = vmatpush3.bf16.msra.mxu0 %v12876_v61  ;;  %v629_v25 = vpack.c.bf16 %v621_v5, %v620_v4 }
 0x164   : > { %11528 = vmatprep.subr.bf16.mxu0 %v12877_v36 }
 0x166   : > { %11481 = vmatmul.mubr.bf16.gmra.mxu0 %v629_v25  ;;  %11513 = vmatmul.mubr.bf16.gmra.mxu1 %v629_v25 }
 0x167   : > { %11529 = vmatpush3.bf16.msra.mxu0 %v12877_v36  ;;  %11532 = vmatprep.mubr.bf16.mxu0 %v14077_v59 }
 0x168   : > { %11530 = vmatprep.subr.bf16.mxu0 %v12878_v6 }
 0x16b   : > { %11531 = vmatpush3.bf16.msra.mxu0 %v12878_v6 }
 0x16e   : > { %11533 = vmatmul.mubr.bf16.vlgmr.msra.gmra.mxu0 %v14088_v19 }
 0x16f   : > { %11536 = vmatprep.mubr.bf16.mxu0 %v14101_v30 }
 0x176   : > { %11537 = vmatmul.mubr.bf16.gmra.mxu0 %v625_v39 }
 0x177   : > { %11540 = vmatprep.mubr.bf16.mxu0 %v626_v48 }
 0x17e   : > { %11541 = vmatmul.mubr.bf16.gmra.mxu0 %v627_v56 }
 0x17f   : > { %11544 = vmatprep.mubr.bf16.mxu0 %v628_v24 }
 0x186   : > { %11545 = vmatmul.mubr.bf16.gmra.mxu0 %v629_v25 }
 0x20e   : > { %v11470_v17 = vpop.f32.mrf.mxu0  ;;  %v11502_v15 = vpop.f32.mrf.mxu1 }
 0x210   : > { %v728_v7 = vpop.f32.mrf.mxu0  ;;  %v14152_v8 = vpop.f32.mrf.mxu1 }
 0x212   : > { %v11471_v9 = vpop.f32.mrf.mxu0  ;;  %v11503_v16 = vpop.f32.mrf.mxu1 }
 0x213   : > { %v14154_v37 = vpack.c.bf16 %v11471_v9, %v11470_v17  ;;  %v14156_v59 = vpack.c.bf16 %v11503_v16, %v11502_v15 }
 0x214   : > { %v731_v22 = vpop.f32.mrf.mxu0  ;;  %v14158_v19 = vpop.f32.mrf.mxu1 }
 0x215   : > { %v14160_v23 = vpack.c.bf16 %v731_v22, %v728_v7 }
 0x216   : > { %v11474_v12 = vpop.f32.mrf.mxu0  ;;  %v11506_v13 = vpop.f32.mrf.mxu1 }
 0x217   : > { %11564 = vmatprep.mubr.msk.bf16.mxu1 %vm1155_vm0, %v14160_v23 }
 0x218   : > { %v14164_v44 = vpop.f32.mrf.mxu0  ;;  %v914_v26 = vpop.f32.mrf.mxu1 }
 0x21a   : > { %v11475_v27 = vpop.f32.mrf.mxu0  ;;  %v11507_v30 = vpop.f32.mrf.mxu1 }
 0x21b   : > { %v14166_v14 = vpack.c.bf16 %v11475_v27, %v11474_v12  ;;  %v14208_v4 = vpack.c.bf16 %v11507_v30, %v11506_v13  ;;  %v14245_v30 = vpack.c.bf16 %v14158_v19, %v14152_v8 }
 0x21c   : > { %v14168_v31 = vpop.f32.mrf.mxu0  ;;  %v917_v32 = vpop.f32.mrf.mxu1 }
 0x21d   : > { %18834 = vst [vmem:[#allocation7_spill] sm:$0xff] %v14208_v4  ;;  %v14216_v9 = vpack.c.bf16 %v917_v32, %v914_v26  ;;  %v1190_v22 = vsel %vm1155_vm0, %v14208_v4, 0  ;;  %v1181_v19 = vsel %vm1155_vm0, %v14245_v30, 0 }
 0x21e   : > { %v11478_v45 = vpop.f32.mrf.mxu0  ;;  %v11510_v33 = vpop.f32.mrf.mxu1 }
 0x21f   : > { %18835 = vst [vmem:[#allocation8_spill] sm:$0xff] %v14216_v9  ;;  %v1187_v26 = vsel %vm1155_vm0, %v14216_v9, 0 }
 0x220   : > { %v14170_v54 = vpop.f32.mrf.mxu0  ;;  %v930_v38 = vpop.f32.mrf.mxu1 }
 0x222   : > { %v11479_v34 = vpop.f32.mrf.mxu0  ;;  %v11511_v35 = vpop.f32.mrf.mxu1 }
 0x223   : > { %v14172_v39 = vpack.c.bf16 %v11479_v34, %v11478_v45  ;;  %v14196_v53 = vpack.c.bf16 %v11511_v35, %v11510_v33  ;;  %v1184_v45 = vsel %vm1155_vm0, %v14156_v59, 0 }
 0x224   : > { %v14174_v20 = vpop.f32.mrf.mxu0  ;;  %v933_v40 = vpop.f32.mrf.mxu1 }
 0x225   : > { %18833 = vst [vmem:[#allocation6_spill] sm:$0xff] %v14196_v53  ;;  %v14202_v63 = vpack.c.bf16 %v933_v40, %v930_v38  ;;  %v1196_v11 = vsel %vm1155_vm0, %v14196_v53, 0  ;;  %v14268_v38 = vpack.c.bf16 %v14168_v31, %v14164_v44  ;;  %v14276_v34 = vpack.c.bf16 %v14174_v20, %v14170_v54  ;;  %v14299_v54 = vld [vmem:[%s18714_s1 + $0x10] sm:$0xff] }
 0x226   : > { %v11482_v41 = vpop.f32.mrf.mxu0  ;;  %v11514_v42 = vpop.f32.mrf.mxu1 }
 0x227   : > { %v1193_v5 = vsel %vm1155_vm0, %v14202_v63, 0 }
 0x228   : > { %v14176_v43 = vpop.f32.mrf.mxu0  ;;  %v946_v46 = vpop.f32.mrf.mxu1 }
 0x22a   : > { %v11483_v55 = vpop.f32.mrf.mxu0  ;;  %v11515_v47 = vpop.f32.mrf.mxu1 }
 0x22b   : > { %v14178_v0 = vpack.c.bf16 %v11483_v55, %v11482_v41  ;;  %v14180_v48 = vpack.c.bf16 %v11515_v47, %v11514_v42  ;;  %v14307_v41 = vld [vmem:[%s18714_s1] sm:$0xff]  ;;  %v14312_v42 = vld [vmem:[%s18714_s1 + $0x18] sm:$0xff] }
 0x22c   : > { %v14182_v49 = vpop.f32.mrf.mxu0  ;;  %v949_v50 = vpop.f32.mrf.mxu1 }
 0x22d   : > { %18832 = vst [vmem:[#allocation5_spill] sm:$0xff] %v14180_v48  ;;  %v14184_v28 = vpack.c.bf16 %v949_v50, %v946_v46  ;;  %1620 = vrot.lane.b32.xlu0 %v14180_v48, %s13803_s28  ;;  %12780 = vmatprep.subr.msk.bf16.mxu1 %vm1155_vm0, %v14180_v48  ;;  %v1202_v51 = vsel %vm1155_vm0, %v14180_v48, 0  ;;  %v14284_v44 = vpack.c.bf16 %v14182_v49, %v14176_v43  ;;  %v14324_v49 = vld [vmem:[%s18714_s1 + $0x30] sm:$0xff]  ;;  %v14329_v50 = vld [vmem:[%s18714_s1 + $0x8] sm:$0xff] }
 0x22e   : > { %v11534_v52 = vpop.f32.mrf.mxu0  ;;  %11549 = vmatpush3.bf16.xpose.msra.mxu1 %v1202_v51  ;;  %18838 = vst [vmem:[#allocation11_spill] sm:$0xff] %v14324_v49 }
 0x22f   : > { %1618 = vrot.lane.b32.xlu1 %v14184_v28, %s13803_s28  ;;  %12781 = vmatprep.subr.msk.bf16.mxu1 %vm1155_vm0, %v14184_v28  ;;  %v1199_v56 = vsel %vm1155_vm0, %v14184_v28, 0 }
 0x230   : > { %v1068_v1 = vpop.f32.mrf.mxu0 }
 0x232   : > { %v11535_v21 = vpop.f32.mrf.mxu0 }
 0x233   : > { %v14255_v33 = vpack.c.bf16 %v11535_v21, %v11534_v52 }
 0x234   : > { %v1071_v10 = vpop.f32.mrf.mxu0 }
 0x235   : > { %18836 = vst [vmem:[#allocation9_spill] sm:$0xff] %v14255_v33  ;;  %v14259_v8 = vpack.c.bf16 %v1071_v10, %v1068_v1  ;;  %v14342_v10 = vld [vmem:[%s18714_s1 + $0x20] sm:$0xff] }
 0x236   : > { %v11538_v58 = vpop.f32.mrf.mxu0  ;;  %11551 = vmatpush3.bf16.xpose.msra.mxu1 %v1199_v56  ;;  %18839 = vst [vmem:[#allocation12_spill] sm:$0xff] %v14342_v10  ;;  %v14347_v56 = vld [vmem:[%s18714_s1 + $0x38] sm:$0xff] }
 0x237   : > { %12782 = vmatprep.subr.msk.bf16.mxu1 %vm1155_vm0, %v14196_v53  ;;  %18837 = vst [vmem:[#allocation10_spill] sm:$0xff] %v14259_v8 }
 0x238   : > { %v1084_v60 = vpop.f32.mrf.mxu0 }
 0x23a   : > { %v11539_v61 = vpop.f32.mrf.mxu0 }
 0x23b   : > { %v14239_v27 = vpack.c.bf16 %v11539_v61, %v11538_v58 }
 0x23c   : > { %v1087_v62 = vpop.f32.mrf.mxu0 }
 0x23d   : > { %v14247_v32 = vpack.c.bf16 %v1087_v62, %v1084_v60 }
 0x23e   : > { %v11542_v3 = vpop.f32.mrf.mxu0  ;;  %11553 = vmatpush3.bf16.xpose.msra.mxu1 %v1196_v11  ;;  %v14360_v11 = vld [vmem:[%s18714_s1 + $0x50] sm:$0xff] }
 0x23f   : > { %12783 = vmatprep.subr.msk.bf16.mxu1 %vm1155_vm0, %v14202_v63  ;;  %18840 = vst [vmem:[#allocation13_spill] sm:$0xff] %v14360_v11 }
 0x240   : > { %v1100_v24 = vpop.f32.mrf.mxu0 }
 0x242   : > { %v11543_v29 = vpop.f32.mrf.mxu0 }
 0x243   : > { %v14227_v12 = vpack.c.bf16 %v11543_v29, %v11542_v3  ;;  %v14365_v3 = vld [vmem:[%s18714_s1 + $0x28] sm:$0xff] }
 0x244   : > { %v1103_v36 = vpop.f32.mrf.mxu0 }
 0x245   : > { %v14231_v13 = vpack.c.bf16 %v1103_v36, %v1100_v24 }
 0x246   : > { %v11546_v25 = vpop.f32.mrf.mxu0  ;;  %11555 = vmatpush3.bf16.xpose.msra.mxu1 %v1193_v5 }
 0x247   : > { %12784 = vmatprep.subr.msk.bf16.mxu1 %vm1155_vm0, %v14208_v4 }
 0x248   : > { %v1116_v6 = vpop.f32.mrf.mxu0 }
 0x24a   : > { %v11547_v17 = vpop.f32.mrf.mxu0 }
 0x24b   : > { %v14214_v15 = vpack.c.bf16 %v11547_v17, %v11546_v25  ;;  %v14378_v25 = vld [vmem:[%s18714_s1 + $0x40] sm:$0xff] }
 0x24c   : > { %v1119_v7 = vpop.f32.mrf.mxu0  ;;  %18841 = vst [vmem:[#allocation14_spill] sm:$0xff] %v14378_v25 }
 0x24d   : > { %v14218_v16 = vpack.c.bf16 %v1119_v7, %v1116_v6  ;;  %11580 = vmatprep.subr.bf16.mxu0 %v14214_v15  ;;  %v14383_v6 = vld [vmem:[%s18714_s1 + $0x58] sm:$0xff] }
 0x24e   : > { %11557 = vmatpush3.bf16.xpose.msra.mxu1 %v1190_v22  ;;  %11581 = vmatpush3.bf16.msra.mxu0 %v14214_v15 }
 0x24f   : > { %12785 = vmatprep.subr.msk.bf16.mxu1 %vm1155_vm0, %v14216_v9  ;;  %11582 = vmatprep.subr.bf16.mxu0 %v14218_v16 }
 0x252   : > { %11583 = vmatpush3.bf16.msra.mxu0 %v14218_v16 }
 0x253   : > { %11584 = vmatprep.subr.bf16.mxu0 %v14227_v12 }
 0x256   : > { %11559 = vmatpush3.bf16.xpose.msra.mxu1 %v1187_v26  ;;  %11585 = vmatpush3.bf16.msra.mxu0 %v14227_v12 }
 0x257   : > { %12786 = vmatprep.subr.msk.bf16.mxu1 %vm1155_vm0, %v14156_v59  ;;  %11586 = vmatprep.subr.bf16.mxu0 %v14231_v13 }
 0x25a   : > { %11587 = vmatpush3.bf16.msra.mxu0 %v14231_v13 }
 0x25b   : > { %11588 = vmatprep.subr.bf16.mxu0 %v14239_v27 }
 0x25e   : > { %11561 = vmatpush3.bf16.xpose.msra.mxu1 %v1184_v45  ;;  %11589 = vmatpush3.bf16.msra.mxu0 %v14239_v27  ;;  %v14396_v45 = vld [vmem:[%s18714_s1 + $0x70] sm:$0xff] }
 0x25f   : > { %12787 = vmatprep.subr.msk.bf16.mxu1 %vm1155_vm0, %v14245_v30  ;;  %11590 = vmatprep.subr.bf16.mxu0 %v14247_v32  ;;  %18842 = vst [vmem:[#allocation15_spill] sm:$0xff] %v14396_v45 }
 0x262   : > { %11591 = vmatpush3.bf16.msra.mxu0 %v14247_v32 }
 0x263   : > { %11592 = vmatprep.subr.bf16.mxu0 %v14255_v33 }
 0x266   : > { %11563 = vmatpush3.bf16.xpose.msra.mxu1 %v1181_v19  ;;  %11593 = vmatpush3.bf16.msra.mxu0 %v14255_v33  ;;  %v14401_v19 = vld [vmem:[%s18714_s1 + $0x48] sm:$0xff] }
 0x267   : > { %11594 = vmatprep.subr.bf16.mxu0 %v14259_v8 }
 0x26a   : > { %11595 = vmatpush3.bf16.msra.mxu0 %v14259_v8 }
 0x26d   : > { %11565 = vmatmul.mubr.msk.bf16.vlgmr.msra.gmra.mxu1 %vm1155_vm0, %v14154_v37 }
 0x26e   : > { %11568 = vmatprep.mubr.msk.bf16.mxu1 %vm1155_vm0, %v14268_v38 }
 0x275   : > { %11569 = vmatmul.mubr.msk.bf16.gmra.mxu1 %vm1155_vm0, %v14166_v14 }
 0x276   : > { %11572 = vmatprep.mubr.msk.bf16.mxu1 %vm1155_vm0, %v14276_v34 }
 0x27d   : > { %11573 = vmatmul.mubr.msk.bf16.gmra.mxu1 %vm1155_vm0, %v14172_v39 }
 0x27e   : > { %11576 = vmatprep.mubr.msk.bf16.mxu1 %vm1155_vm0, %v14284_v44 }
 0x285   : > { %11577 = vmatmul.mubr.msk.bf16.gmra.mxu1 %vm1155_vm0, %v14178_v0 }
 0x29f   : > { %v14292_v31 = vpop.permute.xlu0 %1620 }
 0x2a0   : > { %12788 = vmatprep.subr.msk.bf16.mxu0 %vm1155_vm0, %v14292_v31 }
 0x32d   : > { %v11566_v35 = vpop.f32.mrf.mxu1 }
 0x32e   : > { %v14302_v20 = vadd.f32 %v11566_v35, %v14299_v54 }
 0x32f   : > { %v1238_v40 = vpop.f32.mrf.mxu1 }
 0x330   : > { %1305 = vmax.xlane.f32.xlu0 %v14302_v20  ;;  %v14316_v46 = vadd.f32 %v1238_v40, %v14307_v41 }
 0x331   : > { %v11567_v43 = vpop.f32.mrf.mxu1 }
 0x332   : > { %v14319_v55 = vadd.f32 %v11567_v43, %v14312_v42 }
 0x333   : > { %v1241_v47 = vpop.f32.mrf.mxu1 }
 0x334   : > { %1307 = vmax.xlane.f32.xlu1 %v14319_v55  ;;  %1301 = vmax.xlane.f32.xlu0 %v14316_v46  ;;  %v14337_v1 = vadd.f32 %v1241_v47, %v14329_v50 }
 0x335   : > { %v11570_v51 = vpop.f32.mrf.mxu1 }
 0x336   : > { %v14334_v52 = vadd.f32 %v11570_v51, %v14324_v49  ;;  %v14414_v51 = vld [vmem:[%s18714_s1 + $0x60] sm:$0xff] }
 0x337   : > { %v1254_v21 = vpop.f32.mrf.mxu1  ;;  %18843 = vst [vmem:[#allocation16_spill] sm:$0xff] %v14414_v51 }
 0x338   : > { %1303 = vmax.xlane.f32.xlu1 %v14337_v1  ;;  %1313 = vmax.xlane.f32.xlu0 %v14334_v52  ;;  %v14352_v60 = vadd.f32 %v1254_v21, %v14342_v10 }
 0x339   : > { %v11571_v58 = vpop.f32.mrf.mxu1 }
 0x33a   : > { %v14355_v61 = vadd.f32 %v11571_v58, %v14347_v56  ;;  %v14429_v58 = vld [vmem:[%s18714_s1 + $0x78] sm:$0xff] }
 0x33b   : > { %v1257_v62 = vpop.f32.mrf.mxu1  ;;  %18844 = vst [vmem:[#allocation17_spill] sm:$0xff] %v14429_v58 }
 0x33c   : > { %1315 = vmax.xlane.f32.xlu1 %v14355_v61  ;;  %1309 = vmax.xlane.f32.xlu0 %v14352_v60  ;;  %v14373_v36 = vadd.f32 %v1257_v62, %v14365_v3 }
 0x33d   : > { %v11574_v24 = vpop.f32.mrf.mxu1 }
 0x33e   : > { %v14370_v29 = vadd.f32 %v11574_v24, %v14360_v11 }
 0x33f   : > { %v1270_v5 = vpop.f32.mrf.mxu1 }
 0x340   : > { %1311 = vmax.xlane.f32.xlu1 %v14373_v36  ;;  %1321 = vmax.xlane.f32.xlu0 %v14370_v29  ;;  %v14388_v7 = vadd.f32 %v1270_v5, %v14378_v25 }
 0x341   : > { %v11575_v17 = vpop.f32.mrf.mxu1 }
 0x342   : > { %v14391_v22 = vadd.f32 %v11575_v17, %v14383_v6  ;;  %v14437_v17 = vld [vmem:[%s18714_s1 + $0x68] sm:$0xff] }
 0x343   : > { %v1273_v26 = vpop.f32.mrf.mxu1  ;;  %18845 = vst [vmem:[#allocation18_spill] sm:$0xff] %v14437_v17 }
 0x344   : > { %1323 = vmax.xlane.f32.xlu1 %v14391_v22  ;;  %1317 = vmax.xlane.f32.xlu0 %v14388_v7  ;;  %v14409_v43 = vadd.f32 %v1273_v26, %v14401_v19 }
 0x345   : > { %v11578_v35 = vpop.f32.mrf.mxu1 }
 0x346   : > { %v14406_v40 = vadd.f32 %v11578_v35, %v14396_v45  ;;  %v14444_v35 = vpop.permute.xlu1 %1618 }
 0x347   : > { %v1286_v47 = vpop.f32.mrf.mxu1 }
 0x348   : > { %1319 = vmax.xlane.f32.xlu1 %v14409_v43  ;;  %1329 = vmax.xlane.f32.xlu0 %v14406_v40  ;;  %v14419_v21 = vadd.f32 %v1286_v47, %v14414_v51 }
 0x349   : > { %v11579_v62 = vpop.f32.mrf.mxu1 }
 0x34a   : > { %v14432_v24 = vadd.f32 %v11579_v62, %v14429_v58 }
 0x34b   : > { %v1289_v5 = vpop.f32.mrf.mxu1 }
 0x34c   : > { %1325 = vmax.xlane.f32.xlu0 %v14419_v21  ;;  %v14441_v26 = vadd.f32 %v1289_v5, %v14437_v17 }
 0x359   : > { %1614 = vrot.lane.b32.xlu1 %v14202_v63, %s13803_s28 }
 0x362   : > { %1616 = vrot.lane.b32.xlu0 %v14196_v53, %s13803_s28 }
 0x37d   : > { %1331 = vmax.xlane.f32.xlu1 %v14432_v24 }
 0x381   : > { %1327 = vmax.xlane.f32.xlu1 %v14441_v26 }
 0x3b9   : > { %v1306_v47 = vpop.xlane.xlu0 %1305 }
 0x3ba   : > { %v1335_v18 = vsub.f32 %v14302_v20, %v1306_v47 }
 0x3bc   : > { %v1353_v62 = vmul.f32 1.442695, %v1335_v18 }
 0x3bd   : > { %v1308_v2 = vpop.xlane.xlu1 %1307  ;;  %v1302_v57 = vpop.xlane.xlu0 %1301 }
 0x3be   : > { %13087 = vpow2.f32 %v1353_v62  ;;  %v1336_v53 = vsub.f32 %v14319_v55, %v1308_v2  ;;  %v1333_v48 = vsub.f32 %v14316_v46, %v1302_v57 }
 0x3c0   : > { %v1355_v58 = vmul.f32 1.442695, %v1336_v53  ;;  %v1349_v51 = vmul.f32 1.442695, %v1333_v48 }
 0x3c1   : > { %v1304_v45 = vpop.xlane.xlu1 %1303  ;;  %v1314_v2 = vpop.xlane.xlu0 %1313 }
 0x3c2   : > { %13089 = vpow2.f32 %v1355_v58  ;;  %v1334_v5 = vsub.f32 %v14337_v1, %v1304_v45  ;;  %v1339_v1 = vsub.f32 %v14334_v52, %v1314_v2 }
 0x3c3   : > { %13091 = vpow2.f32 %v1349_v51 }
 0x3c4   : > { %v1351_v17 = vmul.f32 1.442695, %v1334_v5 }
 0x3c5   : > { %v1310_v48 = vpop.xlane.xlu0 %1309  ;;  %v1316_v46 = vpop.xlane.xlu1 %1315 }
 0x3c6   : > { %13093 = vpow2.f32 %v1351_v17  ;;  %v1337_v51 = vsub.f32 %v14352_v60, %v1310_v48  ;;  %v1361_v17 = vmul.f32 1.442695, %v1339_v1  ;;  %v1340_v5 = vsub.f32 %v14355_v61, %v1316_v46 }
 0x3c8   : > { %v1357_v11 = vmul.f32 1.442695, %v1337_v51  ;;  %13095 = vpow2.f32 %v1361_v17  ;;  %v1363_v49 = vmul.f32 1.442695, %v1340_v5 }
 0x3c9   : > { %v1322_v53 = vpop.xlane.xlu0 %1321  ;;  %v1312_v45 = vpop.xlane.xlu1 %1311 }
 0x3ca   : > { %v1338_v47 = vsub.f32 %v14373_v36, %v1312_v45  ;;  %13097 = vpow2.f32 %v1357_v11  ;;  %v1343_v52 = vsub.f32 %v14370_v29, %v1322_v53 }
 0x3cb   : > { %v14450_v25 = vpop.eup %13087 }
 0x3cc   : > { %1385 = vadd.xlane.f32.xlu0 %v14450_v25  ;;  %v1369_v36 = vmul.f32 1.442695, %v1343_v52 }
 0x3cd   : > { %v1318_v55 = vpop.xlane.xlu0 %1317  ;;  %v1324_v62 = vpop.xlane.xlu1 %1323 }
 0x3ce   : > { %v1341_v1 = vsub.f32 %v14388_v7, %v1318_v55  ;;  %v1344_v46 = vsub.f32 %v14391_v22, %v1324_v62 }
 0x3cf   : > { %v14453_v18 = vpop.eup %13089 }
 0x3d0   : > { %v14455_v20 = vpop.eup %13091  ;;  %1387 = vadd.xlane.f32.xlu1 %v14453_v18 }
 0x3d1   : > { %1381 = vadd.xlane.f32.xlu0 %v14455_v20  ;;  %v1330_v58 = vpop.xlane.xlu0 %1329  ;;  %v1320_v2 = vpop.xlane.xlu1 %1319 }
 0x3d2   : > { %v1347_v10 = vsub.f32 %v14406_v40, %v1330_v58  ;;  %v1365_v40 = vmul.f32 1.442695, %v1341_v1 }
 0x3d3   : > { %v14459_v57 = vpop.eup %13093 }
 0x3d4   : > { %1383 = vadd.xlane.f32.xlu1 %v14459_v57  ;;  %v1377_v60 = vmul.f32 1.442695, %v1347_v10 }
 0x3d5   : > { %v14475_v45 = vpop.permute.xlu1 %1614  ;;  %v14477_v11 = vpop.eup %13095 }
 0x3d7   : > { %v14482_v29 = vpop.eup %13097 }
 0x3e5   : > { %1610 = vrot.lane.b32.xlu1 %v14216_v9, %s13803_s28  ;;  %v1359_v9 = vmul.f32 1.442695, %v1338_v47 }
 0x3e7   : > { %1612 = vrot.lane.b32.xlu0 %v14208_v4, %s13803_s28  ;;  %v1326_v4 = vpop.xlane.xlu0 %1325  ;;  %13099 = vpow2.f32 %v1359_v9  ;;  %v1371_v9 = vmul.f32 1.442695, %v1344_v46 }
 0x3e8   : > { %v1345_v48 = vsub.f32 %v14419_v21, %v1326_v4  ;;  %13101 = vpow2.f32 %v1363_v49  ;;  %v1342_v4 = vsub.f32 %v14409_v43, %v1320_v2 }
 0x3e9   : > { %13103 = vpow2.f32 %v1377_v60 }
 0x3ea   : > { %v1373_v61 = vmul.f32 1.442695, %v1345_v48  ;;  %13105 = vpow2.f32 %v1369_v36  ;;  %v1367_v53 = vmul.f32 1.442695, %v1342_v4 }
 0x3eb   : > { %v1617_v2 = vpop.permute.xlu0 %1616 }
 0x3ec   : > { %13107 = vpow2.f32 %v1373_v61 }
 0x3ed   : > { %13109 = vpow2.f32 %v1365_v40 }
 0x3ee   : > { %13111 = vpow2.f32 %v1371_v9 }
 0x3f4   : > { %v14484_v7 = vpop.eup %13099 }
 0x3f5   : > { %v14489_v51 = vpop.eup %13101 }
 0x3f6   : > { %v14491_v43 = vpop.eup %13103 }
 0x3f7   : > { %v14495_v58 = vpop.eup %13105 }
 0x3f9   : > { %v14497_v17 = vpop.eup %13107 }
 0x406   : > { %1393 = vadd.xlane.f32.xlu0 %v14477_v11  ;;  %v1332_v10 = vpop.xlane.xlu1 %1331 }
 0x407   : > { %v1348_v49 = vsub.f32 %v14432_v24, %v1332_v10 }
 0x409   : > { %v1379_v22 = vmul.f32 1.442695, %v1348_v49  ;;  %1389 = vadd.xlane.f32.xlu1 %v14482_v29 }
 0x40a   : > { %1391 = vadd.xlane.f32.xlu0 %v14484_v7  ;;  %v1328_v21 = vpop.xlane.xlu1 %1327 }
 0x40b   : > { %13113 = vpow2.f32 %v1379_v22  ;;  %v1346_v55 = vsub.f32 %v14441_v26, %v1328_v21  ;;  %v14501_v26 = vpop.eup %13109 }
 0x40c   : > { %13115 = vpow2.f32 %v1367_v53  ;;  %v14504_v47 = vpop.eup %13111 }
 0x40d   : > { %1395 = vadd.xlane.f32.xlu1 %v14489_v51  ;;  %v1375_v24 = vmul.f32 1.442695, %v1346_v55  ;;  %v1668_v55 = vsel %vm1155_vm0, %v14292_v31, 0 }
 0x40e   : > { %1409 = vadd.xlane.f32.xlu0 %v14491_v43 }
 0x40f   : > { %13117 = vpow2.f32 %v1375_v24 }
 0x411   : > { %1401 = vadd.xlane.f32.xlu1 %v14495_v58 }
 0x412   : > { %1405 = vadd.xlane.f32.xlu0 %v14497_v17 }
 0x415   : > { %1397 = vadd.xlane.f32.xlu1 %v14501_v26 }
 0x418   : > { %v14506_v62 = vpop.eup %13113 }
 0x419   : > { %1403 = vadd.xlane.f32.xlu1 %v14504_v47  ;;  %1411 = vadd.xlane.f32.xlu0 %v14506_v62  ;;  %v14510_v5 = vpop.eup %13115 }
 0x41c   : > { %v14513_v52 = vpop.eup %13117 }
 0x41d   : > { %1399 = vadd.xlane.f32.xlu1 %v14510_v5 }
 0x421   : > { %1407 = vadd.xlane.f32.xlu1 %v14513_v52 }
 0x42f   : > { %1608 = vrot.lane.b32.xlu0 %v14156_v59, %s13803_s28 }
 0x432   : > { %1606 = vrot.lane.b32.xlu1 %v14245_v30, %s13803_s28 }
 0x433   : > { %1582 = vrot.lane.b32.xlu0 %v14160_v23, %s13803_s28 }
 0x436   : > { %1584 = vrot.lane.b32.xlu1 %v14154_v37, %s13803_s28 }
 0x437   : > { %1586 = vrot.lane.b32.xlu0 %v14268_v38, %s13803_s28 }
 0x43a   : > { %1588 = vrot.lane.b32.xlu1 %v14166_v14, %s13803_s28 }
 0x43b   : > { %1590 = vrot.lane.b32.xlu0 %v14276_v34, %s13803_s28 }
 0x43e   : > { %1592 = vrot.lane.b32.xlu1 %v14172_v39, %s13803_s28 }
 0x43f   : > { %1594 = vrot.lane.b32.xlu0 %v14284_v44, %s13803_s28 }
 0x442   : > { %1596 = vrot.lane.b32.xlu1 %v14178_v0, %s13803_s28 }
 0x443   : > { %1957 = vrot.lane.b32.xlu0 %v14214_v15, %s13803_s28 }
 0x446   : > { %1955 = vrot.lane.b32.xlu1 %v14218_v16, %s13803_s28 }
 0x447   : > { %1953 = vrot.lane.b32.xlu0 %v14227_v12, %s13803_s28 }
 0x44a   : > { %1947 = vrot.lane.b32.xlu1 %v14247_v32, %s13803_s28 }
 0x44b   : > { %1951 = vrot.lane.b32.xlu0 %v14231_v13, %s13803_s28 }
 0x44e   : > { %1943 = vrot.lane.b32.xlu1 %v14259_v8, %s13803_s28 }
 0x44f   : > { %1949 = vrot.lane.b32.xlu0 %v14239_v27, %s13803_s28 }
 0x455   : > { %v1386_v60 = vpop.xlane.xlu0 %1385 }
 0x459   : > { %v1388_v48 = vpop.xlane.xlu1 %1387 }
 0x45a   : > { %v1382_v36 = vpop.xlane.xlu0 %1381  ;;  %13119 = vrcp.f32 %v1388_v48 }
 0x45b   : > { %13121 = vrcp.f32 %v1382_v36 }
 0x45c   : > { %13123 = vrcp.f32 %v1386_v60 }
 0x45d   : > { %v1384_v1 = vpop.xlane.xlu1 %1383 }
 0x45e   : > { %13125 = vrcp.f32 %v1384_v1  ;;  %v1613_v31 = vpop.permute.xlu0 %1612 }
 0x467   : > { %v13120_v61 = vpop.eup %13119 }
 0x468   : > { %v13122_v46 = vpop.eup %13121  ;;  %v1448_v10 = vmul.f32 %v13120_v61, %v14453_v18  ;;  %v1665_v18 = vsel %vm1155_vm0, %v14444_v35, 0 }
 0x469   : > { %v13124_v40 = vpop.eup %13123  ;;  %v1445_v4 = vmul.f32 %v13122_v46, %v14455_v20  ;;  %v1662_v20 = vsel %vm1155_vm0, %v1617_v2, 0 }
 0x46a   : > { %v1447_v22 = vmul.f32 %v13124_v40, %v14450_v25  ;;  %v1659_v25 = vsel %vm1155_vm0, %v14475_v45, 0 }
 0x46b   : > { %v13126_v9 = vpop.eup %13125 }
 0x46c   : > { %v1446_v49 = vmul.f32 %v13126_v9, %v14459_v57  ;;  %v1462_v53 = vpack.c.bf16 %v1448_v10, %v1447_v22  ;;  %v1611_v57 = vpop.permute.xlu1 %1610 }
 0x46e   : > { %v1461_v21 = vpack.c.bf16 %v1446_v49, %v1445_v4 }
 0x470   : > { %11596 = vmatprep.mubr.bf16.mxu0 %v1461_v21 }
 0x471   : > { %11597 = vmatmul.mubr.bf16.vlgmr.msra.gmra.mxu0 %v1462_v53 }
 0x472   : > { %11613 = vmatpush3.bf16.xpose.msra.mxu0 %v1668_v55 }
 0x473   : > { %12789 = vmatprep.subr.msk.bf16.mxu0 %vm1155_vm0, %v14444_v35  ;;  %v1656_v35 = vsel %vm1155_vm0, %v1613_v31, 0 }
 0x47a   : > { %11615 = vmatpush3.bf16.xpose.msra.mxu0 %v1665_v18 }
 0x47b   : > { %12790 = vmatprep.subr.msk.bf16.mxu0 %vm1155_vm0, %v1617_v2 }
 0x482   : > { %11617 = vmatpush3.bf16.xpose.msra.mxu0 %v1662_v20 }
 0x483   : > { %12791 = vmatprep.subr.msk.bf16.mxu0 %vm1155_vm0, %v14475_v45  ;;  %v1653_v45 = vsel %vm1155_vm0, %v1611_v57, 0 }
 0x48a   : > { %11619 = vmatpush3.bf16.xpose.msra.mxu0 %v1659_v25 }
 0x48b   : > { %12792 = vmatprep.subr.msk.bf16.mxu0 %vm1155_vm0, %v1613_v31 }
 0x48f   : > { %v1394_v24 = vpop.xlane.xlu0 %1393 }
 0x492   : > { %11621 = vmatpush3.bf16.xpose.msra.mxu0 %v1656_v35  ;;  %v1390_v60 = vpop.xlane.xlu1 %1389 }
 0x493   : > { %13127 = vrcp.f32 %v1390_v60  ;;  %12793 = vmatprep.subr.msk.bf16.mxu0 %vm1155_vm0, %v1611_v57  ;;  %v1392_v2 = vpop.xlane.xlu0 %1391 }
 0x494   : > { %13129 = vrcp.f32 %v1392_v2 }
 0x495   : > { %13131 = vrcp.f32 %v1394_v24 }
 0x496   : > { %v1396_v48 = vpop.xlane.xlu1 %1395 }
 0x497   : > { %13133 = vrcp.f32 %v1396_v48  ;;  %v1410_v36 = vpop.xlane.xlu0 %1409 }
 0x49a   : > { %11623 = vmatpush3.bf16.xpose.msra.mxu0 %v1653_v45  ;;  %v1402_v1 = vpop.xlane.xlu1 %1401 }
 0x49b   : > { %v1406_v61 = vpop.xlane.xlu0 %1405 }
 0x49e   : > { %v1398_v46 = vpop.xlane.xlu1 %1397 }
 0x4a0   : > { %v13128_v40 = vpop.eup %13127 }
 0x4a1   : > { %v13130_v9 = vpop.eup %13129  ;;  %v1449_v10 = vmul.f32 %v13128_v40, %v14482_v29 }
 0x4a2   : > { %v13132_v4 = vpop.eup %13131  ;;  %v1404_v49 = vpop.xlane.xlu1 %1403  ;;  %v1450_v21 = vmul.f32 %v13130_v9, %v14484_v7 }
 0x4a3   : > { %v1412_v22 = vpop.xlane.xlu0 %1411  ;;  %13135 = vrcp.f32 %v1404_v49  ;;  %v1451_v18 = vmul.f32 %v13132_v4, %v14477_v11 }
 0x4a4   : > { %v13134_v53 = vpop.eup %13133  ;;  %v1463_v55 = vpack.c.bf16 %v1450_v21, %v1449_v10  ;;  %13137 = vrcp.f32 %v1398_v46 }
 0x4a5   : > { %v1452_v20 = vmul.f32 %v13134_v53, %v14489_v51  ;;  %13139 = vrcp.f32 %v1402_v1 }
 0x4a6   : > { %11600 = vmatprep.mubr.bf16.mxu0 %v1463_v55  ;;  %v1400_v25 = vpop.xlane.xlu1 %1399 }
 0x4a7   : > { %v1609_v31 = vpop.permute.xlu0 %1608  ;;  %13141 = vrcp.f32 %v1400_v25  ;;  %v1464_v57 = vpack.c.bf16 %v1452_v20, %v1451_v18 }
 0x4a8   : > { %12794 = vmatprep.subr.msk.bf16.mxu0 %vm1155_vm0, %v1609_v31  ;;  %v1650_v29 = vsel %vm1155_vm0, %v1609_v31, 0  ;;  %13143 = vrcp.f32 %v1406_v61 }
 0x4a9   : > { %11625 = vmatpush3.bf16.xpose.msra.mxu0 %v1650_v29 }
 0x4aa   : > { %11601 = vmatmul.mubr.bf16.gmra.mxu0 %v1464_v57  ;;  %v1408_v7 = vpop.xlane.xlu1 %1407 }
 0x4ab   : > { %v1583_v24 = vpop.permute.xlu0 %1582  ;;  %13145 = vrcp.f32 %v1408_v7 }
 0x4ac   : > { %13147 = vrcp.f32 %v1412_v22 }
 0x4ad   : > { %13149 = vrcp.f32 %v1410_v36 }
 0x4ae   : > { %v1607_v11 = vpop.permute.xlu1 %1606 }
 0x4af   : > { %v1587_v51 = vpop.permute.xlu0 %1586  ;;  %12795 = vmatprep.subr.msk.bf16.mxu0 %vm1155_vm0, %v1607_v11  ;;  %v1647_v35 = vsel %vm1155_vm0, %v1607_v11, 0 }
 0x4b0   : > { %v13136_v60 = vpop.eup %13135 }
 0x4b1   : > { %11627 = vmatpush3.bf16.xpose.msra.mxu0 %v1647_v35  ;;  %v13138_v2 = vpop.eup %13137  ;;  %v1456_v61 = vmul.f32 %v13136_v60, %v14504_v47 }
 0x4b2   : > { %v1585_v48 = vpop.permute.xlu1 %1584  ;;  %v13140_v1 = vpop.eup %13139  ;;  %v1453_v40 = vmul.f32 %v13138_v2, %v14501_v26 }
 0x4b3   : > { %v1591_v45 = vpop.permute.xlu0 %1590  ;;  %v1455_v49 = vmul.f32 %v13140_v1, %v14495_v58 }
 0x4b4   : > { %v13142_v46 = vpop.eup %13141 }
 0x4b5   : > { %v1454_v9 = vmul.f32 %v13142_v46, %v14510_v5  ;;  %v13144_v36 = vpop.eup %13143  ;;  %v1466_v53 = vpack.c.bf16 %v1456_v61, %v1455_v49 }
 0x4b6   : > { %v1589_v10 = vpop.permute.xlu1 %1588  ;;  %v1457_v18 = vmul.f32 %v13144_v36, %v14497_v17 }
 0x4b7   : > { %v1595_v4 = vpop.permute.xlu0 %1594  ;;  %v1465_v22 = vpack.c.bf16 %v1454_v9, %v1453_v40 }
 0x4b8   : > { %v13146_v21 = vpop.eup %13145 }
 0x4b9   : > { %v13148_v55 = vpop.eup %13147  ;;  %11604 = vmatprep.mubr.bf16.mxu0 %v1465_v22  ;;  %v1458_v20 = vmul.f32 %v13146_v21, %v14513_v52 }
 0x4ba   : > { %v1593_v25 = vpop.permute.xlu1 %1592  ;;  %11605 = vmatmul.mubr.bf16.gmra.mxu0 %v1466_v53  ;;  %v13150_v26 = vpop.eup %13149  ;;  %v1460_v31 = vmul.f32 %v13148_v55, %v14506_v62 }
 0x4bb   : > { %v1958_v47 = vpop.permute.xlu0 %1957  ;;  %v1467_v5 = vpack.c.bf16 %v1458_v20, %v1457_v18  ;;  %v1459_v29 = vmul.f32 %v13150_v26, %v14491_v43 }
 0x4bc   : > { %11644 = vmatprep.subr.bf16.mxu1 %v1958_v47 }
 0x4bd   : > { %11645 = vmatpush3.bf16.msra.mxu1 %v1958_v47  ;;  %11608 = vmatprep.mubr.bf16.mxu0 %v1467_v5  ;;  %v1468_v7 = vpack.c.bf16 %v1460_v31, %v1459_v29 }
 0x4be   : > { %v1597_v58 = vpop.permute.xlu1 %1596 }
 0x4bf   : > { %v1954_v57 = vpop.permute.xlu0 %1953 }
 0x4c2   : > { %v1956_v11 = vpop.permute.xlu1 %1955  ;;  %11609 = vmatmul.mubr.bf16.gmra.mxu0 %v1468_v7 }
 0x4c3   : > { %11628 = vmatprep.mubr.msk.bf16.mxu0 %vm1155_vm0, %v1583_v24  ;;  %11646 = vmatprep.subr.bf16.mxu1 %v1956_v11  ;;  %v1952_v17 = vpop.permute.xlu0 %1951 }
 0x4c4   : > { %11647 = vmatpush3.bf16.msra.mxu1 %v1956_v11 }
 0x4c5   : > { %11648 = vmatprep.subr.bf16.mxu1 %v1954_v57 }
 0x4c6   : > { %v1948_v43 = vpop.permute.xlu1 %1947 }
 0x4c7   : > { %v1950_v62 = vpop.permute.xlu0 %1949 }
 0x4c8   : > { %11649 = vmatpush3.bf16.msra.mxu1 %v1954_v57 }
 0x4c9   : > { %11650 = vmatprep.subr.bf16.mxu1 %v1952_v17 }
 0x4ca   : > { %11629 = vmatmul.mubr.msk.bf16.vlgmr.msra.gmra.mxu0 %vm1155_vm0, %v1585_v48 }
 0x4cb   : > { %11632 = vmatprep.mubr.msk.bf16.mxu0 %vm1155_vm0, %v1587_v51 }
 0x4cc   : > { %11651 = vmatpush3.bf16.msra.mxu1 %v1952_v17 }
 0x4cd   : > { %11652 = vmatprep.subr.bf16.mxu1 %v1950_v62 }
 0x4d0   : > { %11653 = vmatpush3.bf16.msra.mxu1 %v1950_v62 }
 0x4d1   : > { %11654 = vmatprep.subr.bf16.mxu1 %v1948_v43 }
 0x4d2   : > { %11633 = vmatmul.mubr.msk.bf16.gmra.mxu0 %vm1155_vm0, %v1589_v10 }
 0x4d3   : > { %11636 = vmatprep.mubr.msk.bf16.mxu0 %vm1155_vm0, %v1591_v45 }
 0x4d4   : > { %11655 = vmatpush3.bf16.msra.mxu1 %v1948_v43  ;;  %v18863_v43 = vld [vmem:[#allocation12_spill] sm:$0xff] }
 0x4da   : > { %11637 = vmatmul.mubr.msk.bf16.gmra.mxu0 %vm1155_vm0, %v1593_v25 }
 0x4db   : > { %11640 = vmatprep.mubr.msk.bf16.mxu0 %vm1155_vm0, %v1595_v4 }
 0x4e2   : > { %11641 = vmatmul.mubr.msk.bf16.gmra.mxu0 %vm1155_vm0, %v1597_v58 }
 0x531   : > { %v14594_v52 = vpop.f32.mrf.mxu0 }
 0x532   : > { %18846 = vst [vmem:[#allocation19_spill] sm:$0xff] %v14594_v52 }
 0x533   : > { %v14596_v24 = vpop.f32.mrf.mxu0 }
 0x534   : > { %18847 = vst [vmem:[#allocation20_spill] sm:$0xff] %v14596_v24 }
 0x535   : > { %v14598_v51 = vpop.f32.mrf.mxu0 }
 0x536   : > { %18848 = vst [vmem:[#allocation21_spill] sm:$0xff] %v14598_v51 }
 0x537   : > { %v14602_v60 = vpop.f32.mrf.mxu0 }
 0x538   : > { %18849 = vst [vmem:[#allocation22_spill] sm:$0xff] %v14602_v60  ;;  %v14972_v60 = vld [vmem:[%s18714_s1 + $0x20] sm:$0xff] }
 0x56a   : > { %v14604_v2 = vpop.f32.mrf.mxu0 }
 0x56b   : > { %18850 = vst [vmem:[#allocation23_spill] sm:$0xff] %v14604_v2 }
 0x56c   : > { %v14606_v48 = vpop.f32.mrf.mxu0 }
 0x56d   : > { %18851 = vst [vmem:[#allocation24_spill] sm:$0xff] %v14606_v48 }
 0x56e   : > { %v14608_v45 = vpop.f32.mrf.mxu0 }
 0x56f   : > { %18852 = vst [vmem:[#allocation25_spill] sm:$0xff] %v14608_v45 }
 0x570   : > { %v14612_v46 = vpop.f32.mrf.mxu0 }
 0x571   : > { %18853 = vst [vmem:[#allocation26_spill] sm:$0xff] %v14612_v46 }
 0x57a   : > { %v14614_v61 = vpop.f32.mrf.mxu0 }
 0x57b   : > { %18854 = vst [vmem:[#allocation27_spill] sm:$0xff] %v14614_v61 }
 0x57c   : > { %v14616_v40 = vpop.f32.mrf.mxu0 }
 0x57d   : > { %18855 = vst [vmem:[#allocation28_spill] sm:$0xff] %v14616_v40 }
 0x57e   : > { %v14618_v9 = vpop.f32.mrf.mxu0 }
 0x57f   : > { %18856 = vst [vmem:[#allocation29_spill] sm:$0xff] %v14618_v9 }
 0x580   : > { %v14622_v10 = vpop.f32.mrf.mxu0 }
 0x581   : > { %18857 = vst [vmem:[#allocation30_spill] sm:$0xff] %v14622_v10 }
 0x582   : > { %v14624_v4 = vpop.f32.mrf.mxu0 }
 0x583   : > { %18858 = vst [vmem:[#allocation31_spill] sm:$0xff] %v14624_v4 }
 0x584   : > { %v14626_v49 = vpop.f32.mrf.mxu0 }
 0x585   : > { %18859 = vst [vmem:[#allocation32_spill] sm:$0xff] %v14626_v49 }
 0x586   : > { %v14628_v22 = vpop.f32.mrf.mxu0 }
 0x587   : > { %18860 = vst [vmem:[#allocation33_spill] sm:$0xff] %v14628_v22 }
 0x588   : > { %v14632_v53 = vpop.f32.mrf.mxu0 }
 0x589   : > { %18861 = vst [vmem:[#allocation34_spill] sm:$0xff] %v14632_v53 }
 0x58a   : > { %v11630_v55 = vpop.f32.mrf.mxu0 }
 0x58b   : > { %v1713_v18 = vadd.f32 %v11630_v55, %v14299_v54 }
 0x58c   : > { %v1704_v20 = vpop.f32.mrf.mxu0 }
 0x58d   : > { %1771 = vmax.xlane.f32.xlu0 %v1713_v18  ;;  %v1705_v47 = vadd.f32 %v1704_v20, %v14307_v41 }
 0x58e   : > { %v11631_v25 = vpop.f32.mrf.mxu0 }
 0x58f   : > { %v1716_v58 = vadd.f32 %v11631_v25, %v14312_v42 }
 0x590   : > { %v1707_v26 = vpop.f32.mrf.mxu0 }
 0x591   : > { %1767 = vmax.xlane.f32.xlu0 %v1705_v47  ;;  %v1708_v5 = vadd.f32 %v1707_v26, %v14329_v50  ;;  %v18865_v26 = vld [vmem:[#allocation14_spill] sm:$0xff] }
 0x592   : > { %v11634_v31 = vpop.f32.mrf.mxu0 }
 0x593   : > { %1769 = vmax.xlane.f32.xlu1 %v1708_v5 }
 0x594   : > { %v1720_v29 = vpop.f32.mrf.mxu0 }
 0x595   : > { %1773 = vmax.xlane.f32.xlu0 %v1716_v58  ;;  %v14662_v55 = vadd.f32 %v1720_v29, %v18863_v43  ;;  %v18867_v29 = vld [vmem:[#allocation16_spill] sm:$0xff] }
 0x596   : > { %v11635_v57 = vpop.f32.mrf.mxu0 }
 0x597   : > { %v14639_v7 = vadd.f32 %v11635_v57, %v14347_v56 }
 0x598   : > { %v1723_v54 = vpop.f32.mrf.mxu0 }
 0x599   : > { %1781 = vmax.xlane.f32.xlu1 %v14639_v7  ;;  %v14643_v41 = vadd.f32 %v1723_v54, %v14365_v3  ;;  %v18862_v3 = vld [vmem:[#allocation11_spill] sm:$0xff] }
 0x59a   : > { %v11638_v11 = vpop.f32.mrf.mxu0 }
 0x59c   : > { %v1736_v17 = vpop.f32.mrf.mxu0 }
 0x59d   : > { %1777 = vmax.xlane.f32.xlu1 %v14643_v41  ;;  %v14670_v57 = vadd.f32 %v1736_v17, %v18865_v26  ;;  %v18869_v17 = vld [vmem:[#allocation18_spill] sm:$0xff] }
 0x59e   : > { %v11639_v50 = vpop.f32.mrf.mxu0 }
 0x59f   : > { %v14647_v42 = vadd.f32 %v11639_v50, %v14383_v6  ;;  %v1729_v6 = vadd.f32 %v11634_v31, %v18862_v3  ;;  %v18866_v50 = vld [vmem:[#allocation15_spill] sm:$0xff] }
 0x5a0   : > { %v1739_v62 = vpop.f32.mrf.mxu0 }
 0x5a1   : > { %1789 = vmax.xlane.f32.xlu1 %v14647_v42  ;;  %v14651_v56 = vadd.f32 %v1739_v62, %v14401_v19  ;;  %v18864_v19 = vld [vmem:[#allocation13_spill] sm:$0xff] }
 0x5a2   : > { %v14666_v20 = vadd.f32 %v11638_v11, %v18864_v19  ;;  %v11642_v25 = vpop.f32.mrf.mxu0  ;;  %v18868_v11 = vld [vmem:[#allocation17_spill] sm:$0xff] }
 0x5a3   : > { %v14674_v31 = vadd.f32 %v11642_v25, %v18866_v50  ;;  %v18870_v25 = vld [vmem:[#allocation5_spill] sm:$0xff]  ;;  %v18871_v50 = vld [vmem:[#allocation6_spill] sm:$0xff] }
 0x5a4   : > { %v1752_v54 = vpop.f32.mrf.mxu0 }
 0x5a5   : > { %1785 = vmax.xlane.f32.xlu1 %v14651_v56  ;;  %v14678_v3 = vadd.f32 %v1752_v54, %v18867_v29  ;;  %v18872_v54 = vld [vmem:[#allocation7_spill] sm:$0xff] }
 0x5a6   : > { %v11643_v62 = vpop.f32.mrf.mxu0 }
 0x5a7   : > { %v14681_v43 = vadd.f32 %v11643_v62, %v18868_v11  ;;  %v1944_v11 = vpop.permute.xlu1 %1943 }
 0x5a8   : > { %v1755_v19 = vpop.f32.mrf.mxu0 }
 0x5a9   : > { %v14686_v26 = vadd.f32 %v1755_v19, %v18869_v17 }
 0x5ab   : > { %1945 = vrot.lane.b32.xlu0 %v14255_v33, %s13803_s28 }
 0x5b6   : > { %2100 = vrot.lane.b32.xlu1 %v14184_v28, %s13804_s14 }
 0x5ba   : > { %2096 = vrot.lane.b32.xlu1 %v14202_v63, %s13804_s14 }
 0x5ca   : > { %1779 = vmax.xlane.f32.xlu0 %v1729_v6 }
 0x5ce   : > { %1775 = vmax.xlane.f32.xlu0 %v14662_v55 }
 0x5d2   : > { %1787 = vmax.xlane.f32.xlu0 %v14666_v20 }
 0x5d6   : > { %1783 = vmax.xlane.f32.xlu0 %v14670_v57 }
 0x5da   : > { %1795 = vmax.xlane.f32.xlu0 %v14674_v31 }
 0x5de   : > { %1797 = vmax.xlane.f32.xlu1 %v14681_v43  ;;  %1791 = vmax.xlane.f32.xlu0 %v14678_v3 }
 0x5e2   : > { %1793 = vmax.xlane.f32.xlu1 %v14686_v26 }
 0x5f4   : > { %2102 = vrot.lane.b32.xlu0 %v18870_v25, %s13804_s14 }
 0x5f8   : > { %2098 = vrot.lane.b32.xlu0 %v18871_v50, %s13804_s14 }
 0x5fc   : > { %2094 = vrot.lane.b32.xlu0 %v18872_v54, %s13804_s14 }
 0x616   : > { %v1772_v62 = vpop.xlane.xlu0 %1771 }
 0x617   : > { %v1801_v29 = vsub.f32 %v1713_v18, %v1772_v62 }
 0x619   : > { %v1819_v21 = vmul.f32 1.442695, %v1801_v29 }
 0x61a   : > { %v1768_v36 = vpop.xlane.xlu0 %1767 }
 0x61b   : > { %13151 = vpow2.f32 %v1819_v21  ;;  %v1799_v1 = vsub.f32 %v1705_v47, %v1768_v36 }
 0x61c   : > { %v1770_v19 = vpop.xlane.xlu1 %1769 }
 0x61d   : > { %v1815_v17 = vmul.f32 1.442695, %v1799_v1  ;;  %v1800_v4 = vsub.f32 %v1708_v5, %v1770_v19 }
 0x61e   : > { %v1774_v35 = vpop.xlane.xlu0 %1773 }
 0x61f   : > { %13153 = vpow2.f32 %v1815_v17  ;;  %v1802_v22 = vsub.f32 %v1716_v58, %v1774_v35  ;;  %v1817_v61 = vmul.f32 1.442695, %v1800_v4 }
 0x621   : > { %v1821_v53 = vmul.f32 1.442695, %v1802_v22 }
 0x622   : > { %v1946_v49 = vpop.permute.xlu0 %1945  ;;  %v1782_v4 = vpop.xlane.xlu1 %1781 }
 0x623   : > { %13155 = vpow2.f32 %v1821_v53  ;;  %11656 = vmatprep.subr.bf16.mxu1 %v1946_v49  ;;  %v1806_v58 = vsub.f32 %v14639_v7, %v1782_v4 }
 0x624   : > { %11657 = vmatpush3.bf16.msra.mxu1 %v1946_v49  ;;  %13157 = vpow2.f32 %v1817_v61  ;;  %v18873_v61 = vld [vmem:[#allocation8_spill] sm:$0xff] }
 0x625   : > { %11658 = vmatprep.subr.bf16.mxu1 %v1944_v11  ;;  %v1829_v9 = vmul.f32 1.442695, %v1806_v58 }
 0x626   : > { %v1778_v49 = vpop.xlane.xlu1 %1777 }
 0x627   : > { %v1804_v21 = vsub.f32 %v14643_v41, %v1778_v49 }
 0x628   : > { %v14695_v18 = vpop.eup %13151  ;;  %11659 = vmatpush3.bf16.msra.mxu1 %v1944_v11 }
 0x629   : > { %1851 = vadd.xlane.f32.xlu1 %v14695_v18  ;;  %v1825_v62 = vmul.f32 1.442695, %v1804_v21 }
 0x62a   : > { %v1790_v22 = vpop.xlane.xlu1 %1789 }
 0x62c   : > { %v14698_v36 = vpop.eup %13153 }
 0x62d   : > { %1847 = vadd.xlane.f32.xlu1 %v14698_v36 }
 0x62e   : > { %v1786_v29 = vpop.xlane.xlu1 %1785 }
 0x630   : > { %v14701_v1 = vpop.eup %13155 }
 0x631   : > { %1853 = vadd.xlane.f32.xlu1 %v14701_v1  ;;  %v14704_v35 = vpop.eup %13157 }
 0x632   : > { %v14713_v2 = vpop.permute.xlu1 %2100 }
 0x635   : > { %1849 = vadd.xlane.f32.xlu1 %v14704_v35 }
 0x646   : > { %2092 = vrot.lane.b32.xlu1 %v18873_v61, %s13804_s14 }
 0x653   : > { %v1780_v53 = vpop.xlane.xlu0 %1779 }
 0x654   : > { %v1805_v47 = vsub.f32 %v1729_v6, %v1780_v53  ;;  %v1810_v6 = vsub.f32 %v14647_v42, %v1790_v22 }
 0x656   : > { %v1827_v5 = vmul.f32 1.442695, %v1805_v47  ;;  %v1837_v21 = vmul.f32 1.442695, %v1810_v6  ;;  %v1808_v47 = vsub.f32 %v14651_v56, %v1786_v29 }
 0x657   : > { %v1776_v11 = vpop.xlane.xlu0 %1775 }
 0x658   : > { %13159 = vpow2.f32 %v1827_v5  ;;  %v1803_v19 = vsub.f32 %v14662_v55, %v1776_v11  ;;  %v14717_v55 = vpop.permute.xlu1 %2096 }
 0x659   : > { %13161 = vpow2.f32 %v1825_v62 }
 0x65a   : > { %v1823_v17 = vmul.f32 1.442695, %v1803_v19 }
 0x65b   : > { %v1788_v10 = vpop.xlane.xlu0 %1787 }
 0x65c   : > { %13163 = vpow2.f32 %v1823_v17  ;;  %v1809_v40 = vsub.f32 %v14666_v20, %v1788_v10 }
 0x65d   : > { %13165 = vpow2.f32 %v1829_v9 }
 0x65e   : > { %v1835_v41 = vmul.f32 1.442695, %v1809_v40 }
 0x65f   : > { %v1784_v7 = vpop.xlane.xlu0 %1783 }
 0x660   : > { %13167 = vpow2.f32 %v1835_v41  ;;  %v1807_v4 = vsub.f32 %v14670_v57, %v1784_v7  ;;  %v1833_v57 = vmul.f32 1.442695, %v1808_v47 }
 0x662   : > { %v1831_v49 = vmul.f32 1.442695, %v1807_v4 }
 0x663   : > { %v1796_v53 = vpop.xlane.xlu0 %1795 }
 0x664   : > { %13169 = vpow2.f32 %v1831_v49  ;;  %v1813_v10 = vsub.f32 %v14674_v31, %v1796_v53 }
 0x665   : > { %v14721_v20 = vpop.eup %13159  ;;  %13171 = vpow2.f32 %v1837_v21 }
 0x666   : > { %v1843_v40 = vmul.f32 1.442695, %v1813_v10  ;;  %1859 = vadd.xlane.f32.xlu0 %v14721_v20  ;;  %v14724_v22 = vpop.eup %13161 }
 0x667   : > { %v1798_v9 = vpop.xlane.xlu1 %1797  ;;  %v1792_v42 = vpop.xlane.xlu0 %1791 }
 0x668   : > { %13173 = vpow2.f32 %v1843_v40  ;;  %v1811_v5 = vsub.f32 %v14678_v3, %v1792_v42  ;;  %v1814_v56 = vsub.f32 %v14681_v43, %v1798_v9 }
 0x669   : > { %v14727_v58 = vpop.eup %13163  ;;  %13175 = vpow2.f32 %v1833_v57 }
 0x66a   : > { %v1839_v62 = vmul.f32 1.442695, %v1811_v5  ;;  %1857 = vadd.xlane.f32.xlu1 %v14724_v22  ;;  %1855 = vadd.xlane.f32.xlu0 %v14727_v58  ;;  %v14734_v11 = vpop.eup %13165  ;;  %v1845_v17 = vmul.f32 1.442695, %v1814_v56 }
 0x66b   : > { %v1794_v31 = vpop.xlane.xlu1 %1793  ;;  %v14732_v29 = vpop.permute.xlu0 %2102 }
 0x66c   : > { %v1812_v19 = vsub.f32 %v14686_v26, %v1794_v31  ;;  %12796 = vmatprep.subr.msk.bf16.mxu1 %vm1155_vm0, %v14732_v29  ;;  %13177 = vpow2.f32 %v1839_v62 }
 0x66d   : > { %v14739_v3 = vpop.eup %13167 }
 0x66e   : > { %v1841_v43 = vmul.f32 1.442695, %v1812_v19  ;;  %1861 = vadd.xlane.f32.xlu0 %v14734_v11  ;;  %1867 = vadd.xlane.f32.xlu1 %v14739_v3 }
 0x670   : > { %13179 = vpow2.f32 %v1841_v43 }
 0x671   : > { %v14743_v41 = vpop.eup %13169  ;;  %13181 = vpow2.f32 %v1845_v17 }
 0x672   : > { %1863 = vadd.xlane.f32.xlu1 %v14743_v41  ;;  %v14746_v6 = vpop.eup %13171 }
 0x675   : > { %v14748_v26 = vpop.eup %13173 }
 0x676   : > { %1869 = vadd.xlane.f32.xlu1 %v14746_v6  ;;  %1875 = vadd.xlane.f32.xlu0 %v14748_v26  ;;  %v14752_v7 = vpop.eup %13175 }
 0x679   : > { %v14754_v4 = vpop.eup %13177 }
 0x67a   : > { %1865 = vadd.xlane.f32.xlu1 %v14752_v7  ;;  %1871 = vadd.xlane.f32.xlu0 %v14754_v4 }
 0x67d   : > { %v14758_v49 = vpop.eup %13179 }
 0x67e   : > { %v14760_v21 = vpop.eup %13181  ;;  %1873 = vadd.xlane.f32.xlu1 %v14758_v49 }
 0x67f   : > { %1877 = vadd.xlane.f32.xlu0 %v14760_v21 }
 0x68f   : > { %2088 = vrot.lane.b32.xlu1 %v14245_v30, %s13804_s14 }
 0x693   : > { %2074 = vrot.lane.b32.xlu1 %v14154_v37, %s13804_s14 }
 0x695   : > { %2090 = vrot.lane.b32.xlu0 %v14156_v59, %s13804_s14 }
 0x697   : > { %2078 = vrot.lane.b32.xlu1 %v14166_v14, %s13804_s14 }
 0x699   : > { %2072 = vrot.lane.b32.xlu0 %v14160_v23, %s13804_s14 }
 0x69b   : > { %2082 = vrot.lane.b32.xlu1 %v14172_v39, %s13804_s14 }
 0x69d   : > { %2076 = vrot.lane.b32.xlu0 %v14268_v38, %s13804_s14 }
 0x69f   : > { %2086 = vrot.lane.b32.xlu1 %v14178_v0, %s13804_s14 }
 0x6a1   : > { %2080 = vrot.lane.b32.xlu0 %v14276_v34, %s13804_s14 }
 0x6a3   : > { %2429 = vrot.lane.b32.xlu1 %v14218_v16, %s13804_s14 }
 0x6a5   : > { %2084 = vrot.lane.b32.xlu0 %v14284_v44, %s13804_s14 }
 0x6a7   : > { %2421 = vrot.lane.b32.xlu1 %v14247_v32, %s13804_s14 }
 0x6a9   : > { %2431 = vrot.lane.b32.xlu0 %v14214_v15, %s13804_s14 }
 0x6ab   : > { %2417 = vrot.lane.b32.xlu1 %v14259_v8, %s13804_s14 }
 0x6ad   : > { %2427 = vrot.lane.b32.xlu0 %v14227_v12, %s13804_s14 }
 0x6b1   : > { %2425 = vrot.lane.b32.xlu0 %v14231_v13, %s13804_s14 }
 0x6b2   : > { %v1852_v53 = vpop.xlane.xlu1 %1851 }
 0x6b5   : > { %2423 = vrot.lane.b32.xlu0 %v14239_v27, %s13804_s14 }
 0x6b6   : > { %v1848_v47 = vpop.xlane.xlu1 %1847 }
 0x6ba   : > { %v1854_v10 = vpop.xlane.xlu1 %1853 }
 0x6bb   : > { %13183 = vrcp.f32 %v1854_v10 }
 0x6bc   : > { %13185 = vrcp.f32 %v1848_v47  ;;  %v2099_v47 = vpop.permute.xlu0 %2098 }
 0x6bd   : > { %13187 = vrcp.f32 %v1852_v53  ;;  %v2150_v53 = vsel %vm1155_vm0, %v14732_v29, 0 }
 0x6be   : > { %v1850_v40 = vpop.xlane.xlu1 %1849 }
 0x6bf   : > { %13189 = vrcp.f32 %v1850_v40 }
 0x6c2   : > { %v2093_v29 = vpop.permute.xlu1 %2092 }
 0x6c8   : > { %v13184_v9 = vpop.eup %13183 }
 0x6c9   : > { %v13186_v42 = vpop.eup %13185  ;;  %v1914_v56 = vmul.f32 %v13184_v9, %v14701_v1  ;;  %v2147_v1 = vsel %vm1155_vm0, %v14713_v2, 0 }
 0x6ca   : > { %v13188_v57 = vpop.eup %13187  ;;  %v1911_v62 = vmul.f32 %v13186_v42, %v14698_v36  ;;  %v2141_v36 = vsel %vm1155_vm0, %v14717_v55, 0 }
 0x6cb   : > { %v1913_v19 = vmul.f32 %v13188_v57, %v14695_v18  ;;  %v2144_v18 = vsel %vm1155_vm0, %v2099_v47, 0 }
 0x6cc   : > { %v13190_v5 = vpop.eup %13189 }
 0x6cd   : > { %v1912_v31 = vmul.f32 %v13190_v5, %v14704_v35  ;;  %v1928_v43 = vpack.c.bf16 %v1914_v56, %v1913_v19  ;;  %v2095_v35 = vpop.permute.xlu0 %2094 }
 0x6cf   : > { %v1927_v17 = vpack.c.bf16 %v1912_v31, %v1911_v62 }
 0x6d1   : > { %11660 = vmatprep.mubr.bf16.mxu1 %v1927_v17 }
 0x6d2   : > { %11661 = vmatmul.mubr.bf16.vlgmr.msra.gmra.mxu1 %v1928_v43 }
 0x6d3   : > { %11677 = vmatpush3.bf16.xpose.msra.mxu1 %v2150_v53 }
 0x6d4   : > { %12797 = vmatprep.subr.msk.bf16.mxu1 %vm1155_vm0, %v14713_v2  ;;  %v2138_v2 = vsel %vm1155_vm0, %v2095_v35, 0 }
 0x6db   : > { %11679 = vmatpush3.bf16.xpose.msra.mxu1 %v2147_v1 }
 0x6dc   : > { %12798 = vmatprep.subr.msk.bf16.mxu1 %vm1155_vm0, %v2099_v47 }
 0x6e3   : > { %11681 = vmatpush3.bf16.xpose.msra.mxu1 %v2144_v18 }
 0x6e4   : > { %12799 = vmatprep.subr.msk.bf16.mxu1 %vm1155_vm0, %v14717_v55  ;;  %v2135_v55 = vsel %vm1155_vm0, %v2093_v29, 0 }
 0x6eb   : > { %11683 = vmatpush3.bf16.xpose.msra.mxu1 %v2141_v36 }
 0x6ec   : > { %12800 = vmatprep.subr.msk.bf16.mxu1 %vm1155_vm0, %v2095_v35 }
 0x6ef   : > { %v1860_v10 = vpop.xlane.xlu0 %1859 }
 0x6f3   : > { %11685 = vmatpush3.bf16.xpose.msra.mxu1 %v2138_v2  ;;  %v1858_v40 = vpop.xlane.xlu1 %1857  ;;  %v1856_v9 = vpop.xlane.xlu0 %1855 }
 0x6f4   : > { %13191 = vrcp.f32 %v1858_v40  ;;  %12801 = vmatprep.subr.msk.bf16.mxu1 %vm1155_vm0, %v2093_v29 }
 0x6f5   : > { %13193 = vrcp.f32 %v1856_v9 }
 0x6f6   : > { %13195 = vrcp.f32 %v1860_v10 }
 0x6f7   : > { %v1868_v42 = vpop.xlane.xlu1 %1867  ;;  %v1862_v57 = vpop.xlane.xlu0 %1861 }
 0x6f8   : > { %13197 = vrcp.f32 %v1862_v57 }
 0x6fb   : > { %11687 = vmatpush3.bf16.xpose.msra.mxu1 %v2135_v55  ;;  %v1864_v5 = vpop.xlane.xlu1 %1863 }
 0x6ff   : > { %v1870_v56 = vpop.xlane.xlu1 %1869  ;;  %v1876_v62 = vpop.xlane.xlu0 %1875 }
 0x700   : > { %13199 = vrcp.f32 %v1870_v56 }
 0x701   : > { %v13192_v31 = vpop.eup %13191  ;;  %13201 = vrcp.f32 %v1864_v5 }
 0x702   : > { %v13194_v19 = vpop.eup %13193  ;;  %v1916_v17 = vmul.f32 %v13192_v31, %v14724_v22  ;;  %13203 = vrcp.f32 %v1868_v42 }
 0x703   : > { %v1866_v43 = vpop.xlane.xlu1 %1865  ;;  %v1915_v53 = vmul.f32 %v13194_v19, %v14727_v58  ;;  %v13196_v1 = vpop.eup %13195 }
 0x704   : > { %13205 = vrcp.f32 %v1866_v43  ;;  %v1872_v47 = vpop.xlane.xlu0 %1871  ;;  %v1917_v29 = vmul.f32 %v13196_v1, %v14721_v20 }
 0x705   : > { %v1929_v18 = vpack.c.bf16 %v1916_v17, %v1915_v53  ;;  %v13198_v36 = vpop.eup %13197  ;;  %13207 = vrcp.f32 %v1872_v47 }
 0x706   : > { %v1918_v10 = vmul.f32 %v13198_v36, %v14734_v11 }
 0x707   : > { %11664 = vmatprep.mubr.bf16.mxu1 %v1929_v18  ;;  %v1874_v35 = vpop.xlane.xlu1 %1873 }
 0x708   : > { %13209 = vrcp.f32 %v1874_v35  ;;  %v1878_v2 = vpop.xlane.xlu0 %1877  ;;  %v1930_v22 = vpack.c.bf16 %v1918_v10, %v1917_v29 }
 0x709   : > { %13211 = vrcp.f32 %v1878_v2 }
 0x70a   : > { %13213 = vrcp.f32 %v1876_v62  ;;  %11665 = vmatmul.mubr.bf16.gmra.mxu1 %v1930_v22 }
 0x70b   : > { %v2089_v40 = vpop.permute.xlu1 %2088 }
 0x70c   : > { %v2091_v58 = vpop.permute.xlu0 %2090  ;;  %v2129_v18 = vsel %vm1155_vm0, %v2089_v40, 0 }
 0x70d   : > { %12802 = vmatprep.subr.msk.bf16.mxu1 %vm1155_vm0, %v2091_v58  ;;  %v2132_v9 = vsel %vm1155_vm0, %v2091_v58, 0  ;;  %v13200_v42 = vpop.eup %13199 }
 0x70e   : > { %11689 = vmatpush3.bf16.xpose.msra.mxu1 %v2132_v9  ;;  %v13202_v57 = vpop.eup %13201  ;;  %v1922_v56 = vmul.f32 %v13200_v42, %v14746_v6 }
 0x70f   : > { %12803 = vmatprep.subr.msk.bf16.mxu1 %vm1155_vm0, %v2089_v40  ;;  %v2075_v20 = vpop.permute.xlu1 %2074  ;;  %v13204_v55 = vpop.eup %13203  ;;  %v1919_v62 = vmul.f32 %v13202_v57, %v14743_v41 }
 0x710   : > { %v2073_v11 = vpop.permute.xlu0 %2072  ;;  %v1921_v43 = vmul.f32 %v13204_v55, %v14739_v3 }
 0x711   : > { %v13206_v5 = vpop.eup %13205 }
 0x712   : > { %v1920_v31 = vmul.f32 %v13206_v5, %v14752_v7  ;;  %v13208_v19 = vpop.eup %13207  ;;  %v1932_v36 = vpack.c.bf16 %v1922_v56, %v1921_v43 }
 0x713   : > { %v2079_v17 = vpop.permute.xlu1 %2078  ;;  %v1923_v29 = vmul.f32 %v13208_v19, %v14754_v4 }
 0x714   : > { %v2077_v53 = vpop.permute.xlu0 %2076  ;;  %v1931_v1 = vpack.c.bf16 %v1920_v31, %v1919_v62 }
 0x715   : > { %v13210_v47 = vpop.eup %13209 }
 0x716   : > { %v13212_v35 = vpop.eup %13211  ;;  %11691 = vmatpush3.bf16.xpose.msra.mxu1 %v2129_v18  ;;  %11668 = vmatprep.mubr.bf16.mxu1 %v1931_v1  ;;  %v1924_v6 = vmul.f32 %v13210_v47, %v14758_v49 }
 0x717   : > { %v2083_v41 = vpop.permute.xlu1 %2082  ;;  %11669 = vmatmul.mubr.bf16.gmra.mxu1 %v1932_v36  ;;  %v13214_v7 = vpop.eup %13213  ;;  %v1926_v3 = vmul.f32 %v13212_v35, %v14760_v21 }
 0x718   : > { %v2081_v10 = vpop.permute.xlu0 %2080  ;;  %v1933_v2 = vpack.c.bf16 %v1924_v6, %v1923_v29  ;;  %v1925_v22 = vmul.f32 %v13214_v7, %v14748_v26 }
 0x71a   : > { %11672 = vmatprep.mubr.bf16.mxu1 %v1933_v2  ;;  %v1934_v9 = vpack.c.bf16 %v1926_v3, %v1925_v22  ;;  %v14885_v2 = vld [vmem:[%s18714_s1 + $0x10] sm:$0xff] }
 0x71b   : > { %v2087_v58 = vpop.permute.xlu1 %2086 }
 0x71c   : > { %v2085_v40 = vpop.permute.xlu0 %2084 }
 0x71f   : > { %11673 = vmatmul.mubr.bf16.gmra.mxu1 %v1934_v9  ;;  %v2430_v4 = vpop.permute.xlu1 %2429 }
 0x720   : > { %v2432_v42 = vpop.permute.xlu0 %2431  ;;  %11692 = vmatprep.mubr.msk.bf16.mxu1 %vm1155_vm0, %v2073_v11 }
 0x721   : > { %11708 = vmatprep.subr.bf16.mxu0 %v2432_v42 }
 0x722   : > { %11709 = vmatpush3.bf16.msra.mxu0 %v2432_v42 }
 0x723   : > { %11710 = vmatprep.subr.bf16.mxu0 %v2430_v4  ;;  %v2422_v57 = vpop.permute.xlu1 %2421 }
 0x724   : > { %v2428_v49 = vpop.permute.xlu0 %2427 }
 0x726   : > { %11711 = vmatpush3.bf16.msra.mxu0 %v2430_v4  ;;  %v14902_v4 = vld [vmem:[%s18714_s1 + $0x8] sm:$0xff] }
 0x727   : > { %11712 = vmatprep.subr.bf16.mxu0 %v2428_v49  ;;  %11693 = vmatmul.mubr.msk.bf16.vlgmr.msra.gmra.mxu1 %vm1155_vm0, %v2075_v20 }
 0x728   : > { %v2426_v21 = vpop.permute.xlu0 %2425  ;;  %11696 = vmatprep.mubr.msk.bf16.mxu1 %vm1155_vm0, %v2077_v53 }
 0x72a   : > { %11713 = vmatpush3.bf16.msra.mxu0 %v2428_v49 }
 0x72b   : > { %11714 = vmatprep.subr.bf16.mxu0 %v2426_v21 }
 0x72c   : > { %v2424_v26 = vpop.permute.xlu0 %2423 }
 0x72e   : > { %11715 = vmatpush3.bf16.msra.mxu0 %v2426_v21 }
 0x72f   : > { %11716 = vmatprep.subr.bf16.mxu0 %v2424_v26  ;;  %11697 = vmatmul.mubr.msk.bf16.gmra.mxu1 %vm1155_vm0, %v2079_v17 }
 0x730   : > { %11700 = vmatprep.mubr.msk.bf16.mxu1 %vm1155_vm0, %v2081_v10 }
 0x732   : > { %11717 = vmatpush3.bf16.msra.mxu0 %v2424_v26  ;;  %v14911_v26 = vld [vmem:[%s18714_s1 + $0x18] sm:$0xff] }
 0x733   : > { %11718 = vmatprep.subr.bf16.mxu0 %v2422_v57 }
 0x736   : > { %11719 = vmatpush3.bf16.msra.mxu0 %v2422_v57 }
 0x737   : > { %11701 = vmatmul.mubr.msk.bf16.gmra.mxu1 %vm1155_vm0, %v2083_v41 }
 0x738   : > { %11704 = vmatprep.mubr.msk.bf16.mxu1 %vm1155_vm0, %v2085_v40  ;;  %v14894_v40 = vld [vmem:[%s18714_s1] sm:$0xff] }
 0x73f   : > { %11705 = vmatmul.mubr.msk.bf16.gmra.mxu1 %vm1155_vm0, %v2087_v58 }
 0x792   : > { %v14842_v20 = vpop.f32.mrf.mxu1 }
 0x793   : > { %18874 = vst [vmem:[#allocation11_spill] sm:$0xff] %v14842_v20 }
 0x794   : > { %v14844_v55 = vpop.f32.mrf.mxu1 }
 0x795   : > { %18875 = vst [vmem:[#allocation12_spill] sm:$0xff] %v14844_v55  ;;  %v2418_v55 = vpop.permute.xlu1 %2417 }
 0x796   : > { %v14846_v11 = vpop.f32.mrf.mxu1 }
 0x797   : > { %18876 = vst [vmem:[#allocation13_spill] sm:$0xff] %v14846_v11 }
 0x798   : > { %v14850_v56 = vpop.f32.mrf.mxu1 }
 0x799   : > { %18877 = vst [vmem:[#allocation14_spill] sm:$0xff] %v14850_v56 }
 0x7ca   : > { %v14852_v62 = vpop.f32.mrf.mxu1 }
 0x7cb   : > { %18878 = vst [vmem:[#allocation15_spill] sm:$0xff] %v14852_v62 }
 0x7cc   : > { %v14854_v31 = vpop.f32.mrf.mxu1 }
 0x7cd   : > { %18879 = vst [vmem:[#allocation16_spill] sm:$0xff] %v14854_v31  ;;  %v15026_v31 = vld [vmem:[%s18714_s1 + $0x68] sm:$0xff] }
 0x7ce   : > { %v14856_v19 = vpop.f32.mrf.mxu1 }
 0x7cf   : > { %18880 = vst [vmem:[#allocation17_spill] sm:$0xff] %v14856_v19 }
 0x7d0   : > { %v14860_v43 = vpop.f32.mrf.mxu1 }
 0x7d1   : > { %18881 = vst [vmem:[#allocation18_spill] sm:$0xff] %v14860_v43 }
 0x7d7   : > { %v14862_v53 = vpop.f32.mrf.mxu1 }
 0x7d8   : > { %18882 = vst [vmem:[#allocation5_spill] sm:$0xff] %v14862_v53 }
 0x7d9   : > { %v14864_v1 = vpop.f32.mrf.mxu1 }
 0x7da   : > { %18883 = vst [vmem:[#allocation6_spill] sm:$0xff] %v14864_v1  ;;  %v15016_v1 = vld [vmem:[%s18714_s1 + $0x78] sm:$0xff] }
 0x7db   : > { %v14866_v47 = vpop.f32.mrf.mxu1 }
 0x7dc   : > { %18884 = vst [vmem:[#allocation7_spill] sm:$0xff] %v14866_v47 }
 0x7dd   : > { %v14870_v36 = vpop.f32.mrf.mxu1 }
 0x7de   : > { %18885 = vst [vmem:[#allocation8_spill] sm:$0xff] %v14870_v36  ;;  %v15008_v36 = vld [vmem:[%s18714_s1 + $0x60] sm:$0xff] }
 0x7df   : > { %v14872_v35 = vpop.f32.mrf.mxu1 }
 0x7e0   : > { %18886 = vst [vmem:[#allocation35_spill] sm:$0xff] %v14872_v35  ;;  %v14990_v35 = vld [vmem:[%s18714_s1 + $0x40] sm:$0xff] }
 0x7e1   : > { %v14874_v29 = vpop.f32.mrf.mxu1 }
 0x7e2   : > { %18887 = vst [vmem:[#allocation36_spill] sm:$0xff] %v14874_v29 }
 0x7e3   : > { %v14876_v6 = vpop.f32.mrf.mxu1 }
 0x7e4   : > { %18888 = vst [vmem:[#allocation37_spill] sm:$0xff] %v14876_v6 }
 0x7e5   : > { %v14880_v7 = vpop.f32.mrf.mxu1 }
 0x7e6   : > { %18889 = vst [vmem:[#allocation38_spill] sm:$0xff] %v14880_v7  ;;  %v14999_v7 = vld [vmem:[%s18714_s1 + $0x70] sm:$0xff] }
 0x7e7   : > { %v11694_v10 = vpop.f32.mrf.mxu1 }
 0x7e8   : > { %v14888_v3 = vadd.f32 %v14885_v2, %v11694_v10 }
 0x7e9   : > { %v2186_v22 = vpop.f32.mrf.mxu1 }
 0x7ea   : > { %2253 = vmax.xlane.f32.xlu0 %v14888_v3  ;;  %v14897_v9 = vadd.f32 %v14894_v40, %v2186_v22 }
 0x7eb   : > { %v11695_v58 = vpop.f32.mrf.mxu1 }
 0x7ec   : > { %v14914_v57 = vadd.f32 %v14911_v26, %v11695_v58  ;;  %v14930_v58 = vld [vmem:[%s18714_s1 + $0x28] sm:$0xff] }
 0x7ed   : > { %v2189_v42 = vpop.f32.mrf.mxu1 }
 0x7ee   : > { %v14905_v49 = vadd.f32 %v14902_v4, %v2189_v42  ;;  %2249 = vmax.xlane.f32.xlu0 %v14897_v9  ;;  %v14921_v42 = vld [vmem:[%s18714_s1 + $0x38] sm:$0xff] }
 0x7ef   : > { %v11698_v21 = vpop.f32.mrf.mxu1 }
 0x7f0   : > { %2251 = vmax.xlane.f32.xlu1 %v14905_v49 }
 0x7f1   : > { %v2202_v10 = vpop.f32.mrf.mxu1 }
 0x7f2   : > { %2255 = vmax.xlane.f32.xlu0 %v14914_v57 }
 0x7f3   : > { %v11699_v22 = vpop.f32.mrf.mxu1 }
 0x7f4   : > { %v14924_v41 = vadd.f32 %v14921_v42, %v11699_v22  ;;  %v14939_v22 = vld [vmem:[%s18714_s1 + $0x58] sm:$0xff] }
 0x7f5   : > { %v2205_v18 = vpop.f32.mrf.mxu1 }
 0x7f6   : > { %2263 = vmax.xlane.f32.xlu1 %v14924_v41  ;;  %v14933_v5 = vadd.f32 %v14930_v58, %v2205_v18  ;;  %v14948_v18 = vld [vmem:[%s18714_s1 + $0x48] sm:$0xff] }
 0x7f7   : > { %v11702_v17 = vpop.f32.mrf.mxu1 }
 0x7f9   : > { %v2218_v45 = vpop.f32.mrf.mxu1 }
 0x7fa   : > { %2259 = vmax.xlane.f32.xlu1 %v14933_v5 }
 0x7fb   : > { %v11703_v46 = vpop.f32.mrf.mxu1 }
 0x7fc   : > { %v14942_v48 = vadd.f32 %v14939_v22, %v11703_v46  ;;  %v14963_v46 = vld [vmem:[%s18714_s1 + $0x30] sm:$0xff] }
 0x7fd   : > { %v2221_v52 = vpop.f32.mrf.mxu1 }
 0x7fe   : > { %2271 = vmax.xlane.f32.xlu1 %v14942_v48  ;;  %v14951_v51 = vadd.f32 %v14948_v18, %v2221_v52  ;;  %v14966_v52 = vadd.f32 %v14963_v46, %v11698_v21 }
 0x7ff   : > { %v11706_v24 = vpop.f32.mrf.mxu1 }
 0x801   : > { %v2234_v6 = vpop.f32.mrf.mxu1 }
 0x802   : > { %2267 = vmax.xlane.f32.xlu1 %v14951_v51 }
 0x803   : > { %v11707_v29 = vpop.f32.mrf.mxu1 }
 0x804   : > { %v15019_v43 = vadd.f32 %v15016_v1, %v11707_v29 }
 0x808   : > { %2419 = vrot.lane.b32.xlu0 %v14255_v33, %s13804_s14 }
 0x813   : > { %2574 = vrot.lane.b32.xlu1 %v14184_v28, %s13805_s21  ;;  %v14975_v28 = vadd.f32 %v14972_v60, %v2202_v10  ;;  %v14993_v10 = vadd.f32 %v14990_v35, %v2218_v45  ;;  %v15011_v45 = vadd.f32 %v15008_v36, %v2234_v6 }
 0x817   : > { %2570 = vrot.lane.b32.xlu1 %v14202_v63, %s13805_s21  ;;  %v14981_v63 = vld [vmem:[%s18714_s1 + $0x50] sm:$0xff] }
 0x818   : > { %v14984_v21 = vadd.f32 %v14981_v63, %v11702_v17  ;;  %v15002_v17 = vadd.f32 %v14999_v7, %v11706_v24  ;;  %v2237_v24 = vpop.f32.mrf.mxu1 }
 0x819   : > { %v15029_v6 = vadd.f32 %v15026_v31, %v2237_v24 }
 0x827   : > { %2261 = vmax.xlane.f32.xlu0 %v14966_v52 }
 0x82b   : > { %2257 = vmax.xlane.f32.xlu0 %v14975_v28 }
 0x82f   : > { %2269 = vmax.xlane.f32.xlu0 %v14984_v21 }
 0x833   : > { %2265 = vmax.xlane.f32.xlu0 %v14993_v10 }
 0x837   : > { %2277 = vmax.xlane.f32.xlu0 %v15002_v17 }
 0x83b   : > { %2279 = vmax.xlane.f32.xlu1 %v15019_v43  ;;  %2273 = vmax.xlane.f32.xlu0 %v15011_v45 }
 0x83f   : > { %2275 = vmax.xlane.f32.xlu1 %v15029_v6 }
 0x851   : > { %2576 = vrot.lane.b32.xlu0 %v18870_v25, %s13805_s21 }
 0x855   : > { %2572 = vrot.lane.b32.xlu0 %v18871_v50, %s13805_s21 }
 0x859   : > { %2568 = vrot.lane.b32.xlu0 %v18872_v54, %s13805_s21 }
 0x873   : > { %v2254_v29 = vpop.xlane.xlu0 %2253 }
 0x874   : > { %v2283_v56 = vsub.f32 %v14888_v3, %v2254_v29 }
 0x876   : > { %v2301_v53 = vmul.f32 1.442695, %v2283_v56 }
 0x877   : > { %v2250_v47 = vpop.xlane.xlu0 %2249 }
 0x878   : > { %13215 = vpow2.f32 %v2301_v53  ;;  %v2281_v24 = vsub.f32 %v14897_v9, %v2250_v47 }
 0x879   : > { %v2252_v62 = vpop.xlane.xlu1 %2251 }
 0x87a   : > { %v2297_v19 = vmul.f32 1.442695, %v2281_v24  ;;  %v2282_v25 = vsub.f32 %v14905_v49, %v2252_v62 }
 0x87b   : > { %v2256_v33 = vpop.xlane.xlu0 %2255 }
 0x87c   : > { %13217 = vpow2.f32 %v2297_v19  ;;  %v2284_v50 = vsub.f32 %v14914_v57, %v2256_v33  ;;  %v2299_v54 = vmul.f32 1.442695, %v2282_v25 }
 0x87e   : > { %v2303_v20 = vmul.f32 1.442695, %v2284_v50 }
 0x87f   : > { %v2420_v11 = vpop.permute.xlu0 %2419 }
 0x880   : > { %13219 = vpow2.f32 %v2303_v20  ;;  %11720 = vmatprep.subr.bf16.mxu0 %v2420_v11  ;;  %v2264_v20 = vpop.xlane.xlu1 %2263 }
 0x881   : > { %11721 = vmatpush3.bf16.msra.mxu0 %v2420_v11  ;;  %13221 = vpow2.f32 %v2299_v54  ;;  %v2288_v49 = vsub.f32 %v14924_v41, %v2264_v20 }
 0x882   : > { %11722 = vmatprep.subr.bf16.mxu0 %v2418_v55 }
 0x883   : > { %v2311_v54 = vmul.f32 1.442695, %v2288_v49 }
 0x884   : > { %v2260_v11 = vpop.xlane.xlu1 %2259 }
 0x885   : > { %v15042_v56 = vpop.eup %13215  ;;  %11723 = vmatpush3.bf16.msra.mxu0 %v2418_v55  ;;  %v2286_v19 = vsub.f32 %v14933_v5, %v2260_v11 }
 0x886   : > { %2333 = vadd.xlane.f32.xlu1 %v15042_v56 }
 0x887   : > { %v2307_v57 = vmul.f32 1.442695, %v2286_v19 }
 0x888   : > { %v2272_v55 = vpop.xlane.xlu1 %2271 }
 0x889   : > { %v15045_v53 = vpop.eup %13217 }
 0x88a   : > { %2329 = vadd.xlane.f32.xlu1 %v15045_v53 }
 0x88c   : > { %v2268_v29 = vpop.xlane.xlu1 %2267 }
 0x88d   : > { %v15048_v62 = vpop.eup %13219 }
 0x88e   : > { %2335 = vadd.xlane.f32.xlu1 %v15048_v62  ;;  %v15051_v33 = vpop.eup %13221 }
 0x890   : > { %v15061_v5 = vpop.permute.xlu1 %2574 }
 0x892   : > { %2331 = vadd.xlane.f32.xlu1 %v15051_v33 }
 0x8a3   : > { %2566 = vrot.lane.b32.xlu1 %v18873_v61, %s13805_s21 }
 0x8b0   : > { %v2262_v47 = vpop.xlane.xlu0 %2261 }
 0x8b1   : > { %v2287_v3 = vsub.f32 %v14966_v52, %v2262_v47  ;;  %v2292_v52 = vsub.f32 %v14942_v48, %v2272_v55 }
 0x8b3   : > { %v2309_v9 = vmul.f32 1.442695, %v2287_v3  ;;  %v2319_v47 = vmul.f32 1.442695, %v2292_v52 }
 0x8b4   : > { %v2258_v24 = vpop.xlane.xlu0 %2257 }
 0x8b5   : > { %13223 = vpow2.f32 %v2309_v9  ;;  %v2285_v25 = vsub.f32 %v14975_v28, %v2258_v24  ;;  %v15065_v28 = vpop.permute.xlu1 %2570  ;;  %v2290_v9 = vsub.f32 %v14951_v51, %v2268_v29 }
 0x8b6   : > { %13225 = vpow2.f32 %v2307_v57 }
 0x8b7   : > { %v2305_v50 = vmul.f32 1.442695, %v2285_v25 }
 0x8b8   : > { %v2270_v61 = vpop.xlane.xlu0 %2269 }
 0x8b9   : > { %13227 = vpow2.f32 %v2305_v50  ;;  %v2291_v8 = vsub.f32 %v14984_v21, %v2270_v61 }
 0x8ba   : > { %13229 = vpow2.f32 %v2311_v54 }
 0x8bb   : > { %v2317_v11 = vmul.f32 1.442695, %v2291_v8 }
 0x8bc   : > { %v2266_v41 = vpop.xlane.xlu0 %2265 }
 0x8bd   : > { %13231 = vpow2.f32 %v2317_v11  ;;  %v2289_v20 = vsub.f32 %v14993_v10, %v2266_v41  ;;  %v2315_v10 = vmul.f32 1.442695, %v2290_v9 }
 0x8bf   : > { %v2313_v19 = vmul.f32 1.442695, %v2289_v20 }
 0x8c0   : > { %v2278_v3 = vpop.xlane.xlu0 %2277 }
 0x8c1   : > { %13233 = vpow2.f32 %v2313_v19  ;;  %v2295_v21 = vsub.f32 %v15002_v17, %v2278_v3 }
 0x8c2   : > { %v15069_v49 = vpop.eup %13223  ;;  %13235 = vpow2.f32 %v2319_v47 }
 0x8c3   : > { %v2325_v8 = vmul.f32 1.442695, %v2295_v21  ;;  %2341 = vadd.xlane.f32.xlu0 %v15069_v49  ;;  %v15072_v57 = vpop.eup %13225 }
 0x8c4   : > { %v2280_v48 = vpop.xlane.xlu1 %2279  ;;  %v2274_v55 = vpop.xlane.xlu0 %2273 }
 0x8c5   : > { %13237 = vpow2.f32 %v2325_v8  ;;  %v2293_v24 = vsub.f32 %v15011_v45, %v2274_v55  ;;  %v2296_v51 = vsub.f32 %v15019_v43, %v2280_v48  ;;  %v2621_v8 = vsel %vm1155_vm0, %v15061_v5, 0 }
 0x8c6   : > { %v15075_v25 = vpop.eup %13227  ;;  %13239 = vpow2.f32 %v2315_v10 }
 0x8c7   : > { %v2321_v29 = vmul.f32 1.442695, %v2293_v24  ;;  %2339 = vadd.xlane.f32.xlu1 %v15072_v57  ;;  %2337 = vadd.xlane.f32.xlu0 %v15075_v25  ;;  %v15080_v54 = vpop.eup %13229  ;;  %v2327_v45 = vmul.f32 1.442695, %v2296_v51 }
 0x8c8   : > { %v2276_v17 = vpop.xlane.xlu1 %2275  ;;  %v2577_v50 = vpop.permute.xlu0 %2576 }
 0x8c9   : > { %v2294_v61 = vsub.f32 %v15029_v6, %v2276_v17  ;;  %12804 = vmatprep.subr.msk.bf16.mxu0 %vm1155_vm0, %v2577_v50  ;;  %13241 = vpow2.f32 %v2321_v29  ;;  %v2624_v21 = vsel %vm1155_vm0, %v2577_v50, 0 }
 0x8ca   : > { %v15084_v11 = vpop.eup %13231 }
 0x8cb   : > { %v2323_v52 = vmul.f32 1.442695, %v2294_v61  ;;  %2343 = vadd.xlane.f32.xlu0 %v15080_v54  ;;  %2349 = vadd.xlane.f32.xlu1 %v15084_v11 }
 0x8cd   : > { %13243 = vpow2.f32 %v2323_v52 }
 0x8ce   : > { %v15088_v43 = vpop.eup %13233  ;;  %13245 = vpow2.f32 %v2327_v45 }
 0x8cf   : > { %2345 = vadd.xlane.f32.xlu1 %v15088_v43  ;;  %v15091_v41 = vpop.eup %13235 }
 0x8d2   : > { %v15093_v6 = vpop.eup %13237 }
 0x8d3   : > { %2351 = vadd.xlane.f32.xlu1 %v15091_v41  ;;  %2357 = vadd.xlane.f32.xlu0 %v15093_v6  ;;  %v15097_v20 = vpop.eup %13239 }
 0x8d6   : > { %v15099_v19 = vpop.eup %13241 }
 0x8d7   : > { %2347 = vadd.xlane.f32.xlu1 %v15097_v20  ;;  %2353 = vadd.xlane.f32.xlu0 %v15099_v19 }
 0x8da   : > { %v15103_v47 = vpop.eup %13243 }
 0x8db   : > { %v15105_v3 = vpop.eup %13245  ;;  %2355 = vadd.xlane.f32.xlu1 %v15103_v47 }
 0x8dc   : > { %2359 = vadd.xlane.f32.xlu0 %v15105_v3 }
 0x8ec   : > { %2562 = vrot.lane.b32.xlu1 %v14245_v30, %s13805_s21 }
 0x8f0   : > { %2548 = vrot.lane.b32.xlu1 %v14154_v37, %s13805_s21 }
 0x8f2   : > { %2564 = vrot.lane.b32.xlu0 %v14156_v59, %s13805_s21 }
 0x8f4   : > { %2552 = vrot.lane.b32.xlu1 %v14166_v14, %s13805_s21 }
 0x8f6   : > { %2546 = vrot.lane.b32.xlu0 %v14160_v23, %s13805_s21 }
 0x8f8   : > { %2556 = vrot.lane.b32.xlu1 %v14172_v39, %s13805_s21 }
 0x8fa   : > { %2550 = vrot.lane.b32.xlu0 %v14268_v38, %s13805_s21 }
 0x8fc   : > { %2560 = vrot.lane.b32.xlu1 %v14178_v0, %s13805_s21 }
 0x8fe   : > { %2554 = vrot.lane.b32.xlu0 %v14276_v34, %s13805_s21 }
 0x900   : > { %2903 = vrot.lane.b32.xlu1 %v14218_v16, %s13805_s21 }
 0x902   : > { %2558 = vrot.lane.b32.xlu0 %v14284_v44, %s13805_s21 }
 0x906   : > { %2905 = vrot.lane.b32.xlu0 %v14214_v15, %s13805_s21 }
 0x90a   : > { %2901 = vrot.lane.b32.xlu0 %v14227_v12, %s13805_s21 }
 0x90f   : > { %v2334_v37 = vpop.xlane.xlu1 %2333 }
 0x913   : > { %v2330_v59 = vpop.xlane.xlu1 %2329 }
 0x917   : > { %v2336_v23 = vpop.xlane.xlu1 %2335 }
 0x918   : > { %13247 = vrcp.f32 %v2336_v23 }
 0x919   : > { %13249 = vrcp.f32 %v2330_v59 }
 0x91a   : > { %13251 = vrcp.f32 %v2334_v37 }
 0x91b   : > { %v2332_v14 = vpop.xlane.xlu1 %2331 }
 0x91c   : > { %13253 = vrcp.f32 %v2332_v14 }
 0x91f   : > { %v2567_v48 = vpop.permute.xlu1 %2566 }
 0x925   : > { %v13248_v39 = vpop.eup %13247 }
 0x926   : > { %v13250_v0 = vpop.eup %13249  ;;  %v2396_v38 = vmul.f32 %v13248_v39, %v15048_v62  ;;  %v2573_v62 = vpop.permute.xlu0 %2572 }
 0x927   : > { %v13252_v16 = vpop.eup %13251  ;;  %v2393_v34 = vmul.f32 %v13250_v0, %v15045_v53  ;;  %v2618_v53 = vsel %vm1155_vm0, %v2573_v62, 0 }
 0x928   : > { %v2395_v12 = vmul.f32 %v13252_v16, %v15042_v56  ;;  %v2615_v56 = vsel %vm1155_vm0, %v15065_v28, 0 }
 0x929   : > { %v13254_v30 = vpop.eup %13253 }
 0x92a   : > { %v2394_v15 = vmul.f32 %v13254_v30, %v15051_v33  ;;  %v2410_v9 = vpack.c.bf16 %v2396_v38, %v2395_v12  ;;  %v2569_v33 = vpop.permute.xlu0 %2568 }
 0x92c   : > { %v2409_v44 = vpack.c.bf16 %v2394_v15, %v2393_v34 }
 0x92e   : > { %11724 = vmatprep.mubr.bf16.mxu0 %v2409_v44 }
 0x92f   : > { %11725 = vmatmul.mubr.bf16.vlgmr.msra.gmra.mxu0 %v2410_v9 }
 0x930   : > { %11741 = vmatpush3.bf16.xpose.msra.mxu0 %v2624_v21 }
 0x931   : > { %12805 = vmatprep.subr.msk.bf16.mxu0 %vm1155_vm0, %v15061_v5  ;;  %v2612_v5 = vsel %vm1155_vm0, %v2569_v33, 0 }
 0x938   : > { %11743 = vmatpush3.bf16.xpose.msra.mxu0 %v2621_v8 }
 0x939   : > { %12806 = vmatprep.subr.msk.bf16.mxu0 %vm1155_vm0, %v2573_v62 }
 0x940   : > { %11745 = vmatpush3.bf16.xpose.msra.mxu0 %v2618_v53 }
 0x941   : > { %12807 = vmatprep.subr.msk.bf16.mxu0 %vm1155_vm0, %v15065_v28  ;;  %v2609_v28 = vsel %vm1155_vm0, %v2567_v48, 0 }
 0x948   : > { %11747 = vmatpush3.bf16.xpose.msra.mxu0 %v2615_v56 }
 0x949   : > { %12808 = vmatprep.subr.msk.bf16.mxu0 %vm1155_vm0, %v2569_v33 }
 0x94c   : > { %v2342_v55 = vpop.xlane.xlu0 %2341 }
 0x950   : > { %11749 = vmatpush3.bf16.xpose.msra.mxu0 %v2612_v5  ;;  %v2340_v10 = vpop.xlane.xlu1 %2339  ;;  %v2338_v24 = vpop.xlane.xlu0 %2337 }
 0x951   : > { %13255 = vrcp.f32 %v2340_v10  ;;  %12809 = vmatprep.subr.msk.bf16.mxu0 %vm1155_vm0, %v2567_v48 }
 0x952   : > { %13257 = vrcp.f32 %v2338_v24 }
 0x953   : > { %13259 = vrcp.f32 %v2342_v55 }
 0x954   : > { %v2350_v51 = vpop.xlane.xlu1 %2349  ;;  %v2344_v29 = vpop.xlane.xlu0 %2343 }
 0x955   : > { %13261 = vrcp.f32 %v2344_v29 }
 0x958   : > { %11751 = vmatpush3.bf16.xpose.msra.mxu0 %v2609_v28  ;;  %v2346_v17 = vpop.xlane.xlu1 %2345 }
 0x95c   : > { %v2352_v50 = vpop.xlane.xlu1 %2351  ;;  %v2358_v61 = vpop.xlane.xlu0 %2357 }
 0x95d   : > { %13263 = vrcp.f32 %v2352_v50 }
 0x95e   : > { %v13256_v45 = vpop.eup %13255  ;;  %13265 = vrcp.f32 %v2346_v17 }
 0x95f   : > { %v13258_v52 = vpop.eup %13257  ;;  %v2398_v37 = vmul.f32 %v13256_v45, %v15072_v57  ;;  %13267 = vrcp.f32 %v2350_v51 }
 0x960   : > { %v2348_v59 = vpop.xlane.xlu1 %2347  ;;  %v2397_v23 = vmul.f32 %v13258_v52, %v15075_v25  ;;  %v13260_v14 = vpop.eup %13259 }
 0x961   : > { %13269 = vrcp.f32 %v2348_v59  ;;  %v2354_v39 = vpop.xlane.xlu0 %2353  ;;  %v2399_v38 = vmul.f32 %v13260_v14, %v15069_v49 }
 0x962   : > { %v2411_v0 = vpack.c.bf16 %v2398_v37, %v2397_v23  ;;  %v13262_v16 = vpop.eup %13261  ;;  %13271 = vrcp.f32 %v2354_v39 }
 0x963   : > { %v2400_v34 = vmul.f32 %v13262_v16, %v15080_v54 }
 0x964   : > { %11728 = vmatprep.mubr.bf16.mxu0 %v2411_v0  ;;  %v2356_v30 = vpop.xlane.xlu1 %2355 }
 0x965   : > { %13273 = vrcp.f32 %v2356_v30  ;;  %v2360_v15 = vpop.xlane.xlu0 %2359  ;;  %v2412_v57 = vpack.c.bf16 %v2400_v34, %v2399_v38 }
 0x966   : > { %13275 = vrcp.f32 %v2360_v15 }
 0x967   : > { %13277 = vrcp.f32 %v2358_v61  ;;  %11729 = vmatmul.mubr.bf16.gmra.mxu0 %v2412_v57 }
 0x968   : > { %v2563_v12 = vpop.permute.xlu1 %2562 }
 0x969   : > { %v2565_v25 = vpop.permute.xlu0 %2564  ;;  %v2603_v29 = vsel %vm1155_vm0, %v2563_v12, 0 }
 0x96a   : > { %12810 = vmatprep.subr.msk.bf16.mxu0 %vm1155_vm0, %v2565_v25  ;;  %v2606_v44 = vsel %vm1155_vm0, %v2565_v25, 0  ;;  %v13264_v9 = vpop.eup %13263 }
 0x96b   : > { %11753 = vmatpush3.bf16.xpose.msra.mxu0 %v2606_v44  ;;  %v13266_v21 = vpop.eup %13265  ;;  %v2404_v53 = vmul.f32 %v13264_v9, %v15091_v41 }
 0x96c   : > { %12811 = vmatprep.subr.msk.bf16.mxu0 %vm1155_vm0, %v2563_v12  ;;  %v2549_v49 = vpop.permute.xlu1 %2548  ;;  %v13268_v8 = vpop.eup %13267  ;;  %v2401_v56 = vmul.f32 %v13266_v21, %v15088_v43 }
 0x96d   : > { %v2547_v54 = vpop.permute.xlu0 %2546  ;;  %v2403_v5 = vmul.f32 %v13268_v8, %v15084_v11 }
 0x96e   : > { %v13270_v62 = vpop.eup %13269 }
 0x96f   : > { %v2402_v33 = vmul.f32 %v13270_v62, %v15097_v20  ;;  %v13272_v48 = vpop.eup %13271  ;;  %v2414_v28 = vpack.c.bf16 %v2404_v53, %v2403_v5 }
 0x970   : > { %v2553_v55 = vpop.permute.xlu1 %2552  ;;  %v2405_v50 = vmul.f32 %v13272_v48, %v15099_v19 }
 0x971   : > { %v2551_v10 = vpop.permute.xlu0 %2550  ;;  %v2413_v24 = vpack.c.bf16 %v2402_v33, %v2401_v56 }
 0x972   : > { %v13274_v51 = vpop.eup %13273 }
 0x973   : > { %v13276_v17 = vpop.eup %13275  ;;  %11755 = vmatpush3.bf16.xpose.msra.mxu0 %v2603_v29  ;;  %11732 = vmatprep.mubr.bf16.mxu0 %v2413_v24  ;;  %v2406_v41 = vmul.f32 %v13274_v51, %v15103_v47 }
 0x974   : > { %v2557_v43 = vpop.permute.xlu1 %2556  ;;  %11733 = vmatmul.mubr.bf16.gmra.mxu0 %v2414_v28  ;;  %v13278_v20 = vpop.eup %13277  ;;  %v2408_v11 = vmul.f32 %v13276_v17, %v15105_v3 }
 0x975   : > { %v2555_v61 = vpop.permute.xlu0 %2554  ;;  %v2415_v45 = vpack.c.bf16 %v2406_v41, %v2405_v50  ;;  %v2407_v52 = vmul.f32 %v13278_v20, %v15093_v6 }
 0x977   : > { %11736 = vmatprep.mubr.bf16.mxu0 %v2415_v45  ;;  %v2416_v23 = vpack.c.bf16 %v2408_v11, %v2407_v52 }
 0x978   : > { %v2561_v37 = vpop.permute.xlu1 %2560 }
 0x979   : > { %v2559_v59 = vpop.permute.xlu0 %2558 }
 0x97c   : > { %11737 = vmatmul.mubr.bf16.gmra.mxu0 %v2416_v23  ;;  %v2904_v19 = vpop.permute.xlu1 %2903 }
 0x97d   : > { %v2906_v14 = vpop.permute.xlu0 %2905  ;;  %11756 = vmatprep.mubr.msk.bf16.mxu0 %vm1155_vm0, %v2547_v54 }
 0x97e   : > { %11772 = vmatprep.subr.bf16.mxu1 %v2906_v14 }
 0x97f   : > { %11773 = vmatpush3.bf16.msra.mxu1 %v2906_v14 }
 0x980   : > { %11774 = vmatprep.subr.bf16.mxu1 %v2904_v19 }
 0x981   : > { %v2902_v47 = vpop.permute.xlu0 %2901 }
 0x983   : > { %11775 = vmatpush3.bf16.msra.mxu1 %v2904_v19 }
 0x984   : > { %11776 = vmatprep.subr.bf16.mxu1 %v2902_v47  ;;  %11757 = vmatmul.mubr.msk.bf16.vlgmr.msra.gmra.mxu0 %vm1155_vm0, %v2549_v49 }
 0x985   : > { %11760 = vmatprep.mubr.msk.bf16.mxu0 %vm1155_vm0, %v2551_v10 }
 0x987   : > { %11777 = vmatpush3.bf16.msra.mxu1 %v2902_v47 }
 0x98c   : > { %11761 = vmatmul.mubr.msk.bf16.gmra.mxu0 %vm1155_vm0, %v2553_v55 }
 0x98d   : > { %11764 = vmatprep.mubr.msk.bf16.mxu0 %vm1155_vm0, %v2555_v61 }
 0x994   : > { %11765 = vmatmul.mubr.msk.bf16.gmra.mxu0 %vm1155_vm0, %v2557_v43 }
 0x995   : > { %11768 = vmatprep.mubr.msk.bf16.mxu0 %vm1155_vm0, %v2559_v59 }
 0x99c   : > { %11769 = vmatmul.mubr.msk.bf16.gmra.mxu0 %vm1155_vm0, %v2561_v37 }
 0x9ef   : > { %v15178_v6 = vpop.f32.mrf.mxu0 }
 0x9f1   : > { %v15180_v3 = vpop.f32.mrf.mxu0 }
 0x9f3   : > { %v15182_v39 = vpop.f32.mrf.mxu0 }
 0x9f4   : > { %v2539_v0 = vpack.c.bf16 %v15182_v39, %v15178_v6  ;;  %v18898_v39 = vld [vmem:[#allocation7_spill] sm:$0xff] }
 0x9f5   : > { %v15186_v16 = vpop.f32.mrf.mxu0 }
 0xa27   : > { %v15188_v30 = vpop.f32.mrf.mxu0 }
 0xa29   : > { %v15190_v38 = vpop.f32.mrf.mxu0 }
 0xa2b   : > { %v15192_v34 = vpop.f32.mrf.mxu0 }
 0xa2c   : > { %v2541_v15 = vpack.c.bf16 %v15192_v34, %v15188_v30  ;;  %v18903_v34 = vld [vmem:[#allocation16_spill] sm:$0xff] }
 0xa2d   : > { %v15196_v57 = vpop.f32.mrf.mxu0 }
 0xa34   : > { %v15198_v12 = vpop.f32.mrf.mxu0 }
 0xa36   : > { %v15200_v25 = vpop.f32.mrf.mxu0 }
 0xa38   : > { %v15202_v44 = vpop.f32.mrf.mxu0 }
 0xa39   : > { %v2543_v9 = vpack.c.bf16 %v15202_v44, %v15198_v12 }
 0xa3a   : > { %v15206_v21 = vpop.f32.mrf.mxu0 }
 0xa3c   : > { %v15208_v49 = vpop.f32.mrf.mxu0 }
 0xa3e   : > { %v15210_v8 = vpop.f32.mrf.mxu0 }
 0xa40   : > { %v15212_v54 = vpop.f32.mrf.mxu0 }
 0xa41   : > { %v2545_v62 = vpack.c.bf16 %v15212_v54, %v15208_v49 }
 0xa42   : > { %v15216_v53 = vpop.f32.mrf.mxu0 }
 0xa44   : > { %v11758_v56 = vpop.f32.mrf.mxu0 }
 0xa45   : > { %v2669_v33 = vadd.f32 %v14885_v2, %v11758_v56 }
 0xa46   : > { %v2660_v48 = vpop.f32.mrf.mxu0 }
 0xa47   : > { %2727 = vmax.xlane.f32.xlu0 %v2669_v33  ;;  %v2661_v5 = vadd.f32 %v14894_v40, %v2660_v48 }
 0xa48   : > { %v11759_v55 = vpop.f32.mrf.mxu0 }
 0xa49   : > { %v2672_v29 = vadd.f32 %v14911_v26, %v11759_v55 }
 0xa4a   : > { %v2663_v10 = vpop.f32.mrf.mxu0 }
 0xa4b   : > { %v2664_v24 = vadd.f32 %v14902_v4, %v2663_v10  ;;  %2723 = vmax.xlane.f32.xlu0 %v2661_v5 }
 0xa4c   : > { %v11762_v51 = vpop.f32.mrf.mxu0 }
 0xa4d   : > { %2725 = vmax.xlane.f32.xlu1 %v2664_v24  ;;  %v2685_v50 = vadd.f32 %v14963_v46, %v11762_v51 }
 0xa4e   : > { %v2676_v28 = vpop.f32.mrf.mxu0 }
 0xa4f   : > { %2729 = vmax.xlane.f32.xlu0 %v2672_v29  ;;  %v2677_v4 = vadd.f32 %v14972_v60, %v2676_v28 }
 0xa50   : > { %v11763_v17 = vpop.f32.mrf.mxu0 }
 0xa51   : > { %v15224_v2 = vadd.f32 %v14921_v42, %v11763_v17 }
 0xa52   : > { %v2679_v41 = vpop.f32.mrf.mxu0 }
 0xa53   : > { %2735 = vmax.xlane.f32.xlu0 %v2685_v50  ;;  %2737 = vmax.xlane.f32.xlu1 %v15224_v2  ;;  %v2680_v43 = vadd.f32 %v14930_v58, %v2679_v41 }
 0xa54   : > { %v11766_v40 = vpop.f32.mrf.mxu0 }
 0xa55   : > { %v15230_v61 = vadd.f32 %v14981_v63, %v11766_v40 }
 0xa56   : > { %v2692_v20 = vpop.f32.mrf.mxu0 }
 0xa57   : > { %2733 = vmax.xlane.f32.xlu1 %v2680_v43  ;;  %2731 = vmax.xlane.f32.xlu0 %v2677_v4  ;;  %v15238_v45 = vadd.f32 %v14990_v35, %v2692_v20 }
 0xa58   : > { %v11767_v26 = vpop.f32.mrf.mxu0 }
 0xa59   : > { %v15233_v46 = vadd.f32 %v14939_v22, %v11767_v26 }
 0xa5a   : > { %v2695_v42 = vpop.f32.mrf.mxu0 }
 0xa5b   : > { %2743 = vmax.xlane.f32.xlu0 %v15230_v61  ;;  %2745 = vmax.xlane.f32.xlu1 %v15233_v46  ;;  %v15241_v60 = vadd.f32 %v14948_v18, %v2695_v42 }
 0xa5c   : > { %v11770_v58 = vpop.f32.mrf.mxu0 }
 0xa5d   : > { %v15246_v63 = vadd.f32 %v14999_v7, %v11770_v58 }
 0xa5e   : > { %v2708_v22 = vpop.f32.mrf.mxu0 }
 0xa5f   : > { %2741 = vmax.xlane.f32.xlu1 %v15241_v60  ;;  %2739 = vmax.xlane.f32.xlu0 %v15238_v45  ;;  %v15250_v11 = vadd.f32 %v15008_v36, %v2708_v22 }
 0xa60   : > { %v11771_v35 = vpop.f32.mrf.mxu0 }
 0xa61   : > { %v15258_v18 = vadd.f32 %v15016_v1, %v11771_v35 }
 0xa62   : > { %v2711_v7 = vpop.f32.mrf.mxu0 }
 0xa63   : > { %2751 = vmax.xlane.f32.xlu0 %v15246_v63  ;;  %v15262_v52 = vadd.f32 %v15026_v31, %v2711_v7 }
 0xa67   : > { %2747 = vmax.xlane.f32.xlu0 %v15250_v11 }
 0xa70   : > { %2897 = vrot.lane.b32.xlu1 %v14239_v27, %s13805_s21 }
 0xa7d   : > { %2899 = vrot.lane.b32.xlu0 %v14231_v13, %s13805_s21 }
 0xa94   : > { %2753 = vmax.xlane.f32.xlu1 %v15258_v18 }
 0xa98   : > { %2749 = vmax.xlane.f32.xlu1 %v15262_v52 }
 0xaa9   : > { %2895 = vrot.lane.b32.xlu1 %v14247_v32, %s13805_s21 }
 0xad0   : > { %v2728_v36 = vpop.xlane.xlu0 %2727 }
 0xad1   : > { %v2757_v27 = vsub.f32 %v2669_v33, %v2728_v36 }
 0xad3   : > { %v2775_v37 = vmul.f32 1.442695, %v2757_v27 }
 0xad4   : > { %v2724_v59 = vpop.xlane.xlu0 %2723 }
 0xad5   : > { %13279 = vpow2.f32 %v2775_v37  ;;  %v2755_v13 = vsub.f32 %v2661_v5, %v2724_v59 }
 0xad6   : > { %v2726_v23 = vpop.xlane.xlu1 %2725 }
 0xad7   : > { %v2771_v1 = vmul.f32 1.442695, %v2755_v13  ;;  %v2756_v19 = vsub.f32 %v2664_v24, %v2726_v23 }
 0xad8   : > { %v2730_v14 = vpop.xlane.xlu0 %2729 }
 0xad9   : > { %13281 = vpow2.f32 %v2771_v1  ;;  %v2758_v47 = vsub.f32 %v2672_v29, %v2730_v14  ;;  %v2773_v55 = vmul.f32 1.442695, %v2756_v19 }
 0xadb   : > { %v2777_v56 = vmul.f32 1.442695, %v2758_v47 }
 0xadc   : > { %v2738_v31 = vpop.xlane.xlu1 %2737  ;;  %v2736_v48 = vpop.xlane.xlu0 %2735 }
 0xadd   : > { %13283 = vpow2.f32 %v2777_v56  ;;  %v2761_v10 = vsub.f32 %v2685_v50, %v2736_v48  ;;  %v2762_v5 = vsub.f32 %v15224_v2, %v2738_v31 }
 0xade   : > { %13285 = vpow2.f32 %v2773_v55 }
 0xadf   : > { %v2783_v51 = vmul.f32 1.442695, %v2761_v10  ;;  %v2785_v42 = vmul.f32 1.442695, %v2762_v5  ;;  %v18894_v5 = vld [vmem:[#allocation9_spill] sm:$0xff] }
 0xae0   : > { %v2734_v32 = vpop.xlane.xlu1 %2733  ;;  %v2732_v28 = vpop.xlane.xlu0 %2731 }
 0xae1   : > { %v2760_v33 = vsub.f32 %v2680_v43, %v2734_v32  ;;  %v2759_v17 = vsub.f32 %v2677_v4, %v2732_v28  ;;  %13287 = vpow2.f32 %v2783_v51  ;;  %v18890_v32 = vld [vmem:[#allocation10_spill] sm:$0xff]  ;;  %v18891_v28 = vld [vmem:[#allocation13_spill] sm:$0xff] }
 0xae2   : > { %v15267_v41 = vpop.eup %13279 }
 0xae3   : > { %v2781_v40 = vmul.f32 1.442695, %v2760_v33  ;;  %v2779_v24 = vmul.f32 1.442695, %v2759_v17  ;;  %2807 = vadd.xlane.f32.xlu1 %v15267_v41  ;;  %v18892_v33 = vld [vmem:[#allocation11_spill] sm:$0xff] }
 0xae4   : > { %v2744_v29 = vpop.xlane.xlu0 %2743  ;;  %v2746_v20 = vpop.xlane.xlu1 %2745  ;;  %v18893_v17 = vpack.c.bf16 %v18891_v28, %v18892_v33 }
 0xae5   : > { %13289 = vpow2.f32 %v2781_v40  ;;  %v2765_v50 = vsub.f32 %v15230_v61, %v2744_v29  ;;  %v2766_v22 = vsub.f32 %v15233_v46, %v2746_v20  ;;  %v2538_v40 = vpack.c.bf16 %v15186_v16, %v15180_v3 }
 0xae6   : > { %v15272_v26 = vpop.eup %13281  ;;  %13291 = vpow2.f32 %v2779_v24 }
 0xae7   : > { %2803 = vadd.xlane.f32.xlu1 %v15272_v26  ;;  %v2791_v43 = vmul.f32 1.442695, %v2765_v50  ;;  %13293 = vpow2.f32 %v2785_v42  ;;  %v2793_v37 = vmul.f32 1.442695, %v2766_v22  ;;  %v18895_v50 = vld [vmem:[#allocation17_spill] sm:$0xff]  ;;  %v18896_v42 = vld [vmem:[#allocation15_spill] sm:$0xff] }
 0xae8   : > { %v2740_v4 = vpop.xlane.xlu0 %2739  ;;  %v2742_v35 = vpop.xlane.xlu1 %2741  ;;  %v18901_v22 = vld [vmem:[#allocation12_spill] sm:$0xff] }
 0xae9   : > { %v2763_v2 = vsub.f32 %v15238_v45, %v2740_v4  ;;  %13295 = vpow2.f32 %v2791_v43  ;;  %v2764_v59 = vsub.f32 %v15241_v60, %v2742_v35  ;;  %v18897_v4 = vpack.c.bf16 %v18895_v50, %v18896_v42  ;;  %v18902_v35 = vld [vmem:[#allocation14_spill] sm:$0xff] }
 0xaea   : > { %v15276_v58 = vpop.eup %13283  ;;  %v2064_v30 = vpack.c.bf16 %v18902_v35, %v18901_v22 }
 0xaeb   : > { %v2787_v7 = vmul.f32 1.442695, %v2763_v2  ;;  %2809 = vadd.xlane.f32.xlu1 %v15276_v58  ;;  %v15281_v27 = vpop.eup %13285 }
 0xaec   : > { %v2752_v61 = vpop.xlane.xlu0 %2751  ;;  %v2898_v47 = vpop.permute.xlu1 %2897 }
 0xaed   : > { %v2769_v36 = vsub.f32 %v15246_v63, %v2752_v61  ;;  %13297 = vpow2.f32 %v2787_v7  ;;  %v2789_v63 = vmul.f32 1.442695, %v2764_v59  ;;  %v2540_v61 = vpack.c.bf16 %v15196_v57, %v15190_v38 }
 0xaee   : > { %v15284_v45 = vpop.eup %13287 }
 0xaef   : > { %v2799_v13 = vmul.f32 1.442695, %v2769_v36  ;;  %2805 = vadd.xlane.f32.xlu1 %v15281_v27  ;;  %2815 = vadd.xlane.f32.xlu0 %v15284_v45  ;;  %v18905_v36 = vld [vmem:[#allocation6_spill] sm:$0xff] }
 0xaf0   : > { %v2748_v46 = vpop.xlane.xlu0 %2747 }
 0xaf1   : > { %13299 = vpow2.f32 %v2799_v13  ;;  %v2767_v23 = vsub.f32 %v15250_v11, %v2748_v46 }
 0xaf2   : > { %v15289_v1 = vpop.eup %13289  ;;  %13301 = vpow2.f32 %v2793_v37  ;;  %v18906_v37 = vld [vmem:[#allocation8_spill] sm:$0xff] }
 0xaf3   : > { %v15291_v14 = vpop.eup %13291  ;;  %v2795_v19 = vmul.f32 1.442695, %v2767_v23  ;;  %2813 = vadd.xlane.f32.xlu1 %v15289_v1  ;;  %v2068_v59 = vpack.c.bf16 %v18906_v37, %v18905_v36 }
 0xaf4   : > { %2811 = vadd.xlane.f32.xlu0 %v15291_v14  ;;  %v2900_v60 = vpop.permute.xlu0 %2899  ;;  %v15295_v56 = vpop.eup %13293 }
 0xaf5   : > { %13303 = vpow2.f32 %v2795_v19  ;;  %11778 = vmatprep.subr.bf16.mxu1 %v2900_v60 }
 0xaf6   : > { %13305 = vpow2.f32 %v2789_v63  ;;  %11779 = vmatpush3.bf16.msra.mxu1 %v2900_v60  ;;  %v15298_v11 = vpop.eup %13295 }
 0xaf7   : > { %11780 = vmatprep.subr.bf16.mxu1 %v2898_v47 }
 0xaf8   : > { %2817 = vadd.xlane.f32.xlu0 %v15295_v56 }
 0xafa   : > { %11781 = vmatpush3.bf16.msra.mxu1 %v2898_v47  ;;  %v15300_v31 = vpop.eup %13297 }
 0xafb   : > { %2819 = vadd.xlane.f32.xlu1 %v15300_v31 }
 0xafc   : > { %2823 = vadd.xlane.f32.xlu0 %v15298_v11 }
 0xafe   : > { %v15304_v48 = vpop.eup %13299 }
 0xaff   : > { %v15306_v55 = vpop.eup %13301  ;;  %2831 = vadd.xlane.f32.xlu1 %v15304_v48 }
 0xb00   : > { %2825 = vadd.xlane.f32.xlu0 %v15306_v55 }
 0xb02   : > { %v15310_v10 = vpop.eup %13303 }
 0xb03   : > { %v15312_v51 = vpop.eup %13305  ;;  %2827 = vadd.xlane.f32.xlu1 %v15310_v10 }
 0xb04   : > { %2821 = vadd.xlane.f32.xlu0 %v15312_v51 }
 0xb14   : > { %2891 = vrot.lane.b32.xlu1 %v18890_v32, %s13805_s21 }
 0xb18   : > { %3030 = vrot.lane.b32.xlu1 %v18893_v17, %s13805_s21 }
 0xb1a   : > { %2893 = vrot.lane.b32.xlu0 %v18894_v5, %s13805_s21 }
 0xb1c   : > { %3052 = vrot.lane.b32.xlu1 %v2538_v40, %s13804_s14 }
 0xb1d   : > { %v2754_v24 = vpop.xlane.xlu1 %2753 }
 0xb1e   : > { %v2770_v3 = vsub.f32 %v15258_v18, %v2754_v24 }
 0xb20   : > { %3054 = vrot.lane.b32.xlu1 %v2539_v0, %s13804_s14  ;;  %v2801_v6 = vmul.f32 1.442695, %v2770_v3  ;;  %v18899_v0 = vld [vmem:[#allocation5_spill] sm:$0xff] }
 0xb21   : > { %v2750_v29 = vpop.xlane.xlu1 %2749 }
 0xb22   : > { %v2768_v20 = vsub.f32 %v15262_v52, %v2750_v29  ;;  %v18900_v52 = vpack.c.bf16 %v18898_v39, %v18899_v0 }
 0xb24   : > { %3034 = vrot.lane.b32.xlu1 %v18897_v4, %s13805_s21  ;;  %v2797_v16 = vmul.f32 1.442695, %v2768_v20 }
 0xb25   : > { %v2896_v43 = vpop.permute.xlu1 %2895 }
 0xb26   : > { %11782 = vmatprep.subr.bf16.mxu1 %v2896_v43  ;;  %13307 = vpow2.f32 %v2797_v16 }
 0xb27   : > { %11783 = vmatpush3.bf16.msra.mxu1 %v2896_v43  ;;  %13309 = vpow2.f32 %v2801_v6 }
 0xb28   : > { %3058 = vrot.lane.b32.xlu1 %v2541_v15, %s13804_s14  ;;  %v18904_v15 = vld [vmem:[#allocation18_spill] sm:$0xff] }
 0xb29   : > { %v2066_v7 = vpack.c.bf16 %v18904_v15, %v18903_v34 }
 0xb2c   : > { %3038 = vrot.lane.b32.xlu1 %v18900_v52, %s13805_s21 }
 0xb33   : > { %v15345_v2 = vpop.eup %13307 }
 0xb34   : > { %v15348_v18 = vpop.eup %13309 }
 0xb39   : > { %2829 = vadd.xlane.f32.xlu0 %v15345_v2 }
 0xb3d   : > { %2833 = vadd.xlane.f32.xlu0 %v15348_v18 }
 0xb53   : > { %3028 = vrot.lane.b32.xlu0 %v2064_v30, %s13805_s21 }
 0xb57   : > { %3032 = vrot.lane.b32.xlu0 %v2066_v7, %s13805_s21 }
 0xb5b   : > { %3056 = vrot.lane.b32.xlu0 %v2540_v61, %s13804_s14 }
 0xb5f   : > { %3036 = vrot.lane.b32.xlu0 %v2068_v59, %s13805_s21 }
 0xb6c   : > { %v2808_v13 = vpop.xlane.xlu1 %2807 }
 0xb70   : > { %v2804_v46 = vpop.xlane.xlu1 %2803 }
 0xb71   : > { %13311 = vrcp.f32 %v2804_v46 }
 0xb74   : > { %v2810_v23 = vpop.xlane.xlu1 %2809 }
 0xb78   : > { %v2806_v63 = vpop.xlane.xlu1 %2805  ;;  %v2816_v19 = vpop.xlane.xlu0 %2815 }
 0xb79   : > { %13313 = vrcp.f32 %v2806_v63 }
 0xb7a   : > { %13315 = vrcp.f32 %v2810_v23 }
 0xb7c   : > { %v2814_v47 = vpop.xlane.xlu1 %2813 }
 0xb7d   : > { %v2812_v60 = vpop.xlane.xlu0 %2811  ;;  %13317 = vrcp.f32 %v2814_v47 }
 0xb7e   : > { %v13312_v28 = vpop.eup %13311  ;;  %13319 = vrcp.f32 %v2812_v60 }
 0xb7f   : > { %13321 = vrcp.f32 %v2808_v13  ;;  %v2867_v17 = vmul.f32 %v13312_v28, %v15272_v26  ;;  %v12879_v28 = vld [vmem:[%s18716_s3 + $0x38] sm:$0xff]  }
 0xb81   : > { %v2818_v32 = vpop.xlane.xlu0 %2817 }
 0xb82   : > { %13323 = vrcp.f32 %v2818_v32 }
 0xb83   : > { %13325 = vrcp.f32 %v2816_v19 }
 0xb84   : > { %v2820_v38 = vpop.xlane.xlu1 %2819 }
 0xb85   : > { %v2824_v57 = vpop.xlane.xlu0 %2823  ;;  %13327 = vrcp.f32 %v2820_v38  ;;  %v12884_v38 = vld [vmem:[%s18716_s3 + $0x10] sm:$0xff]  }
 0xb86   : > { %v13314_v33 = vpop.eup %13313 }
 0xb87   : > { %v2868_v5 = vmul.f32 %v13314_v33, %v15281_v27  ;;  %v13316_v42 = vpop.eup %13315  ;;  %v12886_v33 = vld [vmem:[%s18716_s3] sm:$0xff]  }
 0xb88   : > { %v2832_v40 = vpop.xlane.xlu1 %2831  ;;  %v2870_v26 = vmul.f32 %v13316_v42, %v15276_v58 }
 0xb89   : > { %v2826_v24 = vpop.xlane.xlu0 %2825  ;;  %v2883_v29 = vpack.c.bf16 %v2868_v5, %v2867_v17 }
 0xb8a   : > { %v13318_v4 = vpop.eup %13317 }
 0xb8b   : > { %11788 = vmatprep.mubr.bf16.mxu1 %v2883_v29  ;;  %v13320_v3 = vpop.eup %13319  ;;  %v2872_v39 = vmul.f32 %v13318_v4, %v15289_v1  ;;  %v2542_v4 = vpack.c.bf16 %v15206_v21, %v15200_v25  ;;  %v18909_v21 = vld [vmem:[#allocation37_spill] sm:$0xff] }
 0xb8c   : > { %v2828_v20 = vpop.xlane.xlu1 %2827  ;;  %v13322_v16 = vpop.eup %13321  ;;  %v2871_v27 = vmul.f32 %v13320_v3, %v15291_v14 }
 0xb8d   : > { %v2822_v50 = vpop.xlane.xlu0 %2821  ;;  %v2869_v0 = vmul.f32 %v13322_v16, %v15267_v41 }
 0xb8e   : > { %13329 = vrcp.f32 %v2822_v50  ;;  %v2885_v35 = vpack.c.bf16 %v2872_v39, %v2871_v27  ;;  %v18907_v39 = vld [vmem:[#allocation36_spill] sm:$0xff] }
 0xb8f   : > { %13331 = vrcp.f32 %v2826_v24  ;;  %v2884_v52 = vpack.c.bf16 %v2870_v26, %v2869_v0  ;;  %v13324_v22 = vpop.eup %13323  ;;  %v18908_v0 = vld [vmem:[#allocation38_spill] sm:$0xff] }
 0xb90   : > { %v2892_v6 = vpop.permute.xlu1 %2891  ;;  %13333 = vrcp.f32 %v2824_v57  ;;  %v13326_v30 = vpop.eup %13325  ;;  %v2874_v7 = vmul.f32 %v13324_v22, %v15295_v56  ;;  %v12885_v57 = vld [vmem:[%s18716_s3 + $0x8] sm:$0xff]   ;;  %v2070_v25 = vpack.c.bf16 %v18908_v0, %v18907_v39  ;;  %v18924_v39 = vld [vmem:[#allocation29_spill] sm:$0xff] }
 0xb91   : > { %v2894_v43 = vpop.permute.xlu0 %2893  ;;  %v2873_v14 = vmul.f32 %v13326_v30, %v15284_v45  ;;  %13335 = vrcp.f32 %v2828_v20  ;;  %v2544_v30 = vpack.c.bf16 %v15216_v53, %v15210_v8  ;;  %v18925_v0 = vld [vmem:[#allocation27_spill] sm:$0xff] }
 0xb92   : > { %11784 = vmatprep.subr.bf16.mxu1 %v2894_v43  ;;  %v13328_v34 = vpop.eup %13327 }
 0xb93   : > { %11785 = vmatpush3.bf16.msra.mxu1 %v2894_v43  ;;  %v2875_v1 = vmul.f32 %v13328_v34, %v15300_v31  ;;  %v2886_v61 = vpack.c.bf16 %v2874_v7, %v2873_v14 }
 0xb94   : > { %11786 = vmatprep.subr.bf16.mxu1 %v2892_v6 }
 0xb97   : > { %11787 = vmatpush3.bf16.msra.mxu1 %v2892_v6 }
 0xb98   : > { %11804 = vmatprep.subr.bf16.mxu1 %v12879_v28 }
 0xb9a   : > { %11789 = vmatmul.mubr.bf16.vlgmr.msra.gmra.mxu1 %v2884_v52  ;;  %v18910_v52 = vld [vmem:[#allocation35_spill] sm:$0xff] }
 0xb9b   : > { %11792 = vmatprep.mubr.bf16.mxu1 %v2885_v35  ;;  %v13330_v15 = vpop.eup %13329  ;;  %11805 = vmatpush3.bf16.msra.mxu1 %v12879_v28  ;;  %v18911_v12 = vpack.c.bf16 %v18909_v21, %v18910_v52 }
 0xb9c   : > { %v2876_v58 = vmul.f32 %v13330_v15, %v15312_v51  ;;  %v13332_v36 = vpop.eup %13331 }
 0xb9d   : > { %v13334_v37 = vpop.eup %13333  ;;  %v2878_v59 = vmul.f32 %v13332_v36, %v15306_v55 }
 0xb9e   : > { %v2887_v41 = vpack.c.bf16 %v2876_v58, %v2875_v1  ;;  %v2877_v13 = vmul.f32 %v13334_v37, %v15298_v11  ;;  %v13336_v45 = vpop.eup %13335 }
 0xb9f   : > { %v2879_v23 = vmul.f32 %v13336_v45, %v15310_v10  ;;  %v12880_v10 = vld [vmem:[%s18716_s3 + $0x30] sm:$0xff]  }
 0xba0   : > { %v2888_v46 = vpack.c.bf16 %v2878_v59, %v2877_v13  ;;  %11806 = vmatprep.subr.bf16.mxu1 %v12880_v10  ;;  %v18912_v59 = vld [vmem:[#allocation20_spill] sm:$0xff]  ;;  %v18913_v13 = vld [vmem:[#allocation22_spill] sm:$0xff] }
 0xba1   : > { %11807 = vmatpush3.bf16.msra.mxu1 %v12880_v10 }
 0xba2   : > { %11793 = vmatmul.mubr.bf16.gmra.mxu1 %v2886_v61  ;;  %v3031_v61 = vpop.permute.xlu1 %3030 }
 0xba3   : > { %11796 = vmatprep.mubr.bf16.mxu1 %v2887_v41 }
 0xba6   : > { %v3053_v36 = vpop.permute.xlu1 %3052 }
 0xbaa   : > { %11797 = vmatmul.mubr.bf16.gmra.mxu1 %v2888_v46  ;;  %v3055_v8 = vpop.permute.xlu1 %3054  ;;  %v1566_v46 = vpack.c.bf16 %v18913_v13, %v18912_v59 }
 0xbae   : > { %v3035_v41 = vpop.permute.xlu1 %3034 }
 0xbb2   : > { %v3059_v49 = vpop.permute.xlu1 %3058 }
 0xbc2   : > { %v2830_v56 = vpop.xlane.xlu0 %2829 }
 0xbc3   : > { %13337 = vrcp.f32 %v2830_v56 }
 0xbc4   : > { %13339 = vrcp.f32 %v2832_v40 }
 0xbc6   : > { %v2834_v51 = vpop.xlane.xlu0 %2833 }
 0xbc7   : > { %13341 = vrcp.f32 %v2834_v51 }
 0xbca   : > { %v3029_v53 = vpop.permute.xlu0 %3028 }
 0xbcb   : > { %v3094_v51 = vsel %vm1155_vm0, %v1566_v46, %v3029_v53 }
 0xbce   : > { %v3033_v37 = vpop.permute.xlu0 %3032 }
 0xbd0   : > { %v13338_v31 = vpop.eup %13337 }
 0xbd1   : > { %v2880_v63 = vmul.f32 %v13338_v31, %v15345_v2  ;;  %v13340_v19 = vpop.eup %13339  ;;  %v12881_v2 = vld [vmem:[%s18716_s3 + $0x28] sm:$0xff]   ;;  %v18914_v31 = vld [vmem:[#allocation21_spill] sm:$0xff] }
 0xbd2   : > { %v2881_v11 = vmul.f32 %v13340_v19, %v15304_v48  ;;  %11808 = vmatprep.subr.bf16.mxu1 %v12881_v2  ;;  %v12882_v48 = vld [vmem:[%s18716_s3 + $0x20] sm:$0xff]   ;;  %v3057_v54 = vpop.permute.xlu0 %3056 }
 0xbd3   : > { %v2889_v60 = vpack.c.bf16 %v2880_v63, %v2879_v23  ;;  %11809 = vmatpush3.bf16.msra.mxu1 %v12881_v2  ;;  %v18915_v23 = vld [vmem:[#allocation19_spill] sm:$0xff]  ;;  %v18917_v2 = vld [vmem:[#allocation24_spill] sm:$0xff] }
 0xbd4   : > { %v13342_v47 = vpop.eup %13341  ;;  %11810 = vmatprep.subr.bf16.mxu1 %v12882_v48  ;;  %v18916_v63 = vpack.c.bf16 %v18914_v31, %v18915_v23 }
 0xbd5   : > { %11800 = vmatprep.mubr.bf16.mxu1 %v2889_v60  ;;  %v2882_v55 = vmul.f32 %v13342_v47, %v15348_v18  ;;  %v12883_v18 = vld [vmem:[%s18716_s3 + $0x18] sm:$0xff]   ;;  %v3118_v47 = vsel %vm3116_vm1, %v3094_v51, %v3053_v36 }
 0xbd6   : > { %v3037_v56 = vpop.permute.xlu0 %3036  ;;  %v3097_v19 = vsel %vm1155_vm0, %v18916_v63, %v3031_v61  ;;  %v18930_v61 = vld [vmem:[#allocation31_spill] sm:$0xff]  ;;  %v13745_v63 = vld [vmem:[%s13882_s22 + $0x10] sm:$0xff] }
 0xbd7   : > { %v2890_v32 = vpack.c.bf16 %v2882_v55, %v2881_v11  ;;  %11811 = vmatpush3.bf16.msra.mxu1 %v12882_v48  ;;  %v3120_v11 = vsel %vm3116_vm1, %v3097_v19, %v3055_v8  ;;  %v18918_v48 = vld [vmem:[#allocation26_spill] sm:$0xff] }
 0xbd8   : > { %11812 = vmatprep.subr.bf16.mxu1 %v12883_v18 }
 0xbd9   : > { %11801 = vmatmul.mubr.bf16.gmra.mxu1 %v2890_v32 }
 0xbdb   : > { %11813 = vmatpush3.bf16.msra.mxu1 %v12883_v18  ;;  %v1568_v18 = vpack.c.bf16 %v18918_v48, %v18917_v2 }
 0xbdc   : > { %11814 = vmatprep.subr.bf16.mxu1 %v12884_v38 }
 0xbdf   : > { %11815 = vmatpush3.bf16.msra.mxu1 %v12884_v38 }
 0xbe0   : > { %11816 = vmatprep.subr.bf16.mxu1 %v12885_v57 }
 0xbe3   : > { %11817 = vmatpush3.bf16.msra.mxu1 %v12885_v57  ;;  %v3100_v57 = vsel %vm1155_vm0, %v1568_v18, %v3033_v37 }
 0xbe4   : > { %11818 = vmatprep.subr.bf16.mxu1 %v12886_v33 }
 0xbe7   : > { %11819 = vmatpush3.bf16.msra.mxu1 %v12886_v33  ;;  %v18919_v33 = vld [vmem:[#allocation25_spill] sm:$0xff] }
 0xc5a   : > { %v11790_v17 = vpop.f32.mrf.mxu1 }
 0xc5c   : > { %v2949_v5 = vpop.f32.mrf.mxu1 }
 0xc5e   : > { %v11791_v40 = vpop.f32.mrf.mxu1 }
 0xc5f   : > { %v3013_v24 = vpack.c.bf16 %v11791_v40, %v11790_v17  ;;  %v18920_v17 = vld [vmem:[#allocation23_spill] sm:$0xff] }
 0xc60   : > { %v2952_v29 = vpop.f32.mrf.mxu1 }
 0xc61   : > { %v3012_v20 = vpack.c.bf16 %v2952_v29, %v2949_v5  ;;  %3078 = vrot.lane.b32.xlu1 %v3013_v24, %s13803_s28  ;;  %v18921_v5 = vpack.c.bf16 %v18919_v33, %v18920_v17  ;;  %v3122_v24 = vsel %vm3116_vm1, %v3100_v57, %v3057_v54  ;;  %v13748_v33 = vld [vmem:[%s13882_s22 + $0x20] sm:$0xff] }
 0xc62   : > { %v11794_v50 = vpop.f32.mrf.mxu1 }
 0xc63   : > { %3076 = vrot.lane.b32.xlu0 %v3012_v20, %s13803_s28  ;;  %v3103_v40 = vsel %vm1155_vm0, %v18921_v5, %v3035_v41 }
 0xc64   : > { %v2965_v42 = vpop.f32.mrf.mxu1  ;;  %v3124_v20 = vsel %vm3116_vm1, %v3103_v40, %v3059_v49  ;;  %v13749_v40 = vld [vmem:[%s13882_s22 + $0x28] sm:$0xff] }
 0xc65   : > { %3062 = vrot.lane.b32.xlu1 %v2543_v9, %s13804_s14 }
 0xc66   : > { %v11795_v43 = vpop.f32.mrf.mxu1 }
 0xc67   : > { %v3015_v3 = vpack.c.bf16 %v11795_v43, %v11794_v50  ;;  %3060 = vrot.lane.b32.xlu0 %v2542_v4, %s13804_s14 }
 0xc68   : > { %v2968_v16 = vpop.f32.mrf.mxu1 }
 0xc69   : > { %v3014_v6 = vpack.c.bf16 %v2968_v16, %v2965_v42  ;;  %3082 = vrot.lane.b32.xlu1 %v3015_v3, %s13803_s28  ;;  %v18922_v3 = vld [vmem:[#allocation28_spill] sm:$0xff]  ;;  %v18923_v16 = vld [vmem:[#allocation30_spill] sm:$0xff] }
 0xc6a   : > { %v11798_v26 = vpop.f32.mrf.mxu1 }
 0xc6b   : > { %3080 = vrot.lane.b32.xlu0 %v3014_v6, %s13803_s28  ;;  %v1570_v6 = vpack.c.bf16 %v18923_v16, %v18922_v3 }
 0xc6c   : > { %v2981_v27 = vpop.f32.mrf.mxu1 }
 0xc6d   : > { %3042 = vrot.lane.b32.xlu1 %v18911_v12, %s13805_s21 }
 0xc6e   : > { %v11799_v44 = vpop.f32.mrf.mxu1 }
 0xc6f   : > { %v3017_v9 = vpack.c.bf16 %v11799_v44, %v11798_v26  ;;  %3040 = vrot.lane.b32.xlu0 %v2070_v25, %s13805_s21  ;;  %v3106_v26 = vsel %vm1155_vm0, %v1570_v6, %v3037_v56  ;;  %v18926_v25 = vpack.c.bf16 %v18924_v39, %v18925_v0  ;;  %v15480_v56 = vld [vmem:[%s18720_s7] sm:$0x3f] }
 0xc70   : > { %v2984_v22 = vpop.f32.mrf.mxu1  ;;  %v13752_v39 = vld [vmem:[%s13882_s22 + $0x40] sm:$0xff] }
 0xc71   : > { %v3016_v35 = vpack.c.bf16 %v2984_v22, %v2981_v27  ;;  %3086 = vrot.lane.b32.xlu1 %v3017_v9, %s13803_s28 }
 0xc73   : > { %3084 = vrot.lane.b32.xlu0 %v3016_v35, %s13803_s28 }
 0xc75   : > { %3066 = vrot.lane.b32.xlu1 %v2545_v62, %s13804_s14  ;;  %v3039_v62 = vpop.permute.xlu1 %3038 }
 0xc76   : > { %v3109_v21 = vsel %vm1155_vm0, %v18926_v25, %v3039_v62  ;;  %v18932_v62 = vld [vmem:[#allocation2_spill] sm:$0xff] }
 0xc77   : > { %3064 = vrot.lane.b32.xlu0 %v2544_v30, %s13804_s14  ;;  %v18767_v59 = vsub.s32 2, %v18932_v62 }
 0xc79   : > { %v15485_v51 = vrot.slane %v15480_v56, %v18767_v59 }
 0xc99   : > { %v11802_v34 = vpop.f32.mrf.mxu1 }
 0xc9b   : > { %v2997_v15 = vpop.f32.mrf.mxu1 }
 0xc9d   : > { %v11803_v7 = vpop.f32.mrf.mxu1 }
 0xc9e   : > { %v3019_v58 = vpack.c.bf16 %v11803_v7, %v11802_v34  ;;  %v18927_v34 = vld [vmem:[#allocation32_spill] sm:$0xff] }
 0xc9f   : > { %v3000_v14 = vpop.f32.mrf.mxu1 }
 0xca0   : > { %v3018_v1 = vpack.c.bf16 %v3000_v14, %v2997_v15  ;;  %3090 = vrot.lane.b32.xlu1 %v3019_v58, %s13803_s28  ;;  %v18928_v15 = vld [vmem:[#allocation34_spill] sm:$0xff] }
 0xca1   : > { %v1572_v7 = vpack.c.bf16 %v18928_v15, %v18927_v34 }
 0xca2   : > { %3088 = vrot.lane.b32.xlu0 %v3018_v1, %s13803_s28  ;;  %v18929_v1 = vld [vmem:[#allocation33_spill] sm:$0xff] }
 0xca3   : > { %v18931_v36 = vpack.c.bf16 %v18929_v1, %v18930_v61 }
 0xcd3   : > { %v3079_v45 = vpop.permute.xlu1 %3078 }
 0xcd4   : > { %v3138_v32 = vsel %vm3133_vm2, %v3120_v11, %v3079_v45  ;;  %v13744_v45 = vld [vmem:[%s13882_s22] sm:$0xff]  ;;  %v13746_v11 = vld [vmem:[%s13882_s22 + $0x8] sm:$0xff] }
 0xcd5   : > { %v3077_v60 = vpop.permute.xlu0 %3076 }
 0xcd6   : > { %v3135_v55 = vsel %vm3133_vm2, %v3118_v47, %v3077_v60 }
 0xcd7   : > { %v3063_v28 = vpop.permute.xlu1 %3062  ;;  %11820 = vmatprep.mubr.bf16.mxu1 %v3135_v55 }
 0xcd8   : > { %11821 = vmatmul.mubr.bf16.vlgmr.msra.gmra.mxu1 %v3138_v32  ;;  %v3128_v44 = vsel %vm3116_vm1, %v3109_v21, %v3063_v28  ;;  %v13753_v21 = vld [vmem:[%s13882_s22 + $0x48] sm:$0xff] }
 0xcd9   : > { %v3061_v10 = vpop.permute.xlu0 %3060 }
 0xcda   : > { %v3126_v52 = vsel %vm3116_vm1, %v3106_v26, %v3061_v10  ;;  %v13747_v10 = vld [vmem:[%s13882_s22 + $0x18] sm:$0xff] }
 0xcdb   : > { %v3083_v38 = vpop.permute.xlu1 %3082 }
 0xcdc   : > { %v3144_v4 = vsel %vm3133_vm2, %v3124_v20, %v3083_v38  ;;  %v13750_v20 = vld [vmem:[%s13882_s22 + $0x30] sm:$0xff] }
 0xcdd   : > { %v3081_v29 = vpop.permute.xlu0 %3080 }
 0xcde   : > { %v3141_v50 = vsel %vm3133_vm2, %v3122_v24, %v3081_v29 }
 0xcdf   : > { %v3043_v42 = vpop.permute.xlu1 %3042  ;;  %11824 = vmatprep.mubr.bf16.mxu1 %v3141_v50 }
 0xce0   : > { %11825 = vmatmul.mubr.bf16.gmra.mxu1 %v3144_v4  ;;  %v3115_v8 = vsel %vm1155_vm0, %v18931_v36, %v3043_v42  ;;  %v13751_v4 = vld [vmem:[%s13882_s22 + $0x38] sm:$0xff]  ;;  %v13757_v36 = vld [vmem:[%s13882_s22 + $0x70] sm:$0xff] }
 0xce1   : > { %v3041_v43 = vpop.permute.xlu0 %3040 }
 0xce2   : > { %v3112_v58 = vsel %vm1155_vm0, %v1572_v7, %v3041_v43 }
 0xce3   : > { %v3087_v27 = vpop.permute.xlu1 %3086 }
 0xce4   : > { %v3150_v22 = vsel %vm3133_vm2, %v3128_v44, %v3087_v27 }
 0xce5   : > { %v3085_v12 = vpop.permute.xlu0 %3084 }
 0xce6   : > { %v3147_v9 = vsel %vm3133_vm2, %v3126_v52, %v3085_v12  ;;  %v13754_v12 = vld [vmem:[%s13882_s22 + $0x50] sm:$0xff] }
 0xce7   : > { %11828 = vmatprep.mubr.bf16.mxu1 %v3147_v9  ;;  %v3067_v35 = vpop.permute.xlu1 %3066 }
 0xce8   : > { %11829 = vmatmul.mubr.bf16.gmra.mxu1 %v3150_v22  ;;  %v3132_v37 = vsel %vm3116_vm1, %v3115_v8, %v3067_v35  ;;  %v13755_v22 = vld [vmem:[%s13882_s22 + $0x58] sm:$0xff] }
 0xce9   : > { %v3065_v30 = vpop.permute.xlu0 %3064 }
 0xcea   : > { %v3130_v53 = vsel %vm3116_vm1, %v3112_v58, %v3065_v30 }
 0xd12   : > { %v3091_v14 = vpop.permute.xlu1 %3090 }
 0xd13   : > { %v3156_v54 = vsel %vm3133_vm2, %v3132_v37, %v3091_v14  ;;  %v13756_v14 = vld [vmem:[%s13882_s22 + $0x60] sm:$0xff]  ;;  %v13758_v37 = vld [vmem:[%s13882_s22 + $0x68] sm:$0xff] }
 0xd14   : > { %v3089_v41 = vpop.permute.xlu0 %3088 }
 0xd15   : > { %v3153_v49 = vsel %vm3133_vm2, %v3130_v53, %v3089_v41 }
 0xd16   : > { %11832 = vmatprep.mubr.bf16.mxu1 %v3153_v49 }
 0xd17   : > { %11833 = vmatmul.mubr.bf16.gmra.mxu1 %v3156_v54 }
 0xd98   : > { %v11822_v13 = vpop.f32.mrf.mxu1 }
 0xd99   : > { %v3321_v19 = vadd.f32 %v13745_v63, %v11822_v13  ;;  %v13759_v13 = vld [vmem:[%s13882_s22 + $0x78] sm:$0xff] }
 0xd9a   : > { %v3256_v46 = vpop.f32.mrf.mxu1 }
 0xd9b   : > { %v3319_v31 = vadd.f32 %v13744_v45, %v3256_v46  ;;  %v15495_v28 = vadd.f32 %v15485_v51, %v3321_v19 }
 0xd9c   : > { %v11823_v23 = vpop.f32.mrf.mxu1 }
 0xd9d   : > { %v15490_v60 = vadd.f32 %v15485_v51, %v3319_v31  ;;  %v3322_v2 = vadd.f32 %v13747_v10, %v11823_v23 }
 0xd9e   : > { %v3259_v47 = vpop.f32.mrf.mxu1 }
 0xd9f   : > { %v3320_v55 = vadd.f32 %v13746_v11, %v3259_v47  ;;  %3355 = vadd.xlane.f32.xlu0 %v15490_v60  ;;  %v15504_v57 = vadd.f32 %v15485_v51, %v3322_v2 }
 0xda0   : > { %v11826_v32 = vpop.f32.mrf.mxu1 }
 0xda1   : > { %v15499_v48 = vadd.f32 %v15485_v51, %v3320_v55  ;;  %v3325_v50 = vadd.f32 %v13750_v20, %v11826_v32 }
 0xda2   : > { %v3272_v18 = vpop.f32.mrf.mxu1 }
 0xda3   : > { %3359 = vadd.xlane.f32.xlu0 %v15495_v28  ;;  %3357 = vadd.xlane.f32.xlu1 %v15499_v48  ;;  %v3323_v17 = vadd.f32 %v13748_v33, %v3272_v18  ;;  %v15520_v26 = vadd.f32 %v15485_v51, %v3325_v50 }
 0xda4   : > { %v11827_v38 = vpop.f32.mrf.mxu1 }
 0xda5   : > { %v15511_v42 = vadd.f32 %v15485_v51, %v3323_v17  ;;  %v3326_v43 = vadd.f32 %v13751_v4, %v11827_v38 }
 0xda6   : > { %v3275_v5 = vpop.f32.mrf.mxu1 }
 0xda7   : > { %v3324_v24 = vadd.f32 %v13749_v40, %v3275_v5  ;;  %3361 = vadd.xlane.f32.xlu0 %v15504_v57  ;;  %v15523_v27 = vadd.f32 %v15485_v51, %v3326_v43 }
 0xda8   : > { %v11830_v29 = vpop.f32.mrf.mxu1 }
 0xda9   : > { %v15515_v3 = vadd.f32 %v15485_v51, %v3324_v24  ;;  %v3329_v44 = vadd.f32 %v13754_v12, %v11830_v29  ;;  %v12888_v12 = vld [vmem:[%s18717_s4 + $0x78] sm:$0xff]  }
 0xdaa   : > { %v3288_v16 = vpop.f32.mrf.mxu1  ;;  %11868 = vmatprep.subr.bf16.mxu1 %v12888_v12 }
 0xdab   : > { %3363 = vadd.xlane.f32.xlu0 %v15511_v42  ;;  %3365 = vadd.xlane.f32.xlu1 %v15515_v3  ;;  %v3327_v0 = vadd.f32 %v13752_v39, %v3288_v16  ;;  %v15540_v34 = vadd.f32 %v15485_v51, %v3329_v44 }
 0xdac   : > { %v11831_v6 = vpop.f32.mrf.mxu1  ;;  %11869 = vmatpush3.bf16.msra.mxu1 %v12888_v12 }
 0xdad   : > { %v15531_v9 = vadd.f32 %v15485_v51, %v3327_v0  ;;  %v3330_v35 = vadd.f32 %v13755_v22, %v11831_v6 }
 0xdae   : > { %v3291_v25 = vpop.f32.mrf.mxu1 }
 0xdaf   : > { %v3328_v52 = vadd.f32 %v13753_v21, %v3291_v25  ;;  %3367 = vadd.xlane.f32.xlu0 %v15520_v26  ;;  %3369 = vadd.xlane.f32.xlu1 %v15523_v27  ;;  %v15543_v15 = vadd.f32 %v15485_v51, %v3330_v35 }
 0xdb1   : > { %v15535_v30 = vadd.f32 %v15485_v51, %v3328_v52  ;;  %v12887_v52 = vld [vmem:[%s18717_s4 + $0x38] sm:$0xff]  }
 0xdb2   : > { %11836 = vmatprep.subr.bf16.mxu0 %v12887_v52 }
 0xdb3   : > { %3371 = vadd.xlane.f32.xlu0 %v15531_v9  ;;  %3373 = vadd.xlane.f32.xlu1 %v15535_v30 }
 0xdb4   : > { %11837 = vmatpush3.bf16.msra.mxu0 %v12887_v52 }
 0xdb7   : > { %3375 = vadd.xlane.f32.xlu0 %v15540_v34  ;;  %3377 = vadd.xlane.f32.xlu1 %v15543_v15 }
 0xdd7   : > { %v11834_v7 = vpop.f32.mrf.mxu1 }
 0xdd8   : > { %v3333_v8 = vadd.f32 %v13757_v36, %v11834_v7  ;;  %v12889_v36 = vld [vmem:[%s18717_s4 + $0x30] sm:$0xff]  }
 0xdd9   : > { %v3304_v58 = vpop.f32.mrf.mxu1  ;;  %11838 = vmatprep.subr.bf16.mxu0 %v12889_v36 }
 0xdda   : > { %v3331_v1 = vadd.f32 %v13756_v14, %v3304_v58  ;;  %v15555_v54 = vadd.f32 %v15485_v51, %v3333_v8  ;;  %v12890_v8 = vld [vmem:[%s18717_s4 + $0x70] sm:$0xff]   ;;  %11839 = vmatpush3.bf16.msra.mxu0 %v12889_v36 }
 0xddb   : > { %v11835_v61 = vpop.f32.mrf.mxu1  ;;  %11870 = vmatprep.subr.bf16.mxu1 %v12890_v8 }
 0xddc   : > { %v15550_v53 = vadd.f32 %v15485_v51, %v3331_v1  ;;  %18934 = vst [vmem:[#allocation13_spill] sm:$0xff] %v15555_v54  ;;  %v3334_v46 = vadd.f32 %v13759_v13, %v11835_v61  ;;  %11871 = vmatpush3.bf16.msra.mxu1 %v12890_v8 }
 0xddd   : > { %v3307_v41 = vpop.f32.mrf.mxu1 }
 0xdde   : > { %18933 = vst [vmem:[#allocation10_spill] sm:$0xff] %v15550_v53  ;;  %v3332_v49 = vadd.f32 %v13758_v37, %v3307_v41  ;;  %3379 = vadd.xlane.f32.xlu0 %v15550_v53  ;;  %v15564_v31 = vadd.f32 %v15485_v51, %v3334_v46 }
 0xde0   : > { %v15559_v45 = vadd.f32 %v15485_v51, %v3332_v49  ;;  %18936 = vst [vmem:[#allocation9_spill] sm:$0xff] %v15564_v31 }
 0xde2   : > { %18935 = vst [vmem:[#allocation11_spill] sm:$0xff] %v15559_v45  ;;  %3383 = vadd.xlane.f32.xlu0 %v15555_v54  ;;  %3381 = vadd.xlane.f32.xlu1 %v15559_v45 }
 0xde6   : > { %3385 = vadd.xlane.f32.xlu1 %v15564_v31 }
 0xe28   : > { %v3356_v23 = vpop.xlane.xlu0 %3355 }
 0xe29   : > { %v3387_v63 = vmul.f32 0.0078125, %v3356_v23 }
 0xe2b   : > { %v15568_v19 = vsub.f32 %v15490_v60, %v3387_v63 }
 0xe2c   : > { %v3358_v47 = vpop.xlane.xlu1 %3357  ;;  %v3360_v11 = vpop.xlane.xlu0 %3359 }
 0xe2d   : > { %v3388_v55 = vmul.f32 0.0078125, %v3358_v47  ;;  %v3389_v32 = vmul.f32 0.0078125, %v3360_v11  ;;  %v3419_v10 = vmul.f32 %v15568_v19, %v15568_v19  ;;  %v12891_v11 = vld [vmem:[%s18717_s4 + $0x28] sm:$0xff]  }
 0xe2e   : > { %11840 = vmatprep.subr.bf16.mxu0 %v12891_v11 }
 0xe2f   : > { %v15573_v2 = vsub.f32 %v15499_v48, %v3388_v55  ;;  %v15576_v51 = vsub.f32 %v15495_v28, %v3389_v32  ;;  %3435 = vadd.xlane.f32.xlu0 %v3419_v10  ;;  %v12892_v55 = vld [vmem:[%s18717_s4 + $0x68] sm:$0xff]   ;;  %11841 = vmatpush3.bf16.msra.mxu0 %v12891_v11 }
 0xe30   : > { %v3362_v18 = vpop.xlane.xlu0 %3361  ;;  %11872 = vmatprep.subr.bf16.mxu1 %v12892_v55 }
 0xe31   : > { %v3390_v38 = vmul.f32 0.0078125, %v3362_v18  ;;  %v3420_v33 = vmul.f32 %v15573_v2, %v15573_v2  ;;  %v3421_v17 = vmul.f32 %v15576_v51, %v15576_v51  ;;  %11873 = vmatpush3.bf16.msra.mxu1 %v12892_v55 }
 0xe33   : > { %v15583_v5 = vsub.f32 %v15504_v57, %v3390_v38  ;;  %3437 = vadd.xlane.f32.xlu1 %v3420_v33  ;;  %3439 = vadd.xlane.f32.xlu0 %v3421_v17  ;;  %v12893_v33 = vld [vmem:[%s18717_s4 + $0x20] sm:$0xff]  }
 0xe34   : > { %v3366_v40 = vpop.xlane.xlu1 %3365  ;;  %v3364_v24 = vpop.xlane.xlu0 %3363  ;;  %v12894_v17 = vld [vmem:[%s18717_s4 + $0x60] sm:$0xff]   ;;  %11842 = vmatprep.subr.bf16.mxu0 %v12893_v33 }
 0xe35   : > { %v3392_v29 = vmul.f32 0.0078125, %v3366_v40  ;;  %v3391_v20 = vmul.f32 0.0078125, %v3364_v24  ;;  %v3422_v50 = vmul.f32 %v15583_v5, %v15583_v5  ;;  %11874 = vmatprep.subr.bf16.mxu1 %v12894_v17  ;;  %11843 = vmatpush3.bf16.msra.mxu0 %v12893_v33  ;;  %v12895_v40 = vld [vmem:[%s18717_s4 + $0x18] sm:$0xff]  }
 0xe36   : > { %11875 = vmatpush3.bf16.msra.mxu1 %v12894_v17  ;;  %v12896_v24 = vld [vmem:[%s18717_s4 + $0x58] sm:$0xff]   ;;  %11844 = vmatprep.subr.bf16.mxu0 %v12895_v40 }
 0xe37   : > { %v15588_v4 = vsub.f32 %v15515_v3, %v3392_v29  ;;  %v15591_v43 = vsub.f32 %v15511_v42, %v3391_v20  ;;  %3441 = vadd.xlane.f32.xlu1 %v3422_v50  ;;  %11876 = vmatprep.subr.bf16.mxu1 %v12896_v24  ;;  %v12897_v29 = vld [vmem:[%s18717_s4 + $0x10] sm:$0xff]   ;;  %v12899_v50 = vld [vmem:[%s18717_s4 + $0x8] sm:$0xff]  }
 0xe38   : > { %v3370_v16 = vpop.xlane.xlu1 %3369  ;;  %v3368_v6 = vpop.xlane.xlu0 %3367  ;;  %v12898_v20 = vld [vmem:[%s18717_s4 + $0x50] sm:$0xff]  }
 0xe39   : > { %v3394_v39 = vmul.f32 0.0078125, %v3370_v16  ;;  %v3393_v0 = vmul.f32 0.0078125, %v3368_v6  ;;  %v3424_v25 = vmul.f32 %v15588_v4, %v15588_v4  ;;  %v3423_v21 = vmul.f32 %v15591_v43, %v15591_v43  ;;  %11845 = vmatpush3.bf16.msra.mxu0 %v12895_v40  ;;  %v12900_v16 = vld [vmem:[%s18717_s4 + $0x48] sm:$0xff]   ;;  %v12901_v6 = vld [vmem:[%s18717_s4] sm:$0xff]  }
 0xe3a   : > { %11877 = vmatpush3.bf16.msra.mxu1 %v12896_v24  ;;  %11846 = vmatprep.subr.bf16.mxu0 %v12897_v29 }
 0xe3b   : > { %v15604_v44 = vsub.f32 %v15523_v27, %v3394_v39  ;;  %v15607_v22 = vsub.f32 %v15520_v26, %v3393_v0  ;;  %3445 = vadd.xlane.f32.xlu1 %v3424_v25  ;;  %3443 = vadd.xlane.f32.xlu0 %v3423_v21  ;;  %v12902_v39 = vld [vmem:[%s18717_s4 + $0x40] sm:$0xff]  }
 0xe3c   : > { %v3374_v35 = vpop.xlane.xlu1 %3373  ;;  %v3372_v7 = vpop.xlane.xlu0 %3371  ;;  %11878 = vmatprep.subr.bf16.mxu1 %v12898_v20 }
 0xe3d   : > { %v3396_v58 = vmul.f32 0.0078125, %v3374_v35  ;;  %v3395_v14 = vmul.f32 0.0078125, %v3372_v7  ;;  %v3426_v1 = vmul.f32 %v15604_v44, %v15604_v44  ;;  %v3425_v61 = vmul.f32 %v15607_v22, %v15607_v22  ;;  %11847 = vmatpush3.bf16.msra.mxu0 %v12897_v29 }
 0xe3e   : > { %11879 = vmatpush3.bf16.msra.mxu1 %v12898_v20  ;;  %11848 = vmatprep.subr.bf16.mxu0 %v12899_v50 }
 0xe3f   : > { %v15620_v41 = vsub.f32 %v15535_v30, %v3396_v58  ;;  %v15623_v37 = vsub.f32 %v15531_v9, %v3395_v14  ;;  %3449 = vadd.xlane.f32.xlu1 %v3426_v1  ;;  %3447 = vadd.xlane.f32.xlu0 %v3425_v61 }
 0xe40   : > { %v3378_v49 = vpop.xlane.xlu1 %3377  ;;  %v3376_v13 = vpop.xlane.xlu0 %3375  ;;  %11880 = vmatprep.subr.bf16.mxu1 %v12900_v16 }
 0xe41   : > { %v3398_v46 = vmul.f32 0.0078125, %v3378_v49  ;;  %v3397_v23 = vmul.f32 0.0078125, %v3376_v13  ;;  %v3428_v63 = vmul.f32 %v15620_v41, %v15620_v41  ;;  %v3427_v47 = vmul.f32 %v15623_v37, %v15623_v37  ;;  %11849 = vmatpush3.bf16.msra.mxu0 %v12899_v50 }
 0xe42   : > { %11881 = vmatpush3.bf16.msra.mxu1 %v12900_v16  ;;  %11850 = vmatprep.subr.bf16.mxu0 %v12901_v6 }
 0xe43   : > { %v15636_v32 = vsub.f32 %v15543_v15, %v3398_v46  ;;  %v15639_v10 = vsub.f32 %v15540_v34, %v3397_v23  ;;  %3453 = vadd.xlane.f32.xlu1 %v3428_v63  ;;  %3451 = vadd.xlane.f32.xlu0 %v3427_v47  ;;  %v15698_v23 = vld [vmem:[%s18718_s5 + $0x78] sm:$0xff]  }
 0xe44   : > { %11882 = vmatprep.subr.bf16.mxu1 %v12902_v39  ;;  %v15703_v63 = vld [vmem:[%s18718_s5 + $0x38] sm:$0xff]  }
 0xe45   : > { %v3430_v18 = vmul.f32 %v15636_v32, %v15636_v32  ;;  %v3429_v38 = vmul.f32 %v15639_v10, %v15639_v10  ;;  %11851 = vmatpush3.bf16.msra.mxu0 %v12901_v6 }
 0xe46   : > { %11883 = vmatpush3.bf16.msra.mxu1 %v12902_v39  ;;  %11900 = vmatprep.subr.bf16.mxu0 %v15698_v23 }
 0xe47   : > { %3457 = vadd.xlane.f32.xlu1 %v3430_v18  ;;  %3455 = vadd.xlane.f32.xlu0 %v3429_v38 }
 0xe48   : > { %11932 = vmatprep.subr.bf16.mxu1 %v15703_v63 }
 0xe67   : > { %v3380_v0 = vpop.xlane.xlu0 %3379 }
 0xe68   : > { %v3399_v25 = vmul.f32 0.0078125, %v3380_v0 }
 0xe6a   : > { %v15676_v21 = vsub.f32 %v15550_v53, %v3399_v25  ;;  %v18766_v25 = vsub.s32 3, %v18932_v62 }
 0xe6b   : > { %v3382_v52 = vpop.xlane.xlu1 %3381  ;;  %v3384_v12 = vpop.xlane.xlu0 %3383 }
 0xe6c   : > { %v3400_v35 = vmul.f32 0.0078125, %v3382_v52  ;;  %v3401_v7 = vmul.f32 0.0078125, %v3384_v12  ;;  %v3431_v58 = vmul.f32 %v15676_v21, %v15676_v21 }
 0xe6e   : > { %v15681_v14 = vsub.f32 %v15559_v45, %v3400_v35  ;;  %v15684_v1 = vsub.f32 %v15555_v54, %v3401_v7  ;;  %3459 = vadd.xlane.f32.xlu0 %v3431_v58 }
 0xe6f   : > { %v3386_v61 = vpop.xlane.xlu1 %3385 }
 0xe70   : > { %v3402_v36 = vmul.f32 0.0078125, %v3386_v61  ;;  %v3432_v8 = vmul.f32 %v15681_v14, %v15681_v14  ;;  %v3433_v49 = vmul.f32 %v15684_v1, %v15684_v1 }
 0xe72   : > { %v15691_v13 = vsub.f32 %v15564_v31, %v3402_v36  ;;  %3461 = vadd.xlane.f32.xlu1 %v3432_v8  ;;  %3463 = vadd.xlane.f32.xlu0 %v3433_v49  ;;  %v15711_v8 = vrot.slane %v15480_v56, %v18766_v25  ;;  %v18765_v49 = vsub.s32 4, %v18932_v62 }
 0xe74   : > { %v3434_v46 = vmul.f32 %v15691_v13, %v15691_v13 }
 0xe76   : > { %3465 = vadd.xlane.f32.xlu1 %v3434_v46 }
 0xeb8   : > { %v3436_v47 = vpop.xlane.xlu0 %3435 }
 0xeb9   : > { %v3467_v11 = vmul.f32 0.0078125, %v3436_v47 }
 0xebb   : > { %v3483_v55 = vadd.f32 1e-05, %v3467_v11 }
 0xebc   : > { %v3438_v18 = vpop.xlane.xlu1 %3437  ;;  %v3440_v38 = vpop.xlane.xlu0 %3439 }
 0xebd   : > { %13343 = vrsqrt.f32 %v3483_v55  ;;  %v3468_v33 = vmul.f32 0.0078125, %v3438_v18  ;;  %v3469_v17 = vmul.f32 0.0078125, %v3440_v38 }
 0xebf   : > { %v3484_v40 = vadd.f32 1e-05, %v3468_v33  ;;  %v3485_v24 = vadd.f32 1e-05, %v3469_v17 }
 0xec0   : > { %v3442_v29 = vpop.xlane.xlu1 %3441 }
 0xec1   : > { %13345 = vrsqrt.f32 %v3484_v40  ;;  %v3470_v20 = vmul.f32 0.0078125, %v3442_v29 }
 0xec2   : > { %13347 = vrsqrt.f32 %v3485_v24  ;;  %v15719_v24 = vrot.slane %v15480_v56, %v18765_v49 }
 0xec3   : > { %v3486_v50 = vadd.f32 1e-05, %v3470_v20 }
 0xec4   : > { %v3446_v16 = vpop.xlane.xlu1 %3445  ;;  %v3444_v6 = vpop.xlane.xlu0 %3443 }
 0xec5   : > { %13349 = vrsqrt.f32 %v3486_v50  ;;  %v3472_v39 = vmul.f32 0.0078125, %v3446_v16  ;;  %v3471_v0 = vmul.f32 0.0078125, %v3444_v6 }
 0xec7   : > { %v3488_v52 = vadd.f32 1e-05, %v3472_v39  ;;  %v3487_v12 = vadd.f32 1e-05, %v3471_v0 }
 0xec8   : > { %v3450_v35 = vpop.xlane.xlu1 %3449  ;;  %v3448_v7 = vpop.xlane.xlu0 %3447 }
 0xec9   : > { %13351 = vrsqrt.f32 %v3488_v52  ;;  %v3474_v58 = vmul.f32 0.0078125, %v3450_v35  ;;  %v3473_v61 = vmul.f32 0.0078125, %v3448_v7 }
 0xeca   : > { %v13344_v36 = vpop.eup %13343  ;;  %13353 = vrsqrt.f32 %v3487_v12 }
 0xecb   : > { %v3490_v46 = vadd.f32 1e-05, %v3474_v58  ;;  %v3489_v47 = vadd.f32 1e-05, %v3473_v61  ;;  %v3515_v11 = vmul.f32 %v13344_v36, %v15568_v19 }
 0xecc   : > { %v3454_v55 = vpop.xlane.xlu1 %3453  ;;  %v3452_v18 = vpop.xlane.xlu0 %3451 }
 0xecd   : > { %13355 = vrsqrt.f32 %v3490_v46  ;;  %v3476_v38 = vmul.f32 0.0078125, %v3454_v55  ;;  %v3475_v33 = vmul.f32 0.0078125, %v3452_v18  ;;  %v3535_v40 = vmul.f32 %v15711_v8, %v3515_v11 }
 0xece   : > { %v13346_v17 = vpop.eup %13345  ;;  %13357 = vrsqrt.f32 %v3489_v47 }
 0xecf   : > { %v13348_v29 = vpop.eup %13347  ;;  %v3492_v20 = vadd.f32 1e-05, %v3476_v38  ;;  %v3491_v50 = vadd.f32 1e-05, %v3475_v33  ;;  %v3516_v16 = vmul.f32 %v13346_v17, %v15573_v2  ;;  %v3555_v7 = vadd.f32 %v15719_v24, %v3535_v40  ;;  %v12905_v40 = vld [vmem:[%s18718_s5 + $0x70] sm:$0xff]  }
 0xed0   : > { %v3517_v19 = vmul.f32 %v13348_v29, %v15576_v51  ;;  %v3458_v6 = vpop.xlane.xlu1 %3457  ;;  %v3456_v39 = vpop.xlane.xlu0 %3455  ;;  %v12906_v29 = vld [vmem:[%s18718_s5 + $0x30] sm:$0xff]  }
 0xed1   : > { %13359 = vrsqrt.f32 %v3492_v20  ;;  %v3478_v0 = vmul.f32 0.0078125, %v3458_v6  ;;  %v3477_v52 = vmul.f32 0.0078125, %v3456_v39  ;;  %v3536_v12 = vmul.f32 %v15711_v8, %v3516_v16 }
 0xed2   : > { %v13350_v35 = vpop.eup %13349  ;;  %13361 = vrsqrt.f32 %v3491_v50  ;;  %v3537_v56 = vmul.f32 %v15711_v8, %v3517_v19 }
 0xed3   : > { %v3518_v58 = vmul.f32 %v13350_v35, %v15583_v5  ;;  %v3494_v61 = vadd.f32 1e-05, %v3478_v0  ;;  %v3493_v36 = vadd.f32 1e-05, %v3477_v52  ;;  %v3556_v2 = vadd.f32 %v15719_v24, %v3536_v12 }
 0xed4   : > { %v3557_v55 = vadd.f32 %v15719_v24, %v3537_v56 }
 0xed5   : > { %13363 = vrsqrt.f32 %v3494_v61  ;;  %v15728_v51 = vpack.c.bf16 %v3556_v2, %v3555_v7  ;;  %v3538_v46 = vmul.f32 %v15711_v8, %v3518_v58 }
 0xed6   : > { %v13352_v47 = vpop.eup %13351  ;;  %13365 = vrsqrt.f32 %v3493_v36 }
 0xed7   : > { %v13354_v11 = vpop.eup %13353  ;;  %11852 = vmatprep.mubr.bf16.mxu0 %v15728_v51  ;;  %11884 = vmatprep.mubr.bf16.mxu1 %v15728_v51  ;;  %v3558_v5 = vadd.f32 %v15719_v24, %v3538_v46  ;;  %v3520_v18 = vmul.f32 %v13352_v47, %v15588_v4  ;;  %v12910_v46 = vld [vmem:[%s18718_s5 + $0x20] sm:$0xff]  }
 0xed8   : > { %v3519_v38 = vmul.f32 %v13354_v11, %v15591_v43 }
 0xed9   : > { %v15737_v33 = vpack.c.bf16 %v3558_v5, %v3557_v55  ;;  %v3540_v17 = vmul.f32 %v15711_v8, %v3520_v18 }
 0xeda   : > { %v13356_v20 = vpop.eup %13355  ;;  %v3539_v50 = vmul.f32 %v15711_v8, %v3519_v38 }
 0xedb   : > { %v13358_v16 = vpop.eup %13357  ;;  %11853 = vmatmul.mubr.bf16.vlgmr.msra.gmra.mxu0 %v15737_v33  ;;  %11885 = vmatmul.mubr.bf16.vlgmr.msra.gmra.mxu1 %v15737_v33  ;;  %v3560_v4 = vadd.f32 %v15719_v24, %v3540_v17  ;;  %v3522_v43 = vmul.f32 %v13356_v20, %v15604_v44  ;;  %v12907_v44 = vld [vmem:[%s18718_s5 + $0x68] sm:$0xff]  }
 0xedc   : > { %v3559_v19 = vadd.f32 %v15719_v24, %v3539_v50  ;;  %v3521_v6 = vmul.f32 %v13358_v16, %v15607_v22  ;;  %11901 = vmatpush3.bf16.msra.mxu0 %v15698_v23  ;;  %11933 = vmatpush3.bf16.msra.mxu1 %v15703_v63  ;;  %v12908_v22 = vld [vmem:[%s18718_s5 + $0x28] sm:$0xff]  }
 0xedd   : > { %v3542_v39 = vmul.f32 %v15711_v8, %v3522_v43  ;;  %11902 = vmatprep.subr.bf16.mxu0 %v12905_v40  ;;  %11934 = vmatprep.subr.bf16.mxu1 %v12906_v29 }
 0xede   : > { %v13360_v0 = vpop.eup %13359  ;;  %v15756_v52 = vpack.c.bf16 %v3560_v4, %v3559_v19  ;;  %v3541_v12 = vmul.f32 %v15711_v8, %v3521_v6 }
 0xedf   : > { %v13362_v23 = vpop.eup %13361  ;;  %v3562_v63 = vadd.f32 %v15719_v24, %v3542_v39  ;;  %v3524_v35 = vmul.f32 %v13360_v0, %v15620_v41  ;;  %v12909_v41 = vld [vmem:[%s18718_s5 + $0x60] sm:$0xff]  }
 0xee0   : > { %11856 = vmatprep.mubr.bf16.mxu0 %v15756_v52  ;;  %11888 = vmatprep.mubr.bf16.mxu1 %v15756_v52  ;;  %v3561_v7 = vadd.f32 %v15719_v24, %v3541_v12  ;;  %v3523_v56 = vmul.f32 %v13362_v23, %v15623_v37 }
 0xee1   : > { %v3544_v58 = vmul.f32 %v15711_v8, %v3524_v35  ;;  %11903 = vmatpush3.bf16.msra.mxu0 %v12905_v40  ;;  %11935 = vmatpush3.bf16.msra.mxu1 %v12906_v29  ;;  %v12912_v40 = vld [vmem:[%s18718_s5 + $0x18] sm:$0xff]  }
 0xee2   : > { %v13364_v61 = vpop.eup %13363  ;;  %v15772_v36 = vpack.c.bf16 %v3562_v63, %v3561_v7  ;;  %v3543_v2 = vmul.f32 %v15711_v8, %v3523_v56  ;;  %11904 = vmatprep.subr.bf16.mxu0 %v12907_v44  ;;  %11936 = vmatprep.subr.bf16.mxu1 %v12908_v22 }
 0xee3   : > { %v13366_v37 = vpop.eup %13365  ;;  %v3564_v47 = vadd.f32 %v15719_v24, %v3544_v58  ;;  %v3526_v11 = vmul.f32 %v13364_v61, %v15636_v32  ;;  %v12911_v32 = vld [vmem:[%s18718_s5 + $0x58] sm:$0xff]  }
 0xee4   : > { %11857 = vmatmul.mubr.bf16.gmra.mxu0 %v15772_v36  ;;  %11889 = vmatmul.mubr.bf16.gmra.mxu1 %v15772_v36  ;;  %v3563_v55 = vadd.f32 %v15719_v24, %v3543_v2  ;;  %v3525_v5 = vmul.f32 %v13366_v37, %v15639_v10 }
 0xee5   : > { %v3546_v18 = vmul.f32 %v15711_v8, %v3526_v11  ;;  %11905 = vmatpush3.bf16.msra.mxu0 %v12907_v44  ;;  %11937 = vmatpush3.bf16.msra.mxu1 %v12908_v22 }
 0xee6   : > { %v15788_v38 = vpack.c.bf16 %v3564_v47, %v3563_v55  ;;  %v3545_v17 = vmul.f32 %v15711_v8, %v3525_v5  ;;  %11906 = vmatprep.subr.bf16.mxu0 %v12909_v41  ;;  %11938 = vmatprep.subr.bf16.mxu1 %v12910_v46 }
 0xee7   : > { %v3566_v10 = vadd.f32 %v15719_v24, %v3546_v18 }
 0xee8   : > { %11860 = vmatprep.mubr.bf16.mxu0 %v15788_v38  ;;  %11892 = vmatprep.mubr.bf16.mxu1 %v15788_v38  ;;  %v3565_v29 = vadd.f32 %v15719_v24, %v3545_v17  ;;  %v12916_v17 = vld [vmem:[%s18718_s5 + $0x8] sm:$0xff]  }
 0xee9   : > { %11907 = vmatpush3.bf16.msra.mxu0 %v12909_v41  ;;  %11939 = vmatpush3.bf16.msra.mxu1 %v12910_v46 }
 0xeea   : > { %v15801_v20 = vpack.c.bf16 %v3566_v10, %v3565_v29  ;;  %11908 = vmatprep.subr.bf16.mxu0 %v12911_v32  ;;  %11940 = vmatprep.subr.bf16.mxu1 %v12912_v40  ;;  %v12919_v10 = vld [vmem:[%s18717_s4 + $0xb8] sm:$0xff]  }
 0xeec   : > { %11861 = vmatmul.mubr.bf16.gmra.mxu0 %v15801_v20  ;;  %11893 = vmatmul.mubr.bf16.gmra.mxu1 %v15801_v20 }
 0xeed   : > { %11909 = vmatpush3.bf16.msra.mxu0 %v12911_v32  ;;  %11941 = vmatpush3.bf16.msra.mxu1 %v12912_v40  ;;  %v12917_v32 = vld [vmem:[%s18718_s5 + $0x40] sm:$0xff]  }
 0xeee   : > { %v12918_v40 = vld [vmem:[%s18718_s5] sm:$0xff]  }
 0xef7   : > { %v3460_v50 = vpop.xlane.xlu0 %3459 }
 0xef8   : > { %v3479_v16 = vmul.f32 0.0078125, %v3460_v50 }
 0xefa   : > { %v3495_v4 = vadd.f32 1e-05, %v3479_v16 }
 0xefb   : > { %v3462_v43 = vpop.xlane.xlu1 %3461  ;;  %v3464_v19 = vpop.xlane.xlu0 %3463 }
 0xefc   : > { %13367 = vrsqrt.f32 %v3495_v4  ;;  %v3480_v6 = vmul.f32 0.0078125, %v3462_v43  ;;  %v3481_v39 = vmul.f32 0.0078125, %v3464_v19  ;;  %v15849_v43 = vld [vmem:[%s18719_s6] ss:$0 sm:$0xff]  ;;  %v15854_v19 = vld [vmem:[%s18719_s6 + $0x1] ss:$0 sm:$0xff] }
 0xefe   : > { %v3496_v0 = vadd.f32 1e-05, %v3480_v6  ;;  %v3497_v12 = vadd.f32 1e-05, %v3481_v39 }
 0xeff   : > { %v3466_v44 = vpop.xlane.xlu1 %3465 }
 0xf00   : > { %13369 = vrsqrt.f32 %v3496_v0  ;;  %v3482_v22 = vmul.f32 0.0078125, %v3466_v44 }
 0xf01   : > { %13371 = vrsqrt.f32 %v3497_v12 }
 0xf02   : > { %v3498_v23 = vadd.f32 1e-05, %v3482_v22 }
 0xf04   : > { %13373 = vrsqrt.f32 %v3498_v23 }
 0xf09   : > { %v13368_v63 = vpop.eup %13367 }
 0xf0a   : > { %v3527_v35 = vmul.f32 %v13368_v63, %v15676_v21 }
 0xf0c   : > { %v3547_v61 = vmul.f32 %v15711_v8, %v3527_v35 }
 0xf0d   : > { %v13370_v7 = vpop.eup %13369 }
 0xf0e   : > { %v13372_v56 = vpop.eup %13371  ;;  %v3528_v58 = vmul.f32 %v13370_v7, %v15681_v14  ;;  %v3567_v37 = vadd.f32 %v15719_v24, %v3547_v61 }
 0xf0f   : > { %v3529_v2 = vmul.f32 %v13372_v56, %v15684_v1 }
 0xf10   : > { %v3548_v41 = vmul.f32 %v15711_v8, %v3528_v58 }
 0xf11   : > { %v13374_v46 = vpop.eup %13373  ;;  %v3549_v55 = vmul.f32 %v15711_v8, %v3529_v2 }
 0xf12   : > { %v3568_v47 = vadd.f32 %v15719_v24, %v3548_v41  ;;  %v3530_v11 = vmul.f32 %v13374_v46, %v15691_v13  ;;  %v12913_v13 = vld [vmem:[%s18718_s5 + $0x50] sm:$0xff]  }
 0xf13   : > { %v3569_v14 = vadd.f32 %v15719_v24, %v3549_v55  ;;  %11910 = vmatprep.subr.bf16.mxu0 %v12913_v13 }
 0xf14   : > { %v15814_v21 = vpack.c.bf16 %v3568_v47, %v3567_v37  ;;  %v3550_v5 = vmul.f32 %v15711_v8, %v3530_v11  ;;  %v12914_v8 = vld [vmem:[%s18718_s5 + $0x10] sm:$0xff]   ;;  %11911 = vmatpush3.bf16.msra.mxu0 %v12913_v13 }
 0xf15   : > { %11942 = vmatprep.subr.bf16.mxu1 %v12914_v8 }
 0xf16   : > { %11864 = vmatprep.mubr.bf16.mxu0 %v15814_v21  ;;  %11896 = vmatprep.mubr.bf16.mxu1 %v15814_v21  ;;  %v3570_v1 = vadd.f32 %v15719_v24, %v3550_v5  ;;  %v12915_v24 = vld [vmem:[%s18718_s5 + $0x48] sm:$0xff]  }
 0xf17   : > { %11943 = vmatpush3.bf16.msra.mxu1 %v12914_v8  ;;  %11912 = vmatprep.subr.bf16.mxu0 %v12915_v24 }
 0xf18   : > { %v15821_v18 = vpack.c.bf16 %v3570_v1, %v3569_v14  ;;  %11944 = vmatprep.subr.bf16.mxu1 %v12916_v17  ;;  %11913 = vmatpush3.bf16.msra.mxu0 %v12915_v24 }
 0xf19   : > { %11914 = vmatprep.subr.bf16.mxu0 %v12917_v32 }
 0xf1a   : > { %11865 = vmatmul.mubr.bf16.gmra.mxu0 %v15821_v18  ;;  %11897 = vmatmul.mubr.bf16.gmra.mxu1 %v15821_v18 }
 0xf1b   : > { %11945 = vmatpush3.bf16.msra.mxu1 %v12916_v17 }
 0xf1c   : > { %11946 = vmatprep.subr.bf16.mxu1 %v12918_v40  ;;  %11915 = vmatpush3.bf16.msra.mxu0 %v12917_v32 }
 0xf1d   : > { %11964 = vmatprep.subr.bf16.mxu0 %v12919_v10 }
 0xf1f   : > { %11947 = vmatpush3.bf16.msra.mxu1 %v12918_v40  ;;  %v12920_v40 = vld [vmem:[%s18717_s4 + $0xb0] sm:$0xff]  }
 0xf9b   : > { %v11854_v29 = vpop.f32.mrf.mxu0  ;;  %v11886_v50 = vpop.f32.mrf.mxu1 }
 0xf9c   : > { %v3693_v23 = vadd.f32 %v11854_v29, %v15849_v43  ;;  %v3903_v63 = vadd.f32 %v11886_v50, %v15854_v19 }
 0xf9d   : > { %v3684_v16 = vpop.f32.mrf.mxu0  ;;  %v3894_v4 = vpop.f32.mrf.mxu1 }
 0xf9e   : > { %v3685_v0 = vadd.f32 %v15849_v43, %v3684_v16  ;;  %v3895_v12 = vadd.f32 %v15854_v19, %v3894_v4  ;;  %v3749_v5 = vmax.f32 %v3693_v23, 0.0  ;;  %v3959_v14 = vmax.f32 %v3903_v63, 0.0 }
 0xf9f   : > { %v11855_v6 = vpop.f32.mrf.mxu0  ;;  %v11887_v39 = vpop.f32.mrf.mxu1 }
 0xfa0   : > { %v3696_v44 = vadd.f32 %v11855_v6, %v15849_v43  ;;  %v3906_v22 = vadd.f32 %v11887_v39, %v15854_v19  ;;  %v3747_v41 = vmax.f32 %v3685_v0, 0.0  ;;  %v3957_v46 = vmax.f32 %v3895_v12, 0.0 }
 0xfa1   : > { %v3687_v35 = vpop.f32.mrf.mxu0  ;;  %v3897_v7 = vpop.f32.mrf.mxu1 }
 0xfa2   : > { %v3688_v56 = vadd.f32 %v15849_v43, %v3687_v35  ;;  %v3898_v58 = vadd.f32 %v15854_v19, %v3897_v7  ;;  %v3750_v61 = vmax.f32 %v3696_v44, 0.0  ;;  %v3960_v2 = vmax.f32 %v3906_v22, 0.0  ;;  %v12921_v35 = vld [vmem:[%s18717_s4 + $0xa8] sm:$0xff]  }
 0xfa4   : > { %v3748_v37 = vmax.f32 %v3688_v56, 0.0  ;;  %v3958_v47 = vmax.f32 %v3898_v58, 0.0  ;;  %v11858_v11 = vpop.f32.mrf.mxu0  ;;  %v11890_v55 = vpop.f32.mrf.mxu1  ;;  %v3764_v17 = vpack.c.bf16 %v3750_v61, %v3749_v5  ;;  %v3974_v32 = vpack.c.bf16 %v3960_v2, %v3959_v14 }
 0xfa5   : > { %v3709_v0 = vadd.f32 %v11858_v11, %v15849_v43  ;;  %v3919_v12 = vadd.f32 %v11890_v55, %v15854_v19 }
 0xfa6   : > { %v3700_v1 = vpop.f32.mrf.mxu0  ;;  %v3910_v13 = vpop.f32.mrf.mxu1  ;;  %v3973_v8 = vpack.c.bf16 %v3958_v47, %v3957_v46  ;;  %v3763_v24 = vpack.c.bf16 %v3748_v37, %v3747_v41 }
 0xfa7   : > { %v3701_v29 = vadd.f32 %v15849_v43, %v3700_v1  ;;  %v3911_v4 = vadd.f32 %v15854_v19, %v3910_v13  ;;  %v3753_v47 = vmax.f32 %v3709_v0, 0.0  ;;  %v3963_v11 = vmax.f32 %v3919_v12, 0.0 }
 0xfa8   : > { %v11859_v50 = vpop.f32.mrf.mxu0  ;;  %v11891_v16 = vpop.f32.mrf.mxu1  ;;  %11916 = vmatprep.mubr.bf16.mxu0 %v3973_v8  ;;  %11948 = vmatprep.mubr.bf16.mxu1 %v3763_v24 }
 0xfa9   : > { %v3712_v6 = vadd.f32 %v11859_v50, %v15849_v43  ;;  %v3922_v39 = vadd.f32 %v11891_v16, %v15854_v19  ;;  %11917 = vmatmul.mubr.bf16.vlgmr.msra.gmra.mxu0 %v3974_v32  ;;  %11949 = vmatmul.mubr.bf16.vlgmr.msra.gmra.mxu1 %v3764_v17  ;;  %v3751_v2 = vmax.f32 %v3701_v29, 0.0  ;;  %v3961_v41 = vmax.f32 %v3911_v4, 0.0  ;;  %v12922_v32 = vld [vmem:[%s18717_s4 + $0xa0] sm:$0xff]  }
 0xfaa   : > { %v3703_v44 = vpop.f32.mrf.mxu0  ;;  %v3913_v22 = vpop.f32.mrf.mxu1  ;;  %11965 = vmatpush3.bf16.msra.mxu0 %v12919_v10 }
 0xfab   : > { %v3704_v23 = vadd.f32 %v15849_v43, %v3703_v44  ;;  %v3914_v63 = vadd.f32 %v15854_v19, %v3913_v22  ;;  %11966 = vmatprep.subr.bf16.mxu0 %v12920_v40  ;;  %v3754_v7 = vmax.f32 %v3712_v6, 0.0  ;;  %v3964_v56 = vmax.f32 %v3922_v39, 0.0 }
 0xfac   : > { %v11862_v58 = vpop.f32.mrf.mxu0  ;;  %v11894_v61 = vpop.f32.mrf.mxu1 }
 0xfad   : > { %v3752_v46 = vmax.f32 %v3704_v23, 0.0  ;;  %v3962_v37 = vmax.f32 %v3914_v63, 0.0  ;;  %v3766_v1 = vpack.c.bf16 %v3754_v7, %v3753_v47  ;;  %v3976_v13 = vpack.c.bf16 %v3964_v56, %v3963_v11  ;;  %v12923_v23 = vld [vmem:[%s18717_s4 + $0x98] sm:$0xff]   ;;  %v12925_v11 = vld [vmem:[%s18717_s4 + $0x88] sm:$0xff]  }
 0xfae   : > { %v3716_v10 = vpop.f32.mrf.mxu0  ;;  %v3926_v55 = vpop.f32.mrf.mxu1  ;;  %11967 = vmatpush3.bf16.msra.mxu0 %v12920_v40  ;;  %v3725_v40 = vadd.f32 %v11862_v58, %v15849_v43  ;;  %v3935_v4 = vadd.f32 %v11894_v61, %v15854_v19 }
 0xfaf   : > { %v3975_v5 = vpack.c.bf16 %v3962_v37, %v3961_v41  ;;  %v3765_v14 = vpack.c.bf16 %v3752_v46, %v3751_v2  ;;  %11968 = vmatprep.subr.bf16.mxu0 %v12921_v35  ;;  %v3717_v8 = vadd.f32 %v15849_v43, %v3716_v10  ;;  %v3927_v29 = vadd.f32 %v15854_v19, %v3926_v55  ;;  %v12926_v10 = vld [vmem:[%s18717_s4 + $0x80] sm:$0xff]   ;;  %v12927_v55 = vld [vmem:[%s18717_s4 + $0xf8] sm:$0xff]  }
 0xfb0   : > { %v11863_v24 = vpop.f32.mrf.mxu0  ;;  %v11895_v17 = vpop.f32.mrf.mxu1  ;;  %v3757_v61 = vmax.f32 %v3725_v40, 0.0  ;;  %v3967_v2 = vmax.f32 %v3935_v4, 0.0 }
 0xfb1   : > { %v3728_v50 = vadd.f32 %v11863_v24, %v15849_v43  ;;  %v3938_v16 = vadd.f32 %v11895_v17, %v15854_v19  ;;  %11920 = vmatprep.mubr.bf16.mxu0 %v3975_v5  ;;  %11952 = vmatprep.mubr.bf16.mxu1 %v3765_v14  ;;  %v3755_v63 = vmax.f32 %v3717_v8, 0.0  ;;  %v3965_v7 = vmax.f32 %v3927_v29, 0.0 }
 0xfb2   : > { %v3719_v6 = vpop.f32.mrf.mxu0  ;;  %v3929_v39 = vpop.f32.mrf.mxu1  ;;  %11921 = vmatmul.mubr.bf16.gmra.mxu0 %v3976_v13  ;;  %11953 = vmatmul.mubr.bf16.gmra.mxu1 %v3766_v1 }
 0xfb3   : > { %v3720_v0 = vadd.f32 %v15849_v43, %v3719_v6  ;;  %v3930_v12 = vadd.f32 %v15854_v19, %v3929_v39  ;;  %11969 = vmatpush3.bf16.msra.mxu0 %v12921_v35  ;;  %v3758_v44 = vmax.f32 %v3728_v50, 0.0  ;;  %v3968_v22 = vmax.f32 %v3938_v16, 0.0  ;;  %v12924_v35 = vld [vmem:[%s18717_s4 + $0x90] sm:$0xff]  }
 0xfb4   : > { %11970 = vmatprep.subr.bf16.mxu0 %v12922_v32 }
 0xfb5   : > { %v3756_v56 = vmax.f32 %v3720_v0, 0.0  ;;  %v3966_v58 = vmax.f32 %v3930_v12, 0.0  ;;  %v3768_v37 = vpack.c.bf16 %v3758_v44, %v3757_v61  ;;  %v3978_v47 = vpack.c.bf16 %v3968_v22, %v3967_v2 }
 0xfb7   : > { %v3977_v41 = vpack.c.bf16 %v3966_v58, %v3965_v7  ;;  %v3767_v46 = vpack.c.bf16 %v3756_v56, %v3755_v63  ;;  %11971 = vmatpush3.bf16.msra.mxu0 %v12922_v32 }
 0xfb8   : > { %11972 = vmatprep.subr.bf16.mxu0 %v12923_v23 }
 0xfb9   : > { %11924 = vmatprep.mubr.bf16.mxu0 %v3977_v41  ;;  %11956 = vmatprep.mubr.bf16.mxu1 %v3767_v46 }
 0xfba   : > { %11925 = vmatmul.mubr.bf16.gmra.mxu0 %v3978_v47  ;;  %11957 = vmatmul.mubr.bf16.gmra.mxu1 %v3768_v37  ;;  %v12930_v37 = vld [vmem:[%s18717_s4 + $0xe0] sm:$0xff]   ;;  %v12931_v47 = vld [vmem:[%s18717_s4 + $0xd8] sm:$0xff]  }
 0xfbb   : > { %11973 = vmatpush3.bf16.msra.mxu0 %v12923_v23 }
 0xfbc   : > { %11974 = vmatprep.subr.bf16.mxu0 %v12924_v35 }
 0xfbf   : > { %11975 = vmatpush3.bf16.msra.mxu0 %v12924_v35  ;;  %v12932_v35 = vld [vmem:[%s18717_s4 + $0xd0] sm:$0xff]  }
 0xfc0   : > { %11976 = vmatprep.subr.bf16.mxu0 %v12925_v11 }
 0xfc3   : > { %11977 = vmatpush3.bf16.msra.mxu0 %v12925_v11  ;;  %v12935_v11 = vld [vmem:[%s18718_s5 + $0xb8] sm:$0xff]  }
 0xfc4   : > { %11978 = vmatprep.subr.bf16.mxu0 %v12926_v10  ;;  %11996 = vmatprep.subr.bf16.mxu1 %v12935_v11 }
 0xfc5   : > { %11997 = vmatpush3.bf16.msra.mxu1 %v12935_v11 }
 0xfc7   : > { %11979 = vmatpush3.bf16.msra.mxu0 %v12926_v10  ;;  %v12936_v10 = vld [vmem:[%s18718_s5 + $0xb0] sm:$0xff]  }
 0xfc8   : > { %12028 = vmatprep.subr.bf16.mxu0 %v12927_v55  ;;  %11998 = vmatprep.subr.bf16.mxu1 %v12936_v10 }
 0xfc9   : > { %11999 = vmatpush3.bf16.msra.mxu1 %v12936_v10 }
 0xfda   : > { %v11866_v5 = vpop.f32.mrf.mxu0  ;;  %v11898_v14 = vpop.f32.mrf.mxu1 }
 0xfdb   : > { %v3741_v16 = vadd.f32 %v11866_v5, %v15849_v43  ;;  %v3951_v40 = vadd.f32 %v11898_v14, %v15854_v19  ;;  %v12934_v5 = vld [vmem:[%s18717_s4 + $0xc0] sm:$0xff]   ;;  %v12937_v14 = vld [vmem:[%s18718_s5 + $0xa8] sm:$0xff]  }
 0xfdc   : > { %v3732_v1 = vpop.f32.mrf.mxu0  ;;  %v3942_v13 = vpop.f32.mrf.mxu1  ;;  %12000 = vmatprep.subr.bf16.mxu1 %v12937_v14 }
 0xfdd   : > { %v3733_v17 = vadd.f32 %v15849_v43, %v3732_v1  ;;  %v3943_v32 = vadd.f32 %v15854_v19, %v3942_v13  ;;  %v3761_v56 = vmax.f32 %v3741_v16, 0.0  ;;  %v3971_v58 = vmax.f32 %v3951_v40, 0.0  ;;  %12001 = vmatpush3.bf16.msra.mxu1 %v12937_v14 }
 0xfde   : > { %v11867_v8 = vpop.f32.mrf.mxu0  ;;  %v11899_v24 = vpop.f32.mrf.mxu1 }
 0xfdf   : > { %v3744_v29 = vadd.f32 %v11867_v8, %v15849_v43  ;;  %v3954_v50 = vadd.f32 %v11899_v24, %v15854_v19  ;;  %v3759_v22 = vmax.f32 %v3733_v17, 0.0  ;;  %v3969_v23 = vmax.f32 %v3943_v32, 0.0 }
 0xfe0   : > { %v3735_v4 = vpop.f32.mrf.mxu0  ;;  %v3945_v6 = vpop.f32.mrf.mxu1 }
 0xfe1   : > { %v3736_v39 = vadd.f32 %v15849_v43, %v3735_v4  ;;  %v3946_v0 = vadd.f32 %v15854_v19, %v3945_v6  ;;  %v3762_v12 = vmax.f32 %v3744_v29, 0.0  ;;  %v3972_v44 = vmax.f32 %v3954_v50, 0.0  ;;  %v12928_v43 = vld [vmem:[%s18717_s4 + $0xf0] sm:$0xff]   ;;  %v12929_v19 = vld [vmem:[%s18717_s4 + $0xe8] sm:$0xff]  }
 0xfe3   : > { %v3760_v63 = vmax.f32 %v3736_v39, 0.0  ;;  %v3970_v7 = vmax.f32 %v3946_v0, 0.0  ;;  %v3770_v41 = vpack.c.bf16 %v3762_v12, %v3761_v56  ;;  %v3980_v46 = vpack.c.bf16 %v3972_v44, %v3971_v58 }
 0xfe5   : > { %v3979_v61 = vpack.c.bf16 %v3970_v7, %v3969_v23  ;;  %v3769_v2 = vpack.c.bf16 %v3760_v63, %v3759_v22 }
 0xfe7   : > { %11928 = vmatprep.mubr.bf16.mxu0 %v3979_v61  ;;  %11960 = vmatprep.mubr.bf16.mxu1 %v3769_v2 }
 0xfe8   : > { %11929 = vmatmul.mubr.bf16.gmra.mxu0 %v3980_v46  ;;  %11961 = vmatmul.mubr.bf16.gmra.mxu1 %v3770_v41 }
 0xfe9   : > { %11980 = vmatprep.mubr.bf16.mxu0 %v15728_v51 }
 0xff0   : > { %11981 = vmatmul.mubr.bf16.vlgmr.msra.gmra.mxu0 %v15737_v33 }
 0xff1   : > { %12029 = vmatpush3.bf16.msra.mxu0 %v12927_v55  ;;  %11984 = vmatprep.mubr.bf16.mxu0 %v15756_v52  ;;  %v12933_v55 = vld [vmem:[%s18717_s4 + $0xc8] sm:$0xff]  }
 0xff2   : > { %12030 = vmatprep.subr.bf16.mxu0 %v12928_v43 }
 0xff5   : > { %12031 = vmatpush3.bf16.msra.mxu0 %v12928_v43 }
 0xff6   : > { %12032 = vmatprep.subr.bf16.mxu0 %v12929_v19 }
 0xff8   : > { %11985 = vmatmul.mubr.bf16.gmra.mxu0 %v15772_v36 }
 0xff9   : > { %12033 = vmatpush3.bf16.msra.mxu0 %v12929_v19  ;;  %11988 = vmatprep.mubr.bf16.mxu0 %v15788_v38 }
 0xffa   : > { %12034 = vmatprep.subr.bf16.mxu0 %v12930_v37 }
 0xffd   : > { %12035 = vmatpush3.bf16.msra.mxu0 %v12930_v37 }
 0xffe   : > { %12036 = vmatprep.subr.bf16.mxu0 %v12931_v47 }
0x1000   : > { %11989 = vmatmul.mubr.bf16.gmra.mxu0 %v15801_v20 }
0x1001   : > { %12037 = vmatpush3.bf16.msra.mxu0 %v12931_v47  ;;  %11992 = vmatprep.mubr.bf16.mxu0 %v15814_v21 }
0x1002   : > { %12038 = vmatprep.subr.bf16.mxu0 %v12932_v35 }
0x1005   : > { %12039 = vmatpush3.bf16.msra.mxu0 %v12932_v35 }
0x1006   : > { %12040 = vmatprep.subr.bf16.mxu0 %v12933_v55 }
0x1008   : > { %11993 = vmatmul.mubr.bf16.gmra.mxu0 %v15821_v18 }
0x1009   : > { %12041 = vmatpush3.bf16.msra.mxu0 %v12933_v55  ;;  %12044 = vmatprep.mubr.bf16.mxu0 %v15728_v51  ;;  %v12938_v51 = vld [vmem:[%s18718_s5 + $0xa0] sm:$0xff]  }
0x100a   : > { %12042 = vmatprep.subr.bf16.mxu0 %v12934_v5  ;;  %12002 = vmatprep.subr.bf16.mxu1 %v12938_v51 }
0x100b   : > { %12003 = vmatpush3.bf16.msra.mxu1 %v12938_v51 }
0x100d   : > { %12043 = vmatpush3.bf16.msra.mxu0 %v12934_v5 }
0x1010   : > { %12045 = vmatmul.mubr.bf16.vlgmr.msra.gmra.mxu0 %v15737_v33  ;;  %v12939_v33 = vld [vmem:[%s18718_s5 + $0x98] sm:$0xff]  }
0x1011   : > { %12048 = vmatprep.mubr.bf16.mxu0 %v15756_v52  ;;  %12004 = vmatprep.subr.bf16.mxu1 %v12939_v33  ;;  %v12940_v52 = vld [vmem:[%s18718_s5 + $0x90] sm:$0xff]  }
0x1012   : > { %12005 = vmatpush3.bf16.msra.mxu1 %v12939_v33 }
0x1013   : > { %12006 = vmatprep.subr.bf16.mxu1 %v12940_v52 }
0x1016   : > { %12007 = vmatpush3.bf16.msra.mxu1 %v12940_v52 }
0x1018   : > { %12049 = vmatmul.mubr.bf16.gmra.mxu0 %v15772_v36  ;;  %v12941_v36 = vld [vmem:[%s18718_s5 + $0x88] sm:$0xff]  }
0x1019   : > { %12052 = vmatprep.mubr.bf16.mxu0 %v15788_v38  ;;  %12008 = vmatprep.subr.bf16.mxu1 %v12941_v36  ;;  %v12942_v38 = vld [vmem:[%s18718_s5 + $0x80] sm:$0xff]  }
0x101a   : > { %12009 = vmatpush3.bf16.msra.mxu1 %v12941_v36  ;;  %v16028_v36 = vld [vmem:[%s18719_s6 + $0x2] ss:$0 sm:$0xff] }
0x101b   : > { %12010 = vmatprep.subr.bf16.mxu1 %v12942_v38 }
0x101e   : > { %12011 = vmatpush3.bf16.msra.mxu1 %v12942_v38 }
0x1020   : > { %12053 = vmatmul.mubr.bf16.gmra.mxu0 %v15801_v20  ;;  %v15976_v20 = vld [vmem:[%s18718_s5 + $0xf8] sm:$0xff]  }
0x1021   : > { %12056 = vmatprep.mubr.bf16.mxu0 %v15814_v21  ;;  %12060 = vmatprep.subr.bf16.mxu1 %v15976_v20 }
0x1028   : > { %12057 = vmatmul.mubr.bf16.gmra.mxu0 %v15821_v18 }
0x1069   : > { %v11918_v21 = vpop.f32.mrf.mxu0  ;;  %v11950_v18 = vpop.f32.mrf.mxu1 }
0x106a   : > { %v15979_v1 = vadd.f32 %v11950_v18, %v11918_v21 }
0x106b   : > { %v15981_v13 = vpop.f32.mrf.mxu0  ;;  %v15983_v8 = vpop.f32.mrf.mxu1 }
0x106d   : > { %v11919_v24 = vpop.f32.mrf.mxu0  ;;  %v11951_v17 = vpop.f32.mrf.mxu1 }
0x106e   : > { %v15985_v32 = vadd.f32 %v11951_v17, %v11919_v24 }
0x106f   : > { %v15987_v29 = vpop.f32.mrf.mxu0  ;;  %v15989_v50 = vpop.f32.mrf.mxu1 }
0x1070   : > { %v4229_v59 = vadd.f32 %v15989_v50, %v15987_v29 }
0x1072   : > { %v11922_v16 = vpop.f32.mrf.mxu0  ;;  %v11954_v40 = vpop.f32.mrf.mxu1 }
0x1073   : > { %v15991_v4 = vadd.f32 %v11954_v40, %v11922_v16 }
0x1074   : > { %v15993_v6 = vpop.f32.mrf.mxu0  ;;  %v15995_v39 = vpop.f32.mrf.mxu1 }
0x1076   : > { %v11923_v0 = vpop.f32.mrf.mxu0  ;;  %v11955_v12 = vpop.f32.mrf.mxu1 }
0x1077   : > { %v15997_v44 = vadd.f32 %v11955_v12, %v11923_v0 }
0x1078   : > { %v15999_v22 = vpop.f32.mrf.mxu0  ;;  %v16001_v23 = vpop.f32.mrf.mxu1 }
0x107a   : > { %v11926_v63 = vpop.f32.mrf.mxu0  ;;  %v11958_v7 = vpop.f32.mrf.mxu1 }
0x107b   : > { %v16003_v56 = vadd.f32 %v11958_v7, %v11926_v63 }
0x107c   : > { %v16005_v58 = vpop.f32.mrf.mxu0  ;;  %v16007_v61 = vpop.f32.mrf.mxu1 }
0x107e   : > { %v11927_v2 = vpop.f32.mrf.mxu0  ;;  %v11959_v41 = vpop.f32.mrf.mxu1 }
0x107f   : > { %v16009_v46 = vadd.f32 %v11959_v41, %v11927_v2 }
0x1080   : > { %v16011_v43 = vpop.f32.mrf.mxu0  ;;  %v16013_v19 = vpop.f32.mrf.mxu1 }
0x10a8   : > { %v11930_v37 = vpop.f32.mrf.mxu0  ;;  %v11962_v47 = vpop.f32.mrf.mxu1 }
0x10a9   : > { %v16015_v35 = vadd.f32 %v11962_v47, %v11930_v37 }
0x10aa   : > { %v16017_v11 = vpop.f32.mrf.mxu0  ;;  %v16019_v10 = vpop.f32.mrf.mxu1 }
0x10ac   : > { %v11931_v55 = vpop.f32.mrf.mxu0  ;;  %v11963_v5 = vpop.f32.mrf.mxu1 }
0x10ad   : > { %v16021_v14 = vadd.f32 %v11963_v5, %v11931_v55  ;;  %v12944_v55 = vld [vmem:[%s18718_s5 + $0xf0] sm:$0xff]  }
0x10ae   : > { %v16023_v51 = vpop.f32.mrf.mxu0 }
0x10b0   : > { %v11982_v33 = vpop.f32.mrf.mxu0 }
0x10b1   : > { %v4404_v24 = vadd.f32 %v11982_v33, %v16028_v36 }
0x10b2   : > { %v4395_v52 = vpop.f32.mrf.mxu0 }
0x10b3   : > { %v4396_v21 = vadd.f32 %v16028_v36, %v4395_v52  ;;  %v4460_v7 = vmax.f32 %v4404_v24, 0.0 }
0x10b4   : > { %v11983_v38 = vpop.f32.mrf.mxu0 }
0x10b5   : > { %v4407_v18 = vadd.f32 %v11983_v38, %v16028_v36  ;;  %v4458_v12 = vmax.f32 %v4396_v21, 0.0 }
0x10b6   : > { %v4398_v17 = vpop.f32.mrf.mxu0 }
0x10b7   : > { %v4399_v16 = vadd.f32 %v16028_v36, %v4398_v17  ;;  %v4461_v40 = vmax.f32 %v4407_v18, 0.0  ;;  %v12945_v17 = vld [vmem:[%s18718_s5 + $0xe8] sm:$0xff]  }
0x10b8   : > { %v11986_v0 = vpop.f32.mrf.mxu0 }
0x10b9   : > { %v4459_v63 = vmax.f32 %v4399_v16, 0.0  ;;  %v4475_v37 = vpack.c.bf16 %v4461_v40, %v4460_v7  ;;  %v4420_v52 = vadd.f32 %v11986_v0, %v16028_v36 }
0x10ba   : > { %v4411_v2 = vpop.f32.mrf.mxu0 }
0x10bb   : > { %v4474_v41 = vpack.c.bf16 %v4459_v63, %v4458_v12  ;;  %v4412_v5 = vadd.f32 %v16028_v36, %v4411_v2  ;;  %v4464_v12 = vmax.f32 %v4420_v52, 0.0 }
0x10bc   : > { %v11987_v47 = vpop.f32.mrf.mxu0 }
0x10bd   : > { %v4423_v33 = vadd.f32 %v11987_v47, %v16028_v36  ;;  %12012 = vmatprep.mubr.bf16.mxu1 %v4474_v41  ;;  %v4462_v16 = vmax.f32 %v4412_v5, 0.0 }
0x10be   : > { %v4414_v38 = vpop.f32.mrf.mxu0  ;;  %12013 = vmatmul.mubr.bf16.vlgmr.msra.gmra.mxu1 %v4475_v37 }
0x10bf   : > { %v4415_v21 = vadd.f32 %v16028_v36, %v4414_v38  ;;  %12061 = vmatpush3.bf16.msra.mxu1 %v15976_v20  ;;  %v4465_v18 = vmax.f32 %v4423_v33, 0.0  ;;  %v12946_v20 = vld [vmem:[%s18718_s5 + $0xe0] sm:$0xff]   ;;  %v12947_v38 = vld [vmem:[%s18718_s5 + $0xd8] sm:$0xff]  }
0x10c0   : > { %v11990_v24 = vpop.f32.mrf.mxu0  ;;  %12062 = vmatprep.subr.bf16.mxu1 %v12944_v55 }
0x10c1   : > { %v4463_v40 = vmax.f32 %v4415_v21, 0.0  ;;  %v4477_v0 = vpack.c.bf16 %v4465_v18, %v4464_v12  ;;  %v4436_v47 = vadd.f32 %v11990_v24, %v16028_v36 }
0x10c2   : > { %v4427_v63 = vpop.f32.mrf.mxu0 }
0x10c3   : > { %12063 = vmatpush3.bf16.msra.mxu1 %v12944_v55  ;;  %v4476_v7 = vpack.c.bf16 %v4463_v40, %v4462_v16  ;;  %v4428_v41 = vadd.f32 %v16028_v36, %v4427_v63  ;;  %v4468_v16 = vmax.f32 %v4436_v47, 0.0 }
0x10c4   : > { %v11991_v2 = vpop.f32.mrf.mxu0  ;;  %12064 = vmatprep.subr.bf16.mxu1 %v12945_v17 }
0x10c5   : > { %v4439_v37 = vadd.f32 %v11991_v2, %v16028_v36  ;;  %12016 = vmatprep.mubr.bf16.mxu1 %v4476_v7  ;;  %v4466_v21 = vmax.f32 %v4428_v41, 0.0 }
0x10c6   : > { %v4430_v5 = vpop.f32.mrf.mxu0  ;;  %12017 = vmatmul.mubr.bf16.gmra.mxu1 %v4477_v0 }
0x10c7   : > { %v4431_v33 = vadd.f32 %v16028_v36, %v4430_v5  ;;  %12065 = vmatpush3.bf16.msra.mxu1 %v12945_v17  ;;  %v4469_v55 = vmax.f32 %v4439_v37, 0.0  ;;  %v12948_v17 = vld [vmem:[%s18718_s5 + $0xd0] sm:$0xff]   ;;  %v12949_v5 = vld [vmem:[%s18718_s5 + $0xc8] sm:$0xff]  }
0x10c8   : > { %v11994_v52 = vpop.f32.mrf.mxu0  ;;  %12066 = vmatprep.subr.bf16.mxu1 %v12946_v20 }
0x10c9   : > { %v4467_v18 = vmax.f32 %v4431_v33, 0.0  ;;  %v4479_v63 = vpack.c.bf16 %v4469_v55, %v4468_v16  ;;  %v4452_v2 = vadd.f32 %v11994_v52, %v16028_v36  ;;  %v16068_v52 = vld [vmem:[%s18719_s6 + $0x3] ss:$0 sm:$0xff] }
0x10ca   : > { %v4443_v40 = vpop.f32.mrf.mxu0 }
0x10cb   : > { %12067 = vmatpush3.bf16.msra.mxu1 %v12946_v20  ;;  %v4478_v12 = vpack.c.bf16 %v4467_v18, %v4466_v21  ;;  %v4444_v7 = vadd.f32 %v16028_v36, %v4443_v40  ;;  %v4472_v21 = vmax.f32 %v4452_v2, 0.0  ;;  %v12950_v40 = vld [vmem:[%s18718_s5 + $0xc0] sm:$0xff]  }
0x10cc   : > { %v11995_v24 = vpop.f32.mrf.mxu0  ;;  %12068 = vmatprep.subr.bf16.mxu1 %v12947_v38 }
0x10cd   : > { %v4455_v0 = vadd.f32 %v11995_v24, %v16028_v36  ;;  %12020 = vmatprep.mubr.bf16.mxu1 %v4478_v12  ;;  %v4470_v33 = vmax.f32 %v4444_v7, 0.0 }
0x10ce   : > { %v4446_v41 = vpop.f32.mrf.mxu0  ;;  %12021 = vmatmul.mubr.bf16.gmra.mxu1 %v4479_v63 }
0x10cf   : > { %v4447_v37 = vadd.f32 %v16028_v36, %v4446_v41  ;;  %12069 = vmatpush3.bf16.msra.mxu1 %v12947_v38  ;;  %v4473_v20 = vmax.f32 %v4455_v0, 0.0 }
0x10d0   : > { %v12046_v47 = vpop.f32.mrf.mxu0  ;;  %12070 = vmatprep.subr.bf16.mxu1 %v12948_v17 }
0x10d1   : > { %v4471_v55 = vmax.f32 %v4447_v37, 0.0  ;;  %v4481_v36 = vpack.c.bf16 %v4473_v20, %v4472_v21  ;;  %v4776_v24 = vadd.f32 %v12046_v47, %v16068_v52 }
0x10d2   : > { %v4767_v18 = vpop.f32.mrf.mxu0 }
0x10d3   : > { %12071 = vmatpush3.bf16.msra.mxu1 %v12948_v17  ;;  %v4480_v16 = vpack.c.bf16 %v4471_v55, %v4470_v33  ;;  %v4768_v12 = vadd.f32 %v16068_v52, %v4767_v18  ;;  %v4832_v20 = vmax.f32 %v4776_v24, 0.0 }
0x10d4   : > { %v12047_v38 = vpop.f32.mrf.mxu0  ;;  %12072 = vmatprep.subr.bf16.mxu1 %v12949_v5 }
0x10d5   : > { %v4779_v63 = vadd.f32 %v12047_v38, %v16068_v52  ;;  %12024 = vmatprep.mubr.bf16.mxu1 %v4480_v16  ;;  %v4830_v41 = vmax.f32 %v4768_v12, 0.0 }
0x10d6   : > { %12025 = vmatmul.mubr.bf16.gmra.mxu1 %v4481_v36  ;;  %v4770_v7 = vpop.f32.mrf.mxu0 }
0x10d7   : > { %v4771_v0 = vadd.f32 %v16068_v52, %v4770_v7  ;;  %12073 = vmatpush3.bf16.msra.mxu1 %v12949_v5  ;;  %v4833_v17 = vmax.f32 %v4779_v63, 0.0 }
0x10d8   : > { %v12050_v2 = vpop.f32.mrf.mxu0  ;;  %12074 = vmatprep.subr.bf16.mxu1 %v12950_v40 }
0x10d9   : > { %v4831_v37 = vmax.f32 %v4771_v0, 0.0  ;;  %v4847_v21 = vpack.c.bf16 %v4833_v17, %v4832_v20  ;;  %v4792_v36 = vadd.f32 %v12050_v2, %v16068_v52 }
0x10da   : > { %v4783_v33 = vpop.f32.mrf.mxu0 }
0x10db   : > { %12075 = vmatpush3.bf16.msra.mxu1 %v12950_v40  ;;  %v4846_v55 = vpack.c.bf16 %v4831_v37, %v4830_v41  ;;  %v4784_v16 = vadd.f32 %v16068_v52, %v4783_v33  ;;  %v4836_v0 = vmax.f32 %v4792_v36, 0.0 }
0x10dc   : > { %v12051_v18 = vpop.f32.mrf.mxu0 }
0x10dd   : > { %v4795_v47 = vadd.f32 %v12051_v18, %v16068_v52  ;;  %12076 = vmatprep.mubr.bf16.mxu1 %v4846_v55  ;;  %v4834_v7 = vmax.f32 %v4784_v16, 0.0 }
0x10de   : > { %v4786_v38 = vpop.f32.mrf.mxu0  ;;  %12077 = vmatmul.mubr.bf16.vlgmr.msra.gmra.mxu1 %v4847_v21 }
0x10df   : > { %v4787_v5 = vadd.f32 %v16068_v52, %v4786_v38  ;;  %v4837_v63 = vmax.f32 %v4795_v47, 0.0 }
0x10e0   : > { %v12054_v12 = vpop.f32.mrf.mxu0 }
0x10e1   : > { %v4835_v24 = vmax.f32 %v4787_v5, 0.0  ;;  %v4849_v17 = vpack.c.bf16 %v4837_v63, %v4836_v0  ;;  %v4808_v2 = vadd.f32 %v12054_v12, %v16068_v52 }
0x10e2   : > { %v4799_v40 = vpop.f32.mrf.mxu0 }
0x10e3   : > { %v4848_v41 = vpack.c.bf16 %v4835_v24, %v4834_v7  ;;  %v4800_v20 = vadd.f32 %v16068_v52, %v4799_v40  ;;  %v4840_v36 = vmax.f32 %v4808_v2, 0.0 }
0x10e4   : > { %v12055_v37 = vpop.f32.mrf.mxu0 }
0x10e5   : > { %v4811_v33 = vadd.f32 %v12055_v37, %v16068_v52  ;;  %12080 = vmatprep.mubr.bf16.mxu1 %v4848_v41  ;;  %v4838_v16 = vmax.f32 %v4800_v20, 0.0 }
0x10e6   : > { %v4802_v55 = vpop.f32.mrf.mxu0  ;;  %12081 = vmatmul.mubr.bf16.gmra.mxu1 %v4849_v17 }
0x10e7   : > { %v4803_v21 = vadd.f32 %v16068_v52, %v4802_v55  ;;  %v4841_v18 = vmax.f32 %v4811_v33, 0.0 }
0x10e8   : > { %v12058_v47 = vpop.f32.mrf.mxu0 }
0x10e9   : > { %v4839_v38 = vmax.f32 %v4803_v21, 0.0  ;;  %v4851_v63 = vpack.c.bf16 %v4841_v18, %v4840_v36  ;;  %v4824_v12 = vadd.f32 %v12058_v47, %v16068_v52  ;;  %v16089_v18 = vpop.f32.mrf.mxu1 }
0x10ea   : > { %v4815_v5 = vpop.f32.mrf.mxu0 }
0x10eb   : > { %v4850_v7 = vpack.c.bf16 %v4839_v38, %v4838_v16  ;;  %v4816_v0 = vadd.f32 %v16068_v52, %v4815_v5  ;;  %v4844_v55 = vmax.f32 %v4824_v12, 0.0 }
0x10ec   : > { %v12059_v24 = vpop.f32.mrf.mxu0 }
0x10ed   : > { %v4827_v40 = vadd.f32 %v12059_v24, %v16068_v52  ;;  %12084 = vmatprep.mubr.bf16.mxu1 %v4850_v7  ;;  %v4842_v33 = vmax.f32 %v4816_v0, 0.0 }
0x10ee   : > { %v4818_v41 = vpop.f32.mrf.mxu0  ;;  %12085 = vmatmul.mubr.bf16.gmra.mxu1 %v4851_v63 }
0x10ef   : > { %v4819_v17 = vadd.f32 %v16068_v52, %v4818_v41  ;;  %v4845_v37 = vmax.f32 %v4827_v40, 0.0 }
0x10f1   : > { %v4843_v20 = vmax.f32 %v4819_v17, 0.0  ;;  %v4853_v21 = vpack.c.bf16 %v4845_v37, %v4844_v55 }
0x10f3   : > { %v4852_v2 = vpack.c.bf16 %v4843_v20, %v4842_v33  ;;  %v4226_v33 = vadd.f32 %v15983_v8, %v15981_v13  ;;  %v13760_v13 = vld [vmem:[%s18720_s7] sm:$0x3f]  ;;  %v4242_v8 = vadd.f32 %v15995_v39, %v15993_v6 }
0x10f5   : > { %12088 = vmatprep.mubr.bf16.mxu1 %v4852_v2 }
0x10f6   : > { %12089 = vmatmul.mubr.bf16.gmra.mxu1 %v4853_v21  ;;  %v18772_v21 = vsub.s32 5, %v18932_v62 }
0x117e   : > { %v12014_v16 = vpop.f32.mrf.mxu1 }
0x117f   : > { %v4646_v55 = vadd.f32 %v12014_v16, %v15979_v1  ;;  %v16116_v1 = vrot.slane %v13760_v13, %v18772_v21  ;;  %v16667_v21 = vld [vmem:[%s18714_s1 + $0x50] sm:$0xff] }
0x1180   : > { %v4581_v38 = vpop.f32.mrf.mxu1  ;;  %18971 = vst [vmem:[#allocation32_spill] sm:$0xff] %v16667_v21 }
0x1181   : > { %v4644_v2 = vadd.f32 %v4581_v38, %v4226_v33 }
0x1182   : > { %v12015_v36 = vpop.f32.mrf.mxu1 }
0x1183   : > { %v4647_v53 = vadd.f32 %v12015_v36, %v15985_v32  ;;  %v4245_v36 = vadd.f32 %v16001_v23, %v15999_v22 }
0x1184   : > { %v4584_v5 = vpop.f32.mrf.mxu1 }
0x1186   : > { %v12018_v7 = vpop.f32.mrf.mxu1 }
0x1188   : > { %v4597_v47 = vpop.f32.mrf.mxu1 }
0x1189   : > { %v4648_v32 = vadd.f32 %v4597_v47, %v4242_v8 }
0x118a   : > { %v12019_v24 = vpop.f32.mrf.mxu1 }
0x118c   : > { %v4600_v63 = vpop.f32.mrf.mxu1 }
0x118e   : > { %v12022_v49 = vpop.f32.mrf.mxu1 }
0x1190   : > { %v4613_v52 = vpop.f32.mrf.mxu1 }
0x1192   : > { %v16091_v40 = vpop.f32.mrf.mxu1 }
0x1194   : > { %v16093_v0 = vpop.f32.mrf.mxu1 }
0x1196   : > { %v16095_v12 = vpop.f32.mrf.mxu1 }
0x1198   : > { %v16097_v41 = vpop.f32.mrf.mxu1 }
0x119a   : > { %v16099_v17 = vpop.f32.mrf.mxu1 }
0x119b   : > { %18937 = vst [vmem:[#allocation17_spill] sm:$0xff] %v16099_v17  ;;  %v4645_v17 = vadd.f32 %v4584_v5, %v4229_v59  ;;  %v4651_v5 = vadd.f32 %v12019_v24, %v15997_v44 }
0x119c   : > { %v16101_v37 = vpop.f32.mrf.mxu1 }
0x119d   : > { %18938 = vst [vmem:[#allocation15_spill] sm:$0xff] %v16101_v37 }
0x119e   : > { %v12078_v20 = vpop.f32.mrf.mxu1 }
0x119f   : > { %v5018_v31 = vadd.f32 %v12078_v20, %v4646_v55 }
0x11a0   : > { %v4953_v25 = vpop.f32.mrf.mxu1 }
0x11a1   : > { %v5016_v45 = vadd.f32 %v4953_v25, %v4644_v2  ;;  %v5034_v25 = vadd.f32 %v5018_v31, %v15495_v28 }
0x11a2   : > { %v12079_v54 = vpop.f32.mrf.mxu1 }
0x11a3   : > { %v5032_v37 = vadd.f32 %v5016_v45, %v15490_v60  ;;  %v5019_v50 = vadd.f32 %v12079_v54, %v4647_v53  ;;  %v4650_v60 = vadd.f32 %v12018_v7, %v15991_v4  ;;  %v16131_v54 = vadd.f32 %v16116_v1, %v5034_v25 }
0x11a4   : > { %v4956_v29 = vpop.f32.mrf.mxu1 }
0x11a5   : > { %v5017_v16 = vadd.f32 %v4956_v29, %v4645_v17  ;;  %v16122_v59 = vadd.f32 %v16116_v1, %v5032_v37  ;;  %v5035_v28 = vadd.f32 %v5019_v50, %v15504_v57  ;;  %18940 = vst [vmem:[#allocation5_spill] sm:$0xff] %v16131_v54  ;;  %v4258_v57 = vadd.f32 %v16007_v61, %v16005_v58 }
0x11a6   : > { %v12082_v45 = vpop.f32.mrf.mxu1 }
0x11a7   : > { %18939 = vst [vmem:[#allocation7_spill] sm:$0xff] %v16122_v59  ;;  %v5033_v38 = vadd.f32 %v5017_v16, %v15499_v48  ;;  %5070 = vadd.xlane.f32.xlu0 %v16122_v59  ;;  %v5022_v6 = vadd.f32 %v12082_v45, %v4650_v60  ;;  %v4649_v48 = vadd.f32 %v4600_v63, %v4245_v36  ;;  %v18952_v36 = vld [vmem:[#allocation10_spill] sm:$0xff] }
0x11a8   : > { %v4969_v39 = vpop.f32.mrf.mxu1  ;;  %v16144_v37 = vadd.f32 %v16116_v1, %v5035_v28  ;;  %v4652_v63 = vadd.f32 %v4613_v52, %v4258_v57 }
0x11a9   : > { %v5020_v53 = vadd.f32 %v4969_v39, %v4648_v32  ;;  %v16134_v31 = vadd.f32 %v16116_v1, %v5033_v38  ;;  %v5038_v22 = vadd.f32 %v5022_v6, %v15520_v26  ;;  %v4261_v26 = vadd.f32 %v16013_v19, %v16011_v43  ;;  %v18951_v32 = vld [vmem:[#allocation15_spill] sm:$0xff] }
0x11aa   : > { %v12083_v4 = vpop.f32.mrf.mxu1  ;;  %18942 = vst [vmem:[#allocation14_spill] sm:$0xff] %v16144_v37 }
0x11ab   : > { %18941 = vst [vmem:[#allocation12_spill] sm:$0xff] %v16134_v31  ;;  %v5036_v7 = vadd.f32 %v5020_v53, %v15511_v42  ;;  %5074 = vadd.xlane.f32.xlu0 %v16131_v54  ;;  %5072 = vadd.xlane.f32.xlu1 %v16134_v31  ;;  %v5023_v47 = vadd.f32 %v12083_v4, %v4651_v5 }
0x11ac   : > { %v4972_v23 = vpop.f32.mrf.mxu1  ;;  %v4654_v42 = vadd.f32 %v12022_v49, %v16003_v56  ;;  %v16156_v61 = vadd.f32 %v16116_v1, %v5038_v22  ;;  %v4653_v52 = vadd.f32 %v16093_v0, %v4261_v26 }
0x11ad   : > { %v5021_v17 = vadd.f32 %v4972_v23, %v4649_v48  ;;  %v16147_v44 = vadd.f32 %v16116_v1, %v5036_v7  ;;  %v5039_v20 = vadd.f32 %v5023_v47, %v15523_v27  ;;  %v4274_v27 = vadd.f32 %v16019_v10, %v16017_v11  ;;  %v18957_v48 = vld [vmem:[#allocation9_spill] sm:$0xff] }
0x11ae   : > { %v12086_v24 = vpop.f32.mrf.mxu1  ;;  %18944 = vst [vmem:[#allocation18_spill] sm:$0xff] %v16156_v61 }
0x11af   : > { %18943 = vst [vmem:[#allocation16_spill] sm:$0xff] %v16147_v44  ;;  %v5037_v33 = vadd.f32 %v5021_v17, %v15515_v3  ;;  %5076 = vadd.xlane.f32.xlu1 %v16144_v37  ;;  %5078 = vadd.xlane.f32.xlu0 %v16147_v44  ;;  %v5026_v55 = vadd.f32 %v12086_v24, %v4654_v42 }
0x11b0   : > { %v4985_v58 = vpop.f32.mrf.mxu1  ;;  %v4655_v3 = vadd.f32 %v16091_v40, %v16009_v46  ;;  %v16172_v25 = vadd.f32 %v16116_v1, %v5039_v20  ;;  %v4656_v0 = vadd.f32 %v16097_v41, %v4274_v27 }
0x11b1   : > { %v5024_v2 = vadd.f32 %v4985_v58, %v4652_v63  ;;  %v16160_v49 = vadd.f32 %v16116_v1, %v5037_v33  ;;  %v5042_v8 = vadd.f32 %v5026_v55, %v15540_v34  ;;  %v4277_v34 = vadd.f32 %v16089_v18, %v16023_v51  ;;  %v18954_v18 = vld [vmem:[#allocation13_spill] sm:$0xff] }
0x11b2   : > { %v12087_v56 = vpop.f32.mrf.mxu1  ;;  %18946 = vst [vmem:[#allocation8_spill] sm:$0xff] %v16172_v25 }
0x11b3   : > { %18945 = vst [vmem:[#allocation6_spill] sm:$0xff] %v16160_v49  ;;  %v5040_v13 = vadd.f32 %v5024_v2, %v15531_v9  ;;  %5082 = vadd.xlane.f32.xlu0 %v16156_v61  ;;  %5080 = vadd.xlane.f32.xlu1 %v16160_v49  ;;  %v5027_v43 = vadd.f32 %v12087_v56, %v4655_v3 }
0x11b4   : > { %v4988_v19 = vpop.f32.mrf.mxu1  ;;  %v4658_v9 = vadd.f32 %v16095_v12, %v16015_v35  ;;  %v16187_v45 = vadd.f32 %v16116_v1, %v5042_v8  ;;  %v4657_v38 = vadd.f32 %v18951_v32, %v4277_v34 }
0x11b5   : > { %v5025_v29 = vadd.f32 %v4988_v19, %v4653_v52  ;;  %v16175_v46 = vadd.f32 %v16116_v1, %v5040_v13  ;;  %v5043_v11 = vadd.f32 %v5027_v43, %v15543_v15 }
0x11b6   : > { %v12090_v40 = vpop.f32.mrf.mxu1  ;;  %18948 = vst [vmem:[#allocation38_spill] sm:$0xff] %v16187_v45 }
0x11b7   : > { %18947 = vst [vmem:[#allocation36_spill] sm:$0xff] %v16175_v46  ;;  %v5041_v50 = vadd.f32 %v5025_v29, %v15535_v30  ;;  %5084 = vadd.xlane.f32.xlu1 %v16172_v25  ;;  %5086 = vadd.xlane.f32.xlu0 %v16175_v46  ;;  %v5030_v16 = vadd.f32 %v12090_v40, %v4658_v9  ;;  %v18950_v30 = vld [vmem:[#allocation17_spill] sm:$0xff] }
0x11b8   : > { %v5001_v10 = vpop.f32.mrf.mxu1  ;;  %v4659_v41 = vadd.f32 %v18950_v30, %v16021_v14  ;;  %v16199_v51 = vadd.f32 %v16116_v1, %v5043_v11  ;;  %v18956_v14 = vld [vmem:[#allocation11_spill] sm:$0xff] }
0x11b9   : > { %v5028_v60 = vadd.f32 %v5001_v10, %v4656_v0  ;;  %v16190_v35 = vadd.f32 %v16116_v1, %v5041_v50  ;;  %v5046_v39 = vadd.f32 %v5030_v16, %v18954_v18 }
0x11ba   : > { %v12091_v12 = vpop.f32.mrf.mxu1  ;;  %18953 = vst [vmem:[#allocation35_spill] sm:$0xff] %v16199_v51 }
0x11bb   : > { %18949 = vst [vmem:[#allocation37_spill] sm:$0xff] %v16190_v35  ;;  %v5044_v6 = vadd.f32 %v5028_v60, %v18952_v36  ;;  %5090 = vadd.xlane.f32.xlu0 %v16187_v45  ;;  %5088 = vadd.xlane.f32.xlu1 %v16190_v35  ;;  %v5031_v28 = vadd.f32 %v12091_v12, %v4659_v41  ;;  %v12952_v36 = vld [vmem:[%s18715_s2 + $0xf8] sm:$0xff]  }
0x11bc   : > { %v5004_v15 = vpop.f32.mrf.mxu1  ;;  %v16213_v22 = vadd.f32 %v16116_v1, %v5046_v39  ;;  %12092 = vmatprep.subr.bf16.mxu0 %v12952_v36 }
0x11bd   : > { %v5029_v53 = vadd.f32 %v5004_v15, %v4657_v38  ;;  %v16203_v4 = vadd.f32 %v16116_v1, %v5044_v6  ;;  %v5047_v7 = vadd.f32 %v5031_v28, %v18957_v48  ;;  %v12951_v38 = vld [vmem:[%s18715_s2 + $0x138] sm:$0xff]   ;;  %12093 = vmatpush3.bf16.msra.mxu0 %v12952_v36  ;;  %v12953_v48 = vld [vmem:[%s18715_s2 + $0x130] sm:$0xff]  }
0x11be   : > { %18959 = vst [vmem:[#allocation21_spill] sm:$0xff] %v16213_v22  ;;  %12124 = vmatprep.subr.bf16.mxu1 %v12951_v38  ;;  %v12960_v36 = vld [vmem:[%s18715_s2 + $0xd8] sm:$0xff]  }
0x11bf   : > { %18955 = vst [vmem:[#allocation20_spill] sm:$0xff] %v16203_v4  ;;  %v5045_v5 = vadd.f32 %v5029_v53, %v18956_v14  ;;  %5092 = vadd.xlane.f32.xlu1 %v16199_v51  ;;  %5094 = vadd.xlane.f32.xlu0 %v16203_v4  ;;  %v16218_v23 = vadd.f32 %v16116_v1, %v5047_v7  ;;  %v12954_v7 = vld [vmem:[%s18715_s2 + $0xf0] sm:$0xff]  }
0x11c0   : > { %12125 = vmatpush3.bf16.msra.mxu1 %v12951_v38  ;;  %12094 = vmatprep.subr.bf16.mxu0 %v12954_v7  ;;  %v12959_v38 = vld [vmem:[%s18715_s2 + $0x118] sm:$0xff]  }
0x11c1   : > { %v16210_v57 = vadd.f32 %v16116_v1, %v5045_v5  ;;  %18960 = vst [vmem:[#allocation19_spill] sm:$0xff] %v16218_v23  ;;  %12126 = vmatprep.subr.bf16.mxu1 %v12953_v48  ;;  %12095 = vmatpush3.bf16.msra.mxu0 %v12954_v7  ;;  %v16352_v7 = vld [vmem:[%s18715_s2 + $0x178] sm:$0xff]  }
0x11c3   : > { %18958 = vst [vmem:[#allocation22_spill] sm:$0xff] %v16210_v57  ;;  %5096 = vadd.xlane.f32.xlu1 %v16210_v57  ;;  %5098 = vadd.xlane.f32.xlu0 %v16213_v22 }
0x11c4   : > { %12127 = vmatpush3.bf16.msra.mxu1 %v12953_v48  ;;  %v12966_v48 = vld [vmem:[%s18715_s2 + $0xc0] sm:$0xff]  }
0x11c7   : > { %5100 = vadd.xlane.f32.xlu1 %v16218_v23 }
0x1230   : > { %v5071_v47 = vpop.xlane.xlu0 %5070 }
0x1231   : > { %v5102_v17 = vmul.f32 0.0078125, %v5071_v47 }
0x1233   : > { %v16222_v24 = vsub.f32 %v16122_v59, %v5102_v17 }
0x1234   : > { %v5075_v42 = vpop.xlane.xlu0 %5074  ;;  %v5073_v63 = vpop.xlane.xlu1 %5072 }
0x1235   : > { %v5104_v33 = vmul.f32 0.0078125, %v5075_v42  ;;  %v5103_v26 = vmul.f32 0.0078125, %v5073_v63  ;;  %v5134_v58 = vmul.f32 %v16222_v24, %v16222_v24 }
0x1237   : > { %v16227_v20 = vsub.f32 %v16131_v54, %v5104_v33  ;;  %v16230_v1 = vsub.f32 %v16134_v31, %v5103_v26  ;;  %5150 = vadd.xlane.f32.xlu0 %v5134_v58 }
0x1238   : > { %v5077_v55 = vpop.xlane.xlu1 %5076  ;;  %v5079_v2 = vpop.xlane.xlu0 %5078 }
0x1239   : > { %v5105_v3 = vmul.f32 0.0078125, %v5077_v55  ;;  %v5106_v56 = vmul.f32 0.0078125, %v5079_v2  ;;  %v5135_v52 = vmul.f32 %v16230_v1, %v16230_v1  ;;  %v5136_v13 = vmul.f32 %v16227_v20, %v16227_v20  ;;  %v12955_v2 = vld [vmem:[%s18715_s2 + $0x128] sm:$0xff]  }
0x123a   : > { %12128 = vmatprep.subr.bf16.mxu1 %v12955_v2 }
0x123b   : > { %v16237_v27 = vsub.f32 %v16144_v37, %v5105_v3  ;;  %v16240_v43 = vsub.f32 %v16147_v44, %v5106_v56  ;;  %5152 = vadd.xlane.f32.xlu1 %v5135_v52  ;;  %5154 = vadd.xlane.f32.xlu0 %v5136_v13  ;;  %v12956_v3 = vld [vmem:[%s18715_s2 + $0xe8] sm:$0xff]  }
0x123c   : > { %v5083_v19 = vpop.xlane.xlu0 %5082  ;;  %v5081_v8 = vpop.xlane.xlu1 %5080  ;;  %12096 = vmatprep.subr.bf16.mxu0 %v12956_v3  ;;  %12129 = vmatpush3.bf16.msra.mxu1 %v12955_v2 }
0x123d   : > { %v5108_v29 = vmul.f32 0.0078125, %v5083_v19  ;;  %v5107_v40 = vmul.f32 0.0078125, %v5081_v8  ;;  %v5137_v9 = vmul.f32 %v16237_v27, %v16237_v27  ;;  %v5138_v0 = vmul.f32 %v16240_v43, %v16240_v43  ;;  %12097 = vmatpush3.bf16.msra.mxu0 %v12956_v3 }
0x123f   : > { %v16247_v50 = vsub.f32 %v16156_v61, %v5108_v29  ;;  %v16250_v34 = vsub.f32 %v16160_v49, %v5107_v40  ;;  %5156 = vadd.xlane.f32.xlu1 %v5137_v9  ;;  %5158 = vadd.xlane.f32.xlu0 %v5138_v0  ;;  %v12957_v0 = vld [vmem:[%s18715_s2 + $0x120] sm:$0xff]  }
0x1240   : > { %v5085_v11 = vpop.xlane.xlu1 %5084  ;;  %v5087_v10 = vpop.xlane.xlu0 %5086  ;;  %12130 = vmatprep.subr.bf16.mxu1 %v12957_v0 }
0x1241   : > { %v5109_v16 = vmul.f32 0.0078125, %v5085_v11  ;;  %v5110_v60 = vmul.f32 0.0078125, %v5087_v10  ;;  %v5139_v12 = vmul.f32 %v16250_v34, %v16250_v34  ;;  %v5140_v30 = vmul.f32 %v16247_v50, %v16247_v50  ;;  %v12958_v11 = vld [vmem:[%s18715_s2 + $0xe0] sm:$0xff]   ;;  %12131 = vmatpush3.bf16.msra.mxu1 %v12957_v0 }
0x1242   : > { %12098 = vmatprep.subr.bf16.mxu0 %v12958_v11  ;;  %12132 = vmatprep.subr.bf16.mxu1 %v12959_v38 }
0x1243   : > { %v16257_v41 = vsub.f32 %v16172_v25, %v5109_v16  ;;  %v16260_v32 = vsub.f32 %v16175_v46, %v5110_v60  ;;  %5160 = vadd.xlane.f32.xlu1 %v5139_v12  ;;  %5162 = vadd.xlane.f32.xlu0 %v5140_v30  ;;  %v16713_v46 = vld [vmem:[%s18714_s1 + $0x60] sm:$0xff]  ;;  %v16726_v25 = vld [vmem:[%s18714_s1 + $0x78] sm:$0xff] }
0x1244   : > { %v5091_v6 = vpop.xlane.xlu0 %5090  ;;  %v5089_v15 = vpop.xlane.xlu1 %5088  ;;  %12099 = vmatpush3.bf16.msra.mxu0 %v12958_v11  ;;  %18974 = vst [vmem:[#allocation31_spill] sm:$0xff] %v16713_v46  ;;  %18975 = vst [vmem:[#allocation17_spill] sm:$0xff] %v16726_v25 }
0x1245   : > { %v5112_v18 = vmul.f32 0.0078125, %v5091_v6  ;;  %v5111_v39 = vmul.f32 0.0078125, %v5089_v15  ;;  %v5141_v28 = vmul.f32 %v16257_v41, %v16257_v41  ;;  %v5142_v53 = vmul.f32 %v16260_v32, %v16260_v32  ;;  %12100 = vmatprep.subr.bf16.mxu0 %v12960_v36  ;;  %12133 = vmatpush3.bf16.msra.mxu1 %v12959_v38  ;;  %v12961_v15 = vld [vmem:[%s18715_s2 + $0x110] sm:$0xff]  }
0x1246   : > { %12134 = vmatprep.subr.bf16.mxu1 %v12961_v15 }
0x1247   : > { %v16273_v14 = vsub.f32 %v16187_v45, %v5112_v18  ;;  %v16276_v5 = vsub.f32 %v16190_v35, %v5111_v39  ;;  %5164 = vadd.xlane.f32.xlu1 %v5141_v28  ;;  %5166 = vadd.xlane.f32.xlu0 %v5142_v53  ;;  %v12962_v18 = vld [vmem:[%s18715_s2 + $0xd0] sm:$0xff]   ;;  %v12963_v39 = vld [vmem:[%s18715_s2 + $0x108] sm:$0xff]   ;;  %v12965_v53 = vld [vmem:[%s18715_s2 + $0x100] sm:$0xff]  }
0x1248   : > { %v5093_v47 = vpop.xlane.xlu1 %5092  ;;  %v5095_v17 = vpop.xlane.xlu0 %5094  ;;  %12101 = vmatpush3.bf16.msra.mxu0 %v12960_v36  ;;  %v12964_v28 = vld [vmem:[%s18715_s2 + $0xc8] sm:$0xff]   ;;  %v16703_v45 = vld [vmem:[%s18714_s1 + $0x70] sm:$0xff] }
0x1249   : > { %v5113_v42 = vmul.f32 0.0078125, %v5093_v47  ;;  %v5114_v63 = vmul.f32 0.0078125, %v5095_v17  ;;  %v5143_v33 = vmul.f32 %v16276_v5, %v16276_v5  ;;  %v5144_v26 = vmul.f32 %v16273_v14, %v16273_v14  ;;  %12102 = vmatprep.subr.bf16.mxu0 %v12962_v18  ;;  %12135 = vmatpush3.bf16.msra.mxu1 %v12961_v15  ;;  %v10454_v15 = vld [vmem:[%s18720_s7 + $0x8] sm:$0x3f]  ;;  %18973 = vst [vmem:[#allocation33_spill] sm:$0xff] %v16703_v45 }
0x124a   : > { %12136 = vmatprep.subr.bf16.mxu1 %v12963_v39 }
0x124b   : > { %v16289_v58 = vsub.f32 %v16199_v51, %v5113_v42  ;;  %v16292_v55 = vsub.f32 %v16203_v4, %v5114_v63  ;;  %5168 = vadd.xlane.f32.xlu1 %v5143_v33  ;;  %5170 = vadd.xlane.f32.xlu0 %v5144_v26  ;;  %v16695_v51 = vld [vmem:[%s18714_s1 + $0x48] sm:$0xff] }
0x124c   : > { %v5097_v56 = vpop.xlane.xlu1 %5096  ;;  %v5099_v52 = vpop.xlane.xlu0 %5098  ;;  %12103 = vmatpush3.bf16.msra.mxu0 %v12962_v18 }
0x124d   : > { %v5115_v13 = vmul.f32 0.0078125, %v5097_v56  ;;  %v5116_v19 = vmul.f32 0.0078125, %v5099_v52  ;;  %v5145_v8 = vmul.f32 %v16289_v58, %v16289_v58  ;;  %v5146_v29 = vmul.f32 %v16292_v55, %v16292_v55  ;;  %12104 = vmatprep.subr.bf16.mxu0 %v12964_v28  ;;  %12137 = vmatpush3.bf16.msra.mxu1 %v12963_v39 }
0x124e   : > { %12138 = vmatprep.subr.bf16.mxu1 %v12965_v53 }
0x124f   : > { %v16305_v40 = vsub.f32 %v16210_v57, %v5115_v13  ;;  %v16308_v9 = vsub.f32 %v16213_v22, %v5116_v19  ;;  %5172 = vadd.xlane.f32.xlu1 %v5145_v8  ;;  %5174 = vadd.xlane.f32.xlu0 %v5146_v29  ;;  %v16685_v57 = vld [vmem:[%s18714_s1 + $0x58] sm:$0xff] }
0x1250   : > { %v5101_v10 = vpop.xlane.xlu1 %5100  ;;  %12105 = vmatpush3.bf16.msra.mxu0 %v12964_v28 }
0x1251   : > { %v5117_v16 = vmul.f32 0.0078125, %v5101_v10  ;;  %v5147_v60 = vmul.f32 %v16305_v40, %v16305_v40  ;;  %v5148_v12 = vmul.f32 %v16308_v9, %v16308_v9  ;;  %12106 = vmatprep.subr.bf16.mxu0 %v12966_v48  ;;  %12139 = vmatpush3.bf16.msra.mxu1 %v12965_v53 }
0x1253   : > { %v16321_v30 = vsub.f32 %v16218_v23, %v5117_v16  ;;  %5176 = vadd.xlane.f32.xlu1 %v5147_v60  ;;  %5178 = vadd.xlane.f32.xlu0 %v5148_v12  ;;  %v16677_v23 = vld [vmem:[%s18714_s1 + $0x40] sm:$0xff] }
0x1254   : > { %12107 = vmatpush3.bf16.msra.mxu0 %v12966_v48  ;;  %18972 = vst [vmem:[#allocation34_spill] sm:$0xff] %v16677_v23 }
0x1255   : > { %v5149_v6 = vmul.f32 %v16321_v30, %v16321_v30  ;;  %12156 = vmatprep.subr.bf16.mxu0 %v16352_v7 }
0x1257   : > { %5180 = vadd.xlane.f32.xlu1 %v5149_v6 }
0x12c0   : > { %v5151_v47 = vpop.xlane.xlu0 %5150 }
0x12c1   : > { %v5182_v17 = vmul.f32 0.0078125, %v5151_v47  ;;  %v18961_v47 = vld [vmem:[#allocation3_spill] sm:$0xff] }
0x12c3   : > { %v5198_v42 = vadd.f32 1e-05, %v5182_v17  ;;  %v16359_v17 = vrot.slane %v10454_v15, %v18961_v47 }
0x12c4   : > { %v5153_v63 = vpop.xlane.xlu1 %5152  ;;  %v5155_v33 = vpop.xlane.xlu0 %5154 }
0x12c5   : > { %13375 = vrsqrt.f32 %v5198_v42  ;;  %v5183_v26 = vmul.f32 0.0078125, %v5153_v63  ;;  %v5184_v2 = vmul.f32 0.0078125, %v5155_v33 }
0x12c7   : > { %v5199_v3 = vadd.f32 1e-05, %v5183_v26  ;;  %v5200_v56 = vadd.f32 1e-05, %v5184_v2 }
0x12c8   : > { %v5157_v52 = vpop.xlane.xlu1 %5156  ;;  %v5159_v13 = vpop.xlane.xlu0 %5158 }
0x12c9   : > { %13377 = vrsqrt.f32 %v5199_v3  ;;  %v5185_v19 = vmul.f32 0.0078125, %v5157_v52  ;;  %v5186_v8 = vmul.f32 0.0078125, %v5159_v13 }
0x12ca   : > { %13379 = vrsqrt.f32 %v5200_v56 }
0x12cb   : > { %v5201_v29 = vadd.f32 1e-05, %v5185_v19  ;;  %v5202_v0 = vadd.f32 1e-05, %v5186_v8 }
0x12cc   : > { %v5161_v11 = vpop.xlane.xlu1 %5160  ;;  %v5163_v10 = vpop.xlane.xlu0 %5162 }
0x12cd   : > { %13381 = vrsqrt.f32 %v5201_v29  ;;  %v5187_v16 = vmul.f32 0.0078125, %v5161_v11  ;;  %v5188_v60 = vmul.f32 0.0078125, %v5163_v10  ;;  %v18962_v10 = vld [vmem:[#allocation4_spill] sm:$0xff] }
0x12ce   : > { %13383 = vrsqrt.f32 %v5202_v0 }
0x12cf   : > { %v5203_v12 = vadd.f32 1e-05, %v5187_v16  ;;  %v5204_v38 = vadd.f32 1e-05, %v5188_v60  ;;  %v16366_v16 = vrot.slane %v10454_v15, %v18962_v10 }
0x12d0   : > { %v5165_v36 = vpop.xlane.xlu1 %5164  ;;  %v5167_v6 = vpop.xlane.xlu0 %5166 }
0x12d1   : > { %13385 = vrsqrt.f32 %v5203_v12  ;;  %v5189_v18 = vmul.f32 0.0078125, %v5165_v36  ;;  %v5190_v39 = vmul.f32 0.0078125, %v5167_v6 }
0x12d2   : > { %v13376_v28 = vpop.eup %13375  ;;  %13387 = vrsqrt.f32 %v5204_v38 }
0x12d3   : > { %v5205_v53 = vadd.f32 1e-05, %v5189_v18  ;;  %v5206_v48 = vadd.f32 1e-05, %v5190_v39  ;;  %v5230_v33 = vmul.f32 %v13376_v28, %v16222_v24 }
0x12d4   : > { %v5169_v42 = vpop.xlane.xlu1 %5168  ;;  %v5171_v63 = vpop.xlane.xlu0 %5170 }
0x12d5   : > { %13389 = vrsqrt.f32 %v5205_v53  ;;  %v5191_v26 = vmul.f32 0.0078125, %v5169_v42  ;;  %v5192_v2 = vmul.f32 0.0078125, %v5171_v63  ;;  %v5250_v11 = vmul.f32 %v16359_v17, %v5230_v33 }
0x12d6   : > { %v13378_v3 = vpop.eup %13377  ;;  %13391 = vrsqrt.f32 %v5206_v48 }
0x12d7   : > { %v13380_v56 = vpop.eup %13379  ;;  %v5207_v52 = vadd.f32 1e-05, %v5191_v26  ;;  %v5208_v13 = vadd.f32 1e-05, %v5192_v2  ;;  %v5231_v19 = vmul.f32 %v13378_v3, %v16230_v1  ;;  %v5270_v15 = vadd.f32 %v16366_v16, %v5250_v11 }
0x12d8   : > { %v5232_v8 = vmul.f32 %v13380_v56, %v16227_v20  ;;  %v5173_v29 = vpop.xlane.xlu1 %5172  ;;  %v5175_v0 = vpop.xlane.xlu0 %5174 }
0x12d9   : > { %13393 = vrsqrt.f32 %v5207_v52  ;;  %v5193_v24 = vmul.f32 0.0078125, %v5173_v29  ;;  %v5194_v60 = vmul.f32 0.0078125, %v5175_v0  ;;  %v5251_v12 = vmul.f32 %v16359_v17, %v5231_v19 }
0x12da   : > { %v13382_v38 = vpop.eup %13381  ;;  %v5252_v36 = vmul.f32 %v16359_v17, %v5232_v8  ;;  %13395 = vrsqrt.f32 %v5208_v13 }
0x12db   : > { %v13384_v6 = vpop.eup %13383  ;;  %v5233_v1 = vmul.f32 %v13382_v38, %v16237_v27  ;;  %v5209_v20 = vadd.f32 1e-05, %v5193_v24  ;;  %v5210_v18 = vadd.f32 1e-05, %v5194_v60  ;;  %v5271_v39 = vadd.f32 %v16366_v16, %v5251_v12  ;;  %v12968_v60 = vld [vmem:[%s18715_s2 + $0x170] sm:$0xff]  }
0x12dc   : > { %v5177_v28 = vpop.xlane.xlu1 %5176  ;;  %v5179_v53 = vpop.xlane.xlu0 %5178  ;;  %v5234_v48 = vmul.f32 %v13384_v6, %v16240_v43  ;;  %v5272_v27 = vadd.f32 %v16366_v16, %v5252_v36 }
0x12dd   : > { %v5253_v42 = vmul.f32 %v16359_v17, %v5233_v1  ;;  %13397 = vrsqrt.f32 %v5209_v20  ;;  %v5195_v63 = vmul.f32 0.0078125, %v5177_v28  ;;  %v5196_v33 = vmul.f32 0.0078125, %v5179_v53  ;;  %v12969_v28 = vld [vmem:[%s18715_s2 + $0x168] sm:$0xff]  }
0x12de   : > { %v13386_v26 = vpop.eup %13385  ;;  %13399 = vrsqrt.f32 %v5210_v18  ;;  %v16375_v2 = vpack.c.bf16 %v5271_v39, %v5270_v15  ;;  %v5254_v3 = vmul.f32 %v16359_v17, %v5234_v48 }
0x12df   : > { %v13388_v56 = vpop.eup %13387  ;;  %v5211_v52 = vadd.f32 1e-05, %v5195_v63  ;;  %v5212_v13 = vadd.f32 1e-05, %v5196_v33  ;;  %v5273_v19 = vadd.f32 %v16366_v16, %v5253_v42  ;;  %v5235_v43 = vmul.f32 %v13386_v26, %v16250_v34  ;;  %v12970_v26 = vld [vmem:[%s18715_s2 + $0x160] sm:$0xff]  }
0x12e0   : > { %12108 = vmatprep.mubr.bf16.mxu0 %v16375_v2  ;;  %12140 = vmatprep.mubr.bf16.mxu1 %v16375_v2  ;;  %v5181_v8 = vpop.xlane.xlu1 %5180  ;;  %v5236_v29 = vmul.f32 %v13388_v56, %v16247_v50  ;;  %v5274_v34 = vadd.f32 %v16366_v16, %v5254_v3 }
0x12e1   : > { %13401 = vrsqrt.f32 %v5211_v52  ;;  %v5197_v0 = vmul.f32 0.0078125, %v5181_v8  ;;  %v16384_v11 = vpack.c.bf16 %v5273_v19, %v5272_v27  ;;  %v5255_v24 = vmul.f32 %v16359_v17, %v5235_v43  ;;  %v12971_v8 = vld [vmem:[%s18715_s2 + $0x158] sm:$0xff]  }
0x12e2   : > { %v13390_v12 = vpop.eup %13389  ;;  %13403 = vrsqrt.f32 %v5212_v13  ;;  %v5256_v1 = vmul.f32 %v16359_v17, %v5236_v29 }
0x12e3   : > { %v13392_v38 = vpop.eup %13391  ;;  %v5213_v36 = vadd.f32 1e-05, %v5197_v0  ;;  %12109 = vmatmul.mubr.bf16.vlgmr.msra.gmra.mxu0 %v16384_v11  ;;  %12141 = vmatmul.mubr.bf16.vlgmr.msra.gmra.mxu1 %v16384_v11  ;;  %v5275_v50 = vadd.f32 %v16366_v16, %v5255_v24  ;;  %v5237_v6 = vmul.f32 %v13390_v12, %v16257_v41 }
0x12e4   : > { %12157 = vmatpush3.bf16.msra.mxu0 %v16352_v7  ;;  %v5238_v20 = vmul.f32 %v13392_v38, %v16260_v32  ;;  %v5276_v32 = vadd.f32 %v16366_v16, %v5256_v1 }
0x12e5   : > { %13405 = vrsqrt.f32 %v5213_v36  ;;  %v16398_v18 = vpack.c.bf16 %v5275_v50, %v5274_v34  ;;  %12158 = vmatprep.subr.bf16.mxu0 %v12968_v60  ;;  %v5257_v39 = vmul.f32 %v16359_v17, %v5237_v6  ;;  %v12972_v36 = vld [vmem:[%s18715_s2 + $0x150] sm:$0xff]  }
0x12e6   : > { %v13394_v53 = vpop.eup %13393  ;;  %v5258_v15 = vmul.f32 %v16359_v17, %v5238_v20 }
0x12e7   : > { %v13396_v41 = vpop.eup %13395  ;;  %12112 = vmatprep.mubr.bf16.mxu0 %v16398_v18  ;;  %12144 = vmatprep.mubr.bf16.mxu1 %v16398_v18  ;;  %v5277_v7 = vadd.f32 %v16366_v16, %v5257_v39  ;;  %v5239_v48 = vmul.f32 %v13394_v53, %v16276_v5 }
0x12e8   : > { %12159 = vmatpush3.bf16.msra.mxu0 %v12968_v60  ;;  %v5240_v42 = vmul.f32 %v13396_v41, %v16273_v14  ;;  %v5278_v3 = vadd.f32 %v16366_v16, %v5258_v15 }
0x12e9   : > { %v5289_v63 = vpack.c.bf16 %v5277_v7, %v5276_v32  ;;  %12160 = vmatprep.subr.bf16.mxu0 %v12969_v28  ;;  %v5259_v33 = vmul.f32 %v16359_v17, %v5239_v48 }
0x12ea   : > { %v13398_v27 = vpop.eup %13397  ;;  %v5260_v14 = vmul.f32 %v16359_v17, %v5240_v42 }
0x12eb   : > { %v13400_v56 = vpop.eup %13399  ;;  %12113 = vmatmul.mubr.bf16.gmra.mxu0 %v5289_v63  ;;  %12145 = vmatmul.mubr.bf16.gmra.mxu1 %v5289_v63  ;;  %v5279_v52 = vadd.f32 %v16366_v16, %v5259_v33  ;;  %v5241_v5 = vmul.f32 %v13398_v27, %v16289_v58 }
0x12ec   : > { %12161 = vmatpush3.bf16.msra.mxu0 %v12969_v28  ;;  %v5242_v13 = vmul.f32 %v13400_v56, %v16292_v55  ;;  %v5280_v58 = vadd.f32 %v16366_v16, %v5260_v14  ;;  %v12973_v28 = vld [vmem:[%s18715_s2 + $0x148] sm:$0xff]  }
0x12ed   : > { %v5290_v19 = vpack.c.bf16 %v5279_v52, %v5278_v3  ;;  %12162 = vmatprep.subr.bf16.mxu0 %v12970_v26  ;;  %v5261_v43 = vmul.f32 %v16359_v17, %v5241_v5 }
0x12ee   : > { %v13402_v29 = vpop.eup %13401  ;;  %v5262_v0 = vmul.f32 %v16359_v17, %v5242_v13 }
0x12ef   : > { %v13404_v24 = vpop.eup %13403  ;;  %12116 = vmatprep.mubr.bf16.mxu0 %v5290_v19  ;;  %12148 = vmatprep.mubr.bf16.mxu1 %v5290_v19  ;;  %v5281_v60 = vadd.f32 %v16366_v16, %v5261_v43  ;;  %v5243_v55 = vmul.f32 %v13402_v29, %v16305_v40 }
0x12f0   : > { %12163 = vmatpush3.bf16.msra.mxu0 %v12970_v26  ;;  %v5244_v12 = vmul.f32 %v13404_v24, %v16308_v9  ;;  %v5282_v6 = vadd.f32 %v16366_v16, %v5262_v0 }
0x12f1   : > { %v5291_v34 = vpack.c.bf16 %v5281_v60, %v5280_v58  ;;  %12164 = vmatprep.subr.bf16.mxu0 %v12971_v8  ;;  %v5263_v38 = vmul.f32 %v16359_v17, %v5243_v55 }
0x12f2   : > { %v13406_v50 = vpop.eup %13405  ;;  %v5264_v20 = vmul.f32 %v16359_v17, %v5244_v12 }
0x12f3   : > { %12117 = vmatmul.mubr.bf16.gmra.mxu0 %v5291_v34  ;;  %12149 = vmatmul.mubr.bf16.gmra.mxu1 %v5291_v34  ;;  %v5283_v1 = vadd.f32 %v16366_v16, %v5263_v38  ;;  %v5245_v40 = vmul.f32 %v13406_v50, %v16321_v30  ;;  %v12974_v30 = vld [vmem:[%s18715_s2 + $0x140] sm:$0xff]  }
0x12f4   : > { %12165 = vmatpush3.bf16.msra.mxu0 %v12971_v8  ;;  %v5284_v53 = vadd.f32 %v16366_v16, %v5264_v20 }
0x12f5   : > { %v5292_v9 = vpack.c.bf16 %v5283_v1, %v5282_v6  ;;  %12166 = vmatprep.subr.bf16.mxu0 %v12972_v36  ;;  %v5265_v39 = vmul.f32 %v16359_v17, %v5245_v40 }
0x12f7   : > { %12120 = vmatprep.mubr.bf16.mxu0 %v5292_v9  ;;  %12152 = vmatprep.mubr.bf16.mxu1 %v5292_v9  ;;  %v5285_v15 = vadd.f32 %v16366_v16, %v5265_v39 }
0x12f8   : > { %12167 = vmatpush3.bf16.msra.mxu0 %v12972_v36 }
0x12f9   : > { %v5293_v41 = vpack.c.bf16 %v5285_v15, %v5284_v53  ;;  %12168 = vmatprep.subr.bf16.mxu0 %v12973_v28 }
0x12fb   : > { %12121 = vmatmul.mubr.bf16.gmra.mxu0 %v5293_v41  ;;  %12153 = vmatmul.mubr.bf16.gmra.mxu1 %v5293_v41 }
0x12fc   : > { %12169 = vmatpush3.bf16.msra.mxu0 %v12973_v28  ;;  %12172 = vmatprep.mubr.bf16.mxu0 %v16375_v2 }
0x12fd   : > { %12170 = vmatprep.subr.bf16.mxu0 %v12974_v30 }
0x1300   : > { %12171 = vmatpush3.bf16.msra.mxu0 %v12974_v30 }
0x1303   : > { %12173 = vmatmul.mubr.bf16.vlgmr.msra.gmra.mxu0 %v16384_v11 }
0x1304   : > { %12176 = vmatprep.mubr.bf16.mxu0 %v16398_v18 }
0x130b   : > { %12177 = vmatmul.mubr.bf16.gmra.mxu0 %v5289_v63 }
0x130c   : > { %12180 = vmatprep.mubr.bf16.mxu0 %v5290_v19 }
0x1313   : > { %12181 = vmatmul.mubr.bf16.gmra.mxu0 %v5291_v34 }
0x1314   : > { %12184 = vmatprep.mubr.bf16.mxu0 %v5292_v9 }
0x131b   : > { %12185 = vmatmul.mubr.bf16.gmra.mxu0 %v5293_v41 }
0x13a3   : > { %v12110_v17 = vpop.f32.mrf.mxu0  ;;  %v12142_v16 = vpop.f32.mrf.mxu1 }
0x13a5   : > { %v5393_v32 = vpop.f32.mrf.mxu0  ;;  %v16449_v7 = vpop.f32.mrf.mxu1 }
0x13a7   : > { %v12111_v48 = vpop.f32.mrf.mxu0  ;;  %v12143_v42 = vpop.f32.mrf.mxu1 }
0x13a8   : > { %v16451_v33 = vpack.c.bf16 %v12111_v48, %v12110_v17  ;;  %v16453_v2 = vpack.c.bf16 %v12143_v42, %v12142_v16 }
0x13a9   : > { %v5396_v26 = vpop.f32.mrf.mxu0  ;;  %v16455_v11 = vpop.f32.mrf.mxu1 }
0x13aa   : > { %v16457_v18 = vpack.c.bf16 %v5396_v26, %v5393_v32 }
0x13ab   : > { %v12114_v63 = vpop.f32.mrf.mxu0  ;;  %v12146_v27 = vpop.f32.mrf.mxu1 }
0x13ac   : > { %12204 = vmatprep.mubr.msk.bf16.mxu1 %vm1155_vm0, %v16457_v18 }
0x13ad   : > { %v16461_v3 = vpop.f32.mrf.mxu0  ;;  %v5579_v56 = vpop.f32.mrf.mxu1 }
0x13af   : > { %v12115_v52 = vpop.f32.mrf.mxu0  ;;  %v12147_v5 = vpop.f32.mrf.mxu1 }
0x13b0   : > { %v16463_v14 = vpack.c.bf16 %v12115_v52, %v12114_v63 }
0x13b1   : > { %v16465_v13 = vpop.f32.mrf.mxu0  ;;  %v5582_v19 = vpop.f32.mrf.mxu1 }
0x13b3   : > { %v12118_v43 = vpop.f32.mrf.mxu0  ;;  %v12150_v8 = vpop.f32.mrf.mxu1 }
0x13b5   : > { %v16467_v29 = vpop.f32.mrf.mxu0  ;;  %v5595_v0 = vpop.f32.mrf.mxu1 }
0x13b7   : > { %v12119_v24 = vpop.f32.mrf.mxu0  ;;  %v12151_v58 = vpop.f32.mrf.mxu1 }
0x13b8   : > { %v16469_v60 = vpack.c.bf16 %v12119_v24, %v12118_v43  ;;  %v16493_v16 = vpack.c.bf16 %v12151_v58, %v12150_v8 }
0x13b9   : > { %v16471_v55 = vpop.f32.mrf.mxu0  ;;  %v5598_v12 = vpop.f32.mrf.mxu1 }
0x13ba   : > { %18964 = vst [vmem:[#allocation26_spill] sm:$0xff] %v16493_v16  ;;  %v16499_v52 = vpack.c.bf16 %v5598_v12, %v5595_v0  ;;  %v5844_v43 = vsel %vm1155_vm0, %v16493_v16, 0 }
0x13bb   : > { %v12122_v34 = vpop.f32.mrf.mxu0  ;;  %v12154_v38 = vpop.f32.mrf.mxu1 }
0x13bd   : > { %v16473_v36 = vpop.f32.mrf.mxu0  ;;  %v5611_v50 = vpop.f32.mrf.mxu1 }
0x13bf   : > { %v12123_v6 = vpop.f32.mrf.mxu0  ;;  %v12155_v1 = vpop.f32.mrf.mxu1 }
0x13c0   : > { %v16475_v40 = vpack.c.bf16 %v12123_v6, %v12122_v34  ;;  %v16477_v20 = vpack.c.bf16 %v12155_v1, %v12154_v38  ;;  %v16505_v38 = vpack.c.bf16 %v12147_v5, %v12146_v27 }
0x13c1   : > { %v16479_v9 = vpop.f32.mrf.mxu0  ;;  %v5614_v39 = vpop.f32.mrf.mxu1 }
0x13c2   : > { %18963 = vst [vmem:[#allocation24_spill] sm:$0xff] %v16477_v20  ;;  %v16481_v28 = vpack.c.bf16 %v5614_v39, %v5611_v50  ;;  %6268 = vrot.lane.b32.xlu0 %v16477_v20, %s13803_s28  ;;  %12812 = vmatprep.subr.msk.bf16.mxu1 %vm1155_vm0, %v16477_v20  ;;  %v5850_v53 = vsel %vm1155_vm0, %v16477_v20, 0  ;;  %18965 = vst [vmem:[#allocation25_spill] sm:$0xff] %v16505_v38  ;;  %v5841_v50 = vsel %vm1155_vm0, %v16499_v52, 0  ;;  %v5838_v27 = vsel %vm1155_vm0, %v16505_v38, 0 }
0x13c3   : > { %v12174_v15 = vpop.f32.mrf.mxu0  ;;  %12189 = vmatpush3.bf16.xpose.msra.mxu1 %v5850_v53  ;;  %v16513_v53 = vpack.c.bf16 %v5582_v19, %v5579_v56 }
0x13c4   : > { %6266 = vrot.lane.b32.xlu1 %v16481_v28, %s13803_s28  ;;  %12813 = vmatprep.subr.msk.bf16.mxu1 %vm1155_vm0, %v16481_v28  ;;  %v5847_v32 = vsel %vm1155_vm0, %v16481_v28, 0 }
0x13c5   : > { %v5733_v41 = vpop.f32.mrf.mxu0  ;;  %18966 = vst [vmem:[#allocation23_spill] sm:$0xff] %v16513_v53  ;;  %v5835_v19 = vsel %vm1155_vm0, %v16513_v53, 0 }
0x13c7   : > { %v12175_v30 = vpop.f32.mrf.mxu0 }
0x13c9   : > { %v5736_v17 = vpop.f32.mrf.mxu0 }
0x13cb   : > { %v12178_v48 = vpop.f32.mrf.mxu0  ;;  %12191 = vmatpush3.bf16.xpose.msra.mxu1 %v5847_v32 }
0x13cc   : > { %12814 = vmatprep.subr.msk.bf16.mxu1 %vm1155_vm0, %v16493_v16 }
0x13cd   : > { %v5749_v42 = vpop.f32.mrf.mxu0 }
0x13cf   : > { %v12179_v26 = vpop.f32.mrf.mxu0 }
0x13d1   : > { %v5752_v63 = vpop.f32.mrf.mxu0 }
0x13d3   : > { %v12182_v24 = vpop.f32.mrf.mxu0  ;;  %12193 = vmatpush3.bf16.xpose.msra.mxu1 %v5844_v43  ;;  %v16536_v43 = vpack.c.bf16 %v12179_v26, %v12178_v48  ;;  %v16552_v48 = vpack.c.bf16 %v12175_v30, %v12174_v15  ;;  %v16565_v15 = vpack.c.bf16 %v16465_v13, %v16461_v3  ;;  %v16581_v3 = vpack.c.bf16 %v16479_v9, %v16473_v36  ;;  %v16613_v26 = vld [vmem:[%s18714_s1 + $0x18] sm:$0xff] }
0x13d4   : > { %12815 = vmatprep.subr.msk.bf16.mxu1 %vm1155_vm0, %v16499_v52 }
0x13d5   : > { %v5765_v8 = vpop.f32.mrf.mxu0  ;;  %18967 = vst [vmem:[#allocation28_spill] sm:$0xff] %v16552_v48 }
0x13d7   : > { %v12183_v58 = vpop.f32.mrf.mxu0 }
0x13d8   : > { %v16524_v5 = vpack.c.bf16 %v12183_v58, %v12182_v24  ;;  %v16542_v24 = vpack.c.bf16 %v16455_v11, %v16449_v7  ;;  %v5832_v58 = vsel %vm1155_vm0, %v16453_v2, 0  ;;  %v16556_v7 = vpack.c.bf16 %v5736_v17, %v5733_v41  ;;  %v16605_v17 = vld [vmem:[%s18714_s1] sm:$0xff] }
0x13d9   : > { %v5768_v34 = vpop.f32.mrf.mxu0  ;;  %v16573_v41 = vpack.c.bf16 %v16471_v55, %v16467_v29  ;;  %v16596_v55 = vld [vmem:[%s18714_s1 + $0x10] sm:$0xff] }
0x13da   : > { %v16528_v56 = vpack.c.bf16 %v5768_v34, %v5765_v8  ;;  %v16544_v8 = vpack.c.bf16 %v5752_v63, %v5749_v42  ;;  %18968 = vst [vmem:[#allocation30_spill] sm:$0xff] %v16556_v7  ;;  %v5829_v11 = vsel %vm1155_vm0, %v16542_v24, 0 }
0x13db   : > { %v12186_v6 = vpop.f32.mrf.mxu0  ;;  %12195 = vmatpush3.bf16.xpose.msra.mxu1 %v5841_v50 }
0x13dc   : > { %12816 = vmatprep.subr.msk.bf16.mxu1 %vm1155_vm0, %v16505_v38 }
0x13dd   : > { %v5781_v0 = vpop.f32.mrf.mxu0 }
0x13df   : > { %v12187_v12 = vpop.f32.mrf.mxu0 }
0x13e0   : > { %v16511_v1 = vpack.c.bf16 %v12187_v12, %v12186_v6  ;;  %v16623_v6 = vld [vmem:[%s18714_s1 + $0x8] sm:$0xff]  ;;  %v16631_v12 = vld [vmem:[%s18714_s1 + $0x30] sm:$0xff] }
0x13e1   : > { %v5784_v39 = vpop.f32.mrf.mxu0  ;;  %18969 = vst [vmem:[#allocation29_spill] sm:$0xff] %v16631_v12 }
0x13e2   : > { %v16515_v32 = vpack.c.bf16 %v5784_v39, %v5781_v0  ;;  %12220 = vmatprep.subr.bf16.mxu0 %v16511_v1 }
0x13e3   : > { %12197 = vmatpush3.bf16.xpose.msra.mxu1 %v5838_v27  ;;  %12221 = vmatpush3.bf16.msra.mxu0 %v16511_v1 }
0x13e4   : > { %12817 = vmatprep.subr.msk.bf16.mxu1 %vm1155_vm0, %v16513_v53  ;;  %12222 = vmatprep.subr.bf16.mxu0 %v16515_v32 }
0x13e7   : > { %12223 = vmatpush3.bf16.msra.mxu0 %v16515_v32 }
0x13e8   : > { %12224 = vmatprep.subr.bf16.mxu0 %v16524_v5 }
0x13eb   : > { %12199 = vmatpush3.bf16.xpose.msra.mxu1 %v5835_v19  ;;  %12225 = vmatpush3.bf16.msra.mxu0 %v16524_v5 }
0x13ec   : > { %12818 = vmatprep.subr.msk.bf16.mxu1 %vm1155_vm0, %v16453_v2  ;;  %12226 = vmatprep.subr.bf16.mxu0 %v16528_v56 }
0x13ef   : > { %12227 = vmatpush3.bf16.msra.mxu0 %v16528_v56 }
0x13f0   : > { %12228 = vmatprep.subr.bf16.mxu0 %v16536_v43 }
0x13f3   : > { %12201 = vmatpush3.bf16.xpose.msra.mxu1 %v5832_v58  ;;  %12229 = vmatpush3.bf16.msra.mxu0 %v16536_v43  ;;  %v16641_v58 = vld [vmem:[%s18714_s1 + $0x20] sm:$0xff] }
0x13f4   : > { %12819 = vmatprep.subr.msk.bf16.mxu1 %vm1155_vm0, %v16542_v24  ;;  %12230 = vmatprep.subr.bf16.mxu0 %v16544_v8  ;;  %18970 = vst [vmem:[#allocation27_spill] sm:$0xff] %v16641_v58 }
0x13f7   : > { %12231 = vmatpush3.bf16.msra.mxu0 %v16544_v8 }
0x13f8   : > { %12232 = vmatprep.subr.bf16.mxu0 %v16552_v48 }
0x13fb   : > { %12203 = vmatpush3.bf16.xpose.msra.mxu1 %v5829_v11  ;;  %12233 = vmatpush3.bf16.msra.mxu0 %v16552_v48 }
0x13fc   : > { %12234 = vmatprep.subr.bf16.mxu0 %v16556_v7 }
0x13ff   : > { %12235 = vmatpush3.bf16.msra.mxu0 %v16556_v7 }
0x1402   : > { %12205 = vmatmul.mubr.msk.bf16.vlgmr.msra.gmra.mxu1 %vm1155_vm0, %v16451_v33 }
0x1403   : > { %12208 = vmatprep.mubr.msk.bf16.mxu1 %vm1155_vm0, %v16565_v15 }
0x140a   : > { %12209 = vmatmul.mubr.msk.bf16.gmra.mxu1 %vm1155_vm0, %v16463_v14 }
0x140b   : > { %12212 = vmatprep.mubr.msk.bf16.mxu1 %vm1155_vm0, %v16573_v41 }
0x1412   : > { %12213 = vmatmul.mubr.msk.bf16.gmra.mxu1 %vm1155_vm0, %v16469_v60 }
0x1413   : > { %12216 = vmatprep.mubr.msk.bf16.mxu1 %vm1155_vm0, %v16581_v3 }
0x141a   : > { %12217 = vmatmul.mubr.msk.bf16.gmra.mxu1 %vm1155_vm0, %v16475_v40 }
0x1434   : > { %v16589_v13 = vpop.permute.xlu0 %6268 }
0x1435   : > { %12820 = vmatprep.subr.msk.bf16.mxu0 %vm1155_vm0, %v16589_v13 }
0x1436   : > { %v16741_v37 = vpop.permute.xlu1 %6266 }
0x14c2   : > { %v12206_v29 = vpop.f32.mrf.mxu1 }
0x14c3   : > { %v16599_v36 = vadd.f32 %v16596_v55, %v12206_v29  ;;  %v16649_v29 = vld [vmem:[%s18714_s1 + $0x38] sm:$0xff] }
0x14c4   : > { %v5886_v9 = vpop.f32.mrf.mxu1 }
0x14c5   : > { %5953 = vmax.xlane.f32.xlu0 %v16599_v36  ;;  %v16608_v42 = vadd.f32 %v16605_v17, %v5886_v9 }
0x14c6   : > { %v12207_v30 = vpop.f32.mrf.mxu1 }
0x14c7   : > { %v16616_v63 = vadd.f32 %v16613_v26, %v12207_v30 }
0x14c8   : > { %v5889_v34 = vpop.f32.mrf.mxu1 }
0x14c9   : > { %5955 = vmax.xlane.f32.xlu1 %v16616_v63  ;;  %5949 = vmax.xlane.f32.xlu0 %v16608_v42  ;;  %v16626_v0 = vadd.f32 %v16623_v6, %v5889_v34 }
0x14ca   : > { %v12210_v50 = vpop.f32.mrf.mxu1 }
0x14cb   : > { %v16634_v39 = vadd.f32 %v16631_v12, %v12210_v50  ;;  %v16659_v50 = vld [vmem:[%s18714_s1 + $0x28] sm:$0xff] }
0x14cc   : > { %v5902_v27 = vpop.f32.mrf.mxu1 }
0x14cd   : > { %5951 = vmax.xlane.f32.xlu1 %v16626_v0  ;;  %5961 = vmax.xlane.f32.xlu0 %v16634_v39  ;;  %v16644_v11 = vadd.f32 %v16641_v58, %v5902_v27 }
0x14ce   : > { %v12211_v19 = vpop.f32.mrf.mxu1 }
0x14cf   : > { %v16652_v9 = vadd.f32 %v16649_v29, %v12211_v19 }
0x14d0   : > { %v5905_v30 = vpop.f32.mrf.mxu1 }
0x14d1   : > { %5963 = vmax.xlane.f32.xlu1 %v16652_v9  ;;  %5957 = vmax.xlane.f32.xlu0 %v16644_v11  ;;  %v16662_v27 = vadd.f32 %v16659_v50, %v5905_v30 }
0x14d2   : > { %v12214_v34 = vpop.f32.mrf.mxu1 }
0x14d3   : > { %v16670_v19 = vadd.f32 %v16667_v21, %v12214_v34 }
0x14d4   : > { %v5918_v10 = vpop.f32.mrf.mxu1 }
0x14d5   : > { %5959 = vmax.xlane.f32.xlu1 %v16662_v27  ;;  %5969 = vmax.xlane.f32.xlu0 %v16670_v19  ;;  %v16680_v30 = vadd.f32 %v16677_v23, %v5918_v10 }
0x14d6   : > { %v12215_v47 = vpop.f32.mrf.mxu1 }
0x14d7   : > { %v16688_v34 = vadd.f32 %v16685_v57, %v12215_v47 }
0x14d8   : > { %v5921_v22 = vpop.f32.mrf.mxu1 }
0x14d9   : > { %5971 = vmax.xlane.f32.xlu1 %v16688_v34  ;;  %5965 = vmax.xlane.f32.xlu0 %v16680_v30  ;;  %v16698_v10 = vadd.f32 %v16695_v51, %v5921_v22 }
0x14da   : > { %v12218_v4 = vpop.f32.mrf.mxu1 }
0x14db   : > { %v16706_v47 = vadd.f32 %v16703_v45, %v12218_v4 }
0x14dc   : > { %v5934_v35 = vpop.f32.mrf.mxu1 }
0x14dd   : > { %5967 = vmax.xlane.f32.xlu1 %v16698_v10  ;;  %5977 = vmax.xlane.f32.xlu0 %v16706_v47  ;;  %v16716_v22 = vadd.f32 %v16713_v46, %v5934_v35  ;;  %v16735_v35 = vld [vmem:[%s18714_s1 + $0x68] sm:$0xff] }
0x14de   : > { %v12219_v4 = vpop.f32.mrf.mxu1  ;;  %18976 = vst [vmem:[#allocation15_spill] sm:$0xff] %v16735_v35 }
0x14df   : > { %v16729_v61 = vadd.f32 %v16726_v25, %v12219_v4 }
0x14e0   : > { %v5937_v49 = vpop.f32.mrf.mxu1 }
0x14e1   : > { %5973 = vmax.xlane.f32.xlu0 %v16716_v22  ;;  %v16738_v44 = vadd.f32 %v16735_v35, %v5937_v49 }
0x14ee   : > { %6262 = vrot.lane.b32.xlu1 %v16499_v52, %s13803_s28 }
0x14f7   : > { %6264 = vrot.lane.b32.xlu0 %v16493_v16, %s13803_s28 }
0x1512   : > { %5979 = vmax.xlane.f32.xlu1 %v16729_v61 }
0x1516   : > { %5975 = vmax.xlane.f32.xlu1 %v16738_v44 }
0x154e   : > { %v5954_v31 = vpop.xlane.xlu0 %5953 }
0x154f   : > { %v5983_v54 = vsub.f32 %v16599_v36, %v5954_v31 }
0x1551   : > { %v6001_v4 = vmul.f32 1.442695, %v5983_v54 }
0x1552   : > { %v5956_v59 = vpop.xlane.xlu1 %5955  ;;  %v5950_v62 = vpop.xlane.xlu0 %5949 }
0x1553   : > { %13407 = vpow2.f32 %v6001_v4  ;;  %v5984_v16 = vsub.f32 %v16616_v63, %v5956_v59  ;;  %v5981_v20 = vsub.f32 %v16608_v42, %v5950_v62 }
0x1555   : > { %v6003_v25 = vmul.f32 1.442695, %v5984_v16  ;;  %v5997_v46 = vmul.f32 1.442695, %v5981_v20 }
0x1556   : > { %v5952_v45 = vpop.xlane.xlu1 %5951  ;;  %v5962_v59 = vpop.xlane.xlu0 %5961 }
0x1557   : > { %13409 = vpow2.f32 %v6003_v25  ;;  %v5982_v49 = vsub.f32 %v16626_v0, %v5952_v45  ;;  %v5987_v16 = vsub.f32 %v16634_v39, %v5962_v59 }
0x1558   : > { %13411 = vpow2.f32 %v5997_v46 }
0x1559   : > { %v5999_v35 = vmul.f32 1.442695, %v5982_v49  ;;  %v6009_v0 = vmul.f32 1.442695, %v5987_v16 }
0x155a   : > { %v5958_v25 = vpop.xlane.xlu0 %5957  ;;  %v5964_v45 = vpop.xlane.xlu1 %5963 }
0x155b   : > { %13413 = vpow2.f32 %v5999_v35  ;;  %v5985_v42 = vsub.f32 %v16644_v11, %v5958_v25  ;;  %v5988_v49 = vsub.f32 %v16652_v9, %v5964_v45 }
0x155c   : > { %13415 = vpow2.f32 %v6009_v0 }
0x155d   : > { %v6005_v21 = vmul.f32 1.442695, %v5985_v42  ;;  %v6011_v12 = vmul.f32 1.442695, %v5988_v49 }
0x155e   : > { %v5970_v46 = vpop.xlane.xlu0 %5969  ;;  %v5960_v36 = vpop.xlane.xlu1 %5959 }
0x155f   : > { %v5986_v35 = vsub.f32 %v16662_v27, %v5960_v36  ;;  %13417 = vpow2.f32 %v6005_v21  ;;  %v5991_v39 = vsub.f32 %v16670_v19, %v5970_v46 }
0x1560   : > { %v16747_v23 = vpop.eup %13407 }
0x1561   : > { %6033 = vadd.xlane.f32.xlu0 %v16747_v23  ;;  %v6017_v27 = vmul.f32 1.442695, %v5991_v39 }
0x1562   : > { %v5966_v20 = vpop.xlane.xlu0 %5965  ;;  %v5972_v4 = vpop.xlane.xlu1 %5971 }
0x1563   : > { %v5989_v16 = vsub.f32 %v16680_v30, %v5966_v20  ;;  %v5992_v45 = vsub.f32 %v16688_v34, %v5972_v4 }
0x1564   : > { %v16750_v54 = vpop.eup %13409 }
0x1565   : > { %v16752_v31 = vpop.eup %13411  ;;  %6035 = vadd.xlane.f32.xlu1 %v16750_v54 }
0x1566   : > { %6029 = vadd.xlane.f32.xlu0 %v16752_v31  ;;  %v5978_v63 = vpop.xlane.xlu0 %5977  ;;  %v5968_v59 = vpop.xlane.xlu1 %5967 }
0x1567   : > { %v5995_v58 = vsub.f32 %v16706_v47, %v5978_v63  ;;  %v6013_v47 = vmul.f32 1.442695, %v5989_v16 }
0x1568   : > { %v16756_v62 = vpop.eup %13413 }
0x1569   : > { %6031 = vadd.xlane.f32.xlu1 %v16756_v62  ;;  %v6025_v11 = vmul.f32 1.442695, %v5995_v58  ;;  %v16774_v21 = vpop.eup %13415 }
0x156a   : > { %v16772_v36 = vpop.permute.xlu1 %6262 }
0x156c   : > { %v16779_v19 = vpop.eup %13417 }
0x157a   : > { %6258 = vrot.lane.b32.xlu1 %v16513_v53, %s13803_s28  ;;  %v6007_v53 = vmul.f32 1.442695, %v5986_v35 }
0x157c   : > { %6260 = vrot.lane.b32.xlu0 %v16505_v38, %s13803_s28  ;;  %v5974_v38 = vpop.xlane.xlu0 %5973  ;;  %13419 = vpow2.f32 %v6007_v53  ;;  %v6019_v53 = vmul.f32 1.442695, %v5992_v45 }
0x157d   : > { %v5993_v25 = vsub.f32 %v16716_v22, %v5974_v38  ;;  %13421 = vpow2.f32 %v6011_v12  ;;  %v5990_v38 = vsub.f32 %v16698_v10, %v5968_v59 }
0x157e   : > { %13423 = vpow2.f32 %v6025_v11 }
0x157f   : > { %v6021_v9 = vmul.f32 1.442695, %v5993_v25  ;;  %13425 = vpow2.f32 %v6017_v27  ;;  %v6015_v46 = vmul.f32 1.442695, %v5990_v38 }
0x1580   : > { %v6265_v59 = vpop.permute.xlu0 %6264 }
0x1581   : > { %13427 = vpow2.f32 %v6021_v9 }
0x1582   : > { %13429 = vpow2.f32 %v6013_v47 }
0x1583   : > { %13431 = vpow2.f32 %v6019_v53 }
0x1589   : > { %v16781_v30 = vpop.eup %13419 }
0x158a   : > { %v16786_v42 = vpop.eup %13421 }
0x158b   : > { %v16788_v10 = vpop.eup %13423 }
0x158c   : > { %v16792_v63 = vpop.eup %13425 }
0x158e   : > { %v16794_v0 = vpop.eup %13427 }
0x159b   : > { %6041 = vadd.xlane.f32.xlu0 %v16774_v21  ;;  %v5980_v58 = vpop.xlane.xlu1 %5979 }
0x159c   : > { %v5996_v12 = vsub.f32 %v16729_v61, %v5980_v58 }
0x159e   : > { %v6027_v34 = vmul.f32 1.442695, %v5996_v12  ;;  %6037 = vadd.xlane.f32.xlu1 %v16779_v19 }
0x159f   : > { %6039 = vadd.xlane.f32.xlu0 %v16781_v30  ;;  %v5976_v22 = vpop.xlane.xlu1 %5975 }
0x15a0   : > { %13433 = vpow2.f32 %v6027_v34  ;;  %v5994_v20 = vsub.f32 %v16738_v44, %v5976_v22  ;;  %v16798_v44 = vpop.eup %13429 }
0x15a1   : > { %13435 = vpow2.f32 %v6015_v46  ;;  %v16801_v35 = vpop.eup %13431 }
0x15a2   : > { %6043 = vadd.xlane.f32.xlu1 %v16786_v42  ;;  %v6023_v61 = vmul.f32 1.442695, %v5994_v20  ;;  %v6316_v20 = vsel %vm1155_vm0, %v16589_v13, 0 }
0x15a3   : > { %6057 = vadd.xlane.f32.xlu0 %v16788_v10 }
0x15a4   : > { %13437 = vpow2.f32 %v6023_v61 }
0x15a6   : > { %6049 = vadd.xlane.f32.xlu1 %v16792_v63 }
0x15a7   : > { %6053 = vadd.xlane.f32.xlu0 %v16794_v0 }
0x15aa   : > { %6045 = vadd.xlane.f32.xlu1 %v16798_v44 }
0x15ad   : > { %v16803_v4 = vpop.eup %13433 }
0x15ae   : > { %6051 = vadd.xlane.f32.xlu1 %v16801_v35  ;;  %6059 = vadd.xlane.f32.xlu0 %v16803_v4  ;;  %v16807_v49 = vpop.eup %13435 }
0x15b1   : > { %v16810_v39 = vpop.eup %13437 }
0x15b2   : > { %6047 = vadd.xlane.f32.xlu1 %v16807_v49 }
0x15b6   : > { %6055 = vadd.xlane.f32.xlu1 %v16810_v39 }
0x15c4   : > { %6256 = vrot.lane.b32.xlu0 %v16453_v2, %s13803_s28 }
0x15c7   : > { %6254 = vrot.lane.b32.xlu1 %v16542_v24, %s13803_s28 }
0x15c8   : > { %6230 = vrot.lane.b32.xlu0 %v16457_v18, %s13803_s28 }
0x15cb   : > { %6232 = vrot.lane.b32.xlu1 %v16451_v33, %s13803_s28 }
0x15cc   : > { %6234 = vrot.lane.b32.xlu0 %v16565_v15, %s13803_s28 }
0x15cf   : > { %6236 = vrot.lane.b32.xlu1 %v16463_v14, %s13803_s28 }
0x15d0   : > { %6238 = vrot.lane.b32.xlu0 %v16573_v41, %s13803_s28 }
0x15d3   : > { %6240 = vrot.lane.b32.xlu1 %v16469_v60, %s13803_s28 }
0x15d4   : > { %6242 = vrot.lane.b32.xlu0 %v16581_v3, %s13803_s28 }
0x15d7   : > { %6244 = vrot.lane.b32.xlu1 %v16475_v40, %s13803_s28 }
0x15d8   : > { %6605 = vrot.lane.b32.xlu0 %v16511_v1, %s13803_s28 }
0x15db   : > { %6603 = vrot.lane.b32.xlu1 %v16515_v32, %s13803_s28 }
0x15dc   : > { %6601 = vrot.lane.b32.xlu0 %v16524_v5, %s13803_s28 }
0x15df   : > { %6595 = vrot.lane.b32.xlu1 %v16544_v8, %s13803_s28 }
0x15e0   : > { %6599 = vrot.lane.b32.xlu0 %v16528_v56, %s13803_s28 }
0x15e3   : > { %6591 = vrot.lane.b32.xlu1 %v16556_v7, %s13803_s28 }
0x15e4   : > { %6597 = vrot.lane.b32.xlu0 %v16536_v43, %s13803_s28 }
0x15ea   : > { %v6034_v11 = vpop.xlane.xlu0 %6033 }
0x15ee   : > { %v6036_v25 = vpop.xlane.xlu1 %6035 }
0x15ef   : > { %v6030_v27 = vpop.xlane.xlu0 %6029  ;;  %13439 = vrcp.f32 %v6036_v25 }
0x15f0   : > { %13441 = vrcp.f32 %v6030_v27 }
0x15f1   : > { %13443 = vrcp.f32 %v6034_v11 }
0x15f2   : > { %v6032_v16 = vpop.xlane.xlu1 %6031 }
0x15f3   : > { %13445 = vrcp.f32 %v6032_v16  ;;  %v6261_v13 = vpop.permute.xlu0 %6260 }
0x15fc   : > { %v13440_v9 = vpop.eup %13439 }
0x15fd   : > { %v13442_v45 = vpop.eup %13441  ;;  %v6096_v58 = vmul.f32 %v13440_v9, %v16750_v54  ;;  %v6313_v54 = vsel %vm1155_vm0, %v16741_v37, 0 }
0x15fe   : > { %v13444_v47 = vpop.eup %13443  ;;  %v6093_v38 = vmul.f32 %v13442_v45, %v16752_v31  ;;  %v6310_v31 = vsel %vm1155_vm0, %v6265_v59, 0 }
0x15ff   : > { %v6095_v34 = vmul.f32 %v13444_v47, %v16747_v23  ;;  %v6307_v23 = vsel %vm1155_vm0, %v16772_v36, 0 }
0x1600   : > { %v13446_v53 = vpop.eup %13445 }
0x1601   : > { %v6094_v12 = vmul.f32 %v13446_v53, %v16756_v62  ;;  %v6110_v46 = vpack.c.bf16 %v6096_v58, %v6095_v34  ;;  %v6259_v62 = vpop.permute.xlu1 %6258 }
0x1603   : > { %v6109_v22 = vpack.c.bf16 %v6094_v12, %v6093_v38 }
0x1605   : > { %12236 = vmatprep.mubr.bf16.mxu0 %v6109_v22 }
0x1606   : > { %12237 = vmatmul.mubr.bf16.vlgmr.msra.gmra.mxu0 %v6110_v46 }
0x1607   : > { %12253 = vmatpush3.bf16.xpose.msra.mxu0 %v6316_v20 }
0x1608   : > { %12821 = vmatprep.subr.msk.bf16.mxu0 %vm1155_vm0, %v16741_v37  ;;  %v6304_v37 = vsel %vm1155_vm0, %v6261_v13, 0 }
0x160f   : > { %12255 = vmatpush3.bf16.xpose.msra.mxu0 %v6313_v54 }
0x1610   : > { %12822 = vmatprep.subr.msk.bf16.mxu0 %vm1155_vm0, %v6265_v59 }
0x1617   : > { %12257 = vmatpush3.bf16.xpose.msra.mxu0 %v6310_v31 }
0x1618   : > { %12823 = vmatprep.subr.msk.bf16.mxu0 %vm1155_vm0, %v16772_v36  ;;  %v6301_v36 = vsel %vm1155_vm0, %v6259_v62, 0 }
0x161f   : > { %12259 = vmatpush3.bf16.xpose.msra.mxu0 %v6307_v23 }
0x1620   : > { %12824 = vmatprep.subr.msk.bf16.mxu0 %vm1155_vm0, %v6261_v13 }
0x1624   : > { %v6042_v61 = vpop.xlane.xlu0 %6041 }
0x1627   : > { %12261 = vmatpush3.bf16.xpose.msra.mxu0 %v6304_v37  ;;  %v6038_v11 = vpop.xlane.xlu1 %6037 }
0x1628   : > { %13447 = vrcp.f32 %v6038_v11  ;;  %12825 = vmatprep.subr.msk.bf16.mxu0 %vm1155_vm0, %v6259_v62  ;;  %v6040_v59 = vpop.xlane.xlu0 %6039 }
0x1629   : > { %13449 = vrcp.f32 %v6040_v59 }
0x162a   : > { %13451 = vrcp.f32 %v6042_v61 }
0x162b   : > { %v6044_v25 = vpop.xlane.xlu1 %6043 }
0x162c   : > { %13453 = vrcp.f32 %v6044_v25  ;;  %v6058_v27 = vpop.xlane.xlu0 %6057 }
0x162f   : > { %12263 = vmatpush3.bf16.xpose.msra.mxu0 %v6301_v36  ;;  %v6050_v16 = vpop.xlane.xlu1 %6049 }
0x1630   : > { %v6054_v9 = vpop.xlane.xlu0 %6053 }
0x1633   : > { %v6046_v45 = vpop.xlane.xlu1 %6045 }
0x1635   : > { %v13448_v47 = vpop.eup %13447 }
0x1636   : > { %v13450_v53 = vpop.eup %13449  ;;  %v6097_v58 = vmul.f32 %v13448_v47, %v16779_v19 }
0x1637   : > { %v13452_v38 = vpop.eup %13451  ;;  %v6052_v12 = vpop.xlane.xlu1 %6051  ;;  %v6098_v22 = vmul.f32 %v13450_v53, %v16781_v30 }
0x1638   : > { %v6060_v34 = vpop.xlane.xlu0 %6059  ;;  %13455 = vrcp.f32 %v6052_v12  ;;  %v6099_v54 = vmul.f32 %v13452_v38, %v16774_v21 }
0x1639   : > { %v13454_v46 = vpop.eup %13453  ;;  %v6111_v20 = vpack.c.bf16 %v6098_v22, %v6097_v58  ;;  %13457 = vrcp.f32 %v6046_v45 }
0x163a   : > { %v6100_v31 = vmul.f32 %v13454_v46, %v16786_v42  ;;  %13459 = vrcp.f32 %v6050_v16 }
0x163b   : > { %12240 = vmatprep.mubr.bf16.mxu0 %v6111_v20  ;;  %v6048_v23 = vpop.xlane.xlu1 %6047 }
0x163c   : > { %v6257_v13 = vpop.permute.xlu0 %6256  ;;  %13461 = vrcp.f32 %v6048_v23  ;;  %v6112_v62 = vpack.c.bf16 %v6100_v31, %v6099_v54 }
0x163d   : > { %12826 = vmatprep.subr.msk.bf16.mxu0 %vm1155_vm0, %v6257_v13  ;;  %v6298_v19 = vsel %vm1155_vm0, %v6257_v13, 0  ;;  %13463 = vrcp.f32 %v6054_v9 }
0x163e   : > { %12265 = vmatpush3.bf16.xpose.msra.mxu0 %v6298_v19 }
0x163f   : > { %12241 = vmatmul.mubr.bf16.gmra.mxu0 %v6112_v62  ;;  %v6056_v30 = vpop.xlane.xlu1 %6055 }
0x1640   : > { %v6231_v61 = vpop.permute.xlu0 %6230  ;;  %13465 = vrcp.f32 %v6056_v30 }
0x1641   : > { %13467 = vrcp.f32 %v6060_v34 }
0x1642   : > { %13469 = vrcp.f32 %v6058_v27 }
0x1643   : > { %v6255_v21 = vpop.permute.xlu1 %6254 }
0x1644   : > { %v6235_v42 = vpop.permute.xlu0 %6234  ;;  %12827 = vmatprep.subr.msk.bf16.mxu0 %vm1155_vm0, %v6255_v21  ;;  %v6295_v37 = vsel %vm1155_vm0, %v6255_v21, 0 }
0x1645   : > { %v13456_v11 = vpop.eup %13455 }
0x1646   : > { %12267 = vmatpush3.bf16.xpose.msra.mxu0 %v6295_v37  ;;  %v13458_v59 = vpop.eup %13457  ;;  %v6104_v9 = vmul.f32 %v13456_v11, %v16801_v35 }
0x1647   : > { %v6233_v25 = vpop.permute.xlu1 %6232  ;;  %v13460_v16 = vpop.eup %13459  ;;  %v6101_v47 = vmul.f32 %v13458_v59, %v16798_v44 }
0x1648   : > { %v6239_v36 = vpop.permute.xlu0 %6238  ;;  %v6103_v12 = vmul.f32 %v13460_v16, %v16792_v63 }
0x1649   : > { %v13462_v45 = vpop.eup %13461 }
0x164a   : > { %v6102_v53 = vmul.f32 %v13462_v45, %v16807_v49  ;;  %v13464_v27 = vpop.eup %13463  ;;  %v6114_v46 = vpack.c.bf16 %v6104_v9, %v6103_v12 }
0x164b   : > { %v6237_v58 = vpop.permute.xlu1 %6236  ;;  %v6105_v54 = vmul.f32 %v13464_v27, %v16794_v0 }
0x164c   : > { %v6243_v38 = vpop.permute.xlu0 %6242  ;;  %v6113_v34 = vpack.c.bf16 %v6102_v53, %v6101_v47 }
0x164d   : > { %v13466_v22 = vpop.eup %13465 }
0x164e   : > { %v13468_v20 = vpop.eup %13467  ;;  %12244 = vmatprep.mubr.bf16.mxu0 %v6113_v34  ;;  %v6106_v31 = vmul.f32 %v13466_v22, %v16810_v39 }
0x164f   : > { %v6241_v23 = vpop.permute.xlu1 %6240  ;;  %12245 = vmatmul.mubr.bf16.gmra.mxu0 %v6114_v46  ;;  %v13470_v44 = vpop.eup %13469  ;;  %v6108_v13 = vmul.f32 %v13468_v20, %v16803_v4 }
0x1650   : > { %v6606_v35 = vpop.permute.xlu0 %6605  ;;  %v6115_v49 = vpack.c.bf16 %v6106_v31, %v6105_v54  ;;  %v6107_v19 = vmul.f32 %v13470_v44, %v16788_v10 }
0x1651   : > { %12284 = vmatprep.subr.bf16.mxu1 %v6606_v35 }
0x1652   : > { %12285 = vmatpush3.bf16.msra.mxu1 %v6606_v35  ;;  %12248 = vmatprep.mubr.bf16.mxu0 %v6115_v49  ;;  %v6116_v30 = vpack.c.bf16 %v6108_v13, %v6107_v19 }
0x1653   : > { %v6245_v63 = vpop.permute.xlu1 %6244 }
0x1654   : > { %v6602_v62 = vpop.permute.xlu0 %6601 }
0x1657   : > { %v6604_v21 = vpop.permute.xlu1 %6603  ;;  %12249 = vmatmul.mubr.bf16.gmra.mxu0 %v6116_v30 }
0x1658   : > { %12268 = vmatprep.mubr.msk.bf16.mxu0 %vm1155_vm0, %v6231_v61  ;;  %12286 = vmatprep.subr.bf16.mxu1 %v6604_v21  ;;  %v6600_v0 = vpop.permute.xlu0 %6599 }
0x1659   : > { %12287 = vmatpush3.bf16.msra.mxu1 %v6604_v21 }
0x165a   : > { %12288 = vmatprep.subr.bf16.mxu1 %v6602_v62 }
0x165b   : > { %v6596_v10 = vpop.permute.xlu1 %6595 }
0x165c   : > { %v6598_v4 = vpop.permute.xlu0 %6597 }
0x165d   : > { %12289 = vmatpush3.bf16.msra.mxu1 %v6602_v62 }
0x165e   : > { %12290 = vmatprep.subr.bf16.mxu1 %v6600_v0 }
0x165f   : > { %12269 = vmatmul.mubr.msk.bf16.vlgmr.msra.gmra.mxu0 %vm1155_vm0, %v6233_v25 }
0x1660   : > { %12272 = vmatprep.mubr.msk.bf16.mxu0 %vm1155_vm0, %v6235_v42 }
0x1661   : > { %12291 = vmatpush3.bf16.msra.mxu1 %v6600_v0 }
0x1662   : > { %12292 = vmatprep.subr.bf16.mxu1 %v6598_v4 }
0x1665   : > { %12293 = vmatpush3.bf16.msra.mxu1 %v6598_v4 }
0x1666   : > { %12294 = vmatprep.subr.bf16.mxu1 %v6596_v10 }
0x1667   : > { %12273 = vmatmul.mubr.msk.bf16.gmra.mxu0 %vm1155_vm0, %v6237_v58 }
0x1668   : > { %12276 = vmatprep.mubr.msk.bf16.mxu0 %vm1155_vm0, %v6239_v36 }
0x1669   : > { %12295 = vmatpush3.bf16.msra.mxu1 %v6596_v10  ;;  %v18994_v10 = vld [vmem:[#allocation27_spill] sm:$0xff] }
0x166f   : > { %12277 = vmatmul.mubr.msk.bf16.gmra.mxu0 %vm1155_vm0, %v6241_v23 }
0x1670   : > { %12280 = vmatprep.mubr.msk.bf16.mxu0 %vm1155_vm0, %v6243_v38 }
0x1677   : > { %12281 = vmatmul.mubr.msk.bf16.gmra.mxu0 %vm1155_vm0, %v6245_v63 }
0x16c6   : > { %v16891_v39 = vpop.f32.mrf.mxu0 }
0x16c7   : > { %18977 = vst [vmem:[#allocation10_spill] sm:$0xff] %v16891_v39 }
0x16c8   : > { %v16893_v61 = vpop.f32.mrf.mxu0 }
0x16c9   : > { %18978 = vst [vmem:[#allocation13_spill] sm:$0xff] %v16893_v61 }
0x16ca   : > { %v16895_v42 = vpop.f32.mrf.mxu0 }
0x16cb   : > { %18979 = vst [vmem:[#allocation11_spill] sm:$0xff] %v16895_v42 }
0x16cc   : > { %v16899_v11 = vpop.f32.mrf.mxu0 }
0x16cd   : > { %18980 = vst [vmem:[#allocation9_spill] sm:$0xff] %v16899_v11 }
0x16ff   : > { %v16901_v59 = vpop.f32.mrf.mxu0 }
0x1700   : > { %18981 = vst [vmem:[#allocation39_spill] sm:$0xff] %v16901_v59 }
0x1701   : > { %v16903_v25 = vpop.f32.mrf.mxu0 }
0x1702   : > { %18982 = vst [vmem:[#allocation40_spill] sm:$0xff] %v16903_v25 }
0x1703   : > { %v16905_v36 = vpop.f32.mrf.mxu0 }
0x1704   : > { %18983 = vst [vmem:[#allocation41_spill] sm:$0xff] %v16905_v36 }
0x1705   : > { %v16909_v45 = vpop.f32.mrf.mxu0 }
0x1706   : > { %18984 = vst [vmem:[#allocation42_spill] sm:$0xff] %v16909_v45 }
0x170f   : > { %v16911_v9 = vpop.f32.mrf.mxu0 }
0x1710   : > { %18985 = vst [vmem:[#allocation43_spill] sm:$0xff] %v16911_v9 }
0x1711   : > { %v16913_v47 = vpop.f32.mrf.mxu0 }
0x1712   : > { %18986 = vst [vmem:[#allocation44_spill] sm:$0xff] %v16913_v47 }
0x1713   : > { %v16915_v53 = vpop.f32.mrf.mxu0 }
0x1714   : > { %18987 = vst [vmem:[#allocation45_spill] sm:$0xff] %v16915_v53 }
0x1715   : > { %v16919_v58 = vpop.f32.mrf.mxu0 }
0x1716   : > { %18988 = vst [vmem:[#allocation46_spill] sm:$0xff] %v16919_v58 }
0x1717   : > { %v16921_v38 = vpop.f32.mrf.mxu0 }
0x1718   : > { %18989 = vst [vmem:[#allocation47_spill] sm:$0xff] %v16921_v38 }
0x1719   : > { %v16923_v12 = vpop.f32.mrf.mxu0 }
0x171a   : > { %18990 = vst [vmem:[#allocation48_spill] sm:$0xff] %v16923_v12 }
0x171b   : > { %v16925_v34 = vpop.f32.mrf.mxu0 }
0x171c   : > { %18991 = vst [vmem:[#allocation49_spill] sm:$0xff] %v16925_v34 }
0x171d   : > { %v16929_v46 = vpop.f32.mrf.mxu0 }
0x171e   : > { %18992 = vst [vmem:[#allocation50_spill] sm:$0xff] %v16929_v46 }
0x171f   : > { %v12270_v20 = vpop.f32.mrf.mxu0 }
0x1720   : > { %v6361_v54 = vadd.f32 %v16596_v55, %v12270_v20 }
0x1721   : > { %v6352_v31 = vpop.f32.mrf.mxu0 }
0x1722   : > { %6419 = vmax.xlane.f32.xlu0 %v6361_v54  ;;  %v6353_v35 = vadd.f32 %v16605_v17, %v6352_v31 }
0x1723   : > { %v12271_v23 = vpop.f32.mrf.mxu0 }
0x1724   : > { %v6364_v63 = vadd.f32 %v16613_v26, %v12271_v23 }
0x1725   : > { %v6355_v44 = vpop.f32.mrf.mxu0 }
0x1726   : > { %v6356_v49 = vadd.f32 %v16623_v6, %v6355_v44  ;;  %6415 = vmax.xlane.f32.xlu0 %v6353_v35  ;;  %v18996_v44 = vld [vmem:[#allocation34_spill] sm:$0xff] }
0x1727   : > { %v12274_v13 = vpop.f32.mrf.mxu0 }
0x1728   : > { %6417 = vmax.xlane.f32.xlu1 %v6356_v49 }
0x1729   : > { %v6368_v19 = vpop.f32.mrf.mxu0 }
0x172a   : > { %6421 = vmax.xlane.f32.xlu0 %v6364_v63  ;;  %v16959_v20 = vadd.f32 %v18994_v10, %v6368_v19  ;;  %v18998_v19 = vld [vmem:[#allocation31_spill] sm:$0xff] }
0x172b   : > { %v12275_v62 = vpop.f32.mrf.mxu0 }
0x172c   : > { %v16936_v30 = vadd.f32 %v16649_v29, %v12275_v62 }
0x172d   : > { %v6371_v55 = vpop.f32.mrf.mxu0 }
0x172e   : > { %6429 = vmax.xlane.f32.xlu1 %v16936_v30  ;;  %v16940_v17 = vadd.f32 %v16659_v50, %v6371_v55  ;;  %v18993_v50 = vld [vmem:[#allocation29_spill] sm:$0xff] }
0x172f   : > { %v12278_v21 = vpop.f32.mrf.mxu0 }
0x1731   : > { %v6384_v0 = vpop.f32.mrf.mxu0 }
0x1732   : > { %6425 = vmax.xlane.f32.xlu1 %v16940_v17  ;;  %v16967_v62 = vadd.f32 %v18996_v44, %v6384_v0  ;;  %v19000_v0 = vld [vmem:[#allocation15_spill] sm:$0xff] }
0x1733   : > { %v12279_v6 = vpop.f32.mrf.mxu0 }
0x1734   : > { %v16944_v26 = vadd.f32 %v16685_v57, %v12279_v6  ;;  %v6377_v57 = vadd.f32 %v18993_v50, %v12274_v13  ;;  %v18997_v6 = vld [vmem:[#allocation33_spill] sm:$0xff] }
0x1735   : > { %v6387_v4 = vpop.f32.mrf.mxu0 }
0x1736   : > { %6437 = vmax.xlane.f32.xlu1 %v16944_v26  ;;  %v16948_v29 = vadd.f32 %v16695_v51, %v6387_v4  ;;  %v18995_v51 = vld [vmem:[#allocation32_spill] sm:$0xff] }
0x1737   : > { %v16963_v31 = vadd.f32 %v18995_v51, %v12278_v21  ;;  %v12282_v23 = vpop.f32.mrf.mxu0  ;;  %v18999_v21 = vld [vmem:[#allocation17_spill] sm:$0xff] }
0x1738   : > { %v16971_v13 = vadd.f32 %v18997_v6, %v12282_v23  ;;  %v19001_v23 = vld [vmem:[#allocation24_spill] sm:$0xff]  ;;  %v19002_v6 = vld [vmem:[#allocation26_spill] sm:$0xff] }
0x1739   : > { %v6400_v55 = vpop.f32.mrf.mxu0 }
0x173a   : > { %6433 = vmax.xlane.f32.xlu1 %v16948_v29  ;;  %v16975_v50 = vadd.f32 %v18998_v19, %v6400_v55  ;;  %v19003_v55 = vld [vmem:[#allocation25_spill] sm:$0xff] }
0x173b   : > { %v12283_v4 = vpop.f32.mrf.mxu0 }
0x173c   : > { %v16978_v10 = vadd.f32 %v18999_v21, %v12283_v4  ;;  %v6592_v21 = vpop.permute.xlu1 %6591 }
0x173d   : > { %v6403_v51 = vpop.f32.mrf.mxu0 }
0x173e   : > { %v16983_v44 = vadd.f32 %v19000_v0, %v6403_v51 }
0x1740   : > { %6593 = vrot.lane.b32.xlu0 %v16552_v48, %s13803_s28 }
0x174b   : > { %6748 = vrot.lane.b32.xlu1 %v16481_v28, %s13804_s14 }
0x174f   : > { %6744 = vrot.lane.b32.xlu1 %v16499_v52, %s13804_s14 }
0x175f   : > { %6427 = vmax.xlane.f32.xlu0 %v6377_v57 }
0x1763   : > { %6423 = vmax.xlane.f32.xlu0 %v16959_v20 }
0x1767   : > { %6435 = vmax.xlane.f32.xlu0 %v16963_v31 }
0x176b   : > { %6431 = vmax.xlane.f32.xlu0 %v16967_v62 }
0x176f   : > { %6443 = vmax.xlane.f32.xlu0 %v16971_v13 }
0x1773   : > { %6445 = vmax.xlane.f32.xlu1 %v16978_v10  ;;  %6439 = vmax.xlane.f32.xlu0 %v16975_v50 }
0x1777   : > { %6441 = vmax.xlane.f32.xlu1 %v16983_v44 }
0x1789   : > { %6750 = vrot.lane.b32.xlu0 %v19001_v23, %s13804_s14 }
0x178d   : > { %6746 = vrot.lane.b32.xlu0 %v19002_v6, %s13804_s14 }
0x1791   : > { %6742 = vrot.lane.b32.xlu0 %v19003_v55, %s13804_s14 }
0x17ab   : > { %v6420_v4 = vpop.xlane.xlu0 %6419 }
0x17ac   : > { %v6449_v19 = vsub.f32 %v6361_v54, %v6420_v4 }
0x17ae   : > { %v6467_v22 = vmul.f32 1.442695, %v6449_v19 }
0x17af   : > { %v6416_v27 = vpop.xlane.xlu0 %6415 }
0x17b0   : > { %13471 = vpow2.f32 %v6467_v22  ;;  %v6447_v16 = vsub.f32 %v6353_v35, %v6416_v27 }
0x17b1   : > { %v6418_v51 = vpop.xlane.xlu1 %6417 }
0x17b2   : > { %v6463_v0 = vmul.f32 1.442695, %v6447_v16  ;;  %v6448_v38 = vsub.f32 %v6356_v49, %v6418_v51 }
0x17b3   : > { %v6422_v37 = vpop.xlane.xlu0 %6421 }
0x17b4   : > { %13473 = vpow2.f32 %v6463_v0  ;;  %v6450_v34 = vsub.f32 %v6364_v63, %v6422_v37  ;;  %v6465_v9 = vmul.f32 1.442695, %v6448_v38 }
0x17b6   : > { %v6469_v46 = vmul.f32 1.442695, %v6450_v34 }
0x17b7   : > { %v6594_v12 = vpop.permute.xlu0 %6593  ;;  %v6430_v38 = vpop.xlane.xlu1 %6429 }
0x17b8   : > { %13475 = vpow2.f32 %v6469_v46  ;;  %12296 = vmatprep.subr.bf16.mxu1 %v6594_v12  ;;  %v6454_v63 = vsub.f32 %v16936_v30, %v6430_v38 }
0x17b9   : > { %12297 = vmatpush3.bf16.msra.mxu1 %v6594_v12  ;;  %13477 = vpow2.f32 %v6465_v9  ;;  %v19004_v9 = vld [vmem:[#allocation23_spill] sm:$0xff] }
0x17ba   : > { %12298 = vmatprep.subr.bf16.mxu1 %v6592_v21  ;;  %v6477_v53 = vmul.f32 1.442695, %v6454_v63 }
0x17bb   : > { %v6426_v12 = vpop.xlane.xlu1 %6425 }
0x17bc   : > { %v6452_v22 = vsub.f32 %v16940_v17, %v6426_v12 }
0x17bd   : > { %v16992_v54 = vpop.eup %13471  ;;  %12299 = vmatpush3.bf16.msra.mxu1 %v6592_v21 }
0x17be   : > { %6499 = vadd.xlane.f32.xlu1 %v16992_v54  ;;  %v6473_v4 = vmul.f32 1.442695, %v6452_v22 }
0x17bf   : > { %v6438_v34 = vpop.xlane.xlu1 %6437 }
0x17c1   : > { %v16995_v27 = vpop.eup %13473 }
0x17c2   : > { %6495 = vadd.xlane.f32.xlu1 %v16995_v27 }
0x17c3   : > { %v6434_v19 = vpop.xlane.xlu1 %6433 }
0x17c5   : > { %v16998_v16 = vpop.eup %13475 }
0x17c6   : > { %6501 = vadd.xlane.f32.xlu1 %v16998_v16  ;;  %v17001_v37 = vpop.eup %13477 }
0x17c7   : > { %v17010_v59 = vpop.permute.xlu1 %6748 }
0x17ca   : > { %6497 = vadd.xlane.f32.xlu1 %v17001_v37 }
0x17db   : > { %6740 = vrot.lane.b32.xlu1 %v19004_v9, %s13804_s14 }
0x17e8   : > { %v6428_v46 = vpop.xlane.xlu0 %6427 }
0x17e9   : > { %v6453_v35 = vsub.f32 %v6377_v57, %v6428_v46  ;;  %v6458_v57 = vsub.f32 %v16944_v26, %v6438_v34 }
0x17eb   : > { %v6475_v49 = vmul.f32 1.442695, %v6453_v35  ;;  %v6485_v22 = vmul.f32 1.442695, %v6458_v57  ;;  %v6456_v35 = vsub.f32 %v16948_v29, %v6434_v19 }
0x17ec   : > { %v6424_v21 = vpop.xlane.xlu0 %6423 }
0x17ed   : > { %13479 = vpow2.f32 %v6475_v49  ;;  %v6451_v51 = vsub.f32 %v16959_v20, %v6424_v21  ;;  %v17014_v20 = vpop.permute.xlu1 %6744 }
0x17ee   : > { %13481 = vpow2.f32 %v6473_v4 }
0x17ef   : > { %v6471_v0 = vmul.f32 1.442695, %v6451_v51 }
0x17f0   : > { %v6436_v58 = vpop.xlane.xlu0 %6435 }
0x17f1   : > { %13483 = vpow2.f32 %v6471_v0  ;;  %v6457_v47 = vsub.f32 %v16963_v31, %v6436_v58 }
0x17f2   : > { %13485 = vpow2.f32 %v6477_v53 }
0x17f3   : > { %v6483_v17 = vmul.f32 1.442695, %v6457_v47 }
0x17f4   : > { %v6432_v30 = vpop.xlane.xlu0 %6431 }
0x17f5   : > { %13487 = vpow2.f32 %v6483_v17  ;;  %v6455_v38 = vsub.f32 %v16967_v62, %v6432_v30  ;;  %v6481_v62 = vmul.f32 1.442695, %v6456_v35 }
0x17f7   : > { %v6479_v12 = vmul.f32 1.442695, %v6455_v38 }
0x17f8   : > { %v6444_v46 = vpop.xlane.xlu0 %6443 }
0x17f9   : > { %13489 = vpow2.f32 %v6479_v12  ;;  %v6461_v58 = vsub.f32 %v16971_v13, %v6444_v46 }
0x17fa   : > { %v17018_v31 = vpop.eup %13479  ;;  %13491 = vpow2.f32 %v6485_v22 }
0x17fb   : > { %v6491_v47 = vmul.f32 1.442695, %v6461_v58  ;;  %6507 = vadd.xlane.f32.xlu0 %v17018_v31  ;;  %v17021_v34 = vpop.eup %13481 }
0x17fc   : > { %v6446_v53 = vpop.xlane.xlu1 %6445  ;;  %v6440_v26 = vpop.xlane.xlu0 %6439 }
0x17fd   : > { %13493 = vpow2.f32 %v6491_v47  ;;  %v6459_v49 = vsub.f32 %v16975_v50, %v6440_v26  ;;  %v6462_v29 = vsub.f32 %v16978_v10, %v6446_v53 }
0x17fe   : > { %v17024_v63 = vpop.eup %13483  ;;  %13495 = vpow2.f32 %v6481_v62 }
0x17ff   : > { %v6487_v4 = vmul.f32 1.442695, %v6459_v49  ;;  %6505 = vadd.xlane.f32.xlu1 %v17021_v34  ;;  %6503 = vadd.xlane.f32.xlu0 %v17024_v63  ;;  %v17031_v21 = vpop.eup %13485  ;;  %v6493_v0 = vmul.f32 1.442695, %v6462_v29 }
0x1800   : > { %v6442_v13 = vpop.xlane.xlu1 %6441  ;;  %v17029_v19 = vpop.permute.xlu0 %6750 }
0x1801   : > { %v6460_v51 = vsub.f32 %v16983_v44, %v6442_v13  ;;  %12828 = vmatprep.subr.msk.bf16.mxu1 %vm1155_vm0, %v17029_v19  ;;  %13497 = vpow2.f32 %v6487_v4 }
0x1802   : > { %v17036_v50 = vpop.eup %13487 }
0x1803   : > { %v6489_v10 = vmul.f32 1.442695, %v6460_v51  ;;  %6509 = vadd.xlane.f32.xlu0 %v17031_v21  ;;  %6515 = vadd.xlane.f32.xlu1 %v17036_v50 }
0x1805   : > { %13499 = vpow2.f32 %v6489_v10 }
0x1806   : > { %v17040_v17 = vpop.eup %13489  ;;  %13501 = vpow2.f32 %v6493_v0 }
0x1807   : > { %6511 = vadd.xlane.f32.xlu1 %v17040_v17  ;;  %v17043_v57 = vpop.eup %13491 }
0x180a   : > { %v17045_v44 = vpop.eup %13493 }
0x180b   : > { %6517 = vadd.xlane.f32.xlu1 %v17043_v57  ;;  %6523 = vadd.xlane.f32.xlu0 %v17045_v44  ;;  %v17049_v30 = vpop.eup %13495 }
0x180e   : > { %v17051_v38 = vpop.eup %13497 }
0x180f   : > { %6513 = vadd.xlane.f32.xlu1 %v17049_v30  ;;  %6519 = vadd.xlane.f32.xlu0 %v17051_v38 }
0x1812   : > { %v17055_v12 = vpop.eup %13499 }
0x1813   : > { %v17057_v22 = vpop.eup %13501  ;;  %6521 = vadd.xlane.f32.xlu1 %v17055_v12 }
0x1814   : > { %6525 = vadd.xlane.f32.xlu0 %v17057_v22 }
0x1824   : > { %6736 = vrot.lane.b32.xlu1 %v16542_v24, %s13804_s14 }
0x1828   : > { %6722 = vrot.lane.b32.xlu1 %v16451_v33, %s13804_s14 }
0x182a   : > { %6738 = vrot.lane.b32.xlu0 %v16453_v2, %s13804_s14 }
0x182c   : > { %6726 = vrot.lane.b32.xlu1 %v16463_v14, %s13804_s14 }
0x182e   : > { %6720 = vrot.lane.b32.xlu0 %v16457_v18, %s13804_s14 }
0x1830   : > { %6730 = vrot.lane.b32.xlu1 %v16469_v60, %s13804_s14 }
0x1832   : > { %6724 = vrot.lane.b32.xlu0 %v16565_v15, %s13804_s14 }
0x1834   : > { %6734 = vrot.lane.b32.xlu1 %v16475_v40, %s13804_s14 }
0x1836   : > { %6728 = vrot.lane.b32.xlu0 %v16573_v41, %s13804_s14 }
0x1838   : > { %7077 = vrot.lane.b32.xlu1 %v16515_v32, %s13804_s14 }
0x183a   : > { %6732 = vrot.lane.b32.xlu0 %v16581_v3, %s13804_s14 }
0x183c   : > { %7069 = vrot.lane.b32.xlu1 %v16544_v8, %s13804_s14 }
0x183e   : > { %7079 = vrot.lane.b32.xlu0 %v16511_v1, %s13804_s14 }
0x1840   : > { %7065 = vrot.lane.b32.xlu1 %v16556_v7, %s13804_s14 }
0x1842   : > { %7075 = vrot.lane.b32.xlu0 %v16524_v5, %s13804_s14 }
0x1846   : > { %7073 = vrot.lane.b32.xlu0 %v16528_v56, %s13804_s14 }
0x1847   : > { %v6500_v46 = vpop.xlane.xlu1 %6499 }
0x184a   : > { %7071 = vrot.lane.b32.xlu0 %v16536_v43, %s13804_s14 }
0x184b   : > { %v6496_v35 = vpop.xlane.xlu1 %6495 }
0x184f   : > { %v6502_v58 = vpop.xlane.xlu1 %6501 }
0x1850   : > { %13503 = vrcp.f32 %v6502_v58 }
0x1851   : > { %13505 = vrcp.f32 %v6496_v35  ;;  %v6747_v35 = vpop.permute.xlu0 %6746 }
0x1852   : > { %13507 = vrcp.f32 %v6500_v46  ;;  %v6798_v46 = vsel %vm1155_vm0, %v17029_v19, 0 }
0x1853   : > { %v6498_v47 = vpop.xlane.xlu1 %6497 }
0x1854   : > { %13509 = vrcp.f32 %v6498_v47 }
0x1857   : > { %v6741_v19 = vpop.permute.xlu1 %6740 }
0x185d   : > { %v13504_v53 = vpop.eup %13503 }
0x185e   : > { %v13506_v26 = vpop.eup %13505  ;;  %v6562_v29 = vmul.f32 %v13504_v53, %v16998_v16  ;;  %v6795_v16 = vsel %vm1155_vm0, %v17010_v59, 0 }
0x185f   : > { %v13508_v62 = vpop.eup %13507  ;;  %v6559_v4 = vmul.f32 %v13506_v26, %v16995_v27  ;;  %v6789_v27 = vsel %vm1155_vm0, %v17014_v20, 0 }
0x1860   : > { %v6561_v51 = vmul.f32 %v13508_v62, %v16992_v54  ;;  %v6792_v54 = vsel %vm1155_vm0, %v6747_v35, 0 }
0x1861   : > { %v13510_v49 = vpop.eup %13509 }
0x1862   : > { %v6560_v13 = vmul.f32 %v13510_v49, %v17001_v37  ;;  %v6576_v10 = vpack.c.bf16 %v6562_v29, %v6561_v51  ;;  %v6743_v37 = vpop.permute.xlu0 %6742 }
0x1864   : > { %v6575_v0 = vpack.c.bf16 %v6560_v13, %v6559_v4 }
0x1866   : > { %12300 = vmatprep.mubr.bf16.mxu1 %v6575_v0 }
0x1867   : > { %12301 = vmatmul.mubr.bf16.vlgmr.msra.gmra.mxu1 %v6576_v10 }
0x1868   : > { %12317 = vmatpush3.bf16.xpose.msra.mxu1 %v6798_v46 }
0x1869   : > { %12829 = vmatprep.subr.msk.bf16.mxu1 %vm1155_vm0, %v17010_v59  ;;  %v6786_v59 = vsel %vm1155_vm0, %v6743_v37, 0 }
0x1870   : > { %12319 = vmatpush3.bf16.xpose.msra.mxu1 %v6795_v16 }
0x1871   : > { %12830 = vmatprep.subr.msk.bf16.mxu1 %vm1155_vm0, %v6747_v35 }
0x1878   : > { %12321 = vmatpush3.bf16.xpose.msra.mxu1 %v6792_v54 }
0x1879   : > { %12831 = vmatprep.subr.msk.bf16.mxu1 %vm1155_vm0, %v17014_v20  ;;  %v6783_v20 = vsel %vm1155_vm0, %v6741_v19, 0 }
0x1880   : > { %12323 = vmatpush3.bf16.xpose.msra.mxu1 %v6789_v27 }
0x1881   : > { %12832 = vmatprep.subr.msk.bf16.mxu1 %vm1155_vm0, %v6743_v37 }
0x1884   : > { %v6508_v58 = vpop.xlane.xlu0 %6507 }
0x1888   : > { %12325 = vmatpush3.bf16.xpose.msra.mxu1 %v6786_v59  ;;  %v6506_v47 = vpop.xlane.xlu1 %6505  ;;  %v6504_v53 = vpop.xlane.xlu0 %6503 }
0x1889   : > { %13511 = vrcp.f32 %v6506_v47  ;;  %12833 = vmatprep.subr.msk.bf16.mxu1 %vm1155_vm0, %v6741_v19 }
0x188a   : > { %13513 = vrcp.f32 %v6504_v53 }
0x188b   : > { %13515 = vrcp.f32 %v6508_v58 }
0x188c   : > { %v6516_v26 = vpop.xlane.xlu1 %6515  ;;  %v6510_v62 = vpop.xlane.xlu0 %6509 }
0x188d   : > { %13517 = vrcp.f32 %v6510_v62 }
0x1890   : > { %12327 = vmatpush3.bf16.xpose.msra.mxu1 %v6783_v20  ;;  %v6512_v49 = vpop.xlane.xlu1 %6511 }
0x1894   : > { %v6518_v29 = vpop.xlane.xlu1 %6517  ;;  %v6524_v4 = vpop.xlane.xlu0 %6523 }
0x1895   : > { %13519 = vrcp.f32 %v6518_v29 }
0x1896   : > { %v13512_v13 = vpop.eup %13511  ;;  %13521 = vrcp.f32 %v6512_v49 }
0x1897   : > { %v13514_v51 = vpop.eup %13513  ;;  %v6564_v0 = vmul.f32 %v13512_v13, %v17021_v34  ;;  %13523 = vrcp.f32 %v6516_v26 }
0x1898   : > { %v6514_v10 = vpop.xlane.xlu1 %6513  ;;  %v6563_v46 = vmul.f32 %v13514_v51, %v17024_v63  ;;  %v13516_v16 = vpop.eup %13515 }
0x1899   : > { %13525 = vrcp.f32 %v6514_v10  ;;  %v6520_v35 = vpop.xlane.xlu0 %6519  ;;  %v6565_v19 = vmul.f32 %v13516_v16, %v17018_v31 }
0x189a   : > { %v6577_v54 = vpack.c.bf16 %v6564_v0, %v6563_v46  ;;  %v13518_v27 = vpop.eup %13517  ;;  %13527 = vrcp.f32 %v6520_v35 }
0x189b   : > { %v6566_v58 = vmul.f32 %v13518_v27, %v17031_v21 }
0x189c   : > { %12304 = vmatprep.mubr.bf16.mxu1 %v6577_v54  ;;  %v6522_v37 = vpop.xlane.xlu1 %6521 }
0x189d   : > { %13529 = vrcp.f32 %v6522_v37  ;;  %v6526_v59 = vpop.xlane.xlu0 %6525  ;;  %v6578_v34 = vpack.c.bf16 %v6566_v58, %v6565_v19 }
0x189e   : > { %13531 = vrcp.f32 %v6526_v59 }
0x189f   : > { %13533 = vrcp.f32 %v6524_v4  ;;  %12305 = vmatmul.mubr.bf16.gmra.mxu1 %v6578_v34 }
0x18a0   : > { %v6737_v47 = vpop.permute.xlu1 %6736 }
0x18a1   : > { %v6739_v63 = vpop.permute.xlu0 %6738  ;;  %v6777_v54 = vsel %vm1155_vm0, %v6737_v47, 0 }
0x18a2   : > { %12834 = vmatprep.subr.msk.bf16.mxu1 %vm1155_vm0, %v6739_v63  ;;  %v6780_v53 = vsel %vm1155_vm0, %v6739_v63, 0  ;;  %v13520_v26 = vpop.eup %13519 }
0x18a3   : > { %12329 = vmatpush3.bf16.xpose.msra.mxu1 %v6780_v53  ;;  %v13522_v62 = vpop.eup %13521  ;;  %v6570_v29 = vmul.f32 %v13520_v26, %v17043_v57 }
0x18a4   : > { %12835 = vmatprep.subr.msk.bf16.mxu1 %vm1155_vm0, %v6737_v47  ;;  %v6723_v31 = vpop.permute.xlu1 %6722  ;;  %v13524_v20 = vpop.eup %13523  ;;  %v6567_v4 = vmul.f32 %v13522_v62, %v17040_v17 }
0x18a5   : > { %v6721_v21 = vpop.permute.xlu0 %6720  ;;  %v6569_v10 = vmul.f32 %v13524_v20, %v17036_v50 }
0x18a6   : > { %v13526_v49 = vpop.eup %13525 }
0x18a7   : > { %v6568_v13 = vmul.f32 %v13526_v49, %v17049_v30  ;;  %v13528_v51 = vpop.eup %13527  ;;  %v6580_v27 = vpack.c.bf16 %v6570_v29, %v6569_v10 }
0x18a8   : > { %v6727_v0 = vpop.permute.xlu1 %6726  ;;  %v6571_v19 = vmul.f32 %v13528_v51, %v17051_v38 }
0x18a9   : > { %v6725_v46 = vpop.permute.xlu0 %6724  ;;  %v6579_v16 = vpack.c.bf16 %v6568_v13, %v6567_v4 }
0x18aa   : > { %v13530_v35 = vpop.eup %13529 }
0x18ab   : > { %v13532_v37 = vpop.eup %13531  ;;  %12331 = vmatpush3.bf16.xpose.msra.mxu1 %v6777_v54  ;;  %12308 = vmatprep.mubr.bf16.mxu1 %v6579_v16  ;;  %v6572_v57 = vmul.f32 %v13530_v35, %v17055_v12 }
0x18ac   : > { %v6731_v17 = vpop.permute.xlu1 %6730  ;;  %12309 = vmatmul.mubr.bf16.gmra.mxu1 %v6580_v27  ;;  %v13534_v30 = vpop.eup %13533  ;;  %v6574_v50 = vmul.f32 %v13532_v37, %v17057_v22 }
0x18ad   : > { %v6729_v58 = vpop.permute.xlu0 %6728  ;;  %v6581_v59 = vpack.c.bf16 %v6572_v57, %v6571_v19  ;;  %v6573_v34 = vmul.f32 %v13534_v30, %v17045_v44 }
0x18af   : > { %12312 = vmatprep.mubr.bf16.mxu1 %v6581_v59  ;;  %v6582_v53 = vpack.c.bf16 %v6574_v50, %v6573_v34  ;;  %v17182_v59 = vld [vmem:[%s18714_s1 + $0x10] sm:$0xff] }
0x18b0   : > { %v6735_v63 = vpop.permute.xlu1 %6734 }
0x18b1   : > { %v6733_v47 = vpop.permute.xlu0 %6732 }
0x18b4   : > { %12313 = vmatmul.mubr.bf16.gmra.mxu1 %v6582_v53  ;;  %v7078_v38 = vpop.permute.xlu1 %7077 }
0x18b5   : > { %v7080_v26 = vpop.permute.xlu0 %7079  ;;  %12332 = vmatprep.mubr.msk.bf16.mxu1 %vm1155_vm0, %v6721_v21 }
0x18b6   : > { %12348 = vmatprep.subr.bf16.mxu0 %v7080_v26 }
0x18b7   : > { %12349 = vmatpush3.bf16.msra.mxu0 %v7080_v26 }
0x18b8   : > { %12350 = vmatprep.subr.bf16.mxu0 %v7078_v38  ;;  %v7070_v62 = vpop.permute.xlu1 %7069 }
0x18b9   : > { %v7076_v12 = vpop.permute.xlu0 %7075 }
0x18bb   : > { %12351 = vmatpush3.bf16.msra.mxu0 %v7078_v38  ;;  %v17199_v38 = vld [vmem:[%s18714_s1 + $0x8] sm:$0xff] }
0x18bc   : > { %12352 = vmatprep.subr.bf16.mxu0 %v7076_v12  ;;  %12333 = vmatmul.mubr.msk.bf16.vlgmr.msra.gmra.mxu1 %vm1155_vm0, %v6723_v31 }
0x18bd   : > { %v7074_v22 = vpop.permute.xlu0 %7073  ;;  %12336 = vmatprep.mubr.msk.bf16.mxu1 %vm1155_vm0, %v6725_v46 }
0x18bf   : > { %12353 = vmatpush3.bf16.msra.mxu0 %v7076_v12 }
0x18c0   : > { %12354 = vmatprep.subr.bf16.mxu0 %v7074_v22 }
0x18c1   : > { %v7072_v44 = vpop.permute.xlu0 %7071 }
0x18c3   : > { %12355 = vmatpush3.bf16.msra.mxu0 %v7074_v22 }
0x18c4   : > { %12356 = vmatprep.subr.bf16.mxu0 %v7072_v44  ;;  %12337 = vmatmul.mubr.msk.bf16.gmra.mxu1 %vm1155_vm0, %v6727_v0 }
0x18c5   : > { %12340 = vmatprep.mubr.msk.bf16.mxu1 %vm1155_vm0, %v6729_v58 }
0x18c7   : > { %12357 = vmatpush3.bf16.msra.mxu0 %v7072_v44  ;;  %v17208_v44 = vld [vmem:[%s18714_s1 + $0x18] sm:$0xff] }
0x18c8   : > { %12358 = vmatprep.subr.bf16.mxu0 %v7070_v62 }
0x18cb   : > { %12359 = vmatpush3.bf16.msra.mxu0 %v7070_v62 }
0x18cc   : > { %12341 = vmatmul.mubr.msk.bf16.gmra.mxu1 %vm1155_vm0, %v6731_v17 }
0x18cd   : > { %12344 = vmatprep.mubr.msk.bf16.mxu1 %vm1155_vm0, %v6733_v47  ;;  %v17191_v47 = vld [vmem:[%s18714_s1] sm:$0xff] }
0x18d4   : > { %12345 = vmatmul.mubr.msk.bf16.gmra.mxu1 %vm1155_vm0, %v6735_v63 }
0x1927   : > { %v17139_v31 = vpop.f32.mrf.mxu1 }
0x1928   : > { %19005 = vst [vmem:[#allocation29_spill] sm:$0xff] %v17139_v31 }
0x1929   : > { %v17141_v20 = vpop.f32.mrf.mxu1 }
0x192a   : > { %19006 = vst [vmem:[#allocation27_spill] sm:$0xff] %v17141_v20  ;;  %v7066_v20 = vpop.permute.xlu1 %7065 }
0x192b   : > { %v17143_v21 = vpop.f32.mrf.mxu1 }
0x192c   : > { %19007 = vst [vmem:[#allocation32_spill] sm:$0xff] %v17143_v21 }
0x192d   : > { %v17147_v29 = vpop.f32.mrf.mxu1 }
0x192e   : > { %19008 = vst [vmem:[#allocation34_spill] sm:$0xff] %v17147_v29 }
0x195f   : > { %v17149_v4 = vpop.f32.mrf.mxu1 }
0x1960   : > { %19009 = vst [vmem:[#allocation33_spill] sm:$0xff] %v17149_v4 }
0x1961   : > { %v17151_v13 = vpop.f32.mrf.mxu1 }
0x1962   : > { %19010 = vst [vmem:[#allocation31_spill] sm:$0xff] %v17151_v13  ;;  %v17323_v13 = vld [vmem:[%s18714_s1 + $0x68] sm:$0xff] }
0x1963   : > { %v17153_v51 = vpop.f32.mrf.mxu1 }
0x1964   : > { %19011 = vst [vmem:[#allocation17_spill] sm:$0xff] %v17153_v51 }
0x1965   : > { %v17157_v10 = vpop.f32.mrf.mxu1 }
0x1966   : > { %19012 = vst [vmem:[#allocation15_spill] sm:$0xff] %v17157_v10 }
0x196c   : > { %v17159_v46 = vpop.f32.mrf.mxu1 }
0x196d   : > { %19013 = vst [vmem:[#allocation24_spill] sm:$0xff] %v17159_v46 }
0x196e   : > { %v17161_v16 = vpop.f32.mrf.mxu1 }
0x196f   : > { %19014 = vst [vmem:[#allocation26_spill] sm:$0xff] %v17161_v16  ;;  %v17313_v16 = vld [vmem:[%s18714_s1 + $0x78] sm:$0xff] }
0x1970   : > { %v17163_v35 = vpop.f32.mrf.mxu1 }
0x1971   : > { %19015 = vst [vmem:[#allocation25_spill] sm:$0xff] %v17163_v35 }
0x1972   : > { %v17167_v27 = vpop.f32.mrf.mxu1 }
0x1973   : > { %19016 = vst [vmem:[#allocation23_spill] sm:$0xff] %v17167_v27  ;;  %v17305_v27 = vld [vmem:[%s18714_s1 + $0x60] sm:$0xff] }
0x1974   : > { %v17169_v37 = vpop.f32.mrf.mxu1 }
0x1975   : > { %19017 = vst [vmem:[#allocation51_spill] sm:$0xff] %v17169_v37  ;;  %v17287_v37 = vld [vmem:[%s18714_s1 + $0x40] sm:$0xff] }
0x1976   : > { %v17171_v19 = vpop.f32.mrf.mxu1 }
0x1977   : > { %19018 = vst [vmem:[#allocation52_spill] sm:$0xff] %v17171_v19 }
0x1978   : > { %v17173_v57 = vpop.f32.mrf.mxu1 }
0x1979   : > { %19019 = vst [vmem:[#allocation53_spill] sm:$0xff] %v17173_v57 }
0x197a   : > { %v17177_v30 = vpop.f32.mrf.mxu1 }
0x197b   : > { %19020 = vst [vmem:[#allocation54_spill] sm:$0xff] %v17177_v30  ;;  %v17296_v30 = vld [vmem:[%s18714_s1 + $0x70] sm:$0xff] }
0x197c   : > { %v12334_v58 = vpop.f32.mrf.mxu1 }
0x197d   : > { %v17185_v50 = vadd.f32 %v17182_v59, %v12334_v58 }
0x197e   : > { %v6834_v34 = vpop.f32.mrf.mxu1 }
0x197f   : > { %6901 = vmax.xlane.f32.xlu0 %v17185_v50  ;;  %v17194_v53 = vadd.f32 %v17191_v47, %v6834_v34 }
0x1980   : > { %v12335_v63 = vpop.f32.mrf.mxu1 }
0x1981   : > { %v17211_v62 = vadd.f32 %v17208_v44, %v12335_v63  ;;  %v17227_v63 = vld [vmem:[%s18714_s1 + $0x28] sm:$0xff] }
0x1982   : > { %v6837_v26 = vpop.f32.mrf.mxu1 }
0x1983   : > { %v17202_v12 = vadd.f32 %v17199_v38, %v6837_v26  ;;  %6897 = vmax.xlane.f32.xlu0 %v17194_v53  ;;  %v17218_v26 = vld [vmem:[%s18714_s1 + $0x38] sm:$0xff] }
0x1984   : > { %v12338_v22 = vpop.f32.mrf.mxu1 }
0x1985   : > { %6899 = vmax.xlane.f32.xlu1 %v17202_v12 }
0x1986   : > { %v6850_v58 = vpop.f32.mrf.mxu1 }
0x1987   : > { %6903 = vmax.xlane.f32.xlu0 %v17211_v62 }
0x1988   : > { %v12339_v34 = vpop.f32.mrf.mxu1 }
0x1989   : > { %v17221_v17 = vadd.f32 %v17218_v26, %v12339_v34  ;;  %v17236_v34 = vld [vmem:[%s18714_s1 + $0x58] sm:$0xff] }
0x198a   : > { %v6853_v54 = vpop.f32.mrf.mxu1 }
0x198b   : > { %6911 = vmax.xlane.f32.xlu1 %v17221_v17  ;;  %v17230_v49 = vadd.f32 %v17227_v63, %v6853_v54  ;;  %v17245_v54 = vld [vmem:[%s18714_s1 + $0x48] sm:$0xff] }
0x198c   : > { %v12342_v0 = vpop.f32.mrf.mxu1 }
0x198e   : > { %v6866_v36 = vpop.f32.mrf.mxu1 }
0x198f   : > { %6907 = vmax.xlane.f32.xlu1 %v17230_v49 }
0x1990   : > { %v12343_v45 = vpop.f32.mrf.mxu1 }
0x1991   : > { %v17239_v25 = vadd.f32 %v17236_v34, %v12343_v45  ;;  %v17260_v45 = vld [vmem:[%s18714_s1 + $0x30] sm:$0xff] }
0x1992   : > { %v6869_v39 = vpop.f32.mrf.mxu1  ;;  %v17263_v11 = vadd.f32 %v17260_v45, %v12338_v22 }
0x1993   : > { %6919 = vmax.xlane.f32.xlu1 %v17239_v25  ;;  %v17248_v42 = vadd.f32 %v17245_v54, %v6869_v39  ;;  %v17269_v39 = vld [vmem:[%s18714_s1 + $0x20] sm:$0xff] }
0x1994   : > { %v12346_v61 = vpop.f32.mrf.mxu1 }
0x1996   : > { %v6882_v57 = vpop.f32.mrf.mxu1 }
0x1997   : > { %6915 = vmax.xlane.f32.xlu1 %v17248_v42 }
0x1998   : > { %v12347_v19 = vpop.f32.mrf.mxu1 }
0x1999   : > { %v17316_v10 = vadd.f32 %v17313_v16, %v12347_v19 }
0x199d   : > { %7067 = vrot.lane.b32.xlu0 %v16552_v48, %s13804_s14 }
0x19a8   : > { %7222 = vrot.lane.b32.xlu1 %v16481_v28, %s13805_s21  ;;  %v17272_v28 = vadd.f32 %v17269_v39, %v6850_v58  ;;  %v17290_v58 = vadd.f32 %v17287_v37, %v6866_v36  ;;  %v17308_v36 = vadd.f32 %v17305_v27, %v6882_v57 }
0x19ac   : > { %7218 = vrot.lane.b32.xlu1 %v16499_v52, %s13805_s21  ;;  %v17278_v52 = vld [vmem:[%s18714_s1 + $0x50] sm:$0xff] }
0x19ad   : > { %v17281_v22 = vadd.f32 %v17278_v52, %v12342_v0  ;;  %v17299_v0 = vadd.f32 %v17296_v30, %v12346_v61  ;;  %v6885_v61 = vpop.f32.mrf.mxu1 }
0x19ae   : > { %v17326_v57 = vadd.f32 %v17323_v13, %v6885_v61 }
0x19bc   : > { %6909 = vmax.xlane.f32.xlu0 %v17263_v11 }
0x19c0   : > { %6905 = vmax.xlane.f32.xlu0 %v17272_v28 }
0x19c4   : > { %6917 = vmax.xlane.f32.xlu0 %v17281_v22 }
0x19c8   : > { %6913 = vmax.xlane.f32.xlu0 %v17290_v58 }
0x19cc   : > { %6925 = vmax.xlane.f32.xlu0 %v17299_v0 }
0x19d0   : > { %6927 = vmax.xlane.f32.xlu1 %v17316_v10  ;;  %6921 = vmax.xlane.f32.xlu0 %v17308_v36 }
0x19d4   : > { %6923 = vmax.xlane.f32.xlu1 %v17326_v57 }
0x19e6   : > { %7224 = vrot.lane.b32.xlu0 %v19001_v23, %s13805_s21 }
0x19ea   : > { %7220 = vrot.lane.b32.xlu0 %v19002_v6, %s13805_s21 }
0x19ee   : > { %7216 = vrot.lane.b32.xlu0 %v19003_v55, %s13805_s21 }
0x1a08   : > { %v6902_v19 = vpop.xlane.xlu0 %6901 }
0x1a09   : > { %v6931_v29 = vsub.f32 %v17185_v50, %v6902_v19 }
0x1a0b   : > { %v6949_v46 = vmul.f32 1.442695, %v6931_v29 }
0x1a0c   : > { %v6898_v35 = vpop.xlane.xlu0 %6897 }
0x1a0d   : > { %13535 = vpow2.f32 %v6949_v46  ;;  %v6929_v61 = vsub.f32 %v17194_v53, %v6898_v35 }
0x1a0e   : > { %v6900_v4 = vpop.xlane.xlu1 %6899 }
0x1a0f   : > { %v6945_v51 = vmul.f32 1.442695, %v6929_v61  ;;  %v6930_v23 = vsub.f32 %v17202_v12, %v6900_v4 }
0x1a10   : > { %v6904_v48 = vpop.xlane.xlu0 %6903 }
0x1a11   : > { %13537 = vpow2.f32 %v6945_v51  ;;  %v6932_v6 = vsub.f32 %v17211_v62, %v6904_v48  ;;  %v6947_v55 = vmul.f32 1.442695, %v6930_v23 }
0x1a13   : > { %v6951_v31 = vmul.f32 1.442695, %v6932_v6 }
0x1a14   : > { %v7068_v21 = vpop.permute.xlu0 %7067 }
0x1a15   : > { %13539 = vpow2.f32 %v6951_v31  ;;  %12360 = vmatprep.subr.bf16.mxu0 %v7068_v21  ;;  %v6912_v31 = vpop.xlane.xlu1 %6911 }
0x1a16   : > { %12361 = vmatpush3.bf16.msra.mxu0 %v7068_v21  ;;  %13541 = vpow2.f32 %v6947_v55  ;;  %v6936_v12 = vsub.f32 %v17221_v17, %v6912_v31 }
0x1a17   : > { %12362 = vmatprep.subr.bf16.mxu0 %v7066_v20 }
0x1a18   : > { %v6959_v55 = vmul.f32 1.442695, %v6936_v12 }
0x1a19   : > { %v6908_v21 = vpop.xlane.xlu1 %6907 }
0x1a1a   : > { %v17339_v29 = vpop.eup %13535  ;;  %12363 = vmatpush3.bf16.msra.mxu0 %v7066_v20  ;;  %v6934_v51 = vsub.f32 %v17230_v49, %v6908_v21 }
0x1a1b   : > { %6981 = vadd.xlane.f32.xlu1 %v17339_v29 }
0x1a1c   : > { %v6955_v62 = vmul.f32 1.442695, %v6934_v51 }
0x1a1d   : > { %v6920_v20 = vpop.xlane.xlu1 %6919 }
0x1a1e   : > { %v17342_v46 = vpop.eup %13537 }
0x1a1f   : > { %6977 = vadd.xlane.f32.xlu1 %v17342_v46 }
0x1a21   : > { %v6916_v19 = vpop.xlane.xlu1 %6915 }
0x1a22   : > { %v17345_v4 = vpop.eup %13539 }
0x1a23   : > { %6983 = vadd.xlane.f32.xlu1 %v17345_v4  ;;  %v17348_v48 = vpop.eup %13541 }
0x1a25   : > { %v17358_v49 = vpop.permute.xlu1 %7222 }
0x1a27   : > { %6979 = vadd.xlane.f32.xlu1 %v17348_v48 }
0x1a38   : > { %7214 = vrot.lane.b32.xlu1 %v19004_v9, %s13805_s21 }
0x1a45   : > { %v6910_v35 = vpop.xlane.xlu0 %6909 }
0x1a46   : > { %v6935_v50 = vsub.f32 %v17263_v11, %v6910_v35  ;;  %v6940_v11 = vsub.f32 %v17239_v25, %v6920_v20 }
0x1a48   : > { %v6957_v53 = vmul.f32 1.442695, %v6935_v50  ;;  %v6967_v35 = vmul.f32 1.442695, %v6940_v11 }
0x1a49   : > { %v6906_v61 = vpop.xlane.xlu0 %6905 }
0x1a4a   : > { %13543 = vpow2.f32 %v6957_v53  ;;  %v6933_v23 = vsub.f32 %v17272_v28, %v6906_v61  ;;  %v17362_v28 = vpop.permute.xlu1 %7218  ;;  %v6938_v53 = vsub.f32 %v17248_v42, %v6916_v19 }
0x1a4b   : > { %13545 = vpow2.f32 %v6955_v62 }
0x1a4c   : > { %v6953_v6 = vmul.f32 1.442695, %v6933_v23 }
0x1a4d   : > { %v6918_v9 = vpop.xlane.xlu0 %6917 }
0x1a4e   : > { %13547 = vpow2.f32 %v6953_v6  ;;  %v6939_v7 = vsub.f32 %v17281_v22, %v6918_v9 }
0x1a4f   : > { %13549 = vpow2.f32 %v6959_v55 }
0x1a50   : > { %v6965_v21 = vmul.f32 1.442695, %v6939_v7 }
0x1a51   : > { %v6914_v17 = vpop.xlane.xlu0 %6913 }
0x1a52   : > { %13551 = vpow2.f32 %v6965_v21  ;;  %v6937_v31 = vsub.f32 %v17290_v58, %v6914_v17  ;;  %v6963_v58 = vmul.f32 1.442695, %v6938_v53 }
0x1a54   : > { %v6961_v51 = vmul.f32 1.442695, %v6937_v31 }
0x1a55   : > { %v6926_v50 = vpop.xlane.xlu0 %6925 }
0x1a56   : > { %13553 = vpow2.f32 %v6961_v51  ;;  %v6943_v22 = vsub.f32 %v17299_v0, %v6926_v50 }
0x1a57   : > { %v17366_v12 = vpop.eup %13543  ;;  %13555 = vpow2.f32 %v6967_v35 }
0x1a58   : > { %v6973_v7 = vmul.f32 1.442695, %v6943_v22  ;;  %6989 = vadd.xlane.f32.xlu0 %v17366_v12  ;;  %v17369_v62 = vpop.eup %13545 }
0x1a59   : > { %v6928_v25 = vpop.xlane.xlu1 %6927  ;;  %v6922_v20 = vpop.xlane.xlu0 %6921 }
0x1a5a   : > { %13557 = vpow2.f32 %v6973_v7  ;;  %v6941_v61 = vsub.f32 %v17308_v36, %v6922_v20  ;;  %v6944_v42 = vsub.f32 %v17316_v10, %v6928_v25  ;;  %v7269_v7 = vsel %vm1155_vm0, %v17358_v49, 0 }
0x1a5b   : > { %v17372_v23 = vpop.eup %13547  ;;  %13559 = vpow2.f32 %v6963_v58 }
0x1a5c   : > { %v6969_v19 = vmul.f32 1.442695, %v6941_v61  ;;  %6987 = vadd.xlane.f32.xlu1 %v17369_v62  ;;  %6985 = vadd.xlane.f32.xlu0 %v17372_v23  ;;  %v17377_v55 = vpop.eup %13549  ;;  %v6975_v36 = vmul.f32 1.442695, %v6944_v42 }
0x1a5d   : > { %v6924_v0 = vpop.xlane.xlu1 %6923  ;;  %v7225_v6 = vpop.permute.xlu0 %7224 }
0x1a5e   : > { %v6942_v9 = vsub.f32 %v17326_v57, %v6924_v0  ;;  %12836 = vmatprep.subr.msk.bf16.mxu0 %vm1155_vm0, %v7225_v6  ;;  %13561 = vpow2.f32 %v6969_v19  ;;  %v7272_v22 = vsel %vm1155_vm0, %v7225_v6, 0 }
0x1a5f   : > { %v17381_v21 = vpop.eup %13551 }
0x1a60   : > { %v6971_v11 = vmul.f32 1.442695, %v6942_v9  ;;  %6991 = vadd.xlane.f32.xlu0 %v17377_v55  ;;  %6997 = vadd.xlane.f32.xlu1 %v17381_v21 }
0x1a62   : > { %13563 = vpow2.f32 %v6971_v11 }
0x1a63   : > { %v17385_v10 = vpop.eup %13553  ;;  %13565 = vpow2.f32 %v6975_v36 }
0x1a64   : > { %6993 = vadd.xlane.f32.xlu1 %v17385_v10  ;;  %v17388_v17 = vpop.eup %13555 }
0x1a67   : > { %v17390_v57 = vpop.eup %13557 }
0x1a68   : > { %6999 = vadd.xlane.f32.xlu1 %v17388_v17  ;;  %7005 = vadd.xlane.f32.xlu0 %v17390_v57  ;;  %v17394_v31 = vpop.eup %13559 }
0x1a6b   : > { %v17396_v51 = vpop.eup %13561 }
0x1a6c   : > { %6995 = vadd.xlane.f32.xlu1 %v17394_v31  ;;  %7001 = vadd.xlane.f32.xlu0 %v17396_v51 }
0x1a6f   : > { %v17400_v35 = vpop.eup %13563 }
0x1a70   : > { %v17402_v50 = vpop.eup %13565  ;;  %7003 = vadd.xlane.f32.xlu1 %v17400_v35 }
0x1a71   : > { %7007 = vadd.xlane.f32.xlu0 %v17402_v50 }
0x1a81   : > { %7210 = vrot.lane.b32.xlu1 %v16542_v24, %s13805_s21 }
0x1a85   : > { %7196 = vrot.lane.b32.xlu1 %v16451_v33, %s13805_s21 }
0x1a87   : > { %7212 = vrot.lane.b32.xlu0 %v16453_v2, %s13805_s21 }
0x1a89   : > { %7200 = vrot.lane.b32.xlu1 %v16463_v14, %s13805_s21 }
0x1a8b   : > { %7194 = vrot.lane.b32.xlu0 %v16457_v18, %s13805_s21 }
0x1a8d   : > { %7204 = vrot.lane.b32.xlu1 %v16469_v60, %s13805_s21 }
0x1a8f   : > { %7198 = vrot.lane.b32.xlu0 %v16565_v15, %s13805_s21 }
0x1a91   : > { %7208 = vrot.lane.b32.xlu1 %v16475_v40, %s13805_s21 }
0x1a93   : > { %7202 = vrot.lane.b32.xlu0 %v16573_v41, %s13805_s21 }
0x1a95   : > { %7551 = vrot.lane.b32.xlu1 %v16515_v32, %s13805_s21 }
0x1a97   : > { %7206 = vrot.lane.b32.xlu0 %v16581_v3, %s13805_s21 }
0x1a9b   : > { %7553 = vrot.lane.b32.xlu0 %v16511_v1, %s13805_s21 }
0x1a9f   : > { %7549 = vrot.lane.b32.xlu0 %v16524_v5, %s13805_s21 }
0x1aa4   : > { %v6982_v33 = vpop.xlane.xlu1 %6981 }
0x1aa8   : > { %v6978_v2 = vpop.xlane.xlu1 %6977 }
0x1aac   : > { %v6984_v18 = vpop.xlane.xlu1 %6983 }
0x1aad   : > { %13567 = vrcp.f32 %v6984_v18 }
0x1aae   : > { %13569 = vrcp.f32 %v6978_v2 }
0x1aaf   : > { %13571 = vrcp.f32 %v6982_v33 }
0x1ab0   : > { %v6980_v14 = vpop.xlane.xlu1 %6979 }
0x1ab1   : > { %13573 = vrcp.f32 %v6980_v14 }
0x1ab4   : > { %v7215_v25 = vpop.permute.xlu1 %7214 }
0x1aba   : > { %v13568_v60 = vpop.eup %13567 }
0x1abb   : > { %v13570_v40 = vpop.eup %13569  ;;  %v7044_v15 = vmul.f32 %v13568_v60, %v17345_v4  ;;  %v7221_v4 = vpop.permute.xlu0 %7220 }
0x1abc   : > { %v13572_v32 = vpop.eup %13571  ;;  %v7041_v41 = vmul.f32 %v13570_v40, %v17342_v46  ;;  %v7266_v46 = vsel %vm1155_vm0, %v7221_v4, 0 }
0x1abd   : > { %v7043_v5 = vmul.f32 %v13572_v32, %v17339_v29  ;;  %v7263_v29 = vsel %vm1155_vm0, %v17362_v28, 0 }
0x1abe   : > { %v13574_v24 = vpop.eup %13573 }
0x1abf   : > { %v7042_v1 = vmul.f32 %v13574_v24, %v17348_v48  ;;  %v7058_v53 = vpack.c.bf16 %v7044_v15, %v7043_v5  ;;  %v7217_v48 = vpop.permute.xlu0 %7216 }
0x1ac1   : > { %v7057_v3 = vpack.c.bf16 %v7042_v1, %v7041_v41 }
0x1ac3   : > { %12364 = vmatprep.mubr.bf16.mxu0 %v7057_v3 }
0x1ac4   : > { %12365 = vmatmul.mubr.bf16.vlgmr.msra.gmra.mxu0 %v7058_v53 }
0x1ac5   : > { %12381 = vmatpush3.bf16.xpose.msra.mxu0 %v7272_v22 }
0x1ac6   : > { %12837 = vmatprep.subr.msk.bf16.mxu0 %vm1155_vm0, %v17358_v49  ;;  %v7260_v49 = vsel %vm1155_vm0, %v7217_v48, 0 }
0x1acd   : > { %12383 = vmatpush3.bf16.xpose.msra.mxu0 %v7269_v7 }
0x1ace   : > { %12838 = vmatprep.subr.msk.bf16.mxu0 %vm1155_vm0, %v7221_v4 }
0x1ad5   : > { %12385 = vmatpush3.bf16.xpose.msra.mxu0 %v7266_v46 }
0x1ad6   : > { %12839 = vmatprep.subr.msk.bf16.mxu0 %vm1155_vm0, %v17362_v28  ;;  %v7257_v28 = vsel %vm1155_vm0, %v7215_v25, 0 }
0x1add   : > { %12387 = vmatpush3.bf16.xpose.msra.mxu0 %v7263_v29 }
0x1ade   : > { %12840 = vmatprep.subr.msk.bf16.mxu0 %vm1155_vm0, %v7217_v48 }
0x1ae1   : > { %v6990_v20 = vpop.xlane.xlu0 %6989 }
0x1ae5   : > { %12389 = vmatpush3.bf16.xpose.msra.mxu0 %v7260_v49  ;;  %v6988_v58 = vpop.xlane.xlu1 %6987  ;;  %v6986_v61 = vpop.xlane.xlu0 %6985 }
0x1ae6   : > { %13575 = vrcp.f32 %v6988_v58  ;;  %12841 = vmatprep.subr.msk.bf16.mxu0 %vm1155_vm0, %v7215_v25 }
0x1ae7   : > { %13577 = vrcp.f32 %v6986_v61 }
0x1ae8   : > { %13579 = vrcp.f32 %v6990_v20 }
0x1ae9   : > { %v6998_v42 = vpop.xlane.xlu1 %6997  ;;  %v6992_v19 = vpop.xlane.xlu0 %6991 }
0x1aea   : > { %13581 = vrcp.f32 %v6992_v19 }
0x1aed   : > { %12391 = vmatpush3.bf16.xpose.msra.mxu0 %v7257_v28  ;;  %v6994_v0 = vpop.xlane.xlu1 %6993 }
0x1af1   : > { %v7000_v6 = vpop.xlane.xlu1 %6999  ;;  %v7006_v9 = vpop.xlane.xlu0 %7005 }
0x1af2   : > { %13583 = vrcp.f32 %v7000_v6 }
0x1af3   : > { %v13576_v36 = vpop.eup %13575  ;;  %13585 = vrcp.f32 %v6994_v0 }
0x1af4   : > { %v13578_v11 = vpop.eup %13577  ;;  %v7046_v33 = vmul.f32 %v13576_v36, %v17369_v62  ;;  %13587 = vrcp.f32 %v6998_v42 }
0x1af5   : > { %v6996_v2 = vpop.xlane.xlu1 %6995  ;;  %v7045_v18 = vmul.f32 %v13578_v11, %v17372_v23  ;;  %v13580_v14 = vpop.eup %13579 }
0x1af6   : > { %13589 = vrcp.f32 %v6996_v2  ;;  %v7002_v60 = vpop.xlane.xlu0 %7001  ;;  %v7047_v15 = vmul.f32 %v13580_v14, %v17366_v12 }
0x1af7   : > { %v7059_v40 = vpack.c.bf16 %v7046_v33, %v7045_v18  ;;  %v13582_v32 = vpop.eup %13581  ;;  %13591 = vrcp.f32 %v7002_v60 }
0x1af8   : > { %v7048_v41 = vmul.f32 %v13582_v32, %v17377_v55 }
0x1af9   : > { %12368 = vmatprep.mubr.bf16.mxu0 %v7059_v40  ;;  %v7004_v24 = vpop.xlane.xlu1 %7003 }
0x1afa   : > { %13593 = vrcp.f32 %v7004_v24  ;;  %v7008_v1 = vpop.xlane.xlu0 %7007  ;;  %v7060_v62 = vpack.c.bf16 %v7048_v41, %v7047_v15 }
0x1afb   : > { %13595 = vrcp.f32 %v7008_v1 }
0x1afc   : > { %13597 = vrcp.f32 %v7006_v9  ;;  %12369 = vmatmul.mubr.bf16.gmra.mxu0 %v7060_v62 }
0x1afd   : > { %v7211_v5 = vpop.permute.xlu1 %7210 }
0x1afe   : > { %v7213_v23 = vpop.permute.xlu0 %7212  ;;  %v7251_v19 = vsel %vm1155_vm0, %v7211_v5, 0 }
0x1aff   : > { %12842 = vmatprep.subr.msk.bf16.mxu0 %vm1155_vm0, %v7213_v23  ;;  %v7254_v3 = vsel %vm1155_vm0, %v7213_v23, 0  ;;  %v13584_v53 = vpop.eup %13583 }
0x1b00   : > { %12393 = vmatpush3.bf16.xpose.msra.mxu0 %v7254_v3  ;;  %v13586_v22 = vpop.eup %13585  ;;  %v7052_v46 = vmul.f32 %v13584_v53, %v17388_v17 }
0x1b01   : > { %12843 = vmatprep.subr.msk.bf16.mxu0 %vm1155_vm0, %v7211_v5  ;;  %v7197_v12 = vpop.permute.xlu1 %7196  ;;  %v13588_v7 = vpop.eup %13587  ;;  %v7049_v29 = vmul.f32 %v13586_v22, %v17385_v10 }
0x1b02   : > { %v7195_v55 = vpop.permute.xlu0 %7194  ;;  %v7051_v49 = vmul.f32 %v13588_v7, %v17381_v21 }
0x1b03   : > { %v13590_v4 = vpop.eup %13589 }
0x1b04   : > { %v7050_v48 = vmul.f32 %v13590_v4, %v17394_v31  ;;  %v13592_v25 = vpop.eup %13591  ;;  %v7062_v28 = vpack.c.bf16 %v7052_v46, %v7051_v49 }
0x1b05   : > { %v7201_v20 = vpop.permute.xlu1 %7200  ;;  %v7053_v6 = vmul.f32 %v13592_v25, %v17396_v51 }
0x1b06   : > { %v7199_v58 = vpop.permute.xlu0 %7198  ;;  %v7061_v61 = vpack.c.bf16 %v7050_v48, %v7049_v29 }
0x1b07   : > { %v13594_v42 = vpop.eup %13593 }
0x1b08   : > { %v13596_v0 = vpop.eup %13595  ;;  %12395 = vmatpush3.bf16.xpose.msra.mxu0 %v7251_v19  ;;  %12372 = vmatprep.mubr.bf16.mxu0 %v7061_v61  ;;  %v7054_v17 = vmul.f32 %v13594_v42, %v17400_v35 }
0x1b09   : > { %v7205_v10 = vpop.permute.xlu1 %7204  ;;  %12373 = vmatmul.mubr.bf16.gmra.mxu0 %v7062_v28  ;;  %v13598_v31 = vpop.eup %13597  ;;  %v7056_v21 = vmul.f32 %v13596_v0, %v17402_v50 }
0x1b0a   : > { %v7203_v9 = vpop.permute.xlu0 %7202  ;;  %v7063_v36 = vpack.c.bf16 %v7054_v17, %v7053_v6  ;;  %v7055_v11 = vmul.f32 %v13598_v31, %v17390_v57 }
0x1b0c   : > { %12376 = vmatprep.mubr.bf16.mxu0 %v7063_v36  ;;  %v7064_v18 = vpack.c.bf16 %v7056_v21, %v7055_v11 }
0x1b0d   : > { %v7209_v33 = vpop.permute.xlu1 %7208 }
0x1b0e   : > { %v7207_v2 = vpop.permute.xlu0 %7206 }
0x1b11   : > { %12377 = vmatmul.mubr.bf16.gmra.mxu0 %v7064_v18  ;;  %v7552_v51 = vpop.permute.xlu1 %7551 }
0x1b12   : > { %v7554_v14 = vpop.permute.xlu0 %7553  ;;  %12396 = vmatprep.mubr.msk.bf16.mxu0 %vm1155_vm0, %v7195_v55 }
0x1b13   : > { %12412 = vmatprep.subr.bf16.mxu1 %v7554_v14 }
0x1b14   : > { %12413 = vmatpush3.bf16.msra.mxu1 %v7554_v14 }
0x1b15   : > { %12414 = vmatprep.subr.bf16.mxu1 %v7552_v51 }
0x1b16   : > { %v7550_v35 = vpop.permute.xlu0 %7549 }
0x1b18   : > { %12415 = vmatpush3.bf16.msra.mxu1 %v7552_v51 }
0x1b19   : > { %12416 = vmatprep.subr.bf16.mxu1 %v7550_v35  ;;  %12397 = vmatmul.mubr.msk.bf16.vlgmr.msra.gmra.mxu0 %vm1155_vm0, %v7197_v12 }
0x1b1a   : > { %12400 = vmatprep.mubr.msk.bf16.mxu0 %vm1155_vm0, %v7199_v58 }
0x1b1c   : > { %12417 = vmatpush3.bf16.msra.mxu1 %v7550_v35 }
0x1b21   : > { %12401 = vmatmul.mubr.msk.bf16.gmra.mxu0 %vm1155_vm0, %v7201_v20 }
0x1b22   : > { %12404 = vmatprep.mubr.msk.bf16.mxu0 %vm1155_vm0, %v7203_v9 }
0x1b29   : > { %12405 = vmatmul.mubr.msk.bf16.gmra.mxu0 %vm1155_vm0, %v7205_v10 }
0x1b2a   : > { %12408 = vmatprep.mubr.msk.bf16.mxu0 %vm1155_vm0, %v7207_v2 }
0x1b31   : > { %12409 = vmatmul.mubr.msk.bf16.gmra.mxu0 %vm1155_vm0, %v7209_v33 }
0x1b84   : > { %v17475_v57 = vpop.f32.mrf.mxu0 }
0x1b86   : > { %v17477_v50 = vpop.f32.mrf.mxu0 }
0x1b88   : > { %v17479_v60 = vpop.f32.mrf.mxu0 }
0x1b89   : > { %v7187_v40 = vpack.c.bf16 %v17479_v60, %v17475_v57  ;;  %v19029_v60 = vld [vmem:[#allocation25_spill] sm:$0xff] }
0x1b8a   : > { %v17483_v32 = vpop.f32.mrf.mxu0 }
0x1b8b   : > { %v7186_v24 = vpack.c.bf16 %v17483_v32, %v17477_v50 }
0x1bbc   : > { %v17487_v15 = vpop.f32.mrf.mxu0 }
0x1bbe   : > { %v17489_v41 = vpop.f32.mrf.mxu0 }
0x1bc0   : > { %v17491_v1 = vpop.f32.mrf.mxu0 }
0x1bc1   : > { %v7189_v62 = vpack.c.bf16 %v17491_v1, %v17487_v15  ;;  %v19034_v1 = vld [vmem:[#allocation31_spill] sm:$0xff] }
0x1bc2   : > { %v17495_v5 = vpop.f32.mrf.mxu0 }
0x1bc3   : > { %v7188_v23 = vpack.c.bf16 %v17495_v5, %v17489_v41 }
0x1bc9   : > { %v17499_v3 = vpop.f32.mrf.mxu0 }
0x1bcb   : > { %v17501_v53 = vpop.f32.mrf.mxu0 }
0x1bcd   : > { %v17503_v22 = vpop.f32.mrf.mxu0 }
0x1bce   : > { %v7191_v12 = vpack.c.bf16 %v17503_v22, %v17499_v3  ;;  %v19040_v3 = vld [vmem:[#allocation53_spill] sm:$0xff]  ;;  %v19041_v22 = vld [vmem:[#allocation51_spill] sm:$0xff] }
0x1bcf   : > { %v17507_v7 = vpop.f32.mrf.mxu0 }
0x1bd0   : > { %v7190_v55 = vpack.c.bf16 %v17507_v7, %v17501_v53 }
0x1bd1   : > { %v17511_v4 = vpop.f32.mrf.mxu0 }
0x1bd3   : > { %v17513_v46 = vpop.f32.mrf.mxu0 }
0x1bd5   : > { %v17515_v29 = vpop.f32.mrf.mxu0 }
0x1bd6   : > { %v7193_v48 = vpack.c.bf16 %v17515_v29, %v17511_v4 }
0x1bd7   : > { %v17519_v25 = vpop.f32.mrf.mxu0 }
0x1bd8   : > { %v7192_v20 = vpack.c.bf16 %v17519_v25, %v17513_v46  ;;  %v19043_v25 = vld [vmem:[#allocation13_spill] sm:$0xff] }
0x1bd9   : > { %v12398_v49 = vpop.f32.mrf.mxu0 }
0x1bda   : > { %v7317_v58 = vadd.f32 %v17182_v59, %v12398_v49 }
0x1bdb   : > { %v7308_v61 = vpop.f32.mrf.mxu0 }
0x1bdc   : > { %7375 = vmax.xlane.f32.xlu0 %v7317_v58  ;;  %v7309_v19 = vadd.f32 %v17191_v47, %v7308_v61 }
0x1bdd   : > { %v12399_v42 = vpop.f32.mrf.mxu0 }
0x1bde   : > { %v7320_v17 = vadd.f32 %v17208_v44, %v12399_v42 }
0x1bdf   : > { %v7311_v28 = vpop.f32.mrf.mxu0 }
0x1be0   : > { %v7312_v0 = vadd.f32 %v17199_v38, %v7311_v28  ;;  %7371 = vmax.xlane.f32.xlu0 %v7309_v19 }
0x1be1   : > { %v12402_v6 = vpop.f32.mrf.mxu0 }
0x1be2   : > { %7373 = vmax.xlane.f32.xlu1 %v7312_v0  ;;  %v7333_v9 = vadd.f32 %v17260_v45, %v12402_v6 }
0x1be3   : > { %v7324_v10 = vpop.f32.mrf.mxu0 }
0x1be4   : > { %7377 = vmax.xlane.f32.xlu0 %v7320_v17  ;;  %v7325_v38 = vadd.f32 %v17269_v39, %v7324_v10 }
0x1be5   : > { %v12403_v31 = vpop.f32.mrf.mxu0 }
0x1be6   : > { %v17529_v59 = vadd.f32 %v17218_v26, %v12403_v31 }
0x1be7   : > { %v7327_v36 = vpop.f32.mrf.mxu0 }
0x1be8   : > { %7383 = vmax.xlane.f32.xlu0 %v7333_v9  ;;  %7385 = vmax.xlane.f32.xlu1 %v17529_v59  ;;  %v7328_v21 = vadd.f32 %v17227_v63, %v7327_v36 }
0x1be9   : > { %v12406_v47 = vpop.f32.mrf.mxu0 }
0x1bea   : > { %v17535_v33 = vadd.f32 %v17278_v52, %v12406_v47 }
0x1beb   : > { %v7340_v11 = vpop.f32.mrf.mxu0 }
0x1bec   : > { %7381 = vmax.xlane.f32.xlu1 %v7328_v21  ;;  %7379 = vmax.xlane.f32.xlu0 %v7325_v38  ;;  %v17543_v2 = vadd.f32 %v17287_v37, %v7340_v11 }
0x1bed   : > { %v12407_v44 = vpop.f32.mrf.mxu0 }
0x1bee   : > { %v17538_v45 = vadd.f32 %v17236_v34, %v12407_v44 }
0x1bef   : > { %v7343_v26 = vpop.f32.mrf.mxu0 }
0x1bf0   : > { %7391 = vmax.xlane.f32.xlu0 %v17535_v33  ;;  %7393 = vmax.xlane.f32.xlu1 %v17538_v45  ;;  %v17546_v63 = vadd.f32 %v17245_v54, %v7343_v26 }
0x1bf1   : > { %v12410_v39 = vpop.f32.mrf.mxu0 }
0x1bf2   : > { %v17551_v52 = vadd.f32 %v17296_v30, %v12410_v39 }
0x1bf3   : > { %v7356_v34 = vpop.f32.mrf.mxu0 }
0x1bf4   : > { %7389 = vmax.xlane.f32.xlu1 %v17546_v63  ;;  %7387 = vmax.xlane.f32.xlu0 %v17543_v2  ;;  %v17555_v18 = vadd.f32 %v17305_v27, %v7356_v34 }
0x1bf5   : > { %v12411_v37 = vpop.f32.mrf.mxu0 }
0x1bf6   : > { %v17563_v54 = vadd.f32 %v17313_v16, %v12411_v37 }
0x1bf7   : > { %v7359_v30 = vpop.f32.mrf.mxu0 }
0x1bf8   : > { %7399 = vmax.xlane.f32.xlu0 %v17551_v52  ;;  %v17567_v14 = vadd.f32 %v17323_v13, %v7359_v30 }
0x1bfc   : > { %7395 = vmax.xlane.f32.xlu0 %v17555_v18 }
0x1c05   : > { %7545 = vrot.lane.b32.xlu1 %v16536_v43, %s13805_s21 }
0x1c12   : > { %7547 = vrot.lane.b32.xlu0 %v16528_v56, %s13805_s21 }
0x1c29   : > { %7401 = vmax.xlane.f32.xlu1 %v17563_v54 }
0x1c2d   : > { %7397 = vmax.xlane.f32.xlu1 %v17567_v14 }
0x1c3e   : > { %7543 = vrot.lane.b32.xlu1 %v16544_v8, %s13805_s21 }
0x1c65   : > { %v7376_v27 = vpop.xlane.xlu0 %7375 }
0x1c66   : > { %v7405_v43 = vsub.f32 %v7317_v58, %v7376_v27 }
0x1c68   : > { %v7423_v51 = vmul.f32 1.442695, %v7405_v43 }
0x1c69   : > { %v7372_v35 = vpop.xlane.xlu0 %7371 }
0x1c6a   : > { %13599 = vpow2.f32 %v7423_v51  ;;  %v7403_v56 = vsub.f32 %v7309_v19, %v7372_v35 }
0x1c6b   : > { %v7374_v49 = vpop.xlane.xlu1 %7373 }
0x1c6c   : > { %v7419_v16 = vmul.f32 1.442695, %v7403_v56  ;;  %v7404_v42 = vsub.f32 %v7312_v0, %v7374_v49 }
0x1c6d   : > { %v7378_v61 = vpop.xlane.xlu0 %7377 }
0x1c6e   : > { %13601 = vpow2.f32 %v7419_v16  ;;  %v7406_v28 = vsub.f32 %v7320_v17, %v7378_v61  ;;  %v7421_v31 = vmul.f32 1.442695, %v7404_v42 }
0x1c70   : > { %v7425_v6 = vmul.f32 1.442695, %v7406_v28 }
0x1c71   : > { %v7386_v13 = vpop.xlane.xlu1 %7385  ;;  %v7384_v10 = vpop.xlane.xlu0 %7383 }
0x1c72   : > { %13603 = vpow2.f32 %v7425_v6  ;;  %v7409_v36 = vsub.f32 %v7333_v9, %v7384_v10  ;;  %v7410_v19 = vsub.f32 %v17529_v59, %v7386_v13 }
0x1c73   : > { %13605 = vpow2.f32 %v7421_v31 }
0x1c74   : > { %v7431_v47 = vmul.f32 1.442695, %v7409_v36  ;;  %v7433_v30 = vmul.f32 1.442695, %v7410_v19  ;;  %v19021_v19 = vld [vmem:[#allocation30_spill] sm:$0xff] }
0x1c75   : > { %v7382_v8 = vpop.xlane.xlu1 %7381  ;;  %v7380_v11 = vpop.xlane.xlu0 %7379 }
0x1c76   : > { %v7408_v58 = vsub.f32 %v7328_v21, %v7382_v8  ;;  %v7407_v44 = vsub.f32 %v7325_v38, %v7380_v11  ;;  %13607 = vpow2.f32 %v7431_v47 }
0x1c77   : > { %v17572_v26 = vpop.eup %13599 }
0x1c78   : > { %v7429_v39 = vmul.f32 1.442695, %v7408_v58  ;;  %v7427_v0 = vmul.f32 1.442695, %v7407_v44  ;;  %7455 = vadd.xlane.f32.xlu1 %v17572_v26 }
0x1c79   : > { %v7392_v17 = vpop.xlane.xlu0 %7391  ;;  %v7394_v34 = vpop.xlane.xlu1 %7393 }
0x1c7a   : > { %13609 = vpow2.f32 %v7429_v39  ;;  %v7413_v9 = vsub.f32 %v17535_v33, %v7392_v17  ;;  %v7414_v43 = vsub.f32 %v17538_v45, %v7394_v34  ;;  %v19022_v39 = vld [vmem:[#allocation32_spill] sm:$0xff] }
0x1c7b   : > { %v17577_v37 = vpop.eup %13601  ;;  %13611 = vpow2.f32 %v7427_v0  ;;  %v19023_v0 = vld [vmem:[#allocation29_spill] sm:$0xff]  ;;  %v19025_v34 = vld [vmem:[#allocation28_spill] sm:$0xff] }
0x1c7c   : > { %7451 = vadd.xlane.f32.xlu1 %v17577_v37  ;;  %v7439_v21 = vmul.f32 1.442695, %v7413_v9  ;;  %13613 = vpow2.f32 %v7433_v30  ;;  %v7441_v16 = vmul.f32 1.442695, %v7414_v43  ;;  %v19024_v17 = vpack.c.bf16 %v19022_v39, %v19023_v0 }
0x1c7d   : > { %v7388_v38 = vpop.xlane.xlu0 %7387  ;;  %v7390_v51 = vpop.xlane.xlu1 %7389 }
0x1c7e   : > { %v7411_v59 = vsub.f32 %v17543_v2, %v7388_v38  ;;  %13615 = vpow2.f32 %v7439_v21  ;;  %v7412_v61 = vsub.f32 %v17546_v63, %v7390_v51  ;;  %v19026_v21 = vld [vmem:[#allocation17_spill] sm:$0xff] }
0x1c7f   : > { %v17581_v27 = vpop.eup %13603 }
0x1c80   : > { %v7435_v35 = vmul.f32 1.442695, %v7411_v59  ;;  %7457 = vadd.xlane.f32.xlu1 %v17581_v27  ;;  %v17586_v49 = vpop.eup %13605  ;;  %v19027_v59 = vld [vmem:[#allocation33_spill] sm:$0xff] }
0x1c81   : > { %v7400_v33 = vpop.xlane.xlu0 %7399  ;;  %v7546_v31 = vpop.permute.xlu1 %7545  ;;  %v19028_v43 = vpack.c.bf16 %v19026_v21, %v19027_v59 }
0x1c82   : > { %v7417_v56 = vsub.f32 %v17551_v52, %v7400_v33  ;;  %13617 = vpow2.f32 %v7435_v35  ;;  %v7437_v52 = vmul.f32 1.442695, %v7412_v61  ;;  %v19033_v33 = vld [vmem:[#allocation34_spill] sm:$0xff]  ;;  %v19037_v61 = vld [vmem:[#allocation23_spill] sm:$0xff] }
0x1c83   : > { %v17589_v2 = vpop.eup %13607 }
0x1c84   : > { %v7447_v42 = vmul.f32 1.442695, %v7417_v56  ;;  %7453 = vadd.xlane.f32.xlu1 %v17586_v49  ;;  %7463 = vadd.xlane.f32.xlu0 %v17589_v2 }
0x1c85   : > { %v7396_v45 = vpop.xlane.xlu0 %7395 }
0x1c86   : > { %13619 = vpow2.f32 %v7447_v42  ;;  %v7415_v28 = vsub.f32 %v17555_v18, %v7396_v45 }
0x1c87   : > { %v17594_v6 = vpop.eup %13609  ;;  %13621 = vpow2.f32 %v7441_v16  ;;  %v19036_v16 = vld [vmem:[#allocation26_spill] sm:$0xff] }
0x1c88   : > { %v17596_v13 = vpop.eup %13611  ;;  %v7443_v10 = vmul.f32 1.442695, %v7415_v28  ;;  %7461 = vadd.xlane.f32.xlu1 %v17594_v6  ;;  %v6716_v42 = vpack.c.bf16 %v19037_v61, %v19036_v16 }
0x1c89   : > { %7459 = vadd.xlane.f32.xlu0 %v17596_v13  ;;  %v7548_v63 = vpop.permute.xlu0 %7547  ;;  %v17600_v36 = vpop.eup %13613 }
0x1c8a   : > { %13623 = vpow2.f32 %v7443_v10  ;;  %12418 = vmatprep.subr.bf16.mxu1 %v7548_v63 }
0x1c8b   : > { %13625 = vpow2.f32 %v7437_v52  ;;  %12419 = vmatpush3.bf16.msra.mxu1 %v7548_v63  ;;  %v17603_v18 = vpop.eup %13615 }
0x1c8c   : > { %12420 = vmatprep.subr.bf16.mxu1 %v7546_v31 }
0x1c8d   : > { %7465 = vadd.xlane.f32.xlu0 %v17600_v36 }
0x1c8f   : > { %12421 = vmatpush3.bf16.msra.mxu1 %v7546_v31  ;;  %v17605_v47 = vpop.eup %13617 }
0x1c90   : > { %7467 = vadd.xlane.f32.xlu1 %v17605_v47 }
0x1c91   : > { %7471 = vadd.xlane.f32.xlu0 %v17603_v18 }
0x1c93   : > { %v17609_v8 = vpop.eup %13619 }
0x1c94   : > { %v17611_v11 = vpop.eup %13621  ;;  %7479 = vadd.xlane.f32.xlu1 %v17609_v8 }
0x1c95   : > { %7473 = vadd.xlane.f32.xlu0 %v17611_v11 }
0x1c97   : > { %v17615_v58 = vpop.eup %13623 }
0x1c98   : > { %v17617_v44 = vpop.eup %13625  ;;  %7475 = vadd.xlane.f32.xlu1 %v17615_v58 }
0x1c99   : > { %7469 = vadd.xlane.f32.xlu0 %v17617_v44 }
0x1ca9   : > { %7539 = vrot.lane.b32.xlu1 %v19021_v19, %s13805_s21 }
0x1cad   : > { %7678 = vrot.lane.b32.xlu1 %v19024_v17, %s13805_s21 }
0x1caf   : > { %7541 = vrot.lane.b32.xlu0 %v19025_v34, %s13805_s21 }
0x1cb1   : > { %7700 = vrot.lane.b32.xlu1 %v7186_v24, %s13804_s14 }
0x1cb2   : > { %v7402_v9 = vpop.xlane.xlu1 %7401 }
0x1cb3   : > { %v7418_v35 = vsub.f32 %v17563_v54, %v7402_v9 }
0x1cb5   : > { %7702 = vrot.lane.b32.xlu1 %v7187_v40, %s13804_s14  ;;  %v7449_v57 = vmul.f32 1.442695, %v7418_v35  ;;  %v19030_v40 = vld [vmem:[#allocation24_spill] sm:$0xff] }
0x1cb6   : > { %v7398_v30 = vpop.xlane.xlu1 %7397  ;;  %v19031_v32 = vpack.c.bf16 %v19029_v60, %v19030_v40 }
0x1cb7   : > { %v7416_v38 = vsub.f32 %v17567_v14, %v7398_v30  ;;  %v19032_v14 = vld [vmem:[#allocation27_spill] sm:$0xff] }
0x1cb8   : > { %v6712_v15 = vpack.c.bf16 %v19033_v33, %v19032_v14 }
0x1cb9   : > { %7682 = vrot.lane.b32.xlu1 %v19028_v43, %s13805_s21  ;;  %v7445_v50 = vmul.f32 1.442695, %v7416_v38 }
0x1cba   : > { %v7544_v51 = vpop.permute.xlu1 %7543 }
0x1cbb   : > { %12422 = vmatprep.subr.bf16.mxu1 %v7544_v51  ;;  %13627 = vpow2.f32 %v7445_v50 }
0x1cbc   : > { %12423 = vmatpush3.bf16.msra.mxu1 %v7544_v51  ;;  %13629 = vpow2.f32 %v7449_v57 }
0x1cbd   : > { %7706 = vrot.lane.b32.xlu1 %v7189_v62, %s13804_s14  ;;  %v19035_v62 = vld [vmem:[#allocation15_spill] sm:$0xff] }
0x1cbe   : > { %v6714_v56 = vpack.c.bf16 %v19035_v62, %v19034_v1 }
0x1cc1   : > { %7686 = vrot.lane.b32.xlu1 %v19031_v32, %s13805_s21 }
0x1cc8   : > { %v17651_v24 = vpop.eup %13627 }
0x1cc9   : > { %v17654_v54 = vpop.eup %13629 }
0x1cce   : > { %7477 = vadd.xlane.f32.xlu0 %v17651_v24 }
0x1cd2   : > { %7481 = vadd.xlane.f32.xlu0 %v17654_v54 }
0x1ce8   : > { %7676 = vrot.lane.b32.xlu0 %v6712_v15, %s13805_s21 }
0x1cec   : > { %7680 = vrot.lane.b32.xlu0 %v6714_v56, %s13805_s21 }
0x1cf0   : > { %7704 = vrot.lane.b32.xlu0 %v7188_v23, %s13804_s14 }
0x1cf4   : > { %7684 = vrot.lane.b32.xlu0 %v6716_v42, %s13805_s21 }
0x1d01   : > { %v7456_v45 = vpop.xlane.xlu1 %7455 }
0x1d05   : > { %v7452_v28 = vpop.xlane.xlu1 %7451 }
0x1d06   : > { %13631 = vrcp.f32 %v7452_v28 }
0x1d09   : > { %v7458_v52 = vpop.xlane.xlu1 %7457 }
0x1d0d   : > { %v7454_v10 = vpop.xlane.xlu1 %7453  ;;  %v7464_v63 = vpop.xlane.xlu0 %7463 }
0x1d0e   : > { %13633 = vrcp.f32 %v7454_v10 }
0x1d0f   : > { %13635 = vrcp.f32 %v7458_v52 }
0x1d11   : > { %v7462_v19 = vpop.xlane.xlu1 %7461 }
0x1d12   : > { %v7460_v31 = vpop.xlane.xlu0 %7459  ;;  %13637 = vrcp.f32 %v7462_v19 }
0x1d13   : > { %v13632_v0 = vpop.eup %13631  ;;  %13639 = vrcp.f32 %v7460_v31 }
0x1d14   : > { %13641 = vrcp.f32 %v7456_v45  ;;  %v7515_v17 = vmul.f32 %v13632_v0, %v17577_v37 }
0x1d16   : > { %v7466_v39 = vpop.xlane.xlu0 %7465 }
0x1d17   : > { %13643 = vrcp.f32 %v7466_v39 }
0x1d18   : > { %13645 = vrcp.f32 %v7464_v63 }
0x1d19   : > { %v7468_v41 = vpop.xlane.xlu1 %7467 }
0x1d1a   : > { %v7472_v5 = vpop.xlane.xlu0 %7471  ;;  %13647 = vrcp.f32 %v7468_v41 }
0x1d1b   : > { %v13634_v23 = vpop.eup %13633 }
0x1d1c   : > { %v7516_v34 = vmul.f32 %v13634_v23, %v17586_v49  ;;  %v13636_v43 = vpop.eup %13635  ;;  %v12980_v23 = vld [vmem:[%s18716_s3 + $0x50] sm:$0xff]  }
0x1d1d   : > { %v7480_v9 = vpop.xlane.xlu1 %7479  ;;  %v7518_v37 = vmul.f32 %v13636_v43, %v17581_v27 }
0x1d1e   : > { %v7474_v30 = vpop.xlane.xlu0 %7473  ;;  %v7531_v38 = vpack.c.bf16 %v7516_v34, %v7515_v17  ;;  %v12981_v17 = vld [vmem:[%s18716_s3 + $0x48] sm:$0xff]   ;;  %v12982_v34 = vld [vmem:[%s18716_s3 + $0x40] sm:$0xff]  }
0x1d1f   : > { %v13638_v51 = vpop.eup %13637 }
0x1d20   : > { %12428 = vmatprep.mubr.bf16.mxu1 %v7531_v38  ;;  %v13640_v50 = vpop.eup %13639  ;;  %v7520_v40 = vmul.f32 %v13638_v51, %v17594_v6 }
0x1d21   : > { %v7476_v21 = vpop.xlane.xlu1 %7475  ;;  %v13642_v57 = vpop.eup %13641  ;;  %v7519_v49 = vmul.f32 %v13640_v50, %v17596_v13 }
0x1d22   : > { %v7470_v59 = vpop.xlane.xlu0 %7469  ;;  %v7517_v32 = vmul.f32 %v13642_v57, %v17572_v26 }
0x1d23   : > { %13649 = vrcp.f32 %v7470_v59  ;;  %v7533_v15 = vpack.c.bf16 %v7520_v40, %v7519_v49 }
0x1d24   : > { %13651 = vrcp.f32 %v7474_v30  ;;  %v7532_v14 = vpack.c.bf16 %v7518_v37, %v7517_v32  ;;  %v13644_v33 = vpop.eup %13643  ;;  %v19038_v32 = vld [vmem:[#allocation52_spill] sm:$0xff] }
0x1d25   : > { %v7540_v60 = vpop.permute.xlu1 %7539  ;;  %13653 = vrcp.f32 %v7472_v5  ;;  %v13646_v1 = vpop.eup %13645  ;;  %v7522_v27 = vmul.f32 %v13644_v33, %v17600_v36  ;;  %v12975_v5 = vld [vmem:[%s18716_s3 + $0x78] sm:$0xff]  }
0x1d26   : > { %v7542_v35 = vpop.permute.xlu0 %7541  ;;  %v7521_v13 = vmul.f32 %v13646_v1, %v17589_v2  ;;  %13655 = vrcp.f32 %v7476_v21 }
0x1d27   : > { %12424 = vmatprep.subr.bf16.mxu1 %v7542_v35  ;;  %v13648_v62 = vpop.eup %13647 }
0x1d28   : > { %12425 = vmatpush3.bf16.msra.mxu1 %v7542_v35  ;;  %v7523_v6 = vmul.f32 %v13648_v62, %v17605_v47  ;;  %v7534_v61 = vpack.c.bf16 %v7522_v27, %v7521_v13 }
0x1d29   : > { %12426 = vmatprep.subr.bf16.mxu1 %v7540_v60 }
0x1d2c   : > { %12427 = vmatpush3.bf16.msra.mxu1 %v7540_v60 }
0x1d2d   : > { %12444 = vmatprep.subr.bf16.mxu1 %v12975_v5 }
0x1d2f   : > { %12429 = vmatmul.mubr.bf16.vlgmr.msra.gmra.mxu1 %v7532_v14  ;;  %v19039_v14 = vld [vmem:[#allocation54_spill] sm:$0xff] }
0x1d30   : > { %12432 = vmatprep.mubr.bf16.mxu1 %v7533_v15  ;;  %v13650_v56 = vpop.eup %13649  ;;  %12445 = vmatpush3.bf16.msra.mxu1 %v12975_v5  ;;  %v6718_v33 = vpack.c.bf16 %v19039_v14, %v19038_v32  ;;  %v19048_v5 = vld [vmem:[#allocation40_spill] sm:$0xff]  ;;  %v19056_v32 = vld [vmem:[#allocation43_spill] sm:$0xff] }
0x1d31   : > { %v7524_v16 = vmul.f32 %v13650_v56, %v17617_v44  ;;  %v13652_v26 = vpop.eup %13651 }
0x1d32   : > { %v13654_v45 = vpop.eup %13653  ;;  %v7526_v28 = vmul.f32 %v13652_v26, %v17611_v11 }
0x1d33   : > { %v7535_v42 = vpack.c.bf16 %v7524_v16, %v7523_v6  ;;  %v7525_v52 = vmul.f32 %v13654_v45, %v17603_v18  ;;  %v13656_v2 = vpop.eup %13655  ;;  %v7679_v6 = vpop.permute.xlu1 %7678 }
0x1d34   : > { %v7527_v63 = vmul.f32 %v13656_v2, %v17615_v58  ;;  %v12976_v58 = vld [vmem:[%s18716_s3 + $0x70] sm:$0xff]   ;;  %v19046_v2 = vld [vmem:[#allocation10_spill] sm:$0xff] }
0x1d35   : > { %v7536_v10 = vpack.c.bf16 %v7526_v28, %v7525_v52  ;;  %12446 = vmatprep.subr.bf16.mxu1 %v12976_v58 }
0x1d36   : > { %12447 = vmatpush3.bf16.msra.mxu1 %v12976_v58  ;;  %v19049_v58 = vld [vmem:[#allocation42_spill] sm:$0xff] }
0x1d37   : > { %12433 = vmatmul.mubr.bf16.gmra.mxu1 %v7534_v61  ;;  %v7701_v61 = vpop.permute.xlu1 %7700 }
0x1d38   : > { %12436 = vmatprep.mubr.bf16.mxu1 %v7535_v42 }
0x1d3b   : > { %v7703_v26 = vpop.permute.xlu1 %7702 }
0x1d3f   : > { %12437 = vmatmul.mubr.bf16.gmra.mxu1 %v7536_v10  ;;  %v7683_v29 = vpop.permute.xlu1 %7682 }
0x1d43   : > { %v7707_v42 = vpop.permute.xlu1 %7706 }
0x1d47   : > { %v7687_v46 = vpop.permute.xlu1 %7686 }
0x1d57   : > { %v7478_v36 = vpop.xlane.xlu0 %7477 }
0x1d58   : > { %13657 = vrcp.f32 %v7478_v36 }
0x1d59   : > { %13659 = vrcp.f32 %v7480_v9 }
0x1d5b   : > { %v7482_v44 = vpop.xlane.xlu0 %7481 }
0x1d5c   : > { %13661 = vrcp.f32 %v7482_v44  ;;  %v19045_v44 = vld [vmem:[#allocation11_spill] sm:$0xff] }
0x1d5f   : > { %v7677_v4 = vpop.permute.xlu0 %7676 }
0x1d65   : > { %v13658_v47 = vpop.eup %13657 }
0x1d66   : > { %v7528_v31 = vmul.f32 %v13658_v47, %v17651_v24  ;;  %v13660_v19 = vpop.eup %13659  ;;  %v12977_v24 = vld [vmem:[%s18716_s3 + $0x68] sm:$0xff]   ;;  %v19047_v47 = vpack.c.bf16 %v19045_v44, %v19046_v2 }
0x1d67   : > { %v7529_v18 = vmul.f32 %v13660_v19, %v17609_v8  ;;  %12448 = vmatprep.subr.bf16.mxu1 %v12977_v24  ;;  %v12978_v8 = vld [vmem:[%s18716_s3 + $0x60] sm:$0xff]  }
0x1d68   : > { %v7537_v39 = vpack.c.bf16 %v7528_v31, %v7527_v63  ;;  %12449 = vmatpush3.bf16.msra.mxu1 %v12977_v24  ;;  %v7745_v63 = vsel %vm1155_vm0, %v19047_v47, %v7679_v6  ;;  %v6216_v24 = vpack.c.bf16 %v19049_v58, %v19048_v5  ;;  %v19061_v6 = vld [vmem:[#allocation47_spill] sm:$0xff]  ;;  %v19066_v47 = vld [vmem:[#allocation5_spill] sm:$0xff] }
0x1d69   : > { %v13662_v0 = vpop.eup %13661  ;;  %12450 = vmatprep.subr.bf16.mxu1 %v12978_v8 }
0x1d6a   : > { %12440 = vmatprep.mubr.bf16.mxu1 %v7537_v39  ;;  %v7530_v11 = vmul.f32 %v13662_v0, %v17654_v54  ;;  %v12979_v54 = vld [vmem:[%s18716_s3 + $0x58] sm:$0xff]   ;;  %v7767_v39 = vsel %vm3116_vm1, %v7745_v63, %v7703_v26 }
0x1d6c   : > { %v7538_v41 = vpack.c.bf16 %v7530_v11, %v7529_v18  ;;  %12451 = vmatpush3.bf16.msra.mxu1 %v12978_v8 }
0x1d6d   : > { %12452 = vmatprep.subr.bf16.mxu1 %v12979_v54 }
0x1d6e   : > { %12441 = vmatmul.mubr.bf16.gmra.mxu1 %v7538_v41 }
0x1d70   : > { %12453 = vmatpush3.bf16.msra.mxu1 %v12979_v54 }
0x1d71   : > { %12454 = vmatprep.subr.bf16.mxu1 %v12980_v23 }
0x1d74   : > { %12455 = vmatpush3.bf16.msra.mxu1 %v12980_v23  ;;  %v19050_v23 = vld [vmem:[#allocation41_spill] sm:$0xff] }
0x1d75   : > { %12456 = vmatprep.subr.bf16.mxu1 %v12981_v17 }
0x1d78   : > { %12457 = vmatpush3.bf16.msra.mxu1 %v12981_v17  ;;  %v19051_v17 = vld [vmem:[#allocation39_spill] sm:$0xff] }
0x1d79   : > { %12458 = vmatprep.subr.bf16.mxu1 %v12982_v34 }
0x1d7c   : > { %12459 = vmatpush3.bf16.msra.mxu1 %v12982_v34  ;;  %v19052_v34 = vpack.c.bf16 %v19050_v23, %v19051_v17  ;;  %v19069_v23 = vld [vmem:[#allocation16_spill] sm:$0xff] }
0x1def   : > { %v12430_v9 = vpop.f32.mrf.mxu1 }
0x1df1   : > { %v7597_v30 = vpop.f32.mrf.mxu1 }
0x1df3   : > { %v12431_v38 = vpop.f32.mrf.mxu1 }
0x1df4   : > { %v7661_v21 = vpack.c.bf16 %v12431_v38, %v12430_v9  ;;  %v7751_v9 = vsel %vm1155_vm0, %v19052_v34, %v7683_v29 }
0x1df5   : > { %v7600_v59 = vpop.f32.mrf.mxu1 }
0x1df6   : > { %v7660_v43 = vpack.c.bf16 %v7600_v59, %v7597_v30  ;;  %7726 = vrot.lane.b32.xlu1 %v7661_v21, %s13803_s28  ;;  %v7771_v21 = vsel %vm3116_vm1, %v7751_v9, %v7707_v42  ;;  %v19070_v9 = vld [vmem:[#allocation6_spill] sm:$0xff] }
0x1df7   : > { %v12434_v51 = vpop.f32.mrf.mxu1 }
0x1df8   : > { %7724 = vrot.lane.b32.xlu0 %v7660_v43, %s13803_s28 }
0x1df9   : > { %v7613_v35 = vpop.f32.mrf.mxu1 }
0x1dfa   : > { %7710 = vrot.lane.b32.xlu1 %v7191_v12, %s13804_s14  ;;  %v19042_v12 = vpack.c.bf16 %v19040_v3, %v19041_v22 }
0x1dfb   : > { %v12435_v50 = vpop.f32.mrf.mxu1 }
0x1dfc   : > { %v7663_v57 = vpack.c.bf16 %v12435_v50, %v12434_v51  ;;  %7708 = vrot.lane.b32.xlu0 %v7190_v55, %s13804_s14  ;;  %v19053_v50 = vld [vmem:[#allocation44_spill] sm:$0xff] }
0x1dfd   : > { %v7616_v60 = vpop.f32.mrf.mxu1 }
0x1dfe   : > { %v7662_v37 = vpack.c.bf16 %v7616_v60, %v7613_v35  ;;  %7730 = vrot.lane.b32.xlu1 %v7663_v57, %s13803_s28  ;;  %v19054_v57 = vld [vmem:[#allocation46_spill] sm:$0xff] }
0x1dff   : > { %v12438_v49 = vpop.f32.mrf.mxu1  ;;  %v6218_v60 = vpack.c.bf16 %v19054_v57, %v19053_v50 }
0x1e00   : > { %7728 = vrot.lane.b32.xlu0 %v7662_v37, %s13803_s28 }
0x1e01   : > { %v7629_v40 = vpop.f32.mrf.mxu1 }
0x1e02   : > { %7690 = vrot.lane.b32.xlu1 %v19042_v12, %s13805_s21 }
0x1e03   : > { %v12439_v15 = vpop.f32.mrf.mxu1 }
0x1e04   : > { %v7665_v1 = vpack.c.bf16 %v12439_v15, %v12438_v49  ;;  %7688 = vrot.lane.b32.xlu0 %v6718_v33, %s13805_s21  ;;  %s18692_s21 = scalar_lea.vmem %s18724_s11, %s10794_s19 }
0x1e05   : > { %v7632_v53 = vpop.f32.mrf.mxu1 }
0x1e06   : > { %v7664_v7 = vpack.c.bf16 %v7632_v53, %v7629_v40  ;;  %7734 = vrot.lane.b32.xlu1 %v7665_v1, %s13803_s28  ;;  %v19055_v40 = vld [vmem:[#allocation45_spill] sm:$0xff] }
0x1e07   : > { %v19057_v14 = vpack.c.bf16 %v19055_v40, %v19056_v32  ;;  %v19074_v40 = vld [vmem:[#allocation36_spill] sm:$0xff] }
0x1e08   : > { %7732 = vrot.lane.b32.xlu0 %v7664_v7, %s13803_s28 }
0x1e09   : > { %v7757_v33 = vsel %vm1155_vm0, %v19057_v14, %v7687_v46 }
0x1e0a   : > { %7714 = vrot.lane.b32.xlu1 %v7193_v48, %s13804_s14  ;;  %v7681_v48 = vpop.permute.xlu0 %7680 }
0x1e0b   : > { %v7748_v54 = vsel %vm1155_vm0, %v6216_v24, %v7681_v48 }
0x1e0c   : > { %7712 = vrot.lane.b32.xlu0 %v7192_v20, %s13804_s14  ;;  %v19044_v20 = vld [vmem:[#allocation9_spill] sm:$0xff] }
0x1e0d   : > { %v6214_v28 = vpack.c.bf16 %v19044_v20, %v19043_v25  ;;  %v17788_v20 = vld [vmem:[%s18720_s7 + $0x8] sm:$0x3f] }
0x1e0e   : > { %v7705_v45 = vpop.permute.xlu0 %7704 }
0x1e0f   : > { %v7742_v10 = vsel %vm1155_vm0, %v6214_v28, %v7677_v4  ;;  %v7769_v30 = vsel %vm3116_vm1, %v7748_v54, %v7705_v45  ;;  %v19063_v28 = vld [vmem:[#allocation2_spill] sm:$0xff] }
0x1e10   : > { %v7765_v19 = vsel %vm3116_vm1, %v7742_v10, %v7701_v61 }
0x1e12   : > { %v7685_v52 = vpop.permute.xlu0 %7684 }
0x1e13   : > { %v7754_v37 = vsel %vm1155_vm0, %v6218_v60, %v7685_v52  ;;  %v19064_v52 = vsub.s32 2, %v19063_v28 }
0x1e15   : > { %v7985_v10 = vrot.slane %v17788_v20, %v19064_v52 }
0x1e2e   : > { %v12442_v55 = vpop.f32.mrf.mxu1 }
0x1e30   : > { %v7645_v62 = vpop.f32.mrf.mxu1 }
0x1e32   : > { %v12443_v56 = vpop.f32.mrf.mxu1 }
0x1e33   : > { %v7667_v27 = vpack.c.bf16 %v12443_v56, %v12442_v55  ;;  %v19058_v55 = vld [vmem:[#allocation48_spill] sm:$0xff] }
0x1e34   : > { %v7648_v16 = vpop.f32.mrf.mxu1 }
0x1e35   : > { %v7666_v13 = vpack.c.bf16 %v7648_v16, %v7645_v62  ;;  %7738 = vrot.lane.b32.xlu1 %v7667_v27, %s13803_s28  ;;  %v19059_v62 = vld [vmem:[#allocation50_spill] sm:$0xff] }
0x1e36   : > { %v6220_v56 = vpack.c.bf16 %v19059_v62, %v19058_v55 }
0x1e37   : > { %7736 = vrot.lane.b32.xlu0 %v7666_v13, %s13803_s28  ;;  %v19060_v13 = vld [vmem:[#allocation49_spill] sm:$0xff] }
0x1e38   : > { %v19062_v61 = vpack.c.bf16 %v19060_v13, %v19061_v6 }
0x1e68   : > { %v7727_v36 = vpop.permute.xlu1 %7726 }
0x1e69   : > { %v7784_v18 = vsel %vm3133_vm2, %v7767_v39, %v7727_v36  ;;  %v19065_v36 = vld [vmem:[#allocation7_spill] sm:$0xff]  ;;  %v19067_v39 = vld [vmem:[#allocation12_spill] sm:$0xff] }
0x1e6a   : > { %v7725_v31 = vpop.permute.xlu0 %7724 }
0x1e6b   : > { %v7781_v0 = vsel %vm3133_vm2, %v7765_v19, %v7725_v31 }
0x1e6c   : > { %v7711_v11 = vpop.permute.xlu1 %7710  ;;  %12460 = vmatprep.mubr.bf16.mxu1 %v7781_v0 }
0x1e6d   : > { %12461 = vmatmul.mubr.bf16.vlgmr.msra.gmra.mxu1 %v7784_v18  ;;  %v7775_v12 = vsel %vm3116_vm1, %v7757_v33, %v7711_v11  ;;  %v19075_v33 = vld [vmem:[#allocation37_spill] sm:$0xff] }
0x1e6e   : > { %v7709_v41 = vpop.permute.xlu0 %7708 }
0x1e6f   : > { %v7773_v3 = vsel %vm3116_vm1, %v7754_v37, %v7709_v41  ;;  %v19068_v41 = vld [vmem:[#allocation14_spill] sm:$0xff] }
0x1e70   : > { %v7731_v8 = vpop.permute.xlu1 %7730 }
0x1e71   : > { %v7790_v43 = vsel %vm3133_vm2, %v7771_v21, %v7731_v8  ;;  %v19071_v21 = vld [vmem:[#allocation18_spill] sm:$0xff] }
0x1e72   : > { %v7729_v38 = vpop.permute.xlu0 %7728 }
0x1e73   : > { %v7787_v59 = vsel %vm3133_vm2, %v7769_v30, %v7729_v38 }
0x1e74   : > { %v7691_v51 = vpop.permute.xlu1 %7690  ;;  %12464 = vmatprep.mubr.bf16.mxu1 %v7787_v59 }
0x1e75   : > { %12465 = vmatmul.mubr.bf16.gmra.mxu1 %v7790_v43  ;;  %v7763_v26 = vsel %vm1155_vm0, %v19062_v61, %v7691_v51  ;;  %v19072_v51 = vld [vmem:[#allocation8_spill] sm:$0xff]  ;;  %v19079_v61 = vld [vmem:[#allocation21_spill] sm:$0xff] }
0x1e76   : > { %v7689_v35 = vpop.permute.xlu0 %7688 }
0x1e77   : > { %v7760_v27 = vsel %vm1155_vm0, %v6220_v56, %v7689_v35 }
0x1e78   : > { %v7735_v49 = vpop.permute.xlu1 %7734 }
0x1e79   : > { %v7796_v1 = vsel %vm3133_vm2, %v7775_v12, %v7735_v49 }
0x1e7a   : > { %v7733_v22 = vpop.permute.xlu0 %7732 }
0x1e7b   : > { %v7793_v15 = vsel %vm3133_vm2, %v7773_v3, %v7733_v22  ;;  %v19076_v22 = vld [vmem:[#allocation38_spill] sm:$0xff] }
0x1e7c   : > { %12468 = vmatprep.mubr.bf16.mxu1 %v7793_v15  ;;  %v7715_v53 = vpop.permute.xlu1 %7714 }
0x1e7d   : > { %12469 = vmatmul.mubr.bf16.gmra.mxu1 %v7796_v1  ;;  %v7779_v48 = vsel %vm3116_vm1, %v7763_v26, %v7715_v53  ;;  %v19077_v1 = vld [vmem:[#allocation35_spill] sm:$0xff] }
0x1e7e   : > { %v7713_v7 = vpop.permute.xlu0 %7712 }
0x1e7f   : > { %v7777_v4 = vsel %vm3116_vm1, %v7760_v27, %v7713_v7 }
0x1ea7   : > { %v7739_v16 = vpop.permute.xlu1 %7738 }
0x1ea8   : > { %v7802_v45 = vsel %vm3133_vm2, %v7779_v48, %v7739_v16  ;;  %v19078_v16 = vld [vmem:[#allocation20_spill] sm:$0xff]  ;;  %v19081_v48 = vld [vmem:[#allocation22_spill] sm:$0xff] }
0x1ea9   : > { %v7737_v29 = vpop.permute.xlu0 %7736 }
0x1eaa   : > { %v7799_v42 = vsel %vm3133_vm2, %v7777_v4, %v7737_v29 }
0x1eab   : > { %12472 = vmatprep.mubr.bf16.mxu1 %v7799_v42 }
0x1eac   : > { %12473 = vmatmul.mubr.bf16.gmra.mxu1 %v7802_v45 }
0x1f2d   : > { %v12462_v46 = vpop.f32.mrf.mxu1 }
0x1f2e   : > { %v7968_v63 = vadd.f32 %v12462_v46, %v19066_v47  ;;  %v19083_v46 = vld [vmem:[#allocation19_spill] sm:$0xff] }
0x1f2f   : > { %v7903_v25 = vpop.f32.mrf.mxu1 }
0x1f30   : > { %v7966_v44 = vadd.f32 %v7903_v25, %v19065_v36  ;;  %v17799_v11 = vadd.f32 %v7985_v10, %v7968_v63 }
0x1f31   : > { %v12463_v2 = vpop.f32.mrf.mxu1 }
0x1f32   : > { %v17795_v31 = vadd.f32 %v7985_v10, %v7966_v44  ;;  %v7969_v5 = vadd.f32 %v12463_v2, %v19068_v41 }
0x1f33   : > { %v7906_v19 = vpop.f32.mrf.mxu1 }
0x1f34   : > { %v7967_v0 = vadd.f32 %v7906_v19, %v19067_v39  ;;  %8002 = vadd.xlane.f32.xlu0 %v17795_v31  ;;  %v17806_v54 = vadd.f32 %v7985_v10, %v7969_v5 }
0x1f35   : > { %v12466_v18 = vpop.f32.mrf.mxu1 }
0x1f36   : > { %v17802_v58 = vadd.f32 %v7985_v10, %v7967_v0  ;;  %v7972_v59 = vadd.f32 %v12466_v18, %v19071_v21 }
0x1f37   : > { %v7919_v24 = vpop.f32.mrf.mxu1 }
0x1f38   : > { %8006 = vadd.xlane.f32.xlu0 %v17799_v11  ;;  %8004 = vadd.xlane.f32.xlu1 %v17802_v58  ;;  %v7970_v17 = vadd.f32 %v7919_v24, %v19069_v23  ;;  %v17819_v37 = vadd.f32 %v7985_v10, %v7972_v59 }
0x1f39   : > { %v12467_v8 = vpop.f32.mrf.mxu1 }
0x1f3a   : > { %v17812_v43 = vadd.f32 %v7985_v10, %v7970_v17  ;;  %v7973_v35 = vadd.f32 %v12467_v8, %v19072_v51 }
0x1f3b   : > { %v7922_v34 = vpop.f32.mrf.mxu1 }
0x1f3c   : > { %v7971_v30 = vadd.f32 %v7922_v34, %v19070_v9  ;;  %8008 = vadd.xlane.f32.xlu0 %v17806_v54  ;;  %v17821_v49 = vadd.f32 %v7985_v10, %v7973_v35 }
0x1f3d   : > { %v12470_v38 = vpop.f32.mrf.mxu1 }
0x1f3e   : > { %v17815_v50 = vadd.f32 %v7985_v10, %v7971_v30  ;;  %19073 = vst [vmem:[#allocation30_spill] sm:$0xff] %v17821_v49  ;;  %v7976_v12 = vadd.f32 %v12470_v38, %v19076_v22 }
0x1f3f   : > { %v7935_v57 = vpop.f32.mrf.mxu1 }
0x1f40   : > { %8010 = vadd.xlane.f32.xlu0 %v17812_v43  ;;  %8012 = vadd.xlane.f32.xlu1 %v17815_v50  ;;  %v7974_v32 = vadd.f32 %v7935_v57, %v19074_v40  ;;  %v17835_v55 = vadd.f32 %v7985_v10, %v7976_v12 }
0x1f41   : > { %v12471_v60 = vpop.f32.mrf.mxu1 }
0x1f42   : > { %v17828_v15 = vadd.f32 %v7985_v10, %v7974_v32  ;;  %v7977_v53 = vadd.f32 %v12471_v60, %v19077_v1 }
0x1f43   : > { %v7938_v14 = vpop.f32.mrf.mxu1 }
0x1f44   : > { %v7975_v3 = vadd.f32 %v7938_v14, %v19075_v33  ;;  %8014 = vadd.xlane.f32.xlu0 %v17819_v37  ;;  %8016 = vadd.xlane.f32.xlu1 %v17821_v49  ;;  %v17837_v62 = vadd.f32 %v7985_v10, %v7977_v53  ;;  %v12983_v33 = vld [vmem:[%s18717_s4 + $0x138] sm:$0xff]  }
0x1f45   : > { %12476 = vmatprep.subr.bf16.mxu0 %v12983_v33 }
0x1f46   : > { %v17831_v7 = vadd.f32 %v7985_v10, %v7975_v3  ;;  %v12984_v3 = vld [vmem:[%s18717_s4 + $0x178] sm:$0xff]   ;;  %12477 = vmatpush3.bf16.msra.mxu0 %v12983_v33 }
0x1f47   : > { %12508 = vmatprep.subr.bf16.mxu1 %v12984_v3 }
0x1f48   : > { %8018 = vadd.xlane.f32.xlu0 %v17828_v15  ;;  %8020 = vadd.xlane.f32.xlu1 %v17831_v7 }
0x1f49   : > { %12509 = vmatpush3.bf16.msra.mxu1 %v12984_v3 }
0x1f4c   : > { %8022 = vadd.xlane.f32.xlu0 %v17835_v55  ;;  %8024 = vadd.xlane.f32.xlu1 %v17837_v62 }
0x1f6c   : > { %v12474_v56 = vpop.f32.mrf.mxu1 }
0x1f6d   : > { %v7980_v26 = vadd.f32 %v12474_v56, %v19079_v61  ;;  %v12986_v61 = vld [vmem:[%s18717_s4 + $0x170] sm:$0xff]  }
0x1f6e   : > { %v7951_v27 = vpop.f32.mrf.mxu1  ;;  %12510 = vmatprep.subr.bf16.mxu1 %v12986_v61 }
0x1f6f   : > { %v7978_v13 = vadd.f32 %v7951_v27, %v19078_v16  ;;  %v17847_v45 = vadd.f32 %v7985_v10, %v7980_v26  ;;  %12511 = vmatpush3.bf16.msra.mxu1 %v12986_v61 }
0x1f70   : > { %v12475_v6 = vpop.f32.mrf.mxu1 }
0x1f71   : > { %v17843_v4 = vadd.f32 %v7985_v10, %v7978_v13  ;;  %19082 = vst [vmem:[#allocation29_spill] sm:$0xff] %v17847_v45  ;;  %v7981_v25 = vadd.f32 %v12475_v6, %v19083_v46  ;;  %v12985_v6 = vld [vmem:[%s18717_s4 + $0x130] sm:$0xff]  }
0x1f72   : > { %v7954_v29 = vpop.f32.mrf.mxu1  ;;  %12478 = vmatprep.subr.bf16.mxu0 %v12985_v6 }
0x1f73   : > { %19080 = vst [vmem:[#allocation32_spill] sm:$0xff] %v17843_v4  ;;  %v7979_v42 = vadd.f32 %v7954_v29, %v19081_v48  ;;  %8026 = vadd.xlane.f32.xlu0 %v17843_v4  ;;  %v17854_v36 = vadd.f32 %v7985_v10, %v7981_v25  ;;  %12479 = vmatpush3.bf16.msra.mxu0 %v12985_v6 }
0x1f75   : > { %v17850_v52 = vadd.f32 %v7985_v10, %v7979_v42  ;;  %19085 = vst [vmem:[#allocation17_spill] sm:$0xff] %v17854_v36 }
0x1f77   : > { %19084 = vst [vmem:[#allocation28_spill] sm:$0xff] %v17850_v52  ;;  %8030 = vadd.xlane.f32.xlu0 %v17847_v45  ;;  %8028 = vadd.xlane.f32.xlu1 %v17850_v52 }
0x1f7b   : > { %8032 = vadd.xlane.f32.xlu1 %v17854_v36 }
0x1fbd   : > { %v8003_v44 = vpop.xlane.xlu0 %8002 }
0x1fbe   : > { %v8034_v2 = vmul.f32 0.0078125, %v8003_v44 }
0x1fc0   : > { %v17858_v47 = vsub.f32 %v17795_v31, %v8034_v2 }
0x1fc1   : > { %v8005_v63 = vpop.xlane.xlu1 %8004  ;;  %v8007_v19 = vpop.xlane.xlu0 %8006 }
0x1fc2   : > { %v8035_v39 = vmul.f32 0.0078125, %v8005_v63  ;;  %v8036_v0 = vmul.f32 0.0078125, %v8007_v19  ;;  %v8066_v18 = vmul.f32 %v17858_v47, %v17858_v47  ;;  %v12987_v63 = vld [vmem:[%s18717_s4 + $0x128] sm:$0xff]  }
0x1fc3   : > { %v12988_v19 = vld [vmem:[%s18717_s4 + $0x168] sm:$0xff]   ;;  %12480 = vmatprep.subr.bf16.mxu0 %v12987_v63 }
0x1fc4   : > { %v17863_v41 = vsub.f32 %v17802_v58, %v8035_v39  ;;  %v17866_v10 = vsub.f32 %v17799_v11, %v8036_v0  ;;  %8082 = vadd.xlane.f32.xlu0 %v8066_v18  ;;  %12512 = vmatprep.subr.bf16.mxu1 %v12988_v19 }
0x1fc5   : > { %v8009_v5 = vpop.xlane.xlu0 %8008  ;;  %12481 = vmatpush3.bf16.msra.mxu0 %v12987_v63  ;;  %12513 = vmatpush3.bf16.msra.mxu1 %v12988_v19 }
0x1fc6   : > { %v8037_v24 = vmul.f32 0.0078125, %v8009_v5  ;;  %v8067_v8 = vmul.f32 %v17863_v41, %v17863_v41  ;;  %v8068_v23 = vmul.f32 %v17866_v10, %v17866_v10 }
0x1fc8   : > { %v17873_v17 = vsub.f32 %v17806_v54, %v8037_v24  ;;  %8084 = vadd.xlane.f32.xlu1 %v8067_v8  ;;  %8086 = vadd.xlane.f32.xlu0 %v8068_v23  ;;  %v12989_v24 = vld [vmem:[%s18717_s4 + $0x120] sm:$0xff]   ;;  %v12991_v23 = vld [vmem:[%s18717_s4 + $0x118] sm:$0xff]  }
0x1fc9   : > { %v8013_v34 = vpop.xlane.xlu1 %8012  ;;  %v8011_v9 = vpop.xlane.xlu0 %8010  ;;  %v12990_v8 = vld [vmem:[%s18717_s4 + $0x160] sm:$0xff]   ;;  %12482 = vmatprep.subr.bf16.mxu0 %v12989_v24 }
0x1fca   : > { %v8039_v30 = vmul.f32 0.0078125, %v8013_v34  ;;  %v8038_v38 = vmul.f32 0.0078125, %v8011_v9  ;;  %v8069_v21 = vmul.f32 %v17873_v17, %v17873_v17  ;;  %12514 = vmatprep.subr.bf16.mxu1 %v12990_v8  ;;  %12483 = vmatpush3.bf16.msra.mxu0 %v12989_v24  ;;  %v12992_v34 = vld [vmem:[%s18717_s4 + $0x158] sm:$0xff]   ;;  %v12993_v9 = vld [vmem:[%s18717_s4 + $0x110] sm:$0xff]  }
0x1fcb   : > { %12515 = vmatpush3.bf16.msra.mxu1 %v12990_v8  ;;  %12484 = vmatprep.subr.bf16.mxu0 %v12991_v23 }
0x1fcc   : > { %v17878_v59 = vsub.f32 %v17815_v50, %v8039_v30  ;;  %v17881_v51 = vsub.f32 %v17812_v43, %v8038_v38  ;;  %8088 = vadd.xlane.f32.xlu1 %v8069_v21  ;;  %12516 = vmatprep.subr.bf16.mxu1 %v12992_v34  ;;  %v12994_v30 = vld [vmem:[%s18717_s4 + $0x150] sm:$0xff]   ;;  %v12995_v38 = vld [vmem:[%s18717_s4 + $0x108] sm:$0xff]  }
0x1fcd   : > { %v8017_v35 = vpop.xlane.xlu1 %8016  ;;  %v8015_v57 = vpop.xlane.xlu0 %8014  ;;  %v12996_v21 = vld [vmem:[%s18717_s4 + $0x148] sm:$0xff]  }
0x1fce   : > { %v8041_v60 = vmul.f32 0.0078125, %v8017_v35  ;;  %v8040_v40 = vmul.f32 0.0078125, %v8015_v57  ;;  %v8071_v32 = vmul.f32 %v17878_v59, %v17878_v59  ;;  %v8070_v14 = vmul.f32 %v17881_v51, %v17881_v51  ;;  %12485 = vmatpush3.bf16.msra.mxu0 %v12991_v23  ;;  %v12997_v35 = vld [vmem:[%s18717_s4 + $0x100] sm:$0xff]  }
0x1fcf   : > { %12517 = vmatpush3.bf16.msra.mxu1 %v12992_v34  ;;  %12486 = vmatprep.subr.bf16.mxu0 %v12993_v9  ;;  %v12998_v57 = vld [vmem:[%s18717_s4 + $0x140] sm:$0xff]  }
0x1fd0   : > { %v17894_v22 = vsub.f32 %v17821_v49, %v8041_v60  ;;  %v17897_v12 = vsub.f32 %v17819_v37, %v8040_v40  ;;  %8092 = vadd.xlane.f32.xlu1 %v8071_v32  ;;  %8090 = vadd.xlane.f32.xlu0 %v8070_v14 }
0x1fd1   : > { %v8021_v1 = vpop.xlane.xlu1 %8020  ;;  %v8019_v53 = vpop.xlane.xlu0 %8018  ;;  %12518 = vmatprep.subr.bf16.mxu1 %v12994_v30 }
0x1fd2   : > { %v8043_v56 = vmul.f32 0.0078125, %v8021_v1  ;;  %v8042_v27 = vmul.f32 0.0078125, %v8019_v53  ;;  %v8073_v16 = vmul.f32 %v17894_v22, %v17894_v22  ;;  %v8072_v13 = vmul.f32 %v17897_v12, %v17897_v12  ;;  %12487 = vmatpush3.bf16.msra.mxu0 %v12993_v9 }
0x1fd3   : > { %12519 = vmatpush3.bf16.msra.mxu1 %v12994_v30  ;;  %12488 = vmatprep.subr.bf16.mxu0 %v12995_v38 }
0x1fd4   : > { %v17910_v26 = vsub.f32 %v17831_v7, %v8043_v56  ;;  %v17913_v29 = vsub.f32 %v17828_v15, %v8042_v27  ;;  %8096 = vadd.xlane.f32.xlu1 %v8073_v16  ;;  %8094 = vadd.xlane.f32.xlu0 %v8072_v13 }
0x1fd5   : > { %v8025_v48 = vpop.xlane.xlu1 %8024  ;;  %v8023_v42 = vpop.xlane.xlu0 %8022  ;;  %12520 = vmatprep.subr.bf16.mxu1 %v12996_v21 }
0x1fd6   : > { %v8045_v46 = vmul.f32 0.0078125, %v8025_v48  ;;  %v8044_v25 = vmul.f32 0.0078125, %v8023_v42  ;;  %v8075_v44 = vmul.f32 %v17910_v26, %v17910_v26  ;;  %v8074_v2 = vmul.f32 %v17913_v29, %v17913_v29  ;;  %12489 = vmatpush3.bf16.msra.mxu0 %v12995_v38 }
0x1fd7   : > { %12521 = vmatpush3.bf16.msra.mxu1 %v12996_v21  ;;  %12490 = vmatprep.subr.bf16.mxu0 %v12997_v35 }
0x1fd8   : > { %v17926_v39 = vsub.f32 %v17837_v62, %v8045_v46  ;;  %v17929_v0 = vsub.f32 %v17835_v55, %v8044_v25  ;;  %8100 = vadd.xlane.f32.xlu1 %v8075_v44  ;;  %8098 = vadd.xlane.f32.xlu0 %v8074_v2  ;;  %v17988_v46 = vld [vmem:[%s18718_s5 + $0x178] sm:$0xff]  }
0x1fd9   : > { %12522 = vmatprep.subr.bf16.mxu1 %v12998_v57  ;;  %v17993_v25 = vld [vmem:[%s18718_s5 + $0x138] sm:$0xff]  }
0x1fda   : > { %v8077_v18 = vmul.f32 %v17926_v39, %v17926_v39  ;;  %v8076_v5 = vmul.f32 %v17929_v0, %v17929_v0  ;;  %12491 = vmatpush3.bf16.msra.mxu0 %v12997_v35 }
0x1fdb   : > { %12523 = vmatpush3.bf16.msra.mxu1 %v12998_v57  ;;  %12540 = vmatprep.subr.bf16.mxu0 %v17988_v46 }
0x1fdc   : > { %8104 = vadd.xlane.f32.xlu1 %v8077_v18  ;;  %8102 = vadd.xlane.f32.xlu0 %v8076_v5 }
0x1fdd   : > { %12572 = vmatprep.subr.bf16.mxu1 %v17993_v25 }
0x1ffc   : > { %v8027_v60 = vpop.xlane.xlu0 %8026 }
0x1ffd   : > { %v8046_v40 = vmul.f32 0.0078125, %v8027_v60 }
0x1fff   : > { %v17966_v32 = vsub.f32 %v17843_v4, %v8046_v40  ;;  %v13794_v4 = vld [vmem:[%s18720_s7 + $0x8] sm:$0x3f] }
0x2000   : > { %v8029_v14 = vpop.xlane.xlu1 %8028  ;;  %v8031_v33 = vpop.xlane.xlu0 %8030 }
0x2001   : > { %v8047_v3 = vmul.f32 0.0078125, %v8029_v14  ;;  %v8048_v1 = vmul.f32 0.0078125, %v8031_v33  ;;  %v8078_v53 = vmul.f32 %v17966_v32, %v17966_v32 }
0x2003   : > { %v17971_v56 = vsub.f32 %v17850_v52, %v8047_v3  ;;  %v17974_v27 = vsub.f32 %v17847_v45, %v8048_v1  ;;  %8106 = vadd.xlane.f32.xlu0 %v8078_v53 }
0x2004   : > { %v8033_v16 = vpop.xlane.xlu1 %8032 }
0x2005   : > { %v8049_v13 = vmul.f32 0.0078125, %v8033_v16  ;;  %v8079_v6 = vmul.f32 %v17971_v56, %v17971_v56  ;;  %v8080_v61 = vmul.f32 %v17974_v27, %v17974_v27  ;;  %v19086_v16 = vsub.s32 3, %v19063_v28 }
0x2007   : > { %v17981_v48 = vsub.f32 %v17854_v36, %v8049_v13  ;;  %8108 = vadd.xlane.f32.xlu1 %v8079_v6  ;;  %8110 = vadd.xlane.f32.xlu0 %v8080_v61  ;;  %v18000_v13 = vrot.slane %v17788_v20, %v19086_v16 }
0x2009   : > { %v8081_v42 = vmul.f32 %v17981_v48, %v17981_v48 }
0x200b   : > { %8112 = vadd.xlane.f32.xlu1 %v8081_v42 }
0x204d   : > { %v8083_v44 = vpop.xlane.xlu0 %8082 }
0x204e   : > { %v8114_v2 = vmul.f32 0.0078125, %v8083_v44 }
0x2050   : > { %v8130_v63 = vadd.f32 1e-05, %v8114_v2 }
0x2051   : > { %v8085_v19 = vpop.xlane.xlu1 %8084  ;;  %v8087_v18 = vpop.xlane.xlu0 %8086 }
0x2052   : > { %13663 = vrsqrt.f32 %v8130_v63  ;;  %v8115_v5 = vmul.f32 0.0078125, %v8085_v19  ;;  %v8116_v24 = vmul.f32 0.0078125, %v8087_v18 }
0x2054   : > { %v8131_v8 = vadd.f32 1e-05, %v8115_v5  ;;  %v8132_v23 = vadd.f32 1e-05, %v8116_v24  ;;  %v19087_v24 = vsub.s32 4, %v19063_v28 }
0x2055   : > { %v8089_v34 = vpop.xlane.xlu1 %8088 }
0x2056   : > { %13665 = vrsqrt.f32 %v8131_v8  ;;  %v8117_v9 = vmul.f32 0.0078125, %v8089_v34  ;;  %v18007_v8 = vrot.slane %v17788_v20, %v19087_v24 }
0x2057   : > { %13667 = vrsqrt.f32 %v8132_v23 }
0x2058   : > { %v8133_v30 = vadd.f32 1e-05, %v8117_v9 }
0x2059   : > { %v8093_v38 = vpop.xlane.xlu1 %8092  ;;  %v8091_v21 = vpop.xlane.xlu0 %8090 }
0x205a   : > { %13669 = vrsqrt.f32 %v8133_v30  ;;  %v8119_v35 = vmul.f32 0.0078125, %v8093_v38  ;;  %v8118_v57 = vmul.f32 0.0078125, %v8091_v21 }
0x205c   : > { %v8135_v60 = vadd.f32 1e-05, %v8119_v35  ;;  %v8134_v40 = vadd.f32 1e-05, %v8118_v57 }
0x205d   : > { %v8097_v14 = vpop.xlane.xlu1 %8096  ;;  %v8095_v33 = vpop.xlane.xlu0 %8094 }
0x205e   : > { %13671 = vrsqrt.f32 %v8135_v60  ;;  %v8121_v3 = vmul.f32 0.0078125, %v8097_v14  ;;  %v8120_v1 = vmul.f32 0.0078125, %v8095_v33 }
0x205f   : > { %v13664_v53 = vpop.eup %13663  ;;  %13673 = vrsqrt.f32 %v8134_v40 }
0x2060   : > { %v8137_v6 = vadd.f32 1e-05, %v8121_v3  ;;  %v8136_v61 = vadd.f32 1e-05, %v8120_v1  ;;  %v8162_v42 = vmul.f32 %v13664_v53, %v17858_v47 }
0x2061   : > { %v8101_v44 = vpop.xlane.xlu1 %8100  ;;  %v8099_v2 = vpop.xlane.xlu0 %8098 }
0x2062   : > { %13675 = vrsqrt.f32 %v8137_v6  ;;  %v8123_v63 = vmul.f32 0.0078125, %v8101_v44  ;;  %v8122_v19 = vmul.f32 0.0078125, %v8099_v2  ;;  %v8182_v5 = vmul.f32 %v18000_v13, %v8162_v42 }
0x2063   : > { %v13666_v18 = vpop.eup %13665  ;;  %13677 = vrsqrt.f32 %v8136_v61 }
0x2064   : > { %v13668_v23 = vpop.eup %13667  ;;  %v8139_v34 = vadd.f32 1e-05, %v8123_v63  ;;  %v8138_v9 = vadd.f32 1e-05, %v8122_v19  ;;  %v8163_v30 = vmul.f32 %v13666_v18, %v17863_v41  ;;  %v8202_v20 = vadd.f32 %v18007_v8, %v8182_v5  ;;  %v13001_v19 = vld [vmem:[%s18718_s5 + $0x170] sm:$0xff]  }
0x2065   : > { %v8164_v47 = vmul.f32 %v13668_v23, %v17866_v10  ;;  %v8105_v38 = vpop.xlane.xlu1 %8104  ;;  %v8103_v21 = vpop.xlane.xlu0 %8102  ;;  %v13002_v18 = vld [vmem:[%s18718_s5 + $0x130] sm:$0xff]  }
0x2066   : > { %13679 = vrsqrt.f32 %v8139_v34  ;;  %v8125_v35 = vmul.f32 0.0078125, %v8105_v38  ;;  %v8124_v57 = vmul.f32 0.0078125, %v8103_v21  ;;  %v8183_v60 = vmul.f32 %v18000_v13, %v8163_v30 }
0x2067   : > { %v13670_v40 = vpop.eup %13669  ;;  %v8184_v14 = vmul.f32 %v18000_v13, %v8164_v47  ;;  %13681 = vrsqrt.f32 %v8138_v9 }
0x2068   : > { %v8165_v33 = vmul.f32 %v13670_v40, %v17873_v17  ;;  %v8141_v3 = vadd.f32 1e-05, %v8125_v35  ;;  %v8140_v1 = vadd.f32 1e-05, %v8124_v57  ;;  %v8203_v41 = vadd.f32 %v18007_v8, %v8183_v60 }
0x2069   : > { %v8204_v61 = vadd.f32 %v18007_v8, %v8184_v14 }
0x206a   : > { %v8185_v10 = vmul.f32 %v18000_v13, %v8165_v33  ;;  %13683 = vrsqrt.f32 %v8141_v3  ;;  %v18017_v53 = vpack.c.bf16 %v8203_v41, %v8202_v20  ;;  %v13006_v3 = vld [vmem:[%s18718_s5 + $0x120] sm:$0xff]  }
0x206b   : > { %v13672_v16 = vpop.eup %13671  ;;  %13685 = vrsqrt.f32 %v8140_v1 }
0x206c   : > { %v13674_v6 = vpop.eup %13673  ;;  %12492 = vmatprep.mubr.bf16.mxu0 %v18017_v53  ;;  %12524 = vmatprep.mubr.bf16.mxu1 %v18017_v53  ;;  %v8205_v17 = vadd.f32 %v18007_v8, %v8185_v10  ;;  %v8167_v42 = vmul.f32 %v13672_v16, %v17878_v59 }
0x206d   : > { %v8166_v44 = vmul.f32 %v13674_v6, %v17881_v51 }
0x206e   : > { %v18025_v2 = vpack.c.bf16 %v8205_v17, %v8204_v61  ;;  %v8187_v63 = vmul.f32 %v18000_v13, %v8167_v42  ;;  %v13008_v42 = vld [vmem:[%s18718_s5 + $0x118] sm:$0xff]  }
0x206f   : > { %v13676_v5 = vpop.eup %13675  ;;  %v8186_v24 = vmul.f32 %v18000_v13, %v8166_v44 }
0x2070   : > { %v13678_v23 = vpop.eup %13677  ;;  %12493 = vmatmul.mubr.bf16.vlgmr.msra.gmra.mxu0 %v18025_v2  ;;  %12525 = vmatmul.mubr.bf16.vlgmr.msra.gmra.mxu1 %v18025_v2  ;;  %v8207_v59 = vadd.f32 %v18007_v8, %v8187_v63  ;;  %v8169_v51 = vmul.f32 %v13676_v5, %v17894_v22  ;;  %v13003_v22 = vld [vmem:[%s18718_s5 + $0x168] sm:$0xff]  }
0x2071   : > { %v8206_v34 = vadd.f32 %v18007_v8, %v8186_v24  ;;  %v8168_v9 = vmul.f32 %v13678_v23, %v17897_v12  ;;  %12541 = vmatpush3.bf16.msra.mxu0 %v17988_v46  ;;  %12573 = vmatpush3.bf16.msra.mxu1 %v17993_v25  ;;  %v13004_v12 = vld [vmem:[%s18718_s5 + $0x128] sm:$0xff]  }
0x2072   : > { %v8189_v30 = vmul.f32 %v18000_v13, %v8169_v51  ;;  %12542 = vmatprep.subr.bf16.mxu0 %v13001_v19  ;;  %12574 = vmatprep.subr.bf16.mxu1 %v13002_v18 }
0x2073   : > { %v13680_v47 = vpop.eup %13679  ;;  %v18044_v38 = vpack.c.bf16 %v8207_v59, %v8206_v34  ;;  %v8188_v21 = vmul.f32 %v18000_v13, %v8168_v9 }
0x2074   : > { %v13682_v46 = vpop.eup %13681  ;;  %v8209_v25 = vadd.f32 %v18007_v8, %v8189_v30  ;;  %v8171_v35 = vmul.f32 %v13680_v47, %v17910_v26  ;;  %v13005_v26 = vld [vmem:[%s18718_s5 + $0x160] sm:$0xff]  }
0x2075   : > { %12496 = vmatprep.mubr.bf16.mxu0 %v18044_v38  ;;  %12528 = vmatprep.mubr.bf16.mxu1 %v18044_v38  ;;  %v8208_v57 = vadd.f32 %v18007_v8, %v8188_v21  ;;  %v8170_v60 = vmul.f32 %v13682_v46, %v17913_v29 }
0x2076   : > { %v8191_v40 = vmul.f32 %v18000_v13, %v8171_v35  ;;  %12543 = vmatpush3.bf16.msra.mxu0 %v13001_v19  ;;  %12575 = vmatpush3.bf16.msra.mxu1 %v13002_v18 }
0x2077   : > { %v13684_v14 = vpop.eup %13683  ;;  %v18060_v20 = vpack.c.bf16 %v8209_v25, %v8208_v57  ;;  %v8190_v33 = vmul.f32 %v18000_v13, %v8170_v60  ;;  %12544 = vmatprep.subr.bf16.mxu0 %v13003_v22  ;;  %12576 = vmatprep.subr.bf16.mxu1 %v13004_v12 }
0x2078   : > { %v13686_v29 = vpop.eup %13685  ;;  %v8211_v1 = vadd.f32 %v18007_v8, %v8191_v40  ;;  %v8173_v41 = vmul.f32 %v13684_v14, %v17926_v39  ;;  %v13007_v39 = vld [vmem:[%s18718_s5 + $0x158] sm:$0xff]  }
0x2079   : > { %12497 = vmatmul.mubr.bf16.gmra.mxu0 %v18060_v20  ;;  %12529 = vmatmul.mubr.bf16.gmra.mxu1 %v18060_v20  ;;  %v8210_v10 = vadd.f32 %v18007_v8, %v8190_v33  ;;  %v8172_v16 = vmul.f32 %v13686_v29, %v17929_v0 }
0x207a   : > { %v8193_v6 = vmul.f32 %v18000_v13, %v8173_v41  ;;  %12545 = vmatpush3.bf16.msra.mxu0 %v13003_v22  ;;  %12577 = vmatpush3.bf16.msra.mxu1 %v13004_v12 }
0x207b   : > { %v18076_v61 = vpack.c.bf16 %v8211_v1, %v8210_v10  ;;  %v8192_v17 = vmul.f32 %v18000_v13, %v8172_v16  ;;  %12546 = vmatprep.subr.bf16.mxu0 %v13005_v26  ;;  %12578 = vmatprep.subr.bf16.mxu1 %v13006_v3  ;;  %v13012_v10 = vld [vmem:[%s18718_s5 + $0x108] sm:$0xff]   ;;  %v13013_v16 = vld [vmem:[%s18718_s5 + $0x140] sm:$0xff]  }
0x207c   : > { %v8213_v0 = vadd.f32 %v18007_v8, %v8193_v6  ;;  %v13014_v6 = vld [vmem:[%s18718_s5 + $0x100] sm:$0xff]  }
0x207d   : > { %12500 = vmatprep.mubr.bf16.mxu0 %v18076_v61  ;;  %12532 = vmatprep.mubr.bf16.mxu1 %v18076_v61  ;;  %v8212_v44 = vadd.f32 %v18007_v8, %v8192_v17  ;;  %v13015_v17 = vld [vmem:[%s18717_s4 + $0x1b8] sm:$0xff]  }
0x207e   : > { %12547 = vmatpush3.bf16.msra.mxu0 %v13005_v26  ;;  %12579 = vmatpush3.bf16.msra.mxu1 %v13006_v3 }
0x207f   : > { %v18089_v63 = vpack.c.bf16 %v8213_v0, %v8212_v44  ;;  %12548 = vmatprep.subr.bf16.mxu0 %v13007_v39  ;;  %12580 = vmatprep.subr.bf16.mxu1 %v13008_v42 }
0x2081   : > { %12501 = vmatmul.mubr.bf16.gmra.mxu0 %v18089_v63  ;;  %12533 = vmatmul.mubr.bf16.gmra.mxu1 %v18089_v63 }
0x2082   : > { %12549 = vmatpush3.bf16.msra.mxu0 %v13007_v39  ;;  %12581 = vmatpush3.bf16.msra.mxu1 %v13008_v42 }
0x208c   : > { %v8107_v19 = vpop.xlane.xlu0 %8106 }
0x208d   : > { %v8126_v18 = vmul.f32 0.0078125, %v8107_v19  ;;  %v18137_v19 = vld [vmem:[%s18719_s6 + $0x4] ss:$0 sm:$0xff] }
0x208f   : > { %v8142_v5 = vadd.f32 1e-05, %v8126_v18  ;;  %v18142_v18 = vld [vmem:[%s18719_s6 + $0x5] ss:$0 sm:$0xff] }
0x2090   : > { %v8109_v24 = vpop.xlane.xlu1 %8108  ;;  %v8111_v23 = vpop.xlane.xlu0 %8110 }
0x2091   : > { %13687 = vrsqrt.f32 %v8142_v5  ;;  %v8127_v59 = vmul.f32 0.0078125, %v8109_v24  ;;  %v8128_v51 = vmul.f32 0.0078125, %v8111_v23 }
0x2093   : > { %v8143_v34 = vadd.f32 1e-05, %v8127_v59  ;;  %v8144_v9 = vadd.f32 1e-05, %v8128_v51 }
0x2094   : > { %v8113_v30 = vpop.xlane.xlu1 %8112 }
0x2095   : > { %13689 = vrsqrt.f32 %v8143_v34  ;;  %v8129_v47 = vmul.f32 0.0078125, %v8113_v30 }
0x2096   : > { %13691 = vrsqrt.f32 %v8144_v9 }
0x2097   : > { %v8145_v21 = vadd.f32 1e-05, %v8129_v47 }
0x2099   : > { %13693 = vrsqrt.f32 %v8145_v21 }
0x209e   : > { %v13688_v22 = vpop.eup %13687 }
0x209f   : > { %v8174_v12 = vmul.f32 %v13688_v22, %v17966_v32 }
0x20a1   : > { %v8194_v57 = vmul.f32 %v18000_v13, %v8174_v12 }
0x20a2   : > { %v13690_v46 = vpop.eup %13689 }
0x20a3   : > { %v13692_v25 = vpop.eup %13691  ;;  %v8175_v35 = vmul.f32 %v13690_v46, %v17971_v56  ;;  %v8214_v33 = vadd.f32 %v18007_v8, %v8194_v57 }
0x20a4   : > { %v8176_v60 = vmul.f32 %v13692_v25, %v17974_v27 }
0x20a5   : > { %v8195_v40 = vmul.f32 %v18000_v13, %v8175_v35 }
0x20a6   : > { %v13694_v14 = vpop.eup %13693  ;;  %v8196_v29 = vmul.f32 %v18000_v13, %v8176_v60 }
0x20a7   : > { %v8215_v26 = vadd.f32 %v18007_v8, %v8195_v40  ;;  %v8177_v3 = vmul.f32 %v13694_v14, %v17981_v48  ;;  %v13009_v48 = vld [vmem:[%s18718_s5 + $0x150] sm:$0xff]  }
0x20a8   : > { %v8216_v56 = vadd.f32 %v18007_v8, %v8196_v29  ;;  %12550 = vmatprep.subr.bf16.mxu0 %v13009_v48 }
0x20a9   : > { %v18102_v32 = vpack.c.bf16 %v8215_v26, %v8214_v33  ;;  %v8197_v1 = vmul.f32 %v18000_v13, %v8177_v3  ;;  %v13010_v13 = vld [vmem:[%s18718_s5 + $0x110] sm:$0xff]   ;;  %12551 = vmatpush3.bf16.msra.mxu0 %v13009_v48 }
0x20aa   : > { %12582 = vmatprep.subr.bf16.mxu1 %v13010_v13 }
0x20ab   : > { %12504 = vmatprep.mubr.bf16.mxu0 %v18102_v32  ;;  %12536 = vmatprep.mubr.bf16.mxu1 %v18102_v32  ;;  %v8217_v27 = vadd.f32 %v18007_v8, %v8197_v1  ;;  %v13011_v8 = vld [vmem:[%s18718_s5 + $0x148] sm:$0xff]  }
0x20ac   : > { %12583 = vmatpush3.bf16.msra.mxu1 %v13010_v13  ;;  %12552 = vmatprep.subr.bf16.mxu0 %v13011_v8 }
0x20ad   : > { %v18109_v41 = vpack.c.bf16 %v8217_v27, %v8216_v56  ;;  %12584 = vmatprep.subr.bf16.mxu1 %v13012_v10  ;;  %12553 = vmatpush3.bf16.msra.mxu0 %v13011_v8  ;;  %v13016_v8 = vld [vmem:[%s18717_s4 + $0x1b0] sm:$0xff]  }
0x20ae   : > { %12554 = vmatprep.subr.bf16.mxu0 %v13013_v16 }
0x20af   : > { %12505 = vmatmul.mubr.bf16.gmra.mxu0 %v18109_v41  ;;  %12537 = vmatmul.mubr.bf16.gmra.mxu1 %v18109_v41 }
0x20b0   : > { %12585 = vmatpush3.bf16.msra.mxu1 %v13012_v10 }
0x20b1   : > { %12586 = vmatprep.subr.bf16.mxu1 %v13014_v6  ;;  %12555 = vmatpush3.bf16.msra.mxu0 %v13013_v16 }
0x20b2   : > { %12604 = vmatprep.subr.bf16.mxu0 %v13015_v17 }
0x20b4   : > { %12587 = vmatpush3.bf16.msra.mxu1 %v13014_v6 }
0x2130   : > { %v12494_v39 = vpop.f32.mrf.mxu0  ;;  %v12526_v42 = vpop.f32.mrf.mxu1 }
0x2131   : > { %v8342_v9 = vadd.f32 %v12494_v39, %v18137_v19  ;;  %v8553_v30 = vadd.f32 %v12526_v42, %v18142_v18 }
0x2132   : > { %v8333_v0 = vpop.f32.mrf.mxu0  ;;  %v8544_v44 = vpop.f32.mrf.mxu1 }
0x2133   : > { %v8334_v23 = vadd.f32 %v18137_v19, %v8333_v0  ;;  %v8545_v59 = vadd.f32 %v18142_v18, %v8544_v44  ;;  %v8398_v26 = vmax.f32 %v8342_v9, 0.0  ;;  %v8609_v3 = vmax.f32 %v8553_v30, 0.0 }
0x2134   : > { %v12495_v5 = vpop.f32.mrf.mxu0  ;;  %v12527_v24 = vpop.f32.mrf.mxu1 }
0x2135   : > { %v8345_v51 = vadd.f32 %v12495_v5, %v18137_v19  ;;  %v8556_v34 = vadd.f32 %v12527_v24, %v18142_v18  ;;  %v8396_v35 = vmax.f32 %v8334_v23, 0.0  ;;  %v8607_v57 = vmax.f32 %v8545_v59, 0.0 }
0x2136   : > { %v8336_v47 = vpop.f32.mrf.mxu0  ;;  %v8547_v21 = vpop.f32.mrf.mxu1 }
0x2137   : > { %v8337_v22 = vadd.f32 %v18137_v19, %v8336_v47  ;;  %v8548_v12 = vadd.f32 %v18142_v18, %v8547_v21  ;;  %v8399_v46 = vmax.f32 %v8345_v51, 0.0  ;;  %v8610_v25 = vmax.f32 %v8556_v34, 0.0  ;;  %v13017_v34 = vld [vmem:[%s18717_s4 + $0x1a8] sm:$0xff]  }
0x2139   : > { %v8397_v60 = vmax.f32 %v8337_v22, 0.0  ;;  %v8608_v40 = vmax.f32 %v8548_v12, 0.0  ;;  %v12498_v14 = vpop.f32.mrf.mxu0  ;;  %v12530_v33 = vpop.f32.mrf.mxu1  ;;  %v8413_v48 = vpack.c.bf16 %v8399_v46, %v8398_v26  ;;  %v8624_v13 = vpack.c.bf16 %v8610_v25, %v8609_v3 }
0x213a   : > { %v8358_v44 = vadd.f32 %v12498_v14, %v18137_v19  ;;  %v8569_v5 = vadd.f32 %v12530_v33, %v18142_v18 }
0x213b   : > { %v8412_v29 = vpack.c.bf16 %v8397_v60, %v8396_v35  ;;  %v8623_v1 = vpack.c.bf16 %v8608_v40, %v8607_v57  ;;  %v8349_v56 = vpop.f32.mrf.mxu0  ;;  %v8560_v27 = vpop.f32.mrf.mxu1 }
0x213c   : > { %v8350_v10 = vadd.f32 %v18137_v19, %v8349_v56  ;;  %v8561_v39 = vadd.f32 %v18142_v18, %v8560_v27  ;;  %v8402_v35 = vmax.f32 %v8358_v44, 0.0  ;;  %v8613_v57 = vmax.f32 %v8569_v5, 0.0  ;;  %v13018_v56 = vld [vmem:[%s18717_s4 + $0x1a0] sm:$0xff]   ;;  %v13019_v5 = vld [vmem:[%s18717_s4 + $0x198] sm:$0xff]  }
0x213d   : > { %v12499_v16 = vpop.f32.mrf.mxu0  ;;  %v12531_v6 = vpop.f32.mrf.mxu1  ;;  %12556 = vmatprep.mubr.bf16.mxu0 %v8623_v1  ;;  %12588 = vmatprep.mubr.bf16.mxu1 %v8412_v29 }
0x213e   : > { %v8361_v42 = vadd.f32 %v12499_v16, %v18137_v19  ;;  %v8572_v0 = vadd.f32 %v12531_v6, %v18142_v18  ;;  %12557 = vmatmul.mubr.bf16.vlgmr.msra.gmra.mxu0 %v8624_v13  ;;  %12589 = vmatmul.mubr.bf16.vlgmr.msra.gmra.mxu1 %v8413_v48  ;;  %v8400_v22 = vmax.f32 %v8350_v10, 0.0  ;;  %v8611_v12 = vmax.f32 %v8561_v39, 0.0 }
0x213f   : > { %v8352_v24 = vpop.f32.mrf.mxu0  ;;  %v8563_v23 = vpop.f32.mrf.mxu1  ;;  %12605 = vmatpush3.bf16.msra.mxu0 %v13015_v17 }
0x2140   : > { %v8353_v59 = vadd.f32 %v18137_v19, %v8352_v24  ;;  %v8564_v51 = vadd.f32 %v18142_v18, %v8563_v23  ;;  %12606 = vmatprep.subr.bf16.mxu0 %v13016_v8  ;;  %v8403_v9 = vmax.f32 %v8361_v42, 0.0  ;;  %v8614_v30 = vmax.f32 %v8572_v0, 0.0 }
0x2141   : > { %v12502_v47 = vpop.f32.mrf.mxu0  ;;  %v12534_v21 = vpop.f32.mrf.mxu1 }
0x2142   : > { %v8401_v46 = vmax.f32 %v8353_v59, 0.0  ;;  %v8612_v25 = vmax.f32 %v8564_v51, 0.0  ;;  %v8415_v33 = vpack.c.bf16 %v8403_v9, %v8402_v35  ;;  %v8626_v26 = vpack.c.bf16 %v8614_v30, %v8613_v57  ;;  %v13023_v35 = vld [vmem:[%s18717_s4 + $0x1f8] sm:$0xff]  }
0x2143   : > { %v8365_v17 = vpop.f32.mrf.mxu0  ;;  %v8576_v60 = vpop.f32.mrf.mxu1  ;;  %12607 = vmatpush3.bf16.msra.mxu0 %v13016_v8  ;;  %v8374_v8 = vadd.f32 %v12502_v47, %v18137_v19  ;;  %v8585_v10 = vadd.f32 %v12534_v21, %v18142_v18 }
0x2144   : > { %v8414_v40 = vpack.c.bf16 %v8401_v46, %v8400_v22  ;;  %v8625_v14 = vpack.c.bf16 %v8612_v25, %v8611_v12  ;;  %12608 = vmatprep.subr.bf16.mxu0 %v13017_v34  ;;  %v8366_v3 = vadd.f32 %v18137_v19, %v8365_v17  ;;  %v8577_v27 = vadd.f32 %v18142_v18, %v8576_v60  ;;  %v13021_v46 = vld [vmem:[%s18717_s4 + $0x188] sm:$0xff]   ;;  %v13022_v25 = vld [vmem:[%s18717_s4 + $0x180] sm:$0xff]  }
0x2145   : > { %v12503_v29 = vpop.f32.mrf.mxu0  ;;  %v12535_v1 = vpop.f32.mrf.mxu1  ;;  %v8406_v9 = vmax.f32 %v8374_v8, 0.0  ;;  %v8617_v30 = vmax.f32 %v8585_v10, 0.0 }
0x2146   : > { %v8377_v48 = vadd.f32 %v12503_v29, %v18137_v19  ;;  %v8588_v13 = vadd.f32 %v12535_v1, %v18142_v18  ;;  %12560 = vmatprep.mubr.bf16.mxu0 %v8625_v14  ;;  %12592 = vmatprep.mubr.bf16.mxu1 %v8414_v40  ;;  %v8404_v24 = vmax.f32 %v8366_v3, 0.0  ;;  %v8615_v23 = vmax.f32 %v8577_v27, 0.0 }
0x2147   : > { %v8368_v16 = vpop.f32.mrf.mxu0  ;;  %v8579_v6 = vpop.f32.mrf.mxu1  ;;  %12561 = vmatmul.mubr.bf16.gmra.mxu0 %v8626_v26  ;;  %12593 = vmatmul.mubr.bf16.gmra.mxu1 %v8415_v33 }
0x2148   : > { %v8369_v39 = vadd.f32 %v18137_v19, %v8368_v16  ;;  %v8580_v42 = vadd.f32 %v18142_v18, %v8579_v6  ;;  %12609 = vmatpush3.bf16.msra.mxu0 %v13017_v34  ;;  %v8407_v0 = vmax.f32 %v8377_v48, 0.0  ;;  %v8618_v44 = vmax.f32 %v8588_v13, 0.0  ;;  %v13020_v34 = vld [vmem:[%s18717_s4 + $0x190] sm:$0xff]  }
0x2149   : > { %12610 = vmatprep.subr.bf16.mxu0 %v13018_v56 }
0x214a   : > { %v8405_v59 = vmax.f32 %v8369_v39, 0.0  ;;  %v8616_v51 = vmax.f32 %v8580_v42, 0.0  ;;  %v8417_v22 = vpack.c.bf16 %v8407_v0, %v8406_v9  ;;  %v8628_v12 = vpack.c.bf16 %v8618_v44, %v8617_v30  ;;  %v13026_v30 = vld [vmem:[%s18717_s4 + $0x1e0] sm:$0xff]  }
0x214c   : > { %v8416_v47 = vpack.c.bf16 %v8405_v59, %v8404_v24  ;;  %v8627_v21 = vpack.c.bf16 %v8616_v51, %v8615_v23  ;;  %12611 = vmatpush3.bf16.msra.mxu0 %v13018_v56 }
0x214d   : > { %12612 = vmatprep.subr.bf16.mxu0 %v13019_v5 }
0x214e   : > { %12564 = vmatprep.mubr.bf16.mxu0 %v8627_v21  ;;  %12596 = vmatprep.mubr.bf16.mxu1 %v8416_v47  ;;  %v13027_v47 = vld [vmem:[%s18717_s4 + $0x1d8] sm:$0xff]   ;;  %v13028_v21 = vld [vmem:[%s18717_s4 + $0x1d0] sm:$0xff]  }
0x214f   : > { %12565 = vmatmul.mubr.bf16.gmra.mxu0 %v8628_v12  ;;  %12597 = vmatmul.mubr.bf16.gmra.mxu1 %v8417_v22  ;;  %v13031_v22 = vld [vmem:[%s18718_s5 + $0x1b8] sm:$0xff]   ;;  %v13032_v12 = vld [vmem:[%s18718_s5 + $0x1b0] sm:$0xff]  }
0x2150   : > { %12613 = vmatpush3.bf16.msra.mxu0 %v13019_v5  ;;  %12636 = vmatprep.subr.bf16.mxu1 %v13031_v22 }
0x2151   : > { %12614 = vmatprep.subr.bf16.mxu0 %v13020_v34  ;;  %12637 = vmatpush3.bf16.msra.mxu1 %v13031_v22 }
0x2152   : > { %12638 = vmatprep.subr.bf16.mxu1 %v13032_v12 }
0x2154   : > { %12615 = vmatpush3.bf16.msra.mxu0 %v13020_v34  ;;  %v13029_v34 = vld [vmem:[%s18717_s4 + $0x1c8] sm:$0xff]  }
0x2155   : > { %12616 = vmatprep.subr.bf16.mxu0 %v13021_v46  ;;  %12639 = vmatpush3.bf16.msra.mxu1 %v13032_v12  ;;  %v18324_v12 = vld [vmem:[%s18719_s6 + $0x6] ss:$0 sm:$0xff] }
0x2158   : > { %12617 = vmatpush3.bf16.msra.mxu0 %v13021_v46  ;;  %v13030_v46 = vld [vmem:[%s18717_s4 + $0x1c0] sm:$0xff]  }
0x2159   : > { %12618 = vmatprep.subr.bf16.mxu0 %v13022_v25 }
0x215c   : > { %12619 = vmatpush3.bf16.msra.mxu0 %v13022_v25  ;;  %v13033_v25 = vld [vmem:[%s18718_s5 + $0x1a8] sm:$0xff]  }
0x215d   : > { %12668 = vmatprep.subr.bf16.mxu0 %v13023_v35  ;;  %12640 = vmatprep.subr.bf16.mxu1 %v13033_v25 }
0x215e   : > { %12641 = vmatpush3.bf16.msra.mxu1 %v13033_v25 }
0x216f   : > { %v12506_v57 = vpop.f32.mrf.mxu0  ;;  %v12538_v17 = vpop.f32.mrf.mxu1 }
0x2170   : > { %v8390_v56 = vadd.f32 %v12506_v57, %v18137_v19  ;;  %v8601_v27 = vadd.f32 %v12538_v17, %v18142_v18 }
0x2171   : > { %v8381_v60 = vpop.f32.mrf.mxu0  ;;  %v8592_v40 = vpop.f32.mrf.mxu1 }
0x2172   : > { %v8382_v26 = vadd.f32 %v18137_v19, %v8381_v60  ;;  %v8593_v3 = vadd.f32 %v18142_v18, %v8592_v40  ;;  %v8410_v5 = vmax.f32 %v8390_v56, 0.0  ;;  %v8621_v24 = vmax.f32 %v8601_v27, 0.0 }
0x2173   : > { %v12507_v14 = vpop.f32.mrf.mxu0  ;;  %v12539_v33 = vpop.f32.mrf.mxu1 }
0x2174   : > { %v8393_v29 = vadd.f32 %v12507_v14, %v18137_v19  ;;  %v8604_v1 = vadd.f32 %v12539_v33, %v18142_v18  ;;  %v8408_v39 = vmax.f32 %v8382_v26, 0.0  ;;  %v8619_v42 = vmax.f32 %v8593_v3, 0.0 }
0x2175   : > { %v8384_v48 = vpop.f32.mrf.mxu0  ;;  %v8595_v13 = vpop.f32.mrf.mxu1 }
0x2176   : > { %v8385_v8 = vadd.f32 %v18137_v19, %v8384_v48  ;;  %v8596_v10 = vadd.f32 %v18142_v18, %v8595_v13  ;;  %v8411_v16 = vmax.f32 %v8393_v29, 0.0  ;;  %v8622_v6 = vmax.f32 %v8604_v1, 0.0  ;;  %v13024_v19 = vld [vmem:[%s18717_s4 + $0x1f0] sm:$0xff]   ;;  %v13025_v18 = vld [vmem:[%s18717_s4 + $0x1e8] sm:$0xff]  }
0x2178   : > { %v8409_v0 = vmax.f32 %v8385_v8, 0.0  ;;  %v8620_v44 = vmax.f32 %v8596_v10, 0.0  ;;  %v8419_v51 = vpack.c.bf16 %v8411_v16, %v8410_v5  ;;  %v8630_v9 = vpack.c.bf16 %v8622_v6, %v8621_v24 }
0x217a   : > { %v8418_v23 = vpack.c.bf16 %v8409_v0, %v8408_v39  ;;  %v8629_v59 = vpack.c.bf16 %v8620_v44, %v8619_v42 }
0x217c   : > { %12568 = vmatprep.mubr.bf16.mxu0 %v8629_v59  ;;  %12600 = vmatprep.mubr.bf16.mxu1 %v8418_v23 }
0x217d   : > { %12569 = vmatmul.mubr.bf16.gmra.mxu0 %v8630_v9  ;;  %12601 = vmatmul.mubr.bf16.gmra.mxu1 %v8419_v51 }
0x217e   : > { %12620 = vmatprep.mubr.bf16.mxu0 %v18017_v53 }
0x2185   : > { %12621 = vmatmul.mubr.bf16.vlgmr.msra.gmra.mxu0 %v18025_v2 }
0x2186   : > { %12669 = vmatpush3.bf16.msra.mxu0 %v13023_v35  ;;  %12624 = vmatprep.mubr.bf16.mxu0 %v18044_v38 }
0x2187   : > { %12670 = vmatprep.subr.bf16.mxu0 %v13024_v19 }
0x218a   : > { %12671 = vmatpush3.bf16.msra.mxu0 %v13024_v19 }
0x218b   : > { %12672 = vmatprep.subr.bf16.mxu0 %v13025_v18 }
0x218d   : > { %12625 = vmatmul.mubr.bf16.gmra.mxu0 %v18060_v20 }
0x218e   : > { %12673 = vmatpush3.bf16.msra.mxu0 %v13025_v18  ;;  %12628 = vmatprep.mubr.bf16.mxu0 %v18076_v61 }
0x218f   : > { %12674 = vmatprep.subr.bf16.mxu0 %v13026_v30 }
0x2192   : > { %12675 = vmatpush3.bf16.msra.mxu0 %v13026_v30 }
0x2193   : > { %12676 = vmatprep.subr.bf16.mxu0 %v13027_v47 }
0x2195   : > { %12629 = vmatmul.mubr.bf16.gmra.mxu0 %v18089_v63 }
0x2196   : > { %12677 = vmatpush3.bf16.msra.mxu0 %v13027_v47  ;;  %12632 = vmatprep.mubr.bf16.mxu0 %v18102_v32 }
0x2197   : > { %12678 = vmatprep.subr.bf16.mxu0 %v13028_v21 }
0x219a   : > { %12679 = vmatpush3.bf16.msra.mxu0 %v13028_v21 }
0x219b   : > { %12680 = vmatprep.subr.bf16.mxu0 %v13029_v34 }
0x219d   : > { %12633 = vmatmul.mubr.bf16.gmra.mxu0 %v18109_v41 }
0x219e   : > { %12681 = vmatpush3.bf16.msra.mxu0 %v13029_v34  ;;  %12684 = vmatprep.mubr.bf16.mxu0 %v18017_v53  ;;  %v13034_v53 = vld [vmem:[%s18718_s5 + $0x1a0] sm:$0xff]  }
0x219f   : > { %12682 = vmatprep.subr.bf16.mxu0 %v13030_v46  ;;  %12642 = vmatprep.subr.bf16.mxu1 %v13034_v53 }
0x21a0   : > { %12643 = vmatpush3.bf16.msra.mxu1 %v13034_v53 }
0x21a2   : > { %12683 = vmatpush3.bf16.msra.mxu0 %v13030_v46 }
0x21a5   : > { %12685 = vmatmul.mubr.bf16.vlgmr.msra.gmra.mxu0 %v18025_v2  ;;  %v13035_v2 = vld [vmem:[%s18718_s5 + $0x198] sm:$0xff]  }
0x21a6   : > { %12688 = vmatprep.mubr.bf16.mxu0 %v18044_v38  ;;  %12644 = vmatprep.subr.bf16.mxu1 %v13035_v2  ;;  %v13036_v38 = vld [vmem:[%s18718_s5 + $0x190] sm:$0xff]  }
0x21a7   : > { %12645 = vmatpush3.bf16.msra.mxu1 %v13035_v2 }
0x21a8   : > { %12646 = vmatprep.subr.bf16.mxu1 %v13036_v38 }
0x21ab   : > { %12647 = vmatpush3.bf16.msra.mxu1 %v13036_v38 }
0x21ad   : > { %12689 = vmatmul.mubr.bf16.gmra.mxu0 %v18060_v20  ;;  %v13037_v20 = vld [vmem:[%s18718_s5 + $0x188] sm:$0xff]  }
0x21ae   : > { %12692 = vmatprep.mubr.bf16.mxu0 %v18076_v61  ;;  %12648 = vmatprep.subr.bf16.mxu1 %v13037_v20  ;;  %v13038_v61 = vld [vmem:[%s18718_s5 + $0x180] sm:$0xff]  }
0x21af   : > { %12649 = vmatpush3.bf16.msra.mxu1 %v13037_v20 }
0x21b0   : > { %12650 = vmatprep.subr.bf16.mxu1 %v13038_v61 }
0x21b3   : > { %12651 = vmatpush3.bf16.msra.mxu1 %v13038_v61 }
0x21b5   : > { %12693 = vmatmul.mubr.bf16.gmra.mxu0 %v18089_v63  ;;  %v18264_v63 = vld [vmem:[%s18718_s5 + $0x1f8] sm:$0xff]  }
0x21b6   : > { %12696 = vmatprep.mubr.bf16.mxu0 %v18102_v32  ;;  %12700 = vmatprep.subr.bf16.mxu1 %v18264_v63 }
0x21bd   : > { %12697 = vmatmul.mubr.bf16.gmra.mxu0 %v18109_v41 }
0x21fe   : > { %v18267_v32 = vpop.f32.mrf.mxu0  ;;  %v18269_v41 = vpop.f32.mrf.mxu1 }
0x2200   : > { %v18271_v35 = vpop.f32.mrf.mxu0  ;;  %v18273_v57 = vpop.f32.mrf.mxu1 }
0x2202   : > { %v18275_v17 = vpop.f32.mrf.mxu0  ;;  %v18277_v60 = vpop.f32.mrf.mxu1 }
0x2203   : > { %v8887_v52 = vadd.f32 %v18277_v60, %v18275_v17 }
0x2204   : > { %v18279_v40 = vpop.f32.mrf.mxu0  ;;  %v18281_v14 = vpop.f32.mrf.mxu1 }
0x2207   : > { %v12562_v33 = vpop.f32.mrf.mxu0  ;;  %v12594_v26 = vpop.f32.mrf.mxu1 }
0x2208   : > { %v18283_v3 = vadd.f32 %v12594_v26, %v12562_v33 }
0x2209   : > { %v18285_v29 = vpop.f32.mrf.mxu0  ;;  %v18287_v1 = vpop.f32.mrf.mxu1 }
0x220b   : > { %v12563_v56 = vpop.f32.mrf.mxu0  ;;  %v12595_v27 = vpop.f32.mrf.mxu1 }
0x220c   : > { %v18289_v48 = vadd.f32 %v12595_v27, %v12563_v56 }
0x220d   : > { %v18291_v13 = vpop.f32.mrf.mxu0  ;;  %v18293_v8 = vpop.f32.mrf.mxu1 }
0x220f   : > { %v18295_v10 = vpop.f32.mrf.mxu0  ;;  %v18297_v16 = vpop.f32.mrf.mxu1 }
0x2211   : > { %v18299_v6 = vpop.f32.mrf.mxu0  ;;  %v18301_v39 = vpop.f32.mrf.mxu1 }
0x2213   : > { %v18303_v42 = vpop.f32.mrf.mxu0  ;;  %v18305_v0 = vpop.f32.mrf.mxu1 }
0x2215   : > { %v18307_v44 = vpop.f32.mrf.mxu0  ;;  %v18309_v5 = vpop.f32.mrf.mxu1 }
0x223d   : > { %v12570_v24 = vpop.f32.mrf.mxu0  ;;  %v12602_v23 = vpop.f32.mrf.mxu1 }
0x223e   : > { %v18311_v59 = vadd.f32 %v12602_v23, %v12570_v24 }
0x223f   : > { %v18313_v51 = vpop.f32.mrf.mxu0  ;;  %v18315_v9 = vpop.f32.mrf.mxu1 }
0x2241   : > { %v12571_v19 = vpop.f32.mrf.mxu0  ;;  %v12603_v18 = vpop.f32.mrf.mxu1 }
0x2242   : > { %v18317_v30 = vadd.f32 %v12603_v18, %v12571_v19  ;;  %v13040_v18 = vld [vmem:[%s18718_s5 + $0x1f0] sm:$0xff]  }
0x2243   : > { %v18319_v47 = vpop.f32.mrf.mxu0 }
0x2244   : > { %19088 = vst [vmem:[#allocation33_spill] sm:$0xff] %v18317_v30 }
0x2245   : > { %v12622_v21 = vpop.f32.mrf.mxu0 }
0x2246   : > { %v9054_v53 = vadd.f32 %v12622_v21, %v18324_v12 }
0x2247   : > { %v9045_v22 = vpop.f32.mrf.mxu0 }
0x2248   : > { %v9046_v46 = vadd.f32 %v18324_v12, %v9045_v22  ;;  %v9110_v56 = vmax.f32 %v9054_v53, 0.0 }
0x2249   : > { %v12623_v34 = vpop.f32.mrf.mxu0 }
0x224a   : > { %v9057_v25 = vadd.f32 %v12623_v34, %v18324_v12  ;;  %v9108_v33 = vmax.f32 %v9046_v46, 0.0 }
0x224b   : > { %v9048_v2 = vpop.f32.mrf.mxu0 }
0x224c   : > { %v9049_v38 = vadd.f32 %v18324_v12, %v9048_v2  ;;  %v9111_v20 = vmax.f32 %v9057_v25, 0.0 }
0x224d   : > { %v12626_v61 = vpop.f32.mrf.mxu0 }
0x224e   : > { %v9109_v26 = vmax.f32 %v9049_v38, 0.0  ;;  %v9125_v23 = vpack.c.bf16 %v9111_v20, %v9110_v56  ;;  %v9070_v34 = vadd.f32 %v12626_v61, %v18324_v12  ;;  %v13041_v38 = vld [vmem:[%s18718_s5 + $0x1e8] sm:$0xff]  }
0x224f   : > { %v9061_v27 = vpop.f32.mrf.mxu0 }
0x2250   : > { %v9124_v24 = vpack.c.bf16 %v9109_v26, %v9108_v33  ;;  %v9062_v22 = vadd.f32 %v18324_v12, %v9061_v27  ;;  %v9114_v26 = vmax.f32 %v9070_v34, 0.0 }
0x2251   : > { %v12627_v19 = vpop.f32.mrf.mxu0 }
0x2252   : > { %v9073_v21 = vadd.f32 %v12627_v19, %v18324_v12  ;;  %12652 = vmatprep.mubr.bf16.mxu1 %v9124_v24  ;;  %v9112_v20 = vmax.f32 %v9062_v22, 0.0 }
0x2253   : > { %v9064_v25 = vpop.f32.mrf.mxu0  ;;  %12653 = vmatmul.mubr.bf16.vlgmr.msra.gmra.mxu1 %v9125_v23 }
0x2254   : > { %v9065_v46 = vadd.f32 %v18324_v12, %v9064_v25  ;;  %12701 = vmatpush3.bf16.msra.mxu1 %v18264_v63  ;;  %v9115_v53 = vmax.f32 %v9073_v21, 0.0  ;;  %v13042_v63 = vld [vmem:[%s18718_s5 + $0x1e0] sm:$0xff]  }
0x2255   : > { %v12630_v2 = vpop.f32.mrf.mxu0  ;;  %12702 = vmatprep.subr.bf16.mxu1 %v13040_v18 }
0x2256   : > { %v9113_v33 = vmax.f32 %v9065_v46, 0.0  ;;  %v9127_v61 = vpack.c.bf16 %v9115_v53, %v9114_v26  ;;  %v9086_v21 = vadd.f32 %v12630_v2, %v18324_v12  ;;  %v13043_v46 = vld [vmem:[%s18718_s5 + $0x1d8] sm:$0xff]  }
0x2257   : > { %v9077_v56 = vpop.f32.mrf.mxu0 }
0x2258   : > { %v9126_v27 = vpack.c.bf16 %v9113_v33, %v9112_v20  ;;  %12703 = vmatpush3.bf16.msra.mxu1 %v13040_v18  ;;  %v9078_v23 = vadd.f32 %v18324_v12, %v9077_v56  ;;  %v9118_v33 = vmax.f32 %v9086_v21, 0.0 }
0x2259   : > { %v12631_v24 = vpop.f32.mrf.mxu0  ;;  %12704 = vmatprep.subr.bf16.mxu1 %v13041_v38 }
0x225a   : > { %v9089_v19 = vadd.f32 %v12631_v24, %v18324_v12  ;;  %12656 = vmatprep.mubr.bf16.mxu1 %v9126_v27  ;;  %v9116_v53 = vmax.f32 %v9078_v23, 0.0 }
0x225b   : > { %v9080_v22 = vpop.f32.mrf.mxu0  ;;  %12657 = vmatmul.mubr.bf16.gmra.mxu1 %v9127_v61 }
0x225c   : > { %v9081_v34 = vadd.f32 %v18324_v12, %v9080_v22  ;;  %12705 = vmatpush3.bf16.msra.mxu1 %v13041_v38  ;;  %v9119_v18 = vmax.f32 %v9089_v19, 0.0  ;;  %v13044_v38 = vld [vmem:[%s18718_s5 + $0x1d0] sm:$0xff]  }
0x225d   : > { %v12634_v25 = vpop.f32.mrf.mxu0  ;;  %12706 = vmatprep.subr.bf16.mxu1 %v13042_v63 }
0x225e   : > { %v9117_v20 = vmax.f32 %v9081_v34, 0.0  ;;  %v9129_v27 = vpack.c.bf16 %v9119_v18, %v9118_v33  ;;  %v9102_v19 = vadd.f32 %v12634_v25, %v18324_v12  ;;  %v13045_v34 = vld [vmem:[%s18718_s5 + $0x1c8] sm:$0xff]   ;;  %v18364_v25 = vld [vmem:[%s18719_s6 + $0x7] ss:$0 sm:$0xff] }
0x225f   : > { %v9093_v26 = vpop.f32.mrf.mxu0 }
0x2260   : > { %v9128_v56 = vpack.c.bf16 %v9117_v20, %v9116_v53  ;;  %12707 = vmatpush3.bf16.msra.mxu1 %v13042_v63  ;;  %v9094_v61 = vadd.f32 %v18324_v12, %v9093_v26  ;;  %v9122_v20 = vmax.f32 %v9102_v19, 0.0 }
0x2261   : > { %v12635_v2 = vpop.f32.mrf.mxu0  ;;  %12708 = vmatprep.subr.bf16.mxu1 %v13043_v46 }
0x2262   : > { %v9105_v24 = vadd.f32 %v12635_v2, %v18324_v12  ;;  %12660 = vmatprep.mubr.bf16.mxu1 %v9128_v56  ;;  %v9120_v18 = vmax.f32 %v9094_v61, 0.0  ;;  %v13046_v56 = vld [vmem:[%s18718_s5 + $0x1c0] sm:$0xff]  }
0x2263   : > { %v9096_v23 = vpop.f32.mrf.mxu0  ;;  %12661 = vmatmul.mubr.bf16.gmra.mxu1 %v9129_v27 }
0x2264   : > { %v9097_v21 = vadd.f32 %v18324_v12, %v9096_v23  ;;  %12709 = vmatpush3.bf16.msra.mxu1 %v13043_v46  ;;  %v9123_v63 = vmax.f32 %v9105_v24, 0.0 }
0x2265   : > { %v12686_v22 = vpop.f32.mrf.mxu0  ;;  %12710 = vmatprep.subr.bf16.mxu1 %v13044_v38 }
0x2266   : > { %v9121_v53 = vmax.f32 %v9097_v21, 0.0  ;;  %v9131_v12 = vpack.c.bf16 %v9123_v63, %v9122_v20  ;;  %v9426_v61 = vadd.f32 %v12686_v22, %v18364_v25 }
0x2267   : > { %v9417_v33 = vpop.f32.mrf.mxu0 }
0x2268   : > { %v9130_v26 = vpack.c.bf16 %v9121_v53, %v9120_v18  ;;  %12711 = vmatpush3.bf16.msra.mxu1 %v13044_v38  ;;  %v9418_v27 = vadd.f32 %v18364_v25, %v9417_v33  ;;  %v9482_v18 = vmax.f32 %v9426_v61, 0.0 }
0x2269   : > { %v12687_v46 = vpop.f32.mrf.mxu0  ;;  %12712 = vmatprep.subr.bf16.mxu1 %v13045_v34 }
0x226a   : > { %v9429_v2 = vadd.f32 %v12687_v46, %v18364_v25  ;;  %12664 = vmatprep.mubr.bf16.mxu1 %v9130_v26  ;;  %v9480_v21 = vmax.f32 %v9418_v27, 0.0 }
0x226b   : > { %12665 = vmatmul.mubr.bf16.gmra.mxu1 %v9131_v12  ;;  %v9420_v24 = vpop.f32.mrf.mxu0 }
0x226c   : > { %v9421_v19 = vadd.f32 %v18364_v25, %v9420_v24  ;;  %12713 = vmatpush3.bf16.msra.mxu1 %v13045_v34  ;;  %v9483_v38 = vmax.f32 %v9429_v2, 0.0 }
0x226d   : > { %v12690_v23 = vpop.f32.mrf.mxu0  ;;  %12714 = vmatprep.subr.bf16.mxu1 %v13046_v56 }
0x226e   : > { %v9481_v63 = vmax.f32 %v9421_v19, 0.0  ;;  %v9497_v33 = vpack.c.bf16 %v9483_v38, %v9482_v18  ;;  %v9442_v12 = vadd.f32 %v12690_v23, %v18364_v25 }
0x226f   : > { %v9433_v53 = vpop.f32.mrf.mxu0 }
0x2270   : > { %v9496_v20 = vpack.c.bf16 %v9481_v63, %v9480_v21  ;;  %12715 = vmatpush3.bf16.msra.mxu1 %v13046_v56  ;;  %v9434_v26 = vadd.f32 %v18364_v25, %v9433_v53  ;;  %v9486_v19 = vmax.f32 %v9442_v12, 0.0 }
0x2271   : > { %v12691_v36 = vpop.f32.mrf.mxu0 }
0x2272   : > { %v9445_v22 = vadd.f32 %v12691_v36, %v18364_v25  ;;  %12716 = vmatprep.mubr.bf16.mxu1 %v9496_v20  ;;  %v9484_v24 = vmax.f32 %v9434_v26, 0.0 }
0x2273   : > { %v9436_v46 = vpop.f32.mrf.mxu0  ;;  %12717 = vmatmul.mubr.bf16.vlgmr.msra.gmra.mxu1 %v9497_v33 }
0x2274   : > { %v9437_v34 = vadd.f32 %v18364_v25, %v9436_v46  ;;  %v9487_v2 = vmax.f32 %v9445_v22, 0.0 }
0x2275   : > { %v12694_v27 = vpop.f32.mrf.mxu0 }
0x2276   : > { %v9485_v61 = vmax.f32 %v9437_v34, 0.0  ;;  %v9499_v38 = vpack.c.bf16 %v9487_v2, %v9486_v19  ;;  %v9458_v23 = vadd.f32 %v12694_v27, %v18364_v25 }
0x2277   : > { %v9449_v21 = vpop.f32.mrf.mxu0 }
0x2278   : > { %v9498_v56 = vpack.c.bf16 %v9485_v61, %v9484_v24  ;;  %v9450_v18 = vadd.f32 %v18364_v25, %v9449_v21  ;;  %v9490_v12 = vmax.f32 %v9458_v23, 0.0 }
0x2279   : > { %v12695_v63 = vpop.f32.mrf.mxu0 }
0x227a   : > { %v9461_v36 = vadd.f32 %v12695_v63, %v18364_v25  ;;  %12720 = vmatprep.mubr.bf16.mxu1 %v9498_v56  ;;  %v9488_v26 = vmax.f32 %v9450_v18, 0.0 }
0x227b   : > { %v9452_v53 = vpop.f32.mrf.mxu0  ;;  %12721 = vmatmul.mubr.bf16.gmra.mxu1 %v9499_v38 }
0x227c   : > { %v9453_v20 = vadd.f32 %v18364_v25, %v9452_v53  ;;  %v9491_v33 = vmax.f32 %v9461_v36, 0.0 }
0x227d   : > { %v12698_v22 = vpop.f32.mrf.mxu0 }
0x227e   : > { %v9489_v46 = vmax.f32 %v9453_v20, 0.0  ;;  %v9501_v2 = vpack.c.bf16 %v9491_v33, %v9490_v12  ;;  %v9474_v27 = vadd.f32 %v12698_v22, %v18364_v25  ;;  %v18385_v33 = vpop.f32.mrf.mxu1 }
0x227f   : > { %v9465_v34 = vpop.f32.mrf.mxu0 }
0x2280   : > { %v9500_v24 = vpack.c.bf16 %v9489_v46, %v9488_v26  ;;  %v9466_v19 = vadd.f32 %v18364_v25, %v9465_v34  ;;  %v9494_v53 = vmax.f32 %v9474_v27, 0.0 }
0x2281   : > { %v12699_v61 = vpop.f32.mrf.mxu0 }
0x2282   : > { %v9477_v21 = vadd.f32 %v12699_v61, %v18364_v25  ;;  %12724 = vmatprep.mubr.bf16.mxu1 %v9500_v24  ;;  %v9492_v36 = vmax.f32 %v9466_v19, 0.0 }
0x2283   : > { %v9468_v56 = vpop.f32.mrf.mxu0  ;;  %12725 = vmatmul.mubr.bf16.gmra.mxu1 %v9501_v2 }
0x2284   : > { %v9469_v38 = vadd.f32 %v18364_v25, %v9468_v56  ;;  %v9495_v63 = vmax.f32 %v9477_v21, 0.0 }
0x2286   : > { %v9493_v18 = vmax.f32 %v9469_v38, 0.0  ;;  %v9503_v20 = vpack.c.bf16 %v9495_v63, %v9494_v53  ;;  %v8876_v53 = vadd.f32 %v18273_v57, %v18271_v35 }
0x2288   : > { %v9502_v23 = vpack.c.bf16 %v9493_v18, %v9492_v36  ;;  %v8884_v36 = vadd.f32 %v18269_v41, %v18267_v32  ;;  %v8879_v41 = vadd.f32 %v18281_v14, %v18279_v40 }
0x228a   : > { %12728 = vmatprep.mubr.bf16.mxu1 %v9502_v23 }
0x228b   : > { %12729 = vmatmul.mubr.bf16.gmra.mxu1 %v9503_v20 }
0x2313   : > { %v12654_v26 = vpop.f32.mrf.mxu1 }
0x2314   : > { %v9296_v23 = vadd.f32 %v12654_v26, %v8884_v36 }
0x2315   : > { %v9231_v46 = vpop.f32.mrf.mxu1 }
0x2316   : > { %v9294_v45 = vadd.f32 %v9231_v46, %v8876_v53 }
0x2317   : > { %v12655_v12 = vpop.f32.mrf.mxu1 }
0x2318   : > { %v9297_v35 = vadd.f32 %v12655_v12, %v8887_v52 }
0x2319   : > { %v9234_v34 = vpop.f32.mrf.mxu1 }
0x231a   : > { %v9295_v17 = vadd.f32 %v9234_v34, %v8879_v41 }
0x231b   : > { %v18387_v24 = vpop.f32.mrf.mxu1 }
0x231d   : > { %v9247_v22 = vpop.f32.mrf.mxu1 }
0x231f   : > { %v18389_v2 = vpop.f32.mrf.mxu1 }
0x2321   : > { %v9250_v25 = vpop.f32.mrf.mxu1 }
0x2323   : > { %v12662_v61 = vpop.f32.mrf.mxu1 }
0x2325   : > { %v9263_v19 = vpop.f32.mrf.mxu1 }
0x2327   : > { %v12663_v21 = vpop.f32.mrf.mxu1 }
0x2329   : > { %v18391_v27 = vpop.f32.mrf.mxu1 }
0x232b   : > { %v18393_v56 = vpop.f32.mrf.mxu1 }
0x232d   : > { %v18395_v38 = vpop.f32.mrf.mxu1 }
0x232f   : > { %v18397_v63 = vpop.f32.mrf.mxu1 }
0x2330   : > { %19089 = vst [vmem:[#allocation25_spill] sm:$0xff] %v18397_v63  ;;  %v19090_v63 = vsub.s32 5, %v19063_v28  ;;  %v8892_v28 = vadd.f32 %v18287_v1, %v18285_v29  ;;  %v8916_v1 = vadd.f32 %v18297_v16, %v18295_v10  ;;  %v8919_v10 = vadd.f32 %v18305_v0, %v18303_v42 }
0x2331   : > { %v18401_v18 = vpop.f32.mrf.mxu1 }
0x2332   : > { %v18412_v49 = vrot.slane %v13794_v4, %v19090_v63 }
0x2333   : > { %v12718_v20 = vpop.f32.mrf.mxu1 }
0x2334   : > { %v9668_v30 = vadd.f32 %v12718_v20, %v9296_v23  ;;  %v8908_v20 = vadd.f32 %v18301_v39, %v18299_v6  ;;  %v8911_v6 = vadd.f32 %v18309_v5, %v18307_v44  ;;  %v9300_v39 = vadd.f32 %v18387_v24, %v18283_v3 }
0x2335   : > { %v9603_v32 = vpop.f32.mrf.mxu1  ;;  %v8924_v3 = vadd.f32 %v18315_v9, %v18313_v51  ;;  %v9308_v9 = vadd.f32 %v18393_v56, %v18311_v59 }
0x2336   : > { %v9684_v57 = vadd.f32 %v9668_v30, %v17799_v11  ;;  %v9666_v26 = vadd.f32 %v9603_v32, %v9294_v45  ;;  %v9298_v11 = vadd.f32 %v9247_v22, %v8892_v28  ;;  %v8895_v30 = vadd.f32 %v18293_v8, %v18291_v13 }
0x2337   : > { %v12719_v36 = vpop.f32.mrf.mxu1  ;;  %v9304_v13 = vadd.f32 %v12662_v61, %v8916_v1  ;;  %v9302_v16 = vadd.f32 %v9263_v19, %v8908_v20  ;;  %v9303_v42 = vadd.f32 %v18391_v27, %v8911_v6  ;;  %v19094_v56 = vld [vmem:[#allocation25_spill] sm:$0xff] }
0x2338   : > { %v9682_v60 = vadd.f32 %v9666_v26, %v17795_v31  ;;  %v9669_v46 = vadd.f32 %v12719_v36, %v9297_v35  ;;  %v18419_v53 = vadd.f32 %v18412_v49, %v9684_v57  ;;  %v9305_v35 = vadd.f32 %v12663_v21, %v8919_v10  ;;  %v19097_v20 = vld [vmem:[#allocation17_spill] sm:$0xff] }
0x2339   : > { %v9606_v23 = vpop.f32.mrf.mxu1 }
0x233a   : > { %v9685_v4 = vadd.f32 %v9669_v46, %v17806_v54  ;;  %v9667_v63 = vadd.f32 %v9606_v23, %v9295_v17  ;;  %9723 = vadd.xlane.f32.xlu0 %v18419_v53  ;;  %v18427_v40 = vadd.f32 %v18412_v49, %v9682_v60 }
0x233b   : > { %v12722_v52 = vpop.f32.mrf.mxu1 }
0x233c   : > { %v9683_v45 = vadd.f32 %v9667_v63, %v17802_v58  ;;  %v18430_v31 = vadd.f32 %v18412_v49, %v9685_v4  ;;  %v9299_v58 = vadd.f32 %v9250_v25, %v8895_v30  ;;  %v9672_v0 = vadd.f32 %v12722_v52, %v9300_v39  ;;  %v19092_v52 = vld [vmem:[#allocation32_spill] sm:$0xff] }
0x233d   : > { %v9619_v14 = vpop.f32.mrf.mxu1 }
0x233e   : > { %v9670_v29 = vadd.f32 %v9619_v14, %v9298_v11  ;;  %9719 = vadd.xlane.f32.xlu0 %v18427_v40  ;;  %9725 = vadd.xlane.f32.xlu1 %v18430_v31  ;;  %v18440_v34 = vadd.f32 %v18412_v49, %v9683_v45  ;;  %v9688_v46 = vadd.f32 %v9672_v0, %v17819_v37 }
0x233f   : > { %v12723_v54 = vpop.f32.mrf.mxu1 }
0x2340   : > { %v9686_v12 = vadd.f32 %v9670_v29, %v17812_v43  ;;  %v18491_v45 = vadd.f32 %v18412_v49, %v9688_v46  ;;  %v19095_v29 = vld [vmem:[#allocation29_spill] sm:$0xff] }
0x2341   : > { %v9622_v22 = vpop.f32.mrf.mxu1 }
0x2342   : > { %v9671_v8 = vadd.f32 %v9622_v22, %v9299_v58  ;;  %9721 = vadd.xlane.f32.xlu1 %v18440_v34  ;;  %v18446_v32 = vadd.f32 %v18412_v49, %v9686_v12  ;;  %v19096_v58 = vld [vmem:[#allocation28_spill] sm:$0xff] }
0x2343   : > { %v12726_v41 = vpop.f32.mrf.mxu1 }
0x2344   : > { %v9687_v43 = vadd.f32 %v9671_v8, %v17815_v50  ;;  %v9676_v25 = vadd.f32 %v12726_v41, %v9304_v13  ;;  %9727 = vadd.xlane.f32.xlu0 %v18446_v32 }
0x2345   : > { %v9635_v61 = vpop.f32.mrf.mxu1 }
0x2346   : > { %v9692_v57 = vadd.f32 %v9676_v25, %v17835_v55  ;;  %v9674_v26 = vadd.f32 %v9635_v61, %v9302_v16  ;;  %v18458_v36 = vadd.f32 %v18412_v49, %v9687_v43  ;;  %v9301_v55 = vadd.f32 %v18389_v2, %v18289_v48 }
0x2347   : > { %v12727_v50 = vpop.f32.mrf.mxu1 }
0x2348   : > { %v9690_v19 = vadd.f32 %v9674_v26, %v17828_v15  ;;  %v9677_v17 = vadd.f32 %v12727_v50, %v9305_v35  ;;  %9729 = vadd.xlane.f32.xlu1 %v18458_v36  ;;  %v18464_v44 = vadd.f32 %v18412_v49, %v9692_v57  ;;  %v9306_v15 = vadd.f32 %v18395_v38, %v8924_v3 }
0x2349   : > { %v9638_v5 = vpop.f32.mrf.mxu1  ;;  %v9673_v27 = vadd.f32 %v12723_v54, %v9301_v55 }
0x234a   : > { %v9693_v24 = vadd.f32 %v9677_v17, %v17837_v62  ;;  %v9675_v21 = vadd.f32 %v9638_v5, %v9303_v42  ;;  %9739 = vadd.xlane.f32.xlu0 %v18464_v44  ;;  %v18476_v28 = vadd.f32 %v18412_v49, %v9690_v19  ;;  %v8927_v62 = vadd.f32 %v18385_v33, %v18319_v47  ;;  %v19093_v33 = vld [vmem:[#allocation33_spill] sm:$0xff] }
0x234b   : > { %v12730_v60 = vpop.f32.mrf.mxu1  ;;  %v9309_v14 = vadd.f32 %v19094_v56, %v19093_v33  ;;  %v13049_v33 = vld [vmem:[%s18722_s9 + $0x28] sm:$0xff]  }
0x234c   : > { %v9691_v23 = vadd.f32 %v9675_v21, %v17831_v7  ;;  %v18479_v51 = vadd.f32 %v18412_v49, %v9693_v24  ;;  %v9307_v37 = vadd.f32 %v18401_v18, %v8927_v62  ;;  %v19091_v7 = vld [vmem:[#allocation30_spill] sm:$0xff]  ;;  %v9680_v63 = vadd.f32 %v12730_v60, %v9308_v9 }
0x234d   : > { %v9651_v48 = vpop.f32.mrf.mxu1  ;;  %v9689_v38 = vadd.f32 %v9673_v27, %v19091_v7  ;;  %v13048_v7 = vld [vmem:[%s18722_s9 + $0x30] sm:$0xff]  }
0x234e   : > { %v9678_v2 = vadd.f32 %v9651_v48, %v9306_v15  ;;  %9735 = vadd.xlane.f32.xlu0 %v18476_v28  ;;  %9741 = vadd.xlane.f32.xlu1 %v18479_v51  ;;  %v18494_v47 = vadd.f32 %v18412_v49, %v9691_v23  ;;  %v9696_v54 = vadd.f32 %v9680_v63, %v19095_v29  ;;  %v13047_v23 = vld [vmem:[%s18722_s9 + $0x38] sm:$0xff]  }
0x234f   : > { %v12731_v4 = vpop.f32.mrf.mxu1  ;;  %v18501_v18 = vadd.f32 %v18412_v49, %v9689_v38  ;;  %12732 = vmatprep.subr.bf16.mxu0 %v13047_v23  ;;  %12764 = vmatprep.subr.bf16.mxu1 %v13047_v23 }
0x2350   : > { %v9694_v11 = vadd.f32 %v9678_v2, %v19092_v52  ;;  %v9681_v1 = vadd.f32 %v12731_v4, %v9309_v14  ;;  %v18515_v41 = vadd.f32 %v18412_v49, %v9696_v54  ;;  %12733 = vmatpush3.bf16.msra.mxu0 %v13047_v23  ;;  %12772 = vmatpush3.bf16.msra.mxu1 %v13047_v23 }
0x2351   : > { %v9654_v59 = vpop.f32.mrf.mxu1  ;;  %12734 = vmatprep.subr.bf16.mxu0 %v13048_v7  ;;  %12765 = vmatprep.subr.bf16.mxu1 %v13048_v7 }
0x2352   : > { %v9679_v30 = vadd.f32 %v9654_v59, %v9307_v37  ;;  %9731 = vadd.xlane.f32.xlu0 %v18491_v45  ;;  %9737 = vadd.xlane.f32.xlu1 %v18494_v47  ;;  %v18506_v22 = vadd.f32 %v18412_v49, %v9694_v11  ;;  %v9697_v13 = vadd.f32 %v9681_v1, %v19097_v20 }
0x2354   : > { %v9695_v12 = vadd.f32 %v9679_v30, %v19096_v58  ;;  %v18520_v10 = vadd.f32 %v18412_v49, %v9697_v13  ;;  %12735 = vmatpush3.bf16.msra.mxu0 %v13048_v7  ;;  %12773 = vmatpush3.bf16.msra.mxu1 %v13048_v7  ;;  %v13050_v58 = vld [vmem:[%s18722_s9 + $0x20] sm:$0xff]  }
0x2355   : > { %12736 = vmatprep.subr.bf16.mxu0 %v13049_v33  ;;  %12766 = vmatprep.subr.bf16.mxu1 %v13049_v33 }
0x2356   : > { %9733 = vadd.xlane.f32.xlu1 %v18501_v18  ;;  %9743 = vadd.xlane.f32.xlu0 %v18506_v22  ;;  %v18512_v8 = vadd.f32 %v18412_v49, %v9695_v12 }
0x2358   : > { %12737 = vmatpush3.bf16.msra.mxu0 %v13049_v33  ;;  %12774 = vmatpush3.bf16.msra.mxu1 %v13049_v33 }
0x2359   : > { %12738 = vmatprep.subr.bf16.mxu0 %v13050_v58  ;;  %12767 = vmatprep.subr.bf16.mxu1 %v13050_v58 }
0x235a   : > { %9745 = vadd.xlane.f32.xlu1 %v18512_v8  ;;  %9747 = vadd.xlane.f32.xlu0 %v18515_v41 }
0x235c   : > { %12739 = vmatpush3.bf16.msra.mxu0 %v13050_v58  ;;  %12775 = vmatpush3.bf16.msra.mxu1 %v13050_v58 }
0x235e   : > { %9749 = vadd.xlane.f32.xlu1 %v18520_v10 }
0x23c3   : > { %v9724_v16 = vpop.xlane.xlu0 %9723 }
0x23c4   : > { %v9753_v43 = vmul.f32 0.0078125, %v9724_v16 }
0x23c6   : > { %v18524_v25 = vsub.f32 %v18419_v53, %v9753_v43 }
0x23c7   : > { %v9720_v6 = vpop.xlane.xlu0 %9719  ;;  %v9726_v39 = vpop.xlane.xlu1 %9725 }
0x23c8   : > { %v9751_v61 = vmul.f32 0.0078125, %v9720_v6  ;;  %v9754_v35 = vmul.f32 0.0078125, %v9726_v39  ;;  %v9785_v57 = vmul.f32 %v18524_v25, %v18524_v25  ;;  %v13051_v6 = vld [vmem:[%s18722_s9 + $0x18] sm:$0xff]  }
0x23c9   : > { %12740 = vmatprep.subr.bf16.mxu0 %v13051_v6  ;;  %12768 = vmatprep.subr.bf16.mxu1 %v13051_v6 }
0x23ca   : > { %v18529_v26 = vsub.f32 %v18427_v40, %v9751_v61  ;;  %v18532_v49 = vsub.f32 %v18430_v31, %v9754_v35  ;;  %9803 = vadd.xlane.f32.xlu0 %v9785_v57  ;;  %12741 = vmatpush3.bf16.msra.mxu0 %v13051_v6  ;;  %v13052_v35 = vld [vmem:[%s18722_s9 + $0x10] sm:$0xff]  }
0x23cb   : > { %v9722_v42 = vpop.xlane.xlu1 %9721  ;;  %12776 = vmatpush3.bf16.msra.mxu1 %v13051_v6  ;;  %12742 = vmatprep.subr.bf16.mxu0 %v13052_v35 }
0x23cc   : > { %v9752_v50 = vmul.f32 0.0078125, %v9722_v42  ;;  %v9786_v53 = vmul.f32 %v18532_v49, %v18532_v49  ;;  %v9783_v0 = vmul.f32 %v18529_v26, %v18529_v26  ;;  %12769 = vmatprep.subr.bf16.mxu1 %v13052_v35  ;;  %v13054_v42 = vld [vmem:[%s18722_s9] sm:$0xff]  }
0x23cd   : > { %v9728_v19 = vpop.xlane.xlu0 %9727 }
0x23ce   : > { %v18539_v17 = vsub.f32 %v18440_v34, %v9752_v50  ;;  %v9755_v3 = vmul.f32 0.0078125, %v9728_v19  ;;  %9805 = vadd.xlane.f32.xlu1 %v9786_v53  ;;  %9799 = vadd.xlane.f32.xlu0 %v9783_v0 }
0x23cf   : > { %12743 = vmatpush3.bf16.msra.mxu0 %v13052_v35  ;;  %12777 = vmatpush3.bf16.msra.mxu1 %v13052_v35 }
0x23d0   : > { %v18542_v40 = vsub.f32 %v18446_v32, %v9755_v3  ;;  %v9784_v31 = vmul.f32 %v18539_v17, %v18539_v17 }
0x23d1   : > { %v9730_v55 = vpop.xlane.xlu1 %9729 }
0x23d2   : > { %v9756_v5 = vmul.f32 0.0078125, %v9730_v55  ;;  %9801 = vadd.xlane.f32.xlu1 %v9784_v31  ;;  %v9787_v24 = vmul.f32 %v18542_v40, %v18542_v40 }
0x23d3   : > { %v9740_v21 = vpop.xlane.xlu0 %9739 }
0x23d4   : > { %v18549_v15 = vsub.f32 %v18458_v36, %v9756_v5  ;;  %v9761_v34 = vmul.f32 0.0078125, %v9740_v21  ;;  %9807 = vadd.xlane.f32.xlu0 %v9787_v24 }
0x23d6   : > { %v18552_v27 = vsub.f32 %v18464_v44, %v9761_v34  ;;  %v9788_v32 = vmul.f32 %v18549_v15, %v18549_v15 }
0x23d7   : > { %v9736_v60 = vpop.xlane.xlu0 %9735  ;;  %v9742_v46 = vpop.xlane.xlu1 %9741 }
0x23d8   : > { %v9759_v62 = vmul.f32 0.0078125, %v9736_v60  ;;  %v9762_v48 = vmul.f32 0.0078125, %v9742_v46  ;;  %9809 = vadd.xlane.f32.xlu1 %v9788_v32  ;;  %v9793_v36 = vmul.f32 %v18552_v27, %v18552_v27 }
0x23da   : > { %v18562_v44 = vsub.f32 %v18476_v28, %v9759_v62  ;;  %v18565_v9 = vsub.f32 %v18479_v51, %v9762_v48  ;;  %9819 = vadd.xlane.f32.xlu0 %v9793_v36 }
0x23db   : > { %v9732_v2 = vpop.xlane.xlu0 %9731  ;;  %v9738_v37 = vpop.xlane.xlu1 %9737 }
0x23dc   : > { %v9757_v38 = vmul.f32 0.0078125, %v9732_v2  ;;  %v9760_v4 = vmul.f32 0.0078125, %v9738_v37  ;;  %v9794_v63 = vmul.f32 %v18565_v9, %v18565_v9  ;;  %v9791_v28 = vmul.f32 %v18562_v44, %v18562_v44 }
0x23de   : > { %v18575_v51 = vsub.f32 %v18491_v45, %v9757_v38  ;;  %v18578_v52 = vsub.f32 %v18494_v47, %v9760_v4  ;;  %9821 = vadd.xlane.f32.xlu1 %v9794_v63  ;;  %9815 = vadd.xlane.f32.xlu0 %v9791_v28  ;;  %v9718_v28 = vld [vmem:[%s18721_s8] sm:$0x3] }
0x23df   : > { %v9734_v11 = vpop.xlane.xlu1 %9733  ;;  %v9744_v59 = vpop.xlane.xlu0 %9743 }
0x23e0   : > { %v9758_v56 = vmul.f32 0.0078125, %v9734_v11  ;;  %v9763_v14 = vmul.f32 0.0078125, %v9744_v59  ;;  %v9792_v30 = vmul.f32 %v18578_v52, %v18578_v52  ;;  %v9789_v45 = vmul.f32 %v18575_v51, %v18575_v51 }
0x23e2   : > { %v18588_v47 = vsub.f32 %v18501_v18, %v9758_v56  ;;  %v18591_v29 = vsub.f32 %v18506_v22, %v9763_v14  ;;  %9817 = vadd.xlane.f32.xlu1 %v9792_v30  ;;  %9811 = vadd.xlane.f32.xlu0 %v9789_v45 }
0x23e3   : > { %v9746_v54 = vpop.xlane.xlu1 %9745  ;;  %v9748_v1 = vpop.xlane.xlu0 %9747 }
0x23e4   : > { %v9764_v12 = vmul.f32 0.0078125, %v9746_v54  ;;  %v9765_v20 = vmul.f32 0.0078125, %v9748_v1  ;;  %v9790_v13 = vmul.f32 %v18588_v47, %v18588_v47  ;;  %v9795_v18 = vmul.f32 %v18591_v29, %v18591_v29  ;;  %v19098_v54 = vld [vmem:[#allocation3_spill] sm:$0xff] }
0x23e5   : > { %v18632_v1 = vrot.slane %v9718_v28, %v19098_v54 }
0x23e6   : > { %v18601_v22 = vsub.f32 %v18512_v8, %v9764_v12  ;;  %v18604_v16 = vsub.f32 %v18515_v41, %v9765_v20  ;;  %9813 = vadd.xlane.f32.xlu1 %v9790_v13  ;;  %9823 = vadd.xlane.f32.xlu0 %v9795_v18 }
0x23e7   : > { %v9750_v43 = vpop.xlane.xlu1 %9749 }
0x23e8   : > { %v9766_v39 = vmul.f32 0.0078125, %v9750_v43  ;;  %v9796_v61 = vmul.f32 %v18601_v22, %v18601_v22  ;;  %v9797_v8 = vmul.f32 %v18604_v16, %v18604_v16 }
0x23ea   : > { %v18614_v41 = vsub.f32 %v18520_v10, %v9766_v39  ;;  %9825 = vadd.xlane.f32.xlu1 %v9796_v61  ;;  %9827 = vadd.xlane.f32.xlu0 %v9797_v8  ;;  %v13053_v10 = vld [vmem:[%s18722_s9 + $0x8] sm:$0xff]  }
0x23eb   : > { %12744 = vmatprep.subr.bf16.mxu0 %v13053_v10  ;;  %12770 = vmatprep.subr.bf16.mxu1 %v13053_v10 }
0x23ec   : > { %v9798_v57 = vmul.f32 %v18614_v41, %v18614_v41  ;;  %12745 = vmatpush3.bf16.msra.mxu0 %v13053_v10  ;;  %12778 = vmatpush3.bf16.msra.mxu1 %v13053_v10 }
0x23ed   : > { %12746 = vmatprep.subr.bf16.mxu0 %v13054_v42  ;;  %12771 = vmatprep.subr.bf16.mxu1 %v13054_v42 }
0x23ee   : > { %9829 = vadd.xlane.f32.xlu1 %v9798_v57 }
0x23f0   : > { %12747 = vmatpush3.bf16.msra.mxu0 %v13054_v42  ;;  %12779 = vmatpush3.bf16.msra.mxu1 %v13054_v42 }
0x2453   : > { %v9804_v50 = vpop.xlane.xlu0 %9803 }
0x2454   : > { %v9833_v53 = vmul.f32 0.0078125, %v9804_v50  ;;  %v19099_v50 = vld [vmem:[#allocation4_spill] sm:$0xff] }
0x2456   : > { %v9849_v0 = vadd.f32 1e-05, %v9833_v53 }
0x2457   : > { %v9806_v19 = vpop.xlane.xlu1 %9805  ;;  %v9800_v3 = vpop.xlane.xlu0 %9799 }
0x2458   : > { %v9834_v31 = vmul.f32 0.0078125, %v9806_v19  ;;  %v9831_v55 = vmul.f32 0.0078125, %v9800_v3  ;;  %13695 = vrsqrt.f32 %v9849_v0 }
0x245a   : > { %v9850_v5 = vadd.f32 1e-05, %v9834_v31  ;;  %v9847_v24 = vadd.f32 1e-05, %v9831_v55 }
0x245b   : > { %v9802_v21 = vpop.xlane.xlu1 %9801 }
0x245c   : > { %13697 = vrsqrt.f32 %v9850_v5  ;;  %v9832_v34 = vmul.f32 0.0078125, %v9802_v21 }
0x245d   : > { %13699 = vrsqrt.f32 %v9847_v24  ;;  %v9808_v32 = vpop.xlane.xlu0 %9807 }
0x245e   : > { %v9848_v60 = vadd.f32 1e-05, %v9832_v34  ;;  %v9835_v46 = vmul.f32 0.0078125, %v9808_v32 }
0x2460   : > { %13701 = vrsqrt.f32 %v9848_v60  ;;  %v9851_v23 = vadd.f32 1e-05, %v9835_v46 }
0x2461   : > { %v9810_v62 = vpop.xlane.xlu1 %9809 }
0x2462   : > { %13703 = vrsqrt.f32 %v9851_v23  ;;  %v9836_v48 = vmul.f32 0.0078125, %v9810_v62 }
0x2463   : > { %v9820_v36 = vpop.xlane.xlu0 %9819 }
0x2464   : > { %v9852_v2 = vadd.f32 1e-05, %v9836_v48  ;;  %v9841_v37 = vmul.f32 0.0078125, %v9820_v36 }
0x2465   : > { %v13696_v63 = vpop.eup %13695 }
0x2466   : > { %13705 = vrsqrt.f32 %v9852_v2  ;;  %v9857_v7 = vadd.f32 1e-05, %v9841_v37  ;;  %v9881_v58 = vmul.f32 %v13696_v63, %v18524_v25 }
0x2467   : > { %v9822_v38 = vpop.xlane.xlu1 %9821  ;;  %v9816_v4 = vpop.xlane.xlu0 %9815 }
0x2468   : > { %v9842_v11 = vmul.f32 0.0078125, %v9822_v38  ;;  %v9839_v59 = vmul.f32 0.0078125, %v9816_v4  ;;  %13707 = vrsqrt.f32 %v9857_v7  ;;  %v9901_v25 = vmul.f32 %v18632_v1, %v9881_v58 }
0x2469   : > { %v13698_v33 = vpop.eup %13697 }
0x246a   : > { %v13700_v56 = vpop.eup %13699  ;;  %v9882_v14 = vmul.f32 %v13698_v33, %v18532_v49  ;;  %v9858_v30 = vadd.f32 1e-05, %v9842_v11  ;;  %v9855_v45 = vadd.f32 1e-05, %v9839_v59 }
0x246b   : > { %v9818_v12 = vpop.xlane.xlu1 %9817  ;;  %v9812_v20 = vpop.xlane.xlu0 %9811  ;;  %v9879_v13 = vmul.f32 %v13700_v56, %v18529_v26  ;;  %v18641_v26 = vrot.slane %v9718_v28, %v19099_v50 }
0x246c   : > { %13709 = vrsqrt.f32 %v9858_v30  ;;  %v9840_v18 = vmul.f32 0.0078125, %v9818_v12  ;;  %v9837_v43 = vmul.f32 0.0078125, %v9812_v20  ;;  %v9902_v39 = vmul.f32 %v18632_v1, %v9882_v14 }
0x246d   : > { %v13702_v6 = vpop.eup %13701  ;;  %13711 = vrsqrt.f32 %v9855_v45  ;;  %v9899_v35 = vmul.f32 %v18632_v1, %v9879_v13  ;;  %v9921_v60 = vadd.f32 %v18641_v26, %v9901_v25 }
0x246e   : > { %v9856_v49 = vadd.f32 1e-05, %v9840_v18  ;;  %v9853_v61 = vadd.f32 1e-05, %v9837_v43  ;;  %v9880_v8 = vmul.f32 %v13702_v6, %v18539_v17  ;;  %v9922_v3 = vadd.f32 %v18641_v26, %v9902_v39 }
0x246f   : > { %v13704_v57 = vpop.eup %13703  ;;  %v9814_v10 = vpop.xlane.xlu1 %9813  ;;  %v9919_v5 = vadd.f32 %v18641_v26, %v9899_v35 }
0x2470   : > { %v9824_v42 = vpop.xlane.xlu0 %9823  ;;  %13713 = vrsqrt.f32 %v9856_v49  ;;  %v9838_v53 = vmul.f32 0.0078125, %v9814_v10  ;;  %v9900_v19 = vmul.f32 %v18632_v1, %v9880_v8  ;;  %v9883_v17 = vmul.f32 %v13704_v57, %v18542_v40 }
0x2471   : > { %v9843_v0 = vmul.f32 0.0078125, %v9824_v42  ;;  %13715 = vrsqrt.f32 %v9853_v61  ;;  %v9936_v48 = vpack.c.bf16 %v9922_v3, %v9921_v60  ;;  %v10783_v60 = vld [vmem:[%s18723_s10] ss:$0 sm:$0xff] }
0x2472   : > { %v9854_v31 = vadd.f32 1e-05, %v9838_v53  ;;  %v9920_v24 = vadd.f32 %v18641_v26, %v9900_v19  ;;  %v9903_v40 = vmul.f32 %v18632_v1, %v9883_v17 }
0x2473   : > { %v9859_v55 = vadd.f32 1e-05, %v9843_v0  ;;  %v13706_v21 = vpop.eup %13705  ;;  %v9826_v34 = vpop.xlane.xlu1 %9825 }
0x2474   : > { %v9828_v32 = vpop.xlane.xlu0 %9827  ;;  %13717 = vrsqrt.f32 %v9854_v31  ;;  %v9844_v46 = vmul.f32 0.0078125, %v9826_v34  ;;  %v9935_v62 = vpack.c.bf16 %v9920_v24, %v9919_v5  ;;  %v9884_v36 = vmul.f32 %v13706_v21, %v18549_v15 }
0x2475   : > { %v9845_v23 = vmul.f32 0.0078125, %v9828_v32  ;;  %13719 = vrsqrt.f32 %v9859_v55  ;;  %v13708_v4 = vpop.eup %13707  ;;  %v9923_v11 = vadd.f32 %v18641_v26, %v9903_v40 }
0x2476   : > { %v9860_v2 = vadd.f32 1e-05, %v9844_v46  ;;  %12748 = vmatprep.mubr.bf16.mxu0 %v9935_v62  ;;  %v9904_v38 = vmul.f32 %v18632_v1, %v9884_v36  ;;  %v9889_v14 = vmul.f32 %v13708_v4, %v18552_v27 }
0x2477   : > { %v9861_v37 = vadd.f32 1e-05, %v9845_v23  ;;  %v9830_v7 = vpop.xlane.xlu1 %9829  ;;  %12749 = vmatmul.mubr.bf16.vlgmr.msra.gmra.mxu0 %v9936_v48 }
0x2478   : > { %13721 = vrsqrt.f32 %v9860_v2  ;;  %v9846_v63 = vmul.f32 0.0078125, %v9830_v7  ;;  %v9924_v59 = vadd.f32 %v18641_v26, %v9904_v38  ;;  %v9909_v18 = vmul.f32 %v18632_v1, %v9889_v14 }
0x2479   : > { %v13710_v28 = vpop.eup %13709  ;;  %13723 = vrsqrt.f32 %v9861_v37 }
0x247a   : > { %v13712_v33 = vpop.eup %13711  ;;  %v9890_v15 = vmul.f32 %v13710_v28, %v18565_v9  ;;  %v9862_v56 = vadd.f32 1e-05, %v9846_v63  ;;  %v9937_v30 = vpack.c.bf16 %v9924_v59, %v9923_v11  ;;  %v9929_v8 = vadd.f32 %v18641_v26, %v9909_v18 }
0x247b   : > { %v9887_v45 = vmul.f32 %v13712_v33, %v18562_v44 }
0x247c   : > { %13725 = vrsqrt.f32 %v9862_v56  ;;  %v9910_v58 = vmul.f32 %v18632_v1, %v9890_v15  ;;  %12752 = vmatprep.mubr.bf16.mxu0 %v9937_v30 }
0x247d   : > { %v13714_v54 = vpop.eup %13713  ;;  %v9907_v13 = vmul.f32 %v18632_v1, %v9887_v45 }
0x247e   : > { %v13716_v12 = vpop.eup %13715  ;;  %v9888_v20 = vmul.f32 %v13714_v54, %v18578_v52  ;;  %v9930_v6 = vadd.f32 %v18641_v26, %v9910_v58 }
0x247f   : > { %v9885_v9 = vmul.f32 %v13716_v12, %v18575_v51  ;;  %v9927_v39 = vadd.f32 %v18641_v26, %v9907_v13 }
0x2480   : > { %v9908_v43 = vmul.f32 %v18632_v1, %v9888_v20  ;;  %v9940_v10 = vpack.c.bf16 %v9930_v6, %v9929_v8 }
0x2481   : > { %v13718_v27 = vpop.eup %13717  ;;  %v9905_v52 = vmul.f32 %v18632_v1, %v9885_v9 }
0x2482   : > { %v13720_v44 = vpop.eup %13719  ;;  %v9928_v49 = vadd.f32 %v18641_v26, %v9908_v43  ;;  %v9886_v61 = vmul.f32 %v13718_v27, %v18588_v47 }
0x2483   : > { %v9891_v35 = vmul.f32 %v13720_v44, %v18591_v29  ;;  %v9925_v50 = vadd.f32 %v18641_v26, %v9905_v52 }
0x2484   : > { %v9939_v57 = vpack.c.bf16 %v9928_v49, %v9927_v39  ;;  %v9906_v51 = vmul.f32 %v18632_v1, %v9886_v61 }
0x2485   : > { %v13722_v25 = vpop.eup %13721  ;;  %v9911_v47 = vmul.f32 %v18632_v1, %v9891_v35 }
0x2486   : > { %v13724_v42 = vpop.eup %13723  ;;  %12756 = vmatprep.mubr.bf16.mxu1 %v9939_v57  ;;  %v9926_v53 = vadd.f32 %v18641_v26, %v9906_v51  ;;  %v9892_v0 = vmul.f32 %v13722_v25, %v18601_v22 }
0x2487   : > { %12757 = vmatmul.mubr.bf16.vlgmr.msra.gmra.mxu1 %v9940_v10  ;;  %v9893_v19 = vmul.f32 %v13724_v42, %v18604_v16  ;;  %v9931_v31 = vadd.f32 %v18641_v26, %v9911_v47 }
0x2488   : > { %v9938_v3 = vpack.c.bf16 %v9926_v53, %v9925_v50  ;;  %v9912_v29 = vmul.f32 %v18632_v1, %v9892_v0 }
0x2489   : > { %v13726_v17 = vpop.eup %13725  ;;  %v9913_v24 = vmul.f32 %v18632_v1, %v9893_v19 }
0x248a   : > { %12753 = vmatmul.mubr.bf16.gmra.mxu0 %v9938_v3  ;;  %v9932_v55 = vadd.f32 %v18641_v26, %v9912_v29  ;;  %v9894_v5 = vmul.f32 %v13726_v17, %v18614_v41 }
0x248b   : > { %v9933_v16 = vadd.f32 %v18641_v26, %v9913_v24 }
0x248c   : > { %v9941_v22 = vpack.c.bf16 %v9932_v55, %v9931_v31  ;;  %v9914_v21 = vmul.f32 %v18632_v1, %v9894_v5 }
0x248e   : > { %12760 = vmatprep.mubr.bf16.mxu1 %v9941_v22  ;;  %v9934_v34 = vadd.f32 %v18641_v26, %v9914_v21 }
0x2490   : > { %v9942_v32 = vpack.c.bf16 %v9934_v34, %v9933_v16 }
0x2492   : > { %12761 = vmatmul.mubr.bf16.gmra.mxu1 %v9942_v32 }
0x2537   : > { %v12750_v41 = vpop.f32.mrf.mxu0 }
0x2538   : > { %v10057_v1 = vadd.f32 %v12750_v41, %v10783_v60 }
0x2539   : > { %v10048_v26 = vpop.f32.mrf.mxu0 }
0x253a   : > { %10113 = vst [vmem:[%s18692_s21 + $0x10] sm:$0xff] %v10057_v1  ;;  %v10049_v46 = vadd.f32 %v10783_v60, %v10048_v26 }
0x253b   : > { %v12751_v23 = vpop.f32.mrf.mxu0 }
0x253c   : > { %10111 = vst [vmem:[%s18692_s21] sm:$0xff] %v10049_v46  ;;  %v10060_v62 = vadd.f32 %v12751_v23, %v10783_v60 }
0x253d   : > { %v10051_v48 = vpop.f32.mrf.mxu0 }
0x253e   : > { %10114 = vst [vmem:[%s18692_s21 + $0x18] sm:$0xff] %v10060_v62  ;;  %v10052_v36 = vadd.f32 %v10783_v60, %v10051_v48 }
0x2540   : > { %10112 = vst [vmem:[%s18692_s21 + $0x8] sm:$0xff] %v10052_v36 }
0x2547   : > { %v12758_v40 = vpop.f32.mrf.mxu1 }
0x2548   : > { %v10089_v2 = vadd.f32 %v12758_v40, %v10783_v60 }
0x2549   : > { %v10080_v37 = vpop.f32.mrf.mxu1 }
0x254a   : > { %10121 = vst [vmem:[%s18692_s21 + $0x50] sm:$0xff] %v10089_v2  ;;  %v10081_v7 = vadd.f32 %v10783_v60, %v10080_v37  ;;  %v12754_v38 = vpop.f32.mrf.mxu0 }
0x254b   : > { %v10073_v4 = vadd.f32 %v12754_v38, %v10783_v60  ;;  %v12759_v63 = vpop.f32.mrf.mxu1 }
0x254c   : > { %10119 = vst [vmem:[%s18692_s21 + $0x40] sm:$0xff] %v10081_v7  ;;  %v10092_v28 = vadd.f32 %v12759_v63, %v10783_v60  ;;  %v10064_v11 = vpop.f32.mrf.mxu0 }
0x254d   : > { %10117 = vst [vmem:[%s18692_s21 + $0x30] sm:$0xff] %v10073_v4  ;;  %v10065_v59 = vadd.f32 %v10783_v60, %v10064_v11  ;;  %v10083_v33 = vpop.f32.mrf.mxu1 }
0x254e   : > { %10122 = vst [vmem:[%s18692_s21 + $0x58] sm:$0xff] %v10092_v28  ;;  %v10084_v15 = vadd.f32 %v10783_v60, %v10083_v33  ;;  %v12755_v56 = vpop.f32.mrf.mxu0 }
0x254f   : > { %10115 = vst [vmem:[%s18692_s21 + $0x20] sm:$0xff] %v10065_v59  ;;  %v10076_v14 = vadd.f32 %v12755_v56, %v10783_v60 }
0x2550   : > { %10120 = vst [vmem:[%s18692_s21 + $0x48] sm:$0xff] %v10084_v15  ;;  %v10067_v30 = vpop.f32.mrf.mxu0 }
0x2551   : > { %10118 = vst [vmem:[%s18692_s21 + $0x38] sm:$0xff] %v10076_v14  ;;  %v10068_v45 = vadd.f32 %v10783_v60, %v10067_v30 }
0x2552   : > { %v12762_v54 = vpop.f32.mrf.mxu1 }
0x2553   : > { %10116 = vst [vmem:[%s18692_s21 + $0x28] sm:$0xff] %v10068_v45  ;;  %v10105_v58 = vadd.f32 %v12762_v54, %v10783_v60 }
0x2554   : > { %v10096_v12 = vpop.f32.mrf.mxu1 }
0x2555   : > { %10125 = vst [vmem:[%s18692_s21 + $0x70] sm:$0xff] %v10105_v58  ;;  %v10097_v20 = vadd.f32 %v10783_v60, %v10096_v12 }
0x2556   : > { %v12763_v13 = vpop.f32.mrf.mxu1 }
0x2557   : > { %10123 = vst [vmem:[%s18692_s21 + $0x60] sm:$0xff] %v10097_v20  ;;  %v10108_v18 = vadd.f32 %v12763_v13, %v10783_v60 }
0x2558   : > { %v10099_v9 = vpop.f32.mrf.mxu1 }
0x2559   : > { %10126 = vst [vmem:[%s18692_s21 + $0x78] sm:$0xff] %v10108_v18  ;;  %v10100_v43 = vadd.f32 %v10783_v60, %v10099_v9 }
0x255b   : > { %10124 = vst [vmem:[%s18692_s21 + $0x68] sm:$0xff] %v10100_v43 }
0x255c PF: > { %s21_s17 = sadd.s32 1, %s13801_s17  }
0x255d   : > { %p18_p4 = scmp.ge.s32.totalorder %s21_s17, 4  }
0x255f   :  { %20 = sbr.rel (!%p18_p4) target bundleno = 1 (0x1), region = 122 }

</bundles_post_ra>
